<compile_context>
chip_gen: v6e
topology: v6e:2x2x1
jax: 0.10.0
libtpu: 0.0.40
codegen_flags: <defaults>
</compile_context>

<pallas_src>
import functools

import jax
import jax.numpy as jnp
from jax import lax
from jax.experimental import pallas as pl
from jax.experimental.pallas import tpu as pltpu

BN_EPS = 1e-5


def _round_up(x, m):
    return (x + m - 1) // m * m


# ----------------------------------------------------------------------------
# Kernel 1: fused im2col + all-branch conv + BN partial statistics
# ----------------------------------------------------------------------------
def _conv_stats_kernel(x_ref, w_ref, y_ref, stats_ref, *, ho, wo, stride):
    """One image per grid step.

    Builds the 25 taps of the shared 5x5/pad=2 window with static slices of
    the VMEM-resident padded image, accumulates 25 small (M, Cin) x (Cin, ncol)
    matmuls in f32, writes y back as bf16 and emits per-image column sum /
    sum-of-squares (BatchNorm partials) from the f32 accumulator.
    """
    x = x_ref[0]                                      # (Hp, Wp, Cin) bf16
    m = ho * wo
    ncol = y_ref.shape[-1]
    acc = jnp.zeros((m, ncol), jnp.float32)
    for kh in range(5):
        for kw in range(5):
            tap = x[kh:kh + (ho - 1) * stride + 1:stride,
                    kw:kw + (wo - 1) * stride + 1:stride, :]   # (ho, wo, Cin)
            acc = acc + jnp.dot(tap.reshape(m, -1), w_ref[kh * 5 + kw],
                                preferred_element_type=jnp.float32)
    y_ref[0] = acc.astype(y_ref.dtype)
    # BN partials from the f32 accumulator (host reduces the tiny (N,2,ncol)).
    stats_ref[0, 0:1, :] = jnp.sum(acc, axis=0, keepdims=True)
    stats_ref[0, 1:2, :] = jnp.sum(acc * acc, axis=0, keepdims=True)


def conv_all_branches(x_pad, w_all, ho, wo, stride):
    n, hp, wp, cin = x_pad.shape
    ncol = w_all.shape[-1]
    m = ho * wo
    kern = functools.partial(_conv_stats_kernel, ho=ho, wo=wo, stride=stride)
    # Per-step footprint: double-buffered x / y / stats blocks, double-buffered
    # resident weights, plus the f32 accumulator and tap temporaries.
    step_bytes = (2 * hp * wp * cin * 2 + 2 * m * ncol * 2
                  + 2 * 2 * ncol * 4 + 2 * 25 * cin * ncol * 2
                  + 2 * m * ncol * 4)
    vmem_limit = int(min(max(2 * step_bytes, 32 << 20), 64 << 20))
    return pl.pallas_call(
        kern,
        out_shape=(jax.ShapeDtypeStruct((n, m, ncol), jnp.bfloat16),
                   jax.ShapeDtypeStruct((n, 2, ncol), jnp.float32)),
        grid_spec=pltpu.PrefetchScalarGridSpec(
            num_scalar_prefetch=0,
            grid=(n,),
            in_specs=[pl.BlockSpec((1, hp, wp, cin), lambda i: (i, 0, 0, 0)),
                      pl.BlockSpec((25, cin, ncol), lambda i: (0, 0, 0))],
            out_specs=[pl.BlockSpec((1, m, ncol), lambda i: (i, 0, 0)),
                       pl.BlockSpec((1, 2, ncol), lambda i: (i, 0, 0))]),
        compiler_params=pltpu.CompilerParams(
            dimension_semantics=("parallel",),
            vmem_limit_bytes=vmem_limit),
    )(x_pad, w_all)


# ----------------------------------------------------------------------------
# Kernel 2: BN + softmax-weighted branch combination (pure VPU weighted sum)
# ----------------------------------------------------------------------------
def _combine_kernel(y_ref, scale_ref, shift_ref, o_ref):
    cp = o_ref.shape[-1]
    y = y_ref[0].astype(jnp.float32)                  # (m, 4*cp)
    o_ref[0] = (y[:, 0 * cp:1 * cp] * scale_ref[0:1, :]
                + y[:, 1 * cp:2 * cp] * scale_ref[1:2, :]
                + y[:, 2 * cp:3 * cp] * scale_ref[2:3, :]
                + y[:, 3 * cp:4 * cp] * scale_ref[3:4, :]
                + shift_ref[...])


def combine(y, scale, shift):
    n, m, ncol = y.shape
    cp = ncol // 4
    step_bytes = 2 * (m * ncol * 2 + m * cp * 4) + 2 * (4 + 1) * cp * 4
    vmem_limit = int(min(max(2 * step_bytes, 32 << 20), 64 << 20))
    return pl.pallas_call(
        _combine_kernel,
        out_shape=jax.ShapeDtypeStruct((n, m, cp), jnp.float32),
        grid_spec=pltpu.PrefetchScalarGridSpec(
            num_scalar_prefetch=0,
            grid=(n,),
            in_specs=[pl.BlockSpec((1, m, ncol), lambda i: (i, 0, 0)),
                      pl.BlockSpec((4, cp), lambda i: (0, 0)),
                      pl.BlockSpec((1, cp), lambda i: (0, 0))],
            out_specs=pl.BlockSpec((1, m, cp), lambda i: (i, 0, 0))),
        compiler_params=pltpu.CompilerParams(
            dimension_semantics=("parallel",),
            vmem_limit_bytes=vmem_limit),
    )(y, scale, shift)


# ----------------------------------------------------------------------------
# Glue: weight packing + forward wrapper
# ----------------------------------------------------------------------------
def _pack_weights(params, cin, cout, cout_pad):
    """Embed all 4 branch conv weights into one (25, Cin, 4*Cout_pad) bf16
    tensor multiplying the 5x5/pad=2 taps.  Conv biases are intentionally
    dropped (cancelled by training-mode BatchNorm)."""
    def hwio(w_pt):                      # (Cout,Cin,kh,kw) -> (kh,kw,Cin,Cout)
        return jnp.transpose(w_pt, (2, 3, 1, 0)).astype(jnp.float32)

    z55 = jnp.zeros((5, 5, cin, cout), jnp.float32)
    # branch 0: 3x3 pad=1       -> window taps (1..3, 1..3)
    w0 = z55.at[1:4, 1:4].set(hwio(params["w0"]))
    # branch 1: 5x5 pad=2       -> full window
    w1 = hwio(params["w1"])
    # branch 2: 3x3 pad=2 dil=2 -> window taps (0,2,4) x (0,2,4)
    w2 = z55.at[::2, ::2].set(hwio(params["w2"]))
    # branch 3: depthwise3x3 * pointwise1x1 folded to an effective 3x3 conv
    dw = jnp.transpose(params["w3_dw"][:, 0, :, :], (1, 2, 0))   # (3,3,Cin)
    pw = jnp.transpose(params["w3_pw"][:, :, 0, 0], (1, 0))      # (Cin,Cout)
    w3 = z55.at[1:4, 1:4].set(dw[..., None] * pw[None, None, :, :])

    pad = ((0, 0), (0, 0), (0, 0), (0, cout_pad - cout))
    w_all = jnp.concatenate([jnp.pad(w, pad) for w in (w0, w1, w2, w3)],
                            axis=-1)                  # (5,5,Cin,4*Cout_pad)
    return w_all.reshape(25, cin, 4 * cout_pad).astype(jnp.bfloat16)


def mixed_op_forward(x_nchw, params, stride=1):
    x = jnp.transpose(x_nchw, (0, 2, 3, 1))                       # NHWC
    n, h, w, cin = x.shape
    cout = params["w0"].shape[0]
    # Pad Cout so ncol = 4*Cout_pad is a multiple of 128 -> lane-dense y
    # stores and a filled MXU N dimension.  (The final Cout_pad-wide output
    # is still narrow for tiny Cout, but y traffic dominates, so we don't pad
    # the combined output all the way to 128 at 4x extra y bytes.)
    cout_pad = _round_up(cout, 32)
    ncol = 4 * cout_pad

    # Spatial halo padding (pad=2 for the shared 5x5 window) + bf16 cast.
    x_pad = jnp.pad(x, ((0, 0), (2, 2), (2, 2), (0, 0))).astype(jnp.bfloat16)
    ho = (h - 1) // stride + 1
    wo = (w - 1) // stride + 1
    m_total = n * ho * wo

    w_all = _pack_weights(params, cin, cout, cout_pad)

    # Pass 1: fused im2col + all-branch conv + per-image BN partial stats.
    y, stats = conv_all_branches(x_pad, w_all, ho, wo, stride)

    # Global (all-pixel) batch statistics, biased variance, clamped >= 0.
    tot_sum = jnp.sum(stats[:, 0, :], axis=0)
    tot_ssq = jnp.sum(stats[:, 1, :], axis=0)
    mean = (tot_sum / m_total).reshape(4, cout_pad)
    var = jnp.maximum((tot_ssq / m_total).reshape(4, cout_pad) - mean * mean,
                      0.0)

    alpha = jax.nn.softmax(params["arch_weights"].astype(jnp.float32))
    gamma = jnp.stack([params[f"bn{i}_g"] for i in range(4)])     # (4, Cout)
    beta = jnp.stack([params[f"bn{i}_b"] for i in range(4)])      # (4, Cout)
    gamma = jnp.pad(gamma, ((0, 0), (0, cout_pad - cout)))
    beta = jnp.pad(beta, ((0, 0), (0, cout_pad - cout)))
    inv = lax.rsqrt(var + BN_EPS)
    scale = (alpha[:, None] * gamma * inv).astype(jnp.float32)    # (4, Cp)
    shift = jnp.sum(alpha[:, None] * (beta - gamma * mean * inv),
                    axis=0, keepdims=True).astype(jnp.float32)    # (1, Cp)

    # Pass 2: BN + softmax-weighted combine (VPU weighted sum over y).
    out = combine(y, scale, shift)                    # (N, Ho*Wo, Cout_pad)
    out = out.reshape(n, ho, wo, cout_pad)[..., :cout]
    return jnp.transpose(out, (0, 3, 1, 2))                       # NCHW


# ----------------------------------------------------------------------------
# Pure-JAX reference (full-precision, with biases) for validation
# ----------------------------------------------------------------------------
def mixed_op_reference(x_nchw, params, stride=1):
    x = jnp.transpose(x_nchw, (0, 2, 3, 1)).astype(jnp.float32)
    dn = ("NHWC", "HWIO", "NHWC")
    alpha = jax.nn.softmax(params["arch_weights"])

    def bn(y, g, b):
        mu = jnp.mean(y, axis=(0, 1, 2), keepdims=True)
        var = jnp.mean(jnp.square(y - mu), axis=(0, 1, 2), keepdims=True)
        return (y - mu) * lax.rsqrt(var + BN_EPS) * g + b

    def conv(xx, w_pt, b_pt, pad, dil, groups=1, st=stride):
        w = jnp.transpose(w_pt, (2, 3, 1, 0))  # HWIO
        y = lax.conv_general_dilated(
            xx, w, (st, st), [(pad, pad), (pad, pad)],
            rhs_dilation=(dil, dil), dimension_numbers=dn,
            feature_group_count=groups, precision=lax.Precision.HIGHEST)
        return y + b_pt

    y0 = bn(conv(x, params["w0"], params["b0"], 1, 1),
            params["bn0_g"], params["bn0_b"])
    y1 = bn(conv(x, params["w1"], params["b1"], 2, 1),
            params["bn1_g"], params["bn1_b"])
    y2 = bn(conv(x, params["w2"], params["b2"], 2, 2),
            params["bn2_g"], params["bn2_b"])
    yd = conv(x, params["w3_dw"], params["b3_dw"], 1, 1, groups=x.shape[-1])
    yp = conv(yd, params["w3_pw"], params["b3_pw"], 0, 1, st=1)
    y3 = bn(yp, params["bn3_g"], params["bn3_b"])
    out = alpha[0] * y0 + alpha[1] * y1 + alpha[2] * y2 + alpha[3] * y3
    return jnp.transpose(out, (0, 3, 1, 2))


# ----------------------------------------------------------------------------
if __name__ == "__main__":
    key = jax.random.PRNGKey(0)
    N, Cin, Cout, H, W = 2, 4, 8, 16, 16
    ks = jax.random.split(key, 20)

    def rnd(k, shape, scale=0.1):
        return scale * jax.random.normal(k, shape, jnp.float32)

    params = {
        "w0": rnd(ks[0], (Cout, Cin, 3, 3)),
        "b0": rnd(ks[1], (Cout,)),
        "w1": rnd(ks[2], (Cout, Cin, 5, 5)),
        "b1": rnd(ks[3], (Cout,)),
        "w2": rnd(ks[4], (Cout, Cin, 3, 3)),
        "b2": rnd(ks[5], (Cout,)),
        "w3_dw": rnd(ks[6], (Cin, 1, 3, 3)),
        "b3_dw": rnd(ks[7], (Cin,)),
        "w3_pw": rnd(ks[8], (Cout, Cin, 1, 1)),
        "b3_pw": rnd(ks[9], (Cout,)),
        "bn0_g": 1.0 + rnd(ks[10], (Cout,)),
        "bn0_b": rnd(ks[11], (Cout,)),
        "bn1_g": 1.0 + rnd(ks[12], (Cout,)),
        "bn1_b": rnd(ks[13], (Cout,)),
        "bn2_g": 1.0 + rnd(ks[14], (Cout,)),
        "bn2_b": rnd(ks[15], (Cout,)),
        "bn3_g": 1.0 + rnd(ks[16], (Cout,)),
        "bn3_b": rnd(ks[17], (Cout,)),
        "arch_weights": jax.random.normal(ks[18], (4,), jnp.float32),
    }

    x = jax.random.normal(ks[19], (N, Cin, H, W), jnp.float32)

    out = jax.block_until_ready(mixed_op_forward(x, params, stride=1))
    ref = jax.block_until_ready(mixed_op_reference(x, params, stride=1))

    assert out.shape == (N, Cout, H, W), out.shape
    # Tolerance accounts for bf16 operands / single-pass bf16 MXU vs the
    # HIGHEST-precision f32 reference; BN re-normalizes, keeping errors small.
    assert jnp.allclose(out, ref, atol=3e-2, rtol=3e-2), (
        float(jnp.max(jnp.abs(out - ref))))

    print("KERNEL_OK")
</pallas_src>

<mosaic_0001>
module attributes {stable_mosaic.version = 11 : i64} {
  func.func @_conv_stats_kernel(%arg0: i32, %arg1: memref<1x20x20x4xbf16, #tpu.memory_space<vmem>>, %arg2: memref<25x4x128xbf16, #tpu.memory_space<vmem>>, %arg3: memref<1x256x128xbf16, #tpu.memory_space<vmem>>, %arg4: memref<1x2x128xf32, #tpu.memory_space<vmem>>) attributes {dimension_semantics = [#tpu.dimension_semantics<parallel>], iteration_bounds = array<i64: 2>, scalar_prefetch = 0 : i64, scratch_operands = 0 : i64, tpu.core_type = #tpu.core_type<tc>, window_params = [{transform_indices = @transform_0, window_bounds = array<i64: 1, 20, 20, 4>}, {pipeline_mode = #tpu.pipeline_mode<synchronous>, transform_indices = @transform_1, window_bounds = array<i64: 25, 4, 128>}, {transform_indices = @transform_2, window_bounds = array<i64: 1, 256, 128>}, {transform_indices = @transform_3, window_bounds = array<i64: 1, 2, 128>}]} {
    %c0 = arith.constant 0 : index
    %c0_0 = arith.constant 0 : index
    %c0_1 = arith.constant 0 : index
    %c0_2 = arith.constant 0 : index
    %0 = vector.load %arg1[%c0, %c0_0, %c0_1, %c0_2] : memref<1x20x20x4xbf16, #tpu.memory_space<vmem>>, vector<1x20x20x4xbf16>
    %1 = vector.shape_cast %0 : vector<1x20x20x4xbf16> to vector<20x20x4xbf16>
    %cst = arith.constant 0.000000e+00 : f32
    %2 = vector.broadcast %cst : f32 to vector<256x128xf32>
    %3 = vector.extract_strided_slice %1 {offsets = [0, 0, 0], sizes = [16, 16, 4], strides = [1, 1, 1]} : vector<20x20x4xbf16> to vector<16x16x4xbf16>
    %4 = vector.shape_cast %3 : vector<16x16x4xbf16> to vector<256x4xbf16>
    %c0_3 = arith.constant 0 : index
    %c0_4 = arith.constant 0 : index
    %c0_5 = arith.constant 0 : index
    %5 = vector.load %arg2[%c0_3, %c0_4, %c0_5] : memref<25x4x128xbf16, #tpu.memory_space<vmem>>, vector<1x4x128xbf16>
    %6 = vector.shape_cast %5 : vector<1x4x128xbf16> to vector<4x128xbf16>
    %cst_6 = arith.constant dense<0.000000e+00> : vector<256x128xf32>
    %7 = tpu.matmul %4, %6, %cst_6 {dimension_numbers = #tpu.dot_dimension_numbers<[1], [0], [0], [1], [0, 0, 1, 1], [], []>} : vector<256x4xbf16>, vector<4x128xbf16>, vector<256x128xf32> -> vector<256x128xf32>
    %8 = arith.addf %2, %7 : vector<256x128xf32>
    %9 = vector.extract_strided_slice %1 {offsets = [0, 1, 0], sizes = [16, 16, 4], strides = [1, 1, 1]} : vector<20x20x4xbf16> to vector<16x16x4xbf16>
    %10 = vector.shape_cast %9 : vector<16x16x4xbf16> to vector<256x4xbf16>
    %c1 = arith.constant 1 : index
    %c0_7 = arith.constant 0 : index
    %c0_8 = arith.constant 0 : index
    %11 = vector.load %arg2[%c1, %c0_7, %c0_8] : memref<25x4x128xbf16, #tpu.memory_space<vmem>>, vector<1x4x128xbf16>
    %12 = vector.shape_cast %11 : vector<1x4x128xbf16> to vector<4x128xbf16>
    %cst_9 = arith.constant dense<0.000000e+00> : vector<256x128xf32>
    %13 = tpu.matmul %10, %12, %cst_9 {dimension_numbers = #tpu.dot_dimension_numbers<[1], [0], [0], [1], [0, 0, 1, 1], [], []>} : vector<256x4xbf16>, vector<4x128xbf16>, vector<256x128xf32> -> vector<256x128xf32>
    %14 = arith.addf %8, %13 : vector<256x128xf32>
    %15 = vector.extract_strided_slice %1 {offsets = [0, 2, 0], sizes = [16, 16, 4], strides = [1, 1, 1]} : vector<20x20x4xbf16> to vector<16x16x4xbf16>
    %16 = vector.shape_cast %15 : vector<16x16x4xbf16> to vector<256x4xbf16>
    %c2 = arith.constant 2 : index
    %c0_10 = arith.constant 0 : index
    %c0_11 = arith.constant 0 : index
    %17 = vector.load %arg2[%c2, %c0_10, %c0_11] : memref<25x4x128xbf16, #tpu.memory_space<vmem>>, vector<1x4x128xbf16>
    %18 = vector.shape_cast %17 : vector<1x4x128xbf16> to vector<4x128xbf16>
    %cst_12 = arith.constant dense<0.000000e+00> : vector<256x128xf32>
    %19 = tpu.matmul %16, %18, %cst_12 {dimension_numbers = #tpu.dot_dimension_numbers<[1], [0], [0], [1], [0, 0, 1, 1], [], []>} : vector<256x4xbf16>, vector<4x128xbf16>, vector<256x128xf32> -> vector<256x128xf32>
    %20 = arith.addf %14, %19 : vector<256x128xf32>
    %21 = vector.extract_strided_slice %1 {offsets = [0, 3, 0], sizes = [16, 16, 4], strides = [1, 1, 1]} : vector<20x20x4xbf16> to vector<16x16x4xbf16>
    %22 = vector.shape_cast %21 : vector<16x16x4xbf16> to vector<256x4xbf16>
    %c3 = arith.constant 3 : index
    %c0_13 = arith.constant 0 : index
    %c0_14 = arith.constant 0 : index
    %23 = vector.load %arg2[%c3, %c0_13, %c0_14] : memref<25x4x128xbf16, #tpu.memory_space<vmem>>, vector<1x4x128xbf16>
    %24 = vector.shape_cast %23 : vector<1x4x128xbf16> to vector<4x128xbf16>
    %cst_15 = arith.constant dense<0.000000e+00> : vector<256x128xf32>
    %25 = tpu.matmul %22, %24, %cst_15 {dimension_numbers = #tpu.dot_dimension_numbers<[1], [0], [0], [1], [0, 0, 1, 1], [], []>} : vector<256x4xbf16>, vector<4x128xbf16>, vector<256x128xf32> -> vector<256x128xf32>
    %26 = arith.addf %20, %25 : vector<256x128xf32>
    %27 = vector.extract_strided_slice %1 {offsets = [0, 4, 0], sizes = [16, 16, 4], strides = [1, 1, 1]} : vector<20x20x4xbf16> to vector<16x16x4xbf16>
    %28 = vector.shape_cast %27 : vector<16x16x4xbf16> to vector<256x4xbf16>
    %c4 = arith.constant 4 : index
    %c0_16 = arith.constant 0 : index
    %c0_17 = arith.constant 0 : index
    %29 = vector.load %arg2[%c4, %c0_16, %c0_17] : memref<25x4x128xbf16, #tpu.memory_space<vmem>>, vector<1x4x128xbf16>
    %30 = vector.shape_cast %29 : vector<1x4x128xbf16> to vector<4x128xbf16>
    %cst_18 = arith.constant dense<0.000000e+00> : vector<256x128xf32>
    %31 = tpu.matmul %28, %30, %cst_18 {dimension_numbers = #tpu.dot_dimension_numbers<[1], [0], [0], [1], [0, 0, 1, 1], [], []>} : vector<256x4xbf16>, vector<4x128xbf16>, vector<256x128xf32> -> vector<256x128xf32>
    %32 = arith.addf %26, %31 : vector<256x128xf32>
    %33 = vector.extract_strided_slice %1 {offsets = [1, 0, 0], sizes = [16, 16, 4], strides = [1, 1, 1]} : vector<20x20x4xbf16> to vector<16x16x4xbf16>
    %34 = vector.shape_cast %33 : vector<16x16x4xbf16> to vector<256x4xbf16>
    %c5 = arith.constant 5 : index
    %c0_19 = arith.constant 0 : index
    %c0_20 = arith.constant 0 : index
    %35 = vector.load %arg2[%c5, %c0_19, %c0_20] : memref<25x4x128xbf16, #tpu.memory_space<vmem>>, vector<1x4x128xbf16>
    %36 = vector.shape_cast %35 : vector<1x4x128xbf16> to vector<4x128xbf16>
    %cst_21 = arith.constant dense<0.000000e+00> : vector<256x128xf32>
    %37 = tpu.matmul %34, %36, %cst_21 {dimension_numbers = #tpu.dot_dimension_numbers<[1], [0], [0], [1], [0, 0, 1, 1], [], []>} : vector<256x4xbf16>, vector<4x128xbf16>, vector<256x128xf32> -> vector<256x128xf32>
    %38 = arith.addf %32, %37 : vector<256x128xf32>
    %39 = vector.extract_strided_slice %1 {offsets = [1, 1, 0], sizes = [16, 16, 4], strides = [1, 1, 1]} : vector<20x20x4xbf16> to vector<16x16x4xbf16>
    %40 = vector.shape_cast %39 : vector<16x16x4xbf16> to vector<256x4xbf16>
    %c6 = arith.constant 6 : index
    %c0_22 = arith.constant 0 : index
    %c0_23 = arith.constant 0 : index
    %41 = vector.load %arg2[%c6, %c0_22, %c0_23] : memref<25x4x128xbf16, #tpu.memory_space<vmem>>, vector<1x4x128xbf16>
    %42 = vector.shape_cast %41 : vector<1x4x128xbf16> to vector<4x128xbf16>
    %cst_24 = arith.constant dense<0.000000e+00> : vector<256x128xf32>
    %43 = tpu.matmul %40, %42, %cst_24 {dimension_numbers = #tpu.dot_dimension_numbers<[1], [0], [0], [1], [0, 0, 1, 1], [], []>} : vector<256x4xbf16>, vector<4x128xbf16>, vector<256x128xf32> -> vector<256x128xf32>
    %44 = arith.addf %38, %43 : vector<256x128xf32>
    %45 = vector.extract_strided_slice %1 {offsets = [1, 2, 0], sizes = [16, 16, 4], strides = [1, 1, 1]} : vector<20x20x4xbf16> to vector<16x16x4xbf16>
    %46 = vector.shape_cast %45 : vector<16x16x4xbf16> to vector<256x4xbf16>
    %c7 = arith.constant 7 : index
    %c0_25 = arith.constant 0 : index
    %c0_26 = arith.constant 0 : index
    %47 = vector.load %arg2[%c7, %c0_25, %c0_26] : memref<25x4x128xbf16, #tpu.memory_space<vmem>>, vector<1x4x128xbf16>
    %48 = vector.shape_cast %47 : vector<1x4x128xbf16> to vector<4x128xbf16>
    %cst_27 = arith.constant dense<0.000000e+00> : vector<256x128xf32>
    %49 = tpu.matmul %46, %48, %cst_27 {dimension_numbers = #tpu.dot_dimension_numbers<[1], [0], [0], [1], [0, 0, 1, 1], [], []>} : vector<256x4xbf16>, vector<4x128xbf16>, vector<256x128xf32> -> vector<256x128xf32>
    %50 = arith.addf %44, %49 : vector<256x128xf32>
    %51 = vector.extract_strided_slice %1 {offsets = [1, 3, 0], sizes = [16, 16, 4], strides = [1, 1, 1]} : vector<20x20x4xbf16> to vector<16x16x4xbf16>
    %52 = vector.shape_cast %51 : vector<16x16x4xbf16> to vector<256x4xbf16>
    %c8 = arith.constant 8 : index
    %c0_28 = arith.constant 0 : index
    %c0_29 = arith.constant 0 : index
    %53 = vector.load %arg2[%c8, %c0_28, %c0_29] : memref<25x4x128xbf16, #tpu.memory_space<vmem>>, vector<1x4x128xbf16>
    %54 = vector.shape_cast %53 : vector<1x4x128xbf16> to vector<4x128xbf16>
    %cst_30 = arith.constant dense<0.000000e+00> : vector<256x128xf32>
    %55 = tpu.matmul %52, %54, %cst_30 {dimension_numbers = #tpu.dot_dimension_numbers<[1], [0], [0], [1], [0, 0, 1, 1], [], []>} : vector<256x4xbf16>, vector<4x128xbf16>, vector<256x128xf32> -> vector<256x128xf32>
    %56 = arith.addf %50, %55 : vector<256x128xf32>
    %57 = vector.extract_strided_slice %1 {offsets = [1, 4, 0], sizes = [16, 16, 4], strides = [1, 1, 1]} : vector<20x20x4xbf16> to vector<16x16x4xbf16>
    %58 = vector.shape_cast %57 : vector<16x16x4xbf16> to vector<256x4xbf16>
    %c9 = arith.constant 9 : index
    %c0_31 = arith.constant 0 : index
    %c0_32 = arith.constant 0 : index
    %59 = vector.load %arg2[%c9, %c0_31, %c0_32] : memref<25x4x128xbf16, #tpu.memory_space<vmem>>, vector<1x4x128xbf16>
    %60 = vector.shape_cast %59 : vector<1x4x128xbf16> to vector<4x128xbf16>
    %cst_33 = arith.constant dense<0.000000e+00> : vector<256x128xf32>
    %61 = tpu.matmul %58, %60, %cst_33 {dimension_numbers = #tpu.dot_dimension_numbers<[1], [0], [0], [1], [0, 0, 1, 1], [], []>} : vector<256x4xbf16>, vector<4x128xbf16>, vector<256x128xf32> -> vector<256x128xf32>
    %62 = arith.addf %56, %61 : vector<256x128xf32>
    %63 = vector.extract_strided_slice %1 {offsets = [2, 0, 0], sizes = [16, 16, 4], strides = [1, 1, 1]} : vector<20x20x4xbf16> to vector<16x16x4xbf16>
    %64 = vector.shape_cast %63 : vector<16x16x4xbf16> to vector<256x4xbf16>
    %c10 = arith.constant 10 : index
    %c0_34 = arith.constant 0 : index
    %c0_35 = arith.constant 0 : index
    %65 = vector.load %arg2[%c10, %c0_34, %c0_35] : memref<25x4x128xbf16, #tpu.memory_space<vmem>>, vector<1x4x128xbf16>
    %66 = vector.shape_cast %65 : vector<1x4x128xbf16> to vector<4x128xbf16>
    %cst_36 = arith.constant dense<0.000000e+00> : vector<256x128xf32>
    %67 = tpu.matmul %64, %66, %cst_36 {dimension_numbers = #tpu.dot_dimension_numbers<[1], [0], [0], [1], [0, 0, 1, 1], [], []>} : vector<256x4xbf16>, vector<4x128xbf16>, vector<256x128xf32> -> vector<256x128xf32>
    %68 = arith.addf %62, %67 : vector<256x128xf32>
    %69 = vector.extract_strided_slice %1 {offsets = [2, 1, 0], sizes = [16, 16, 4], strides = [1, 1, 1]} : vector<20x20x4xbf16> to vector<16x16x4xbf16>
    %70 = vector.shape_cast %69 : vector<16x16x4xbf16> to vector<256x4xbf16>
    %c11 = arith.constant 11 : index
    %c0_37 = arith.constant 0 : index
    %c0_38 = arith.constant 0 : index
    %71 = vector.load %arg2[%c11, %c0_37, %c0_38] : memref<25x4x128xbf16, #tpu.memory_space<vmem>>, vector<1x4x128xbf16>
    %72 = vector.shape_cast %71 : vector<1x4x128xbf16> to vector<4x128xbf16>
    %cst_39 = arith.constant dense<0.000000e+00> : vector<256x128xf32>
    %73 = tpu.matmul %70, %72, %cst_39 {dimension_numbers = #tpu.dot_dimension_numbers<[1], [0], [0], [1], [0, 0, 1, 1], [], []>} : vector<256x4xbf16>, vector<4x128xbf16>, vector<256x128xf32> -> vector<256x128xf32>
    %74 = arith.addf %68, %73 : vector<256x128xf32>
    %75 = vector.extract_strided_slice %1 {offsets = [2, 2, 0], sizes = [16, 16, 4], strides = [1, 1, 1]} : vector<20x20x4xbf16> to vector<16x16x4xbf16>
    %76 = vector.shape_cast %75 : vector<16x16x4xbf16> to vector<256x4xbf16>
    %c12 = arith.constant 12 : index
    %c0_40 = arith.constant 0 : index
    %c0_41 = arith.constant 0 : index
    %77 = vector.load %arg2[%c12, %c0_40, %c0_41] : memref<25x4x128xbf16, #tpu.memory_space<vmem>>, vector<1x4x128xbf16>
    %78 = vector.shape_cast %77 : vector<1x4x128xbf16> to vector<4x128xbf16>
    %cst_42 = arith.constant dense<0.000000e+00> : vector<256x128xf32>
    %79 = tpu.matmul %76, %78, %cst_42 {dimension_numbers = #tpu.dot_dimension_numbers<[1], [0], [0], [1], [0, 0, 1, 1], [], []>} : vector<256x4xbf16>, vector<4x128xbf16>, vector<256x128xf32> -> vector<256x128xf32>
    %80 = arith.addf %74, %79 : vector<256x128xf32>
    %81 = vector.extract_strided_slice %1 {offsets = [2, 3, 0], sizes = [16, 16, 4], strides = [1, 1, 1]} : vector<20x20x4xbf16> to vector<16x16x4xbf16>
    %82 = vector.shape_cast %81 : vector<16x16x4xbf16> to vector<256x4xbf16>
    %c13 = arith.constant 13 : index
    %c0_43 = arith.constant 0 : index
    %c0_44 = arith.constant 0 : index
    %83 = vector.load %arg2[%c13, %c0_43, %c0_44] : memref<25x4x128xbf16, #tpu.memory_space<vmem>>, vector<1x4x128xbf16>
    %84 = vector.shape_cast %83 : vector<1x4x128xbf16> to vector<4x128xbf16>
    %cst_45 = arith.constant dense<0.000000e+00> : vector<256x128xf32>
    %85 = tpu.matmul %82, %84, %cst_45 {dimension_numbers = #tpu.dot_dimension_numbers<[1], [0], [0], [1], [0, 0, 1, 1], [], []>} : vector<256x4xbf16>, vector<4x128xbf16>, vector<256x128xf32> -> vector<256x128xf32>
    %86 = arith.addf %80, %85 : vector<256x128xf32>
    %87 = vector.extract_strided_slice %1 {offsets = [2, 4, 0], sizes = [16, 16, 4], strides = [1, 1, 1]} : vector<20x20x4xbf16> to vector<16x16x4xbf16>
    %88 = vector.shape_cast %87 : vector<16x16x4xbf16> to vector<256x4xbf16>
    %c14 = arith.constant 14 : index
    %c0_46 = arith.constant 0 : index
    %c0_47 = arith.constant 0 : index
    %89 = vector.load %arg2[%c14, %c0_46, %c0_47] : memref<25x4x128xbf16, #tpu.memory_space<vmem>>, vector<1x4x128xbf16>
    %90 = vector.shape_cast %89 : vector<1x4x128xbf16> to vector<4x128xbf16>
    %cst_48 = arith.constant dense<0.000000e+00> : vector<256x128xf32>
    %91 = tpu.matmul %88, %90, %cst_48 {dimension_numbers = #tpu.dot_dimension_numbers<[1], [0], [0], [1], [0, 0, 1, 1], [], []>} : vector<256x4xbf16>, vector<4x128xbf16>, vector<256x128xf32> -> vector<256x128xf32>
    %92 = arith.addf %86, %91 : vector<256x128xf32>
    %93 = vector.extract_strided_slice %1 {offsets = [3, 0, 0], sizes = [16, 16, 4], strides = [1, 1, 1]} : vector<20x20x4xbf16> to vector<16x16x4xbf16>
    %94 = vector.shape_cast %93 : vector<16x16x4xbf16> to vector<256x4xbf16>
    %c15 = arith.constant 15 : index
    %c0_49 = arith.constant 0 : index
    %c0_50 = arith.constant 0 : index
    %95 = vector.load %arg2[%c15, %c0_49, %c0_50] : memref<25x4x128xbf16, #tpu.memory_space<vmem>>, vector<1x4x128xbf16>
    %96 = vector.shape_cast %95 : vector<1x4x128xbf16> to vector<4x128xbf16>
    %cst_51 = arith.constant dense<0.000000e+00> : vector<256x128xf32>
    %97 = tpu.matmul %94, %96, %cst_51 {dimension_numbers = #tpu.dot_dimension_numbers<[1], [0], [0], [1], [0, 0, 1, 1], [], []>} : vector<256x4xbf16>, vector<4x128xbf16>, vector<256x128xf32> -> vector<256x128xf32>
    %98 = arith.addf %92, %97 : vector<256x128xf32>
    %99 = vector.extract_strided_slice %1 {offsets = [3, 1, 0], sizes = [16, 16, 4], strides = [1, 1, 1]} : vector<20x20x4xbf16> to vector<16x16x4xbf16>
    %100 = vector.shape_cast %99 : vector<16x16x4xbf16> to vector<256x4xbf16>
    %c16 = arith.constant 16 : index
    %c0_52 = arith.constant 0 : index
    %c0_53 = arith.constant 0 : index
    %101 = vector.load %arg2[%c16, %c0_52, %c0_53] : memref<25x4x128xbf16, #tpu.memory_space<vmem>>, vector<1x4x128xbf16>
    %102 = vector.shape_cast %101 : vector<1x4x128xbf16> to vector<4x128xbf16>
    %cst_54 = arith.constant dense<0.000000e+00> : vector<256x128xf32>
    %103 = tpu.matmul %100, %102, %cst_54 {dimension_numbers = #tpu.dot_dimension_numbers<[1], [0], [0], [1], [0, 0, 1, 1], [], []>} : vector<256x4xbf16>, vector<4x128xbf16>, vector<256x128xf32> -> vector<256x128xf32>
    %104 = arith.addf %98, %103 : vector<256x128xf32>
    %105 = vector.extract_strided_slice %1 {offsets = [3, 2, 0], sizes = [16, 16, 4], strides = [1, 1, 1]} : vector<20x20x4xbf16> to vector<16x16x4xbf16>
    %106 = vector.shape_cast %105 : vector<16x16x4xbf16> to vector<256x4xbf16>
    %c17 = arith.constant 17 : index
    %c0_55 = arith.constant 0 : index
    %c0_56 = arith.constant 0 : index
    %107 = vector.load %arg2[%c17, %c0_55, %c0_56] : memref<25x4x128xbf16, #tpu.memory_space<vmem>>, vector<1x4x128xbf16>
    %108 = vector.shape_cast %107 : vector<1x4x128xbf16> to vector<4x128xbf16>
    %cst_57 = arith.constant dense<0.000000e+00> : vector<256x128xf32>
    %109 = tpu.matmul %106, %108, %cst_57 {dimension_numbers = #tpu.dot_dimension_numbers<[1], [0], [0], [1], [0, 0, 1, 1], [], []>} : vector<256x4xbf16>, vector<4x128xbf16>, vector<256x128xf32> -> vector<256x128xf32>
    %110 = arith.addf %104, %109 : vector<256x128xf32>
    %111 = vector.extract_strided_slice %1 {offsets = [3, 3, 0], sizes = [16, 16, 4], strides = [1, 1, 1]} : vector<20x20x4xbf16> to vector<16x16x4xbf16>
    %112 = vector.shape_cast %111 : vector<16x16x4xbf16> to vector<256x4xbf16>
    %c18 = arith.constant 18 : index
    %c0_58 = arith.constant 0 : index
    %c0_59 = arith.constant 0 : index
    %113 = vector.load %arg2[%c18, %c0_58, %c0_59] : memref<25x4x128xbf16, #tpu.memory_space<vmem>>, vector<1x4x128xbf16>
    %114 = vector.shape_cast %113 : vector<1x4x128xbf16> to vector<4x128xbf16>
    %cst_60 = arith.constant dense<0.000000e+00> : vector<256x128xf32>
    %115 = tpu.matmul %112, %114, %cst_60 {dimension_numbers = #tpu.dot_dimension_numbers<[1], [0], [0], [1], [0, 0, 1, 1], [], []>} : vector<256x4xbf16>, vector<4x128xbf16>, vector<256x128xf32> -> vector<256x128xf32>
    %116 = arith.addf %110, %115 : vector<256x128xf32>
    %117 = vector.extract_strided_slice %1 {offsets = [3, 4, 0], sizes = [16, 16, 4], strides = [1, 1, 1]} : vector<20x20x4xbf16> to vector<16x16x4xbf16>
    %118 = vector.shape_cast %117 : vector<16x16x4xbf16> to vector<256x4xbf16>
    %c19 = arith.constant 19 : index
    %c0_61 = arith.constant 0 : index
    %c0_62 = arith.constant 0 : index
    %119 = vector.load %arg2[%c19, %c0_61, %c0_62] : memref<25x4x128xbf16, #tpu.memory_space<vmem>>, vector<1x4x128xbf16>
    %120 = vector.shape_cast %119 : vector<1x4x128xbf16> to vector<4x128xbf16>
    %cst_63 = arith.constant dense<0.000000e+00> : vector<256x128xf32>
    %121 = tpu.matmul %118, %120, %cst_63 {dimension_numbers = #tpu.dot_dimension_numbers<[1], [0], [0], [1], [0, 0, 1, 1], [], []>} : vector<256x4xbf16>, vector<4x128xbf16>, vector<256x128xf32> -> vector<256x128xf32>
    %122 = arith.addf %116, %121 : vector<256x128xf32>
    %123 = vector.extract_strided_slice %1 {offsets = [4, 0, 0], sizes = [16, 16, 4], strides = [1, 1, 1]} : vector<20x20x4xbf16> to vector<16x16x4xbf16>
    %124 = vector.shape_cast %123 : vector<16x16x4xbf16> to vector<256x4xbf16>
    %c20 = arith.constant 20 : index
    %c0_64 = arith.constant 0 : index
    %c0_65 = arith.constant 0 : index
    %125 = vector.load %arg2[%c20, %c0_64, %c0_65] : memref<25x4x128xbf16, #tpu.memory_space<vmem>>, vector<1x4x128xbf16>
    %126 = vector.shape_cast %125 : vector<1x4x128xbf16> to vector<4x128xbf16>
    %cst_66 = arith.constant dense<0.000000e+00> : vector<256x128xf32>
    %127 = tpu.matmul %124, %126, %cst_66 {dimension_numbers = #tpu.dot_dimension_numbers<[1], [0], [0], [1], [0, 0, 1, 1], [], []>} : vector<256x4xbf16>, vector<4x128xbf16>, vector<256x128xf32> -> vector<256x128xf32>
    %128 = arith.addf %122, %127 : vector<256x128xf32>
    %129 = vector.extract_strided_slice %1 {offsets = [4, 1, 0], sizes = [16, 16, 4], strides = [1, 1, 1]} : vector<20x20x4xbf16> to vector<16x16x4xbf16>
    %130 = vector.shape_cast %129 : vector<16x16x4xbf16> to vector<256x4xbf16>
    %c21 = arith.constant 21 : index
    %c0_67 = arith.constant 0 : index
    %c0_68 = arith.constant 0 : index
    %131 = vector.load %arg2[%c21, %c0_67, %c0_68] : memref<25x4x128xbf16, #tpu.memory_space<vmem>>, vector<1x4x128xbf16>
    %132 = vector.shape_cast %131 : vector<1x4x128xbf16> to vector<4x128xbf16>
    %cst_69 = arith.constant dense<0.000000e+00> : vector<256x128xf32>
    %133 = tpu.matmul %130, %132, %cst_69 {dimension_numbers = #tpu.dot_dimension_numbers<[1], [0], [0], [1], [0, 0, 1, 1], [], []>} : vector<256x4xbf16>, vector<4x128xbf16>, vector<256x128xf32> -> vector<256x128xf32>
    %134 = arith.addf %128, %133 : vector<256x128xf32>
    %135 = vector.extract_strided_slice %1 {offsets = [4, 2, 0], sizes = [16, 16, 4], strides = [1, 1, 1]} : vector<20x20x4xbf16> to vector<16x16x4xbf16>
    %136 = vector.shape_cast %135 : vector<16x16x4xbf16> to vector<256x4xbf16>
    %c22 = arith.constant 22 : index
    %c0_70 = arith.constant 0 : index
    %c0_71 = arith.constant 0 : index
    %137 = vector.load %arg2[%c22, %c0_70, %c0_71] : memref<25x4x128xbf16, #tpu.memory_space<vmem>>, vector<1x4x128xbf16>
    %138 = vector.shape_cast %137 : vector<1x4x128xbf16> to vector<4x128xbf16>
    %cst_72 = arith.constant dense<0.000000e+00> : vector<256x128xf32>
    %139 = tpu.matmul %136, %138, %cst_72 {dimension_numbers = #tpu.dot_dimension_numbers<[1], [0], [0], [1], [0, 0, 1, 1], [], []>} : vector<256x4xbf16>, vector<4x128xbf16>, vector<256x128xf32> -> vector<256x128xf32>
    %140 = arith.addf %134, %139 : vector<256x128xf32>
    %141 = vector.extract_strided_slice %1 {offsets = [4, 3, 0], sizes = [16, 16, 4], strides = [1, 1, 1]} : vector<20x20x4xbf16> to vector<16x16x4xbf16>
    %142 = vector.shape_cast %141 : vector<16x16x4xbf16> to vector<256x4xbf16>
    %c23 = arith.constant 23 : index
    %c0_73 = arith.constant 0 : index
    %c0_74 = arith.constant 0 : index
    %143 = vector.load %arg2[%c23, %c0_73, %c0_74] : memref<25x4x128xbf16, #tpu.memory_space<vmem>>, vector<1x4x128xbf16>
    %144 = vector.shape_cast %143 : vector<1x4x128xbf16> to vector<4x128xbf16>
    %cst_75 = arith.constant dense<0.000000e+00> : vector<256x128xf32>
    %145 = tpu.matmul %142, %144, %cst_75 {dimension_numbers = #tpu.dot_dimension_numbers<[1], [0], [0], [1], [0, 0, 1, 1], [], []>} : vector<256x4xbf16>, vector<4x128xbf16>, vector<256x128xf32> -> vector<256x128xf32>
    %146 = arith.addf %140, %145 : vector<256x128xf32>
    %147 = vector.extract_strided_slice %1 {offsets = [4, 4, 0], sizes = [16, 16, 4], strides = [1, 1, 1]} : vector<20x20x4xbf16> to vector<16x16x4xbf16>
    %148 = vector.shape_cast %147 : vector<16x16x4xbf16> to vector<256x4xbf16>
    %c24 = arith.constant 24 : index
    %c0_76 = arith.constant 0 : index
    %c0_77 = arith.constant 0 : index
    %149 = vector.load %arg2[%c24, %c0_76, %c0_77] : memref<25x4x128xbf16, #tpu.memory_space<vmem>>, vector<1x4x128xbf16>
    %150 = vector.shape_cast %149 : vector<1x4x128xbf16> to vector<4x128xbf16>
    %cst_78 = arith.constant dense<0.000000e+00> : vector<256x128xf32>
    %151 = tpu.matmul %148, %150, %cst_78 {dimension_numbers = #tpu.dot_dimension_numbers<[1], [0], [0], [1], [0, 0, 1, 1], [], []>} : vector<256x4xbf16>, vector<4x128xbf16>, vector<256x128xf32> -> vector<256x128xf32>
    %152 = arith.addf %146, %151 : vector<256x128xf32>
    %153 = arith.truncf %152 : vector<256x128xf32> to vector<256x128xbf16>
    %c0_79 = arith.constant 0 : index
    %c0_80 = arith.constant 0 : index
    %c0_81 = arith.constant 0 : index
    %154 = vector.load %arg3[%c0_79, %c0_80, %c0_81] : memref<1x256x128xbf16, #tpu.memory_space<vmem>>, vector<1x256x128xbf16>
    %155 = vector.shape_cast %154 : vector<1x256x128xbf16> to vector<256x128xbf16>
    %156 = vector.shape_cast %153 : vector<256x128xbf16> to vector<1x256x128xbf16>
    tpu.vector_store %arg3[%c0_79, %c0_80, %c0_81], %156 {strides = array<i32>} : memref<1x256x128xbf16, #tpu.memory_space<vmem>>, vector<1x256x128xbf16>,
    %cst_82 = arith.constant dense<0.000000e+00> : vector<128xf32>
    %157 = vector.multi_reduction <add>, %152, %cst_82 [0] : vector<256x128xf32> to vector<128xf32>
    %158 = vector.shape_cast %157 : vector<128xf32> to vector<1x128xf32>
    %c0_83 = arith.constant 0 : index
    %c0_84 = arith.constant 0 : index
    %c0_85 = arith.constant 0 : index
    %159 = vector.load %arg4[%c0_83, %c0_84, %c0_85] : memref<1x2x128xf32, #tpu.memory_space<vmem>>, vector<1x1x128xf32>
    %160 = vector.shape_cast %159 : vector<1x1x128xf32> to vector<1x128xf32>
    %161 = vector.shape_cast %158 : vector<1x128xf32> to vector<1x1x128xf32>
    tpu.vector_store %arg4[%c0_83, %c0_84, %c0_85], %161 {strides = array<i32>} : memref<1x2x128xf32, #tpu.memory_space<vmem>>, vector<1x1x128xf32>,
    %162 = arith.mulf %152, %152 : vector<256x128xf32>
    %cst_86 = arith.constant dense<0.000000e+00> : vector<128xf32>
    %163 = vector.multi_reduction <add>, %162, %cst_86 [0] : vector<256x128xf32> to vector<128xf32>
    %164 = vector.shape_cast %163 : vector<128xf32> to vector<1x128xf32>
    %c0_87 = arith.constant 0 : index
    %c1_88 = arith.constant 1 : index
    %c0_89 = arith.constant 0 : index
    %165 = vector.load %arg4[%c0_87, %c1_88, %c0_89] : memref<1x2x128xf32, #tpu.memory_space<vmem>>, vector<1x1x128xf32>
    %166 = vector.shape_cast %165 : vector<1x1x128xf32> to vector<1x128xf32>
    %167 = vector.shape_cast %164 : vector<1x128xf32> to vector<1x1x128xf32>
    tpu.vector_store %arg4[%c0_87, %c1_88, %c0_89], %167 {strides = array<i32>} : memref<1x2x128xf32, #tpu.memory_space<vmem>>, vector<1x1x128xf32>,
    return
  }
  func.func @transform_0(%arg0: i32) -> (i32, i32, i32, i32) {
    %c0_i32 = arith.constant 0 : i32
    %c0_i32_0 = arith.constant 0 : i32
    %c0_i32_1 = arith.constant 0 : i32
    %c0_i32_2 = arith.constant 0 : i32
    return %arg0, %c0_i32, %c0_i32_0, %c0_i32_1 : i32, i32, i32, i32
  }
  func.func @transform_1(%arg0: i32) -> (i32, i32, i32) {
    %c0_i32 = arith.constant 0 : i32
    %c0_i32_0 = arith.constant 0 : i32
    %c0_i32_1 = arith.constant 0 : i32
    %c0_i32_2 = arith.constant 0 : i32
    return %c0_i32, %c0_i32_0, %c0_i32_1 : i32, i32, i32
  }
  func.func @transform_2(%arg0: i32) -> (i32, i32, i32) {
    %c0_i32 = arith.constant 0 : i32
    %c0_i32_0 = arith.constant 0 : i32
    %c0_i32_1 = arith.constant 0 : i32
    return %arg0, %c0_i32, %c0_i32_0 : i32, i32, i32
  }
  func.func @transform_3(%arg0: i32) -> (i32, i32, i32) {
    %c0_i32 = arith.constant 0 : i32
    %c0_i32_0 = arith.constant 0 : i32
    %c0_i32_1 = arith.constant 0 : i32
    return %arg0, %c0_i32, %c0_i32_0 : i32, i32, i32
  }
}

</mosaic_0001>

<bundles_post_ra>
// kernel: tpu_custom_call.1
= control target key start
LH: loop header
LB: loop body
LE: loop exit
PB: predicated region body
PF: predicated region fallthrough
CT: control target
= control target key end

     0   :  { %9 = vsyncpa [#allocation3], 0  ;;  %s13380_s0 = inlined_call_operand.vmem [shape: bf16[2,20,20,4], index: 0, kind: input, shape index: {}]   ;;  %s13381_s1 = inlined_call_operand.vmem [shape: bf16[25,4,128], index: 1, kind: input, shape index: {}]   ;;  %s13382_s2 = inlined_call_operand.hbm [shape: bf16[2,256,128], index: 2, kind: output, shape index: {0}]   ;;  %s13383_s3 = inlined_call_operand.hbm [shape: f32[2,2,128], index: 3, kind: output, shape index: {1}]  }
   0x1   :  { %11 = vsyncpa [#allocation3 + $0x1], 0 }
   0x2   :  { %12 = vsyncpa [#allocation5], 0 }
   0x3   :  { %14 = vsyncpa [#allocation5 + $0x1], 0  ;;  %s9511_s12 = smov 0   ;;  %s9513_s13 = smov 0  }
   0x4   :  { %s9515_s14 = smov 0   ;;  %s9517_s15 = smov 0  }
   0x5 LB: > { %s9532_s16 = sadd.s32 4294967295, %s9485_s15   ;;  %s7254_s17 = sadd.s32 4294967294, %s9485_s15   ;;  %s9485_s15 = sphi %s9517_s15, %s14358_s15   ;;  %s9481_s14 = sphi %s9515_s14, %s14357_s14   ;;  %s9477_s13 = sphi %s9513_s13, %s14356_s13   ;;  %s9473_s12 = sphi %s9511_s12, %s14355_s12  }
   0x6   : > { %s9536_s18 = sadd.s32 1, %s9485_s15   ;;  %s74_s19 = sadd.s32 1, %s9481_s14 }
   0x7   : > { %s71_s20 = ssub.s32 %s9485_s15, %s9536_s18  ;;  %p84_p0 = scmp.ne.s32.totalorder %s9481_s14, %s9477_s13 }
   0x8   : > { %p72_p1 = scmp.eq.s32.totalorder %s71_s20, 0  ;;  %p85_p2 = scmp.eq.s32.totalorder %s9532_s16, 1 }
   0x9   : > { %p90_p3 = scmp.ne.s32.totalorder %s9477_s13, %s9473_s12  ;;  %p91_p4 = scmp.eq.s32.totalorder %s7254_s17, 1 }
   0xa   : > { %s9547_s21 = scalar_select %p72_p1, %s9481_s14, %s74_s19  }
   0xb   : > { %p9549_p5 = por %p85_p2, %p84_p0  ;;  %p9553_p6 = por %p91_p4, %p90_p3 }
   0xc   : > { %p7257_p7 = scmp.ge.s32.totalorder %s9485_s15, 1  ;;  %p146_p8 = scmp.lt.s32.totalorder %s9485_s15, 3 }
   0xe   : > { %p147_p9 = pnand %p7257_p7, %p146_p8 }
  0x10   : > { %150 = sbr.rel (%p147_p9) target bundleno = 1138 (0x472), region = 28 }
  0x15   : > { %v7261_v0 = vld [vmem:[%s13381_s1 + $0x2] sm:$0x3]  ;;  %vm728_vm0 = vcmask 1041408   ;;  %p175_p10 = scmp.lt.s32.totalorder %s9532_s16, 1  ;;  %v9569_v2 = vld [vmem:[%s13381_s1] sm:$0x3] }
  0x16   : > { %9270 = vmatprep.subr.msk.bf16.mxu1 %vm728_vm0, %v7261_v0  ;;  %9269 = vmatprep.subr.msk.bf16.mxu0 %vm728_vm0, %v7261_v0  ;;  %v730_v1 = vsel %vm728_vm0, %v7261_v0, 0  ;;  %v9575_v3 = vld [vmem:[%s13381_s1 + $0x4] sm:$0x3]  ;;  %vm242_vm1 = vsmask.f32 3328  ;;  %vm679_vm3 = vcmask 31744  }
  0x17   : > { %9268 = vmatpush3.bf16.msra.mxu1 %v730_v1  ;;  %8418 = vmatpush3.bf16.msra.mxu0 %v730_v1  ;;  %s176_s28 = scalar_select %p175_p10, %s9532_s16, 1  ;;  %vm243_vm2 = vsmask.f32 7440  ;;  %v13729_v24 = vmov 0  ;;  %vm1201_vm5 = vcmask 1042432   ;;  %vm1202_vm6 = vcmask 1046532  }
  0x18   : > { %9271 = vmatprep.subr.msk.bf16.mxu1 %vm728_vm0, %v9569_v2  ;;  %9272 = vmatprep.subr.msk.bf16.mxu0 %vm728_vm0, %v9575_v3  ;;  %vm9624_vm4 = vmor %vm242_vm1, %vm243_vm2  ;;  %vm1610_vm8 = vsmask.f32 2304  ;;  %vm1611_vm9 = vsmask.f32 6416  ;;  %vm2148_vm11 = vcmask 1045508   ;;  %s7896_s29 = sshll.u32 %s9532_s16, 11 }
  0x19   : > { %s9295_s4 = smul.u32 240, %s176_s28  ;;  %v13730_v24 = vsel %vm9624_vm4, 4294967295, %v13729_v24  ;;  %vm10103_vm7 = vmor %vm1201_vm5, %vm1202_vm6  ;;  %s13316_s6 = scalar_lea.hbm %s13382_s2, %s7896_s29 }
  0x1a   : > { %13731 = vst [vmem:[#allocation11_spill] sm:$0xff] %v13730_v24  ;;  %vm10371_vm10 = vmor %vm1610_vm8, %vm1611_vm9  ;;  %s9487_s10 = smov [#allocation2]  }
  0x1b   : > { %s9584_s7 = scalar_lea.vmem %s13380_s0, %s9295_s4  ;;  %vm10464_vm12 = vmor %vm728_vm0, %vm2148_vm11  ;;  %s9399_s11 = sshll.u32 %s9487_s10, 4  ;;  %s9400_s11 = int_to_ptr.vmem [resolvable:$false] %s9399_s11 }
  0x1c   : > { %v9587_v4 = vld [vmem:[%s9584_s7] sm:$0xf]  ;;  %v9590_v5 = vld [vmem:[%s9584_s7 + $0x4] sm:$0xf]  ;;  %v9593_v6 = vld [vmem:[%s9584_s7 + $0x8] sm:$0x3] }
  0x1d   : > { %v13427_v7 = vshrl.u32 %v9587_v4, 16  ;;  %v13423_v8 = vshll.u32 %v9587_v4, 16  ;;  %v13420_v9 = vshll.u32 %v9590_v5, 16  ;;  %v13421_v10 = vshrl.u32 %v9590_v5, 16  ;;  %v9600_v11 = vld [vmem:[%s9584_s7 + $0x60] sm:$0xf] }
  0x1e   : > { %13726 = vst [vmem:[#allocation8_spill] sm:$0xff] %v9600_v11  ;;  %v13417_v12 = vshll.u32 %v9593_v6, 16  ;;  %v13398_v13 = vshrl.u32 %v9600_v11, 16  ;;  %v9613_v18 = vld [vmem:[%s9584_s7 + $0x64] sm:$0xf]  ;;  %v13397_v26 = vshll.u32 %v9600_v11, 16 }
  0x1f   : > { %v248_v14 = vrot.slane %v13427_v7, 4  ;;  %v251_v15 = vrot.slane %v13423_v8, 5  ;;  %v257_v16 = vrot.slane %v13420_v9, 5  ;;  %v261_v17 = vrot.slane %v13421_v10, 4  ;;  %13727 = vst [vmem:[#allocation9_spill] sm:$0xff] %v9613_v18  ;;  %s9401_s17 = scalar_lea.vmem %s9400_s11, 4096 }
  0x20   : > { %v9616_v19 = vld [vmem:[%s9584_s7 + $0x68] sm:$0x3]  ;;  %v9619_v20 = vld [vmem:[%s9584_s7 + $0xc] sm:$0xf]  ;;  %v267_v23 = vrot.slane %v13417_v12, 5  ;;  %v440_v25 = vrot.slane %v13398_v13, 4 }
  0x21   : > { %13728 = vst [vmem:[#allocation10_spill] sm:$0xff] %v9616_v19  ;;  %v252_v21 = vor.u32 %v251_v15, %v248_v14  ;;  %v262_v22 = vor.u32 %v261_v17, %v257_v16  ;;  %v13395_v27 = vshll.u32 %v9613_v18, 16  ;;  %v13396_v28 = vshrl.u32 %v9613_v18, 16  ;;  %v9635_v32 = vld [vmem:[%s9584_s7 + $0x10] sm:$0xf] }
  0x22   : > { %v13394_v31 = vshll.u32 %v9616_v19, 16  ;;  %v270_v33 = vshrl.u32 %v9619_v20, 16  ;;  %v443_v34 = vrot.slane %v13397_v26, 5  ;;  %v9645_v37 = vld [vmem:[%s9584_s7 + $0x14] sm:$0x3]  ;;  %v273_v38 = vshll.u32 %v9619_v20, 16 }
  0x23   : > { %v253_v29 = vrot.slane %v252_v21, 4  ;;  %v263_v30 = vrot.slane %v262_v22, 4  ;;  %v449_v35 = vrot.slane %v13395_v27, 5  ;;  %v453_v36 = vrot.slane %v13396_v28, 4  ;;  %v9663_v58 = vld [vmem:[%s9584_s7 + $0x6c] sm:$0xf] }
  0x24   : > { %v459_v41 = vrot.slane %v13394_v31, 5  ;;  %v272_v42 = vrot.slane %v270_v33, 4  ;;  %v444_v44 = vor.u32 %v443_v34, %v440_v25  ;;  %v275_v46 = vrot.slane %v273_v38, 5  ;;  %13732 = vst [vmem:[#allocation12_spill] sm:$0xff] %v9663_v58  ;;  %v9676_v15 = vld [vmem:[%s9584_s7 + $0x70] sm:$0xf] }
  0x25   : > { %v258_v39 = vsel %vm9624_vm4, %v253_v29, %v257_v16  ;;  %v268_v40 = vsel %vm9624_vm4, %v263_v30, %v267_v23  ;;  %v454_v45 = vor.u32 %v453_v36, %v449_v35  ;;  %v279_v47 = vshll.u32 %v9635_v32, 16  ;;  %13734 = vst [vmem:[#allocation14_spill] sm:$0xff] %v9676_v15  ;;  %v9679_v16 = vld [vmem:[%s9584_s7 + $0x74] sm:$0x3]  ;;  %v9694_v30 = vld [vmem:[%s9584_s7 + $0x18] sm:$0xf] }
  0x26   : > { %v7262_v43 = vcombine.low %v258_v39, %v268_v40  ;;  %v283_v48 = vshrl.u32 %v9635_v32, 16  ;;  %v13418_v49 = vshll.u32 %v9645_v37, 16  ;;  %v9657_v50 = vrot.slane %v270_v33, 5  ;;  %13735 = vst [vmem:[#allocation15_spill] sm:$0xff] %v9679_v16  ;;  %v9702_v36 = vld [vmem:[%s9584_s7 + $0x1c] sm:$0xf] }
  0x27   : > { %v445_v51 = vrot.slane %v444_v44, 4  ;;  %v455_v52 = vrot.slane %v454_v45, 4  ;;  %v276_v53 = vor.u32 %v275_v46, %v272_v42  ;;  %v9660_v54 = vrot.slane %v273_v38, 6  ;;  %v9714_v42 = vld [vmem:[%s9584_s7 + $0x78] sm:$0xf] }
  0x28   : > { %8419 = vmatprep.mubr.msk.bf16.mxu0 %vm679_vm3, %v7262_v43  ;;  %v281_v55 = vrot.slane %v279_v47, 5  ;;  %v285_v56 = vrot.slane %v283_v48, 4  ;;  %v1632_v57 = vrot.slane %v283_v48, 5  ;;  %v291_v1 = vrot.slane %v13418_v49, 5  ;;  %13736 = vst [vmem:[#allocation16_spill] sm:$0xff] %v9714_v42 }
  0x29   : > { %v450_v59 = vsel %vm9624_vm4, %v445_v51, %v449_v35  ;;  %v460_v60 = vsel %vm9624_vm4, %v455_v52, %v459_v41  ;;  %v277_v61 = vrot.slane %v276_v53, 4  ;;  %v1633_v14 = vrot.slane %v279_v47, 6  ;;  %v9711_v41 = vld [vmem:[%s9584_s7 + $0x20] sm:$0x3]  ;;  %v9730_v52 = vld [vmem:[%s13381_s1 + $0x8] sm:$0x3] }
  0x2a   : > { %v9671_v63 = vcombine.low %v450_v59, %v460_v60  ;;  %v286_v0 = vor.u32 %v285_v56, %v281_v55  ;;  %v13389_v17 = vshrl.u32 %v9663_v58, 16  ;;  %v9684_v21 = vsel %vm728_vm0, %v9569_v2, 0  ;;  %v9825_v26 = vld [vmem:[%s9584_s7 + $0x8c] sm:$0x3]  ;;  %v9919_v7 = vld [vmem:[%s9584_s7 + $0x44] sm:$0x3] }
  0x2b   : > { %v282_v22 = vsel %vm9624_vm4, %v277_v61, %v281_v55  ;;  %v9690_v25 = vor.u32 %v1633_v14, %v1632_v57  ;;  %v13388_v29 = vshll.u32 %v9663_v58, 16  ;;  %v13385_v2 = vshll.u32 %v9676_v15, 16  ;;  %v9737_v57 = vld [vmem:[%s9584_s7 + $0x7c] sm:$0xf]  ;;  %v9747_v14 = vld [vmem:[%s9584_s7 + $0x80] sm:$0x3] }
  0x2c   : > { %13733 = vst [vmem:[#allocation13_spill] sm:$0xff] %v9671_v63  ;;  %8435 = vmatprep.mubr.msk.bf16.mxu1 %vm679_vm3, %v9671_v63  ;;  %v287_v23 = vrot.slane %v286_v0, 4  ;;  %v464_v33 = vrot.slane %v13389_v17, 4  ;;  %v13387_v34 = vshrl.u32 %v9676_v15, 16  ;;  %v13384_v35 = vshll.u32 %v9679_v16, 16  ;;  %13738 = vst [vmem:[#allocation18_spill] sm:$0xff] %v9737_v57 }
  0x2d   : > { %v467_v39 = vrot.slane %v13388_v29, 5  ;;  %v1415_v40 = vsel %vm728_vm0, %v9575_v3, 0  ;;  %v473_v44 = vrot.slane %v13385_v2, 5  ;;  %v13411_v3 = vshrl.u32 %v9694_v30, 16  ;;  %13739 = vst [vmem:[#allocation19_spill] sm:$0xff] %v9747_v14  ;;  %13744 = vst [vmem:[#allocation24_spill] sm:$0xff] %v9825_v26 }
  0x2e   : > { %v292_v38 = vsel %vm9624_vm4, %v287_v23, %v291_v1  ;;  %v477_v45 = vrot.slane %v13387_v34, 4  ;;  %v483_v46 = vrot.slane %v13384_v35, 5  ;;  %v13410_v48 = vshll.u32 %v9694_v30, 16  ;;  %v9769_v29 = vld [vmem:[%s9584_s7 + $0x28] sm:$0xf]  ;;  %13753 = vst [vmem:[#allocation33_spill] sm:$0xff] %v9919_v7 }
  0x2f   : > { %v9716_v43 = vcombine.low %v282_v22, %v292_v38  ;;  %v468_v47 = vor.u32 %v467_v39, %v464_v33  ;;  %v13408_v51 = vshll.u32 %v9702_v36, 16  ;;  %v13409_v55 = vshrl.u32 %v9702_v36, 16 }
  0x30   : > { %v478_v53 = vor.u32 %v477_v45, %v473_v44  ;;  %v13403_v56 = vshll.u32 %v9711_v41, 16  ;;  %v13386_v59 = vshrl.u32 %v9714_v42, 16  ;;  %v296_v61 = vrot.slane %v13411_v3, 4 }
  0x31   : > { %13737 = vst [vmem:[#allocation17_spill] sm:$0xff] %v9716_v43  ;;  %8420 = vmatmul.mubr.msk.bf16.vlgmr.msra.gmra.mxu0 %vm679_vm3, %v9716_v43  ;;  %v469_v60 = vrot.slane %v468_v47, 4  ;;  %v299_v0 = vrot.slane %v13410_v48, 5  ;;  %v305_v1 = vrot.slane %v13408_v51, 5  ;;  %v309_v23 = vrot.slane %v13409_v55, 4 }
  0x32   : > { %8486 = vmatpush3.bf16.msra.mxu0 %v1415_v40  ;;  %v479_v22 = vrot.slane %v478_v53, 4  ;;  %v315_v33 = vrot.slane %v13403_v56, 5  ;;  %v488_v38 = vrot.slane %v13386_v59, 4  ;;  %v13393_v45 = vshll.u32 %v9714_v42, 16  ;;  %v9762_v53 = vld [vmem:[%s9584_s7 + $0x24] sm:$0xf] }
  0x33   : > { %9274 = vmatprep.subr.msk.bf16.mxu0 %vm728_vm0, %v9730_v52  ;;  %v474_v39 = vsel %vm9624_vm4, %v469_v60, %v473_v44  ;;  %v300_v40 = vor.u32 %v299_v0, %v296_v61  ;;  %v13390_v47 = vshll.u32 %v9737_v57, 16  ;;  %v310_v2 = vor.u32 %v309_v23, %v305_v1 }
  0x34   : > { %v484_v35 = vsel %vm9624_vm4, %v479_v22, %v483_v46  ;;  %v13392_v59 = vshrl.u32 %v9737_v57, 16  ;;  %v13391_v34 = vshll.u32 %v9747_v14, 16  ;;  %v491_v61 = vrot.slane %v13393_v45, 5 }
  0x35   : > { %v9771_v44 = vcombine.low %v474_v39, %v484_v35  ;;  %v301_v60 = vrot.slane %v300_v40, 4  ;;  %v497_v0 = vrot.slane %v13390_v47, 5  ;;  %v311_v17 = vrot.slane %v310_v2, 4  ;;  %v9785_v35 = vld [vmem:[%s13381_s1 + $0x6] sm:$0x3] }
  0x36   : > { %v501_v46 = vrot.slane %v13392_v59, 4  ;;  %v507_v22 = vrot.slane %v13391_v34, 5  ;;  %v13402_v23 = vshrl.u32 %v9762_v53, 16  ;;  %v492_v39 = vor.u32 %v491_v61, %v488_v38  ;;  %v9792_v40 = vld [vmem:[%s9584_s7 + $0x2c] sm:$0x3] }
  0x37   : > { %13740 = vst [vmem:[#allocation20_spill] sm:$0xff] %v9771_v44  ;;  %8436 = vmatmul.mubr.msk.bf16.vlgmr.msra.gmra.mxu1 %vm679_vm3, %v9771_v44  ;;  %v306_v2 = vsel %vm9624_vm4, %v301_v60, %v305_v1  ;;  %v13401_v47 = vshll.u32 %v9762_v53, 16  ;;  %v13399_v34 = vshll.u32 %v9769_v29, 16  ;;  %v9797_v59 = vld [vmem:[%s9584_s7 + $0x84] sm:$0xf]  ;;  %v316_v45 = vsel %vm9624_vm4, %v311_v17, %v315_v33 }
  0x38   : > { %13741 = vst [vmem:[#allocation21_spill] sm:$0xff] %v9797_v59  ;;  %8452 = vmatpush3.bf16.msra.mxu1 %v9684_v21  ;;  %v502_v31 = vor.u32 %v501_v46, %v497_v0  ;;  %v320_v27 = vrot.slane %v13402_v23, 4  ;;  %v13400_v1 = vshrl.u32 %v9769_v29, 16  ;;  %v9806_v38 = vld [vmem:[%s9584_s7 + $0x88] sm:$0xf]  ;;  %v9808_v60 = vcombine.low %v306_v2, %v316_v45 }
  0x39   : > { %13742 = vst [vmem:[#allocation22_spill] sm:$0xff] %v9806_v38  ;;  %v493_v61 = vrot.slane %v492_v39, 4  ;;  %v323_v28 = vrot.slane %v13401_v47, 5  ;;  %v329_v21 = vrot.slane %v13399_v34, 5  ;;  %9273 = vmatprep.subr.msk.bf16.mxu1 %vm728_vm0, %v9785_v35  ;;  %v13404_v46 = vshll.u32 %v9792_v40, 16 }
  0x3a   : > { %13743 = vst [vmem:[#allocation23_spill] sm:$0xff] %v9808_v60  ;;  %v503_v17 = vrot.slane %v502_v31, 4  ;;  %v333_v33 = vrot.slane %v13400_v1, 4  ;;  %v13405_v45 = vshrl.u32 %v9797_v59, 16  ;;  %8423 = vmatprep.mubr.msk.bf16.mxu0 %vm679_vm3, %v9808_v60  ;;  %v13406_v13 = vshll.u32 %v9797_v59, 16 }
  0x3b   : > { %v498_v2 = vsel %vm9624_vm4, %v493_v61, %v497_v0  ;;  %v324_v39 = vor.u32 %v323_v28, %v320_v27  ;;  %v13407_v31 = vshll.u32 %v9806_v38, 16  ;;  %v9830_v34 = vld [vmem:[%s9584_s7 + $0x30] sm:$0xf]  ;;  %v339_v23 = vrot.slane %v13404_v46, 5  ;;  %v9839_v27 = vld [vmem:[%s9584_s7 + $0x34] sm:$0xf] }
  0x3c   : > { %v508_v1 = vsel %vm9624_vm4, %v503_v17, %v507_v22  ;;  %v334_v47 = vor.u32 %v333_v33, %v329_v21  ;;  %v512_v0 = vrot.slane %v13405_v45, 4  ;;  %v515_v56 = vrot.slane %v13406_v13, 5 }
  0x3d   : > { %v9841_v28 = vcombine.low %v498_v2, %v508_v1  ;;  %v325_v61 = vrot.slane %v324_v39, 4  ;;  %v521_v22 = vrot.slane %v13407_v31, 5  ;;  %v13412_v33 = vshrl.u32 %v9806_v38, 16  ;;  %v9855_v39 = vld [vmem:[%s9584_s7 + $0x38] sm:$0x3] }
  0x3e   : > { %v335_v17 = vrot.slane %v334_v47, 4  ;;  %v13413_v46 = vshll.u32 %v9825_v26, 16  ;;  %v13416_v45 = vshrl.u32 %v9830_v34, 16  ;;  %v516_v2 = vor.u32 %v515_v56, %v512_v0  ;;  %v9860_v47 = vld [vmem:[%s9584_s7 + $0x90] sm:$0xf] }
  0x3f   : > { %13745 = vst [vmem:[#allocation25_spill] sm:$0xff] %v9841_v28  ;;  %8439 = vmatprep.mubr.msk.bf16.mxu1 %vm679_vm3, %v9841_v28  ;;  %v330_v1 = vsel %vm9624_vm4, %v325_v61, %v329_v21  ;;  %v13414_v13 = vshll.u32 %v9830_v34, 16  ;;  %v13415_v31 = vshll.u32 %v9839_v27, 16  ;;  %13746 = vst [vmem:[#allocation26_spill] sm:$0xff] %v9860_v47  ;;  %v525_v55 = vrot.slane %v13412_v33, 4 }
  0x40   : > { %v340_v51 = vsel %vm9624_vm4, %v335_v17, %v339_v23  ;;  %v531_v48 = vrot.slane %v13413_v46, 5  ;;  %v344_v56 = vrot.slane %v13416_v45, 4  ;;  %v9871_v21 = vld [vmem:[%s9584_s7 + $0x94] sm:$0xf]  ;;  %v517_v61 = vrot.slane %v516_v2, 4 }
  0x41   : > { %13747 = vst [vmem:[#allocation27_spill] sm:$0xff] %v9871_v21  ;;  %v9873_v0 = vcombine.low %v330_v1, %v340_v51  ;;  %v347_v3 = vrot.slane %v13414_v13, 5  ;;  %v353_v23 = vrot.slane %v13415_v31, 5  ;;  %v526_v17 = vor.u32 %v525_v55, %v521_v22  ;;  %v9887_v2 = vld [vmem:[%s9584_s7 + $0x98] sm:$0x3] }
  0x42   : > { %v13419_v33 = vshrl.u32 %v9839_v27, 16  ;;  %v13422_v46 = vshll.u32 %v9855_v39, 16  ;;  %v13424_v62 = vshrl.u32 %v9860_v47, 16  ;;  %v522_v51 = vsel %vm9624_vm4, %v517_v61, %v521_v22  ;;  %13749 = vst [vmem:[#allocation29_spill] sm:$0xff] %v9887_v2  ;;  %v9892_v31 = vld [vmem:[%s9584_s7 + $0x3c] sm:$0xf] }
  0x43   : > { %13748 = vst [vmem:[#allocation28_spill] sm:$0xff] %v9873_v0  ;;  %8424 = vmatmul.mubr.msk.bf16.gmra.mxu0 %vm679_vm3, %v9873_v0  ;;  %v348_v1 = vor.u32 %v347_v3, %v344_v56  ;;  %v13425_v13 = vshll.u32 %v9860_v47, 16  ;;  %v13426_v55 = vshll.u32 %v9871_v21, 16  ;;  %13750 = vst [vmem:[#allocation30_spill] sm:$0xff] %v9892_v31  ;;  %v527_v45 = vrot.slane %v526_v17, 4 }
  0x44   : > { %v357_v12 = vrot.slane %v13419_v33, 4  ;;  %v363_v49 = vrot.slane %v13422_v46, 5  ;;  %v536_v3 = vrot.slane %v13424_v62, 4  ;;  %v13429_v17 = vshrl.u32 %v9871_v21, 16  ;;  %v9909_v46 = vld [vmem:[%s9584_s7 + $0x40] sm:$0xf] }
  0x45   : > { %v349_v22 = vrot.slane %v348_v1, 4  ;;  %v539_v56 = vrot.slane %v13425_v13, 5  ;;  %v545_v61 = vrot.slane %v13426_v55, 5  ;;  %v532_v33 = vsel %vm9624_vm4, %v527_v45, %v531_v48  ;;  %13751 = vst [vmem:[#allocation31_spill] sm:$0xff] %v9909_v46  ;;  %v9922_v48 = vld [vmem:[%s9584_s7 + $0x9c] sm:$0xf] }
  0x46   : > { %v358_v9 = vor.u32 %v357_v12, %v353_v23  ;;  %v13428_v10 = vshll.u32 %v9887_v2, 16  ;;  %v13430_v8 = vshrl.u32 %v9892_v31, 16  ;;  %v9912_v62 = vcombine.low %v522_v51, %v532_v33  ;;  %13754 = vst [vmem:[#allocation34_spill] sm:$0xff] %v9922_v48  ;;  %v9980_v0 = vld [vmem:[%s9584_s7 + $0x50] sm:$0x3] }
  0x47   : > { %v354_v1 = vsel %vm9624_vm4, %v349_v22, %v353_v23  ;;  %v540_v13 = vor.u32 %v539_v56, %v536_v3  ;;  %v549_v55 = vrot.slane %v13429_v17, 4  ;;  %v13435_v51 = vshll.u32 %v9892_v31, 16  ;;  %13761 = vst [vmem:[#allocation39_spill] sm:$0xff] %v9980_v0 }
  0x48   : > { %13752 = vst [vmem:[#allocation32_spill] sm:$0xff] %v9912_v62  ;;  %v359_v12 = vrot.slane %v358_v9, 4  ;;  %v555_v45 = vrot.slane %v13428_v10, 5  ;;  %v368_v33 = vrot.slane %v13430_v8, 4  ;;  %8440 = vmatmul.mubr.msk.bf16.gmra.mxu1 %vm679_vm3, %v9912_v62  ;;  %v13441_v22 = vshll.u32 %v9909_v46, 16 }
  0x49   : > { %v541_v23 = vrot.slane %v540_v13, 4  ;;  %v550_v3 = vor.u32 %v549_v55, %v545_v61  ;;  %v371_v10 = vrot.slane %v13435_v51, 5  ;;  %v9939_v8 = vld [vmem:[%s9584_s7 + $0xa0] sm:$0xf]  ;;  %v13440_v28 = vshrl.u32 %v9922_v48, 16 }
  0x4a   : > { %v364_v9 = vsel %vm9624_vm4, %v359_v12, %v363_v49  ;;  %13755 = vst [vmem:[#allocation35_spill] sm:$0xff] %v9939_v8  ;;  %v377_v56 = vrot.slane %v13441_v22, 5  ;;  %v9949_v49 = vld [vmem:[%s9584_s7 + $0xa4] sm:$0x3]  ;;  %v13758_v51 = vshrl.u32 %v9909_v46, 16  ;;  %v13759_v44 = vshll.u32 %v9919_v7, 16 }
  0x4b   : > { %v9942_v62 = vcombine.low %v354_v1, %v364_v9  ;;  %v546_v13 = vsel %vm9624_vm4, %v541_v23, %v545_v61  ;;  %v551_v55 = vrot.slane %v550_v3, 4  ;;  %13757 = vst [vmem:[#allocation37_spill] sm:$0xff] %v9949_v49  ;;  %v372_v12 = vor.u32 %v371_v10, %v368_v33  ;;  %v9958_v9 = vld [vmem:[%s9584_s7 + $0x48] sm:$0xf]  ;;  %v9971_v22 = vld [vmem:[%s9584_s7 + $0x4c] sm:$0xf] }
  0x4c   : > { %v381_v17 = vrot.slane %v13758_v51, 4  ;;  %v387_v63 = vrot.slane %v13759_v44, 5  ;;  %v560_v1 = vrot.slane %v13440_v28, 4  ;;  %v13447_v10 = vshll.u32 %v9922_v48, 16  ;;  %v9994_v48 = vld [vmem:[%s9584_s7 + $0xa8] sm:$0xf] }
  0x4d   : > { %13756 = vst [vmem:[#allocation36_spill] sm:$0xff] %v9942_v62  ;;  %8427 = vmatprep.mubr.msk.bf16.mxu0 %vm679_vm3, %v9942_v62  ;;  %v556_v61 = vsel %vm9624_vm4, %v551_v55, %v555_v45  ;;  %v13446_v33 = vshll.u32 %v9939_v8, 16  ;;  %v13450_v51 = vshrl.u32 %v9939_v8, 16  ;;  %v373_v44 = vrot.slane %v372_v12, 4  ;;  %13762 = vst [vmem:[#allocation40_spill] sm:$0xff] %v9994_v48 }
  0x4e   : > { %v9967_v23 = vcombine.low %v546_v13, %v556_v61  ;;  %v382_v3 = vor.u32 %v381_v17, %v377_v56  ;;  %v13456_v28 = vshll.u32 %v9949_v49, 16  ;;  %v563_v62 = vrot.slane %v13447_v10, 5 }
  0x4f   : > { %v569_v45 = vrot.slane %v13446_v33, 5  ;;  %v573_v55 = vrot.slane %v13450_v51, 4  ;;  %v13457_v13 = vshrl.u32 %v9958_v9, 16  ;;  %v378_v17 = vsel %vm9624_vm4, %v373_v44, %v377_v56 }
  0x50   : > { %13760 = vst [vmem:[#allocation38_spill] sm:$0xff] %v9967_v23  ;;  %8443 = vmatprep.mubr.msk.bf16.mxu1 %vm679_vm3, %v9967_v23  ;;  %v383_v12 = vrot.slane %v382_v3, 4  ;;  %v579_v61 = vrot.slane %v13456_v28, 5  ;;  %v13460_v33 = vshll.u32 %v9958_v9, 16  ;;  %v564_v10 = vor.u32 %v563_v62, %v560_v1  ;;  %v10003_v62 = vld [vmem:[%s9584_s7 + $0xac] sm:$0xf] }
  0x51   : > { %v574_v60 = vor.u32 %v573_v55, %v569_v45  ;;  %v392_v51 = vrot.slane %v13457_v13, 4  ;;  %v13464_v43 = vshll.u32 %v9971_v22, 16  ;;  %v13465_v44 = vshrl.u32 %v9971_v22, 16  ;;  %13763 = vst [vmem:[#allocation41_spill] sm:$0xff] %v10003_v62 }
  0x52   : > { %v388_v23 = vsel %vm9624_vm4, %v383_v12, %v387_v63  ;;  %v395_v56 = vrot.slane %v13460_v33, 5  ;;  %v13463_v3 = vshll.u32 %v9980_v0, 16  ;;  %v565_v55 = vrot.slane %v564_v10, 4  ;;  %v10014_v33 = vld [vmem:[%s9584_s7 + $0xb0] sm:$0x3] }
  0x53   : > { %v10005_v1 = vcombine.low %v378_v17, %v388_v23  ;;  %v575_v28 = vrot.slane %v574_v60, 4  ;;  %v401_v13 = vrot.slane %v13464_v43, 5  ;;  %v405_v63 = vrot.slane %v13465_v44, 4  ;;  %13765 = vst [vmem:[#allocation43_spill] sm:$0xff] %v10014_v33  ;;  %v10026_v17 = vld [vmem:[%s9584_s7 + $0x54] sm:$0xf] }
  0x54   : > { %v396_v49 = vor.u32 %v395_v56, %v392_v51  ;;  %v411_v12 = vrot.slane %v13463_v3, 5  ;;  %v13469_v2 = vshrl.u32 %v9994_v48, 16  ;;  %v570_v60 = vsel %vm9624_vm4, %v565_v55, %v569_v45  ;;  %v10033_v45 = vld [vmem:[%s9584_s7 + $0x58] sm:$0xf] }
  0x55   : > { %13764 = vst [vmem:[#allocation42_spill] sm:$0xff] %v10005_v1  ;;  %8428 = vmatmul.mubr.msk.bf16.gmra.mxu0 %vm679_vm3, %v10005_v1  ;;  %v580_v10 = vsel %vm9624_vm4, %v575_v28, %v579_v61  ;;  %v13468_v51 = vshll.u32 %v9994_v48, 16  ;;  %v13470_v23 = vshll.u32 %v10003_v62, 16  ;;  %v406_v43 = vor.u32 %v405_v63, %v401_v13 }
  0x56   : > { %v10028_v56 = vcombine.low %v570_v60, %v580_v10  ;;  %v397_v3 = vrot.slane %v396_v49, 4  ;;  %v584_v44 = vrot.slane %v13469_v2, 4  ;;  %v13477_v55 = vshrl.u32 %v10003_v62, 16  ;;  %v10046_v60 = vld [vmem:[%s9584_s7 + $0x5c] sm:$0x3] }
  0x57   : > { %v587_v28 = vrot.slane %v13468_v51, 5  ;;  %v593_v61 = vrot.slane %v13470_v23, 5  ;;  %v13478_v1 = vshll.u32 %v10014_v33, 16  ;;  %v407_v63 = vrot.slane %v406_v43, 4  ;;  %13767 = vst [vmem:[#allocation45_spill] sm:$0xff] %v10046_v60 }
  0x58   : > { %13766 = vst [vmem:[#allocation44_spill] sm:$0xff] %v10028_v56  ;;  %8444 = vmatmul.mubr.msk.bf16.gmra.mxu1 %vm679_vm3, %v10028_v56  ;;  %v402_v49 = vsel %vm9624_vm4, %v397_v3, %v401_v13  ;;  %v13485_v10 = vshrl.u32 %v10026_v17, 16  ;;  %v13487_v51 = vshll.u32 %v10026_v17, 16  ;;  %v597_v23 = vrot.slane %v13477_v55, 4  ;;  %v10056_v56 = vld [vmem:[%s9584_s7 + $0xb4] sm:$0xf] }
  0x59   : > { %v588_v2 = vor.u32 %v587_v28, %v584_v44  ;;  %v603_v48 = vrot.slane %v13478_v1, 5  ;;  %13768 = vst [vmem:[#allocation46_spill] sm:$0xff] %v10056_v56  ;;  %v412_v43 = vsel %vm9624_vm4, %v407_v63, %v411_v12  ;;  %v13486_v3 = vshrl.u32 %v10033_v45, 16  ;;  %v10066_v28 = vld [vmem:[%s9584_s7 + $0xb8] sm:$0xf] }
  0x5a   : > { %v416_v13 = vrot.slane %v13485_v10, 4  ;;  %v419_v44 = vrot.slane %v13487_v51, 5  ;;  %13769 = vst [vmem:[#allocation47_spill] sm:$0xff] %v10066_v28  ;;  %v10068_v55 = vcombine.low %v402_v49, %v412_v43  ;;  %v598_v8 = vor.u32 %v597_v23, %v593_v61 }
  0x5b   : > { %v589_v1 = vrot.slane %v588_v2, 4  ;;  %v13771_v33 = vshll.u32 %v10033_v45, 16  ;;  %v429_v12 = vrot.slane %v13486_v3, 4  ;;  %v13492_v63 = vshll.u32 %v10046_v60, 16  ;;  %v10081_v2 = vld [vmem:[%s9584_s7 + $0xbc] sm:$0x3] }
  0x5c   : > { %13770 = vst [vmem:[#allocation48_spill] sm:$0xff] %v10068_v55  ;;  %v420_v26 = vor.u32 %v419_v44, %v416_v13  ;;  %v13496_v10 = vshrl.u32 %v10056_v56, 16  ;;  %8431 = vmatprep.mubr.msk.bf16.mxu0 %vm679_vm3, %v10068_v55  ;;  %v599_v43 = vrot.slane %v598_v8, 4  ;;  %v13494_v23 = vshll.u32 %v10056_v56, 16 }
  0x5d   : > { %v425_v62 = vrot.slane %v13771_v33, 5  ;;  %v594_v49 = vsel %vm9624_vm4, %v589_v1, %v593_v61  ;;  %v13493_v33 = vshll.u32 %v10066_v28, 16  ;;  %v435_v3 = vrot.slane %v13492_v63, 5 }
  0x5e   : > { %v421_v13 = vrot.slane %v420_v26, 4  ;;  %v608_v51 = vrot.slane %v13496_v10, 4  ;;  %v604_v55 = vsel %vm9624_vm4, %v599_v43, %v603_v48  ;;  %v611_v8 = vrot.slane %v13494_v23, 5 }
  0x5f   : > { %v430_v44 = vor.u32 %v429_v12, %v425_v62  ;;  %v617_v1 = vrot.slane %v13493_v33, 5  ;;  %v13495_v61 = vshrl.u32 %v10066_v28, 16  ;;  %v10096_v21 = vcombine.low %v594_v49, %v604_v55 }
  0x60   : > { %v426_v26 = vsel %vm9624_vm4, %v421_v13, %v425_v62  ;;  %v13503_v63 = vshll.u32 %v10081_v2, 16  ;;  %v13773_v48 = vmov 0  ;;  %v612_v43 = vor.u32 %v611_v8, %v608_v51 }
  0x61   : > { %13772 = vst [vmem:[#allocation49_spill] sm:$0xff] %v10096_v21  ;;  %v431_v12 = vrot.slane %v430_v44, 4  ;;  %v13774_v48 = vsel %vm10103_vm7, 4294967295, %v13773_v48  ;;  %v621_v33 = vrot.slane %v13495_v61, 4  ;;  %v7326_v23 = vrot.slane %v9587_v4, 9  ;;  %8447 = vmatprep.mubr.msk.bf16.mxu1 %vm679_vm3, %v10096_v21 }
  0x62   : > { %13775 = vst [vmem:[#allocation50_spill] sm:$0xff] %v13774_v48  ;;  %v1206_v55 = vrot.slane %v9590_v5, 5  ;;  %v627_v49 = vrot.slane %v13503_v63, 5  ;;  %v1209_v13 = vrot.slane %v9593_v6, 5  ;;  %v613_v51 = vrot.slane %v612_v43, 4 }
  0x63   : > { %v436_v62 = vsel %vm9624_vm4, %v431_v12, %v435_v3  ;;  %v622_v8 = vor.u32 %v621_v33, %v617_v1  ;;  %v7327_v56 = vrot.slane %v9619_v20, 9  ;;  %v1213_v21 = vrot.slane %v9635_v32, 5 }
  0x64   : > { %v10118_v44 = vcombine.low %v426_v26, %v436_v62  ;;  %v1207_v61 = vsel %vm10103_vm7, %v7326_v23, %v1206_v55  ;;  %v1208_v10 = vrot.slane %v1206_v55, 4  ;;  %v1216_v28 = vrot.slane %v9645_v37, 5 }
  0x65   : > { %v618_v3 = vsel %vm9624_vm4, %v613_v51, %v617_v1  ;;  %v623_v26 = vrot.slane %v622_v8, 4  ;;  %v7328_v12 = vrot.slane %v9694_v30, 9  ;;  %v1214_v23 = vsel %vm10103_vm7, %v7327_v56, %v1213_v21 }
  0x66   : > { %13776 = vst [vmem:[#allocation51_spill] sm:$0xff] %v10118_v44  ;;  %8432 = vmatmul.mubr.msk.bf16.gmra.mxu0 %vm679_vm3, %v10118_v44  ;;  %v1210_v33 = vsel %vm10103_vm7, %v1208_v10, %v1209_v13  ;;  %v1215_v43 = vrot.slane %v1213_v21, 4  ;;  %v1220_v55 = vrot.slane %v9702_v36, 5  ;;  %v7294_v63 = vcombine.low %v9587_v4, %v9590_v5 }
  0x67   : > { %v628_v62 = vsel %vm9624_vm4, %v623_v26, %v627_v49  ;;  %v7343_v44 = vcombine.low %v1207_v61, %v1210_v33  ;;  %v1223_v1 = vrot.slane %v9711_v41, 5  ;;  %v2361_v49 = vsel %vm728_vm0, %v9730_v52, 0 }
  0x68   : > { %v10140_v51 = vcombine.low %v618_v3, %v628_v62  ;;  %v1217_v10 = vsel %vm10103_vm7, %v1215_v43, %v1216_v28  ;;  %v1221_v56 = vsel %vm10103_vm7, %v7328_v12, %v1220_v55  ;;  %v1222_v21 = vrot.slane %v1220_v55, 4  ;;  %v10168_v55 = vld [vmem:[%s13381_s1 + $0xc] sm:$0x3] }
  0x69   : > { %8487 = vmatprep.mubr.msk.bf16.mxu0 %vm679_vm3, %v7343_v44  ;;  %v10147_v13 = vcombine.low %v1214_v23, %v1217_v10  ;;  %v1227_v61 = vrot.slane %v9769_v29, 5  ;;  %v7329_v28 = vrot.slane %v9762_v53, 9  ;;  %v1230_v3 = vrot.slane %v9792_v40, 5  ;;  %13780 = vst [vmem:[#allocation55_spill] sm:$0xff] %v10168_v55 }
  0x6a   : > { %13777 = vst [vmem:[#allocation52_spill] sm:$0xff] %v10140_v51  ;;  %8448 = vmatmul.mubr.msk.bf16.gmra.mxu1 %vm679_vm3, %v10140_v51  ;;  %v1224_v8 = vsel %vm10103_vm7, %v1222_v21, %v1223_v1  ;;  %v1234_v26 = vrot.slane %v9839_v27, 5  ;;  %v7330_v52 = vrot.slane %v9830_v34, 9  ;;  %v1237_v33 = vrot.slane %v9855_v39, 5 }
  0x6b   : > { %13778 = vst [vmem:[#allocation53_spill] sm:$0xff] %v10147_v13  ;;  %8453 = vmatprep.mubr.msk.bf16.mxu1 %vm679_vm3, %v7294_v63  ;;  %v10160_v44 = vcombine.low %v1221_v56, %v1224_v8  ;;  %v1229_v12 = vrot.slane %v1227_v61, 4  ;;  %v1637_v23 = vshrl.u32 %v9645_v37, 16  ;;  %v13781_v62 = vshrl.u32 %v9587_v4, 16 }
  0x6c   : > { %v1236_v43 = vrot.slane %v1234_v26, 4  ;;  %v10176_v63 = vcombine.low %v9619_v20, %v9635_v32  ;;  %v1952_v10 = vsel %vm728_vm0, %v9785_v35, 0  ;;  %v1228_v56 = vsel %vm10103_vm7, %v7329_v28, %v1227_v61 }
  0x6d   : > { %13779 = vst [vmem:[#allocation54_spill] sm:$0xff] %v10160_v44  ;;  %v10172_v1 = vrot.slane %v13781_v62, 5  ;;  %v1231_v21 = vsel %vm10103_vm7, %v1229_v12, %v1230_v3  ;;  %v1241_v8 = vrot.slane %v9909_v46, 5  ;;  %v1248_v20 = vrot.slane %v9971_v22, 5 }
  0x6e   : > { %13782 = vst [vmem:[#allocation56_spill] sm:$0xff] %v10176_v63  ;;  %8488 = vmatmul.mubr.msk.bf16.vlgmr.msra.gmra.mxu0 %vm679_vm3, %v10147_v13  ;;  %v13783_v32 = vshll.u32 %v9587_v4, 16  ;;  %v10196_v35 = vcombine.low %v9694_v30, %v9702_v36  ;;  %v1238_v61 = vsel %vm10103_vm7, %v1236_v43, %v1237_v33  ;;  %v13785_v28 = vshrl.u32 %v9590_v5, 16 }
  0x6f   : > { %8554 = vmatpush3.bf16.msra.mxu0 %v2361_v49  ;;  %8491 = vmatprep.mubr.msk.bf16.mxu0 %vm679_vm3, %v10160_v44  ;;  %v1235_v49 = vsel %vm10103_vm7, %v7330_v52, %v1234_v26  ;;  %v13786_v4 = vshll.u32 %v9590_v5, 16  ;;  %v13787_v44 = vshll.u32 %v9645_v37, 16  ;;  %v10218_v26 = vcombine.low %v1228_v56, %v1231_v21  ;;  %v10226_v5 = vld [vmem:[%s13381_s1 + $0xa] sm:$0x3] }
  0x70   : > { %v10192_v62 = vrot.slane %v13783_v32, 6  ;;  %13784 = vst [vmem:[#allocation57_spill] sm:$0xff] %v10196_v35  ;;  %9276 = vmatprep.subr.msk.bf16.mxu0 %vm728_vm0, %v10168_v55  ;;  %v10206_v3 = vrot.slane %v13785_v28, 5  ;;  %v10212_v32 = vrot.slane %v1637_v23, 5  ;;  %v7331_v52 = vrot.slane %v9892_v31, 9 }
  0x71   : > { %v10210_v12 = vrot.slane %v13786_v4, 6  ;;  %v10216_v13 = vrot.slane %v13787_v44, 6  ;;  %13788 = vst [vmem:[#allocation58_spill] sm:$0xff] %v10218_v26  ;;  %v1244_v33 = vrot.slane %v9919_v7, 5  ;;  %v7332_v43 = vrot.slane %v9958_v9, 9 }
  0x72   : > { %8454 = vmatmul.mubr.msk.bf16.vlgmr.msra.gmra.mxu1 %vm679_vm3, %v10176_v63  ;;  %v10230_v23 = vcombine.low %v1235_v49, %v1238_v61  ;;  %v1243_v37 = vrot.slane %v1241_v8, 4  ;;  %v1250_v44 = vrot.slane %v1248_v20, 4  ;;  %v1251_v56 = vrot.slane %v9980_v0, 5 }
  0x73   : > { %v13790_v21 = vshll.u32 %v9593_v6, 16  ;;  %v13791_v4 = vor.u32 %v9660_v54, %v9657_v50  ;;  %8520 = vmatpush3.bf16.msra.mxu1 %v1952_v10  ;;  %8457 = vmatprep.mubr.msk.bf16.mxu1 %vm679_vm3, %v10196_v35  ;;  %v1255_v49 = vrot.slane %v10033_v45, 5  ;;  %v1262_v61 = vrot.slane %v9613_v18, 5 }
  0x74   : > { %13789 = vst [vmem:[#allocation59_spill] sm:$0xff] %v10230_v23  ;;  %v10255_v50 = vcombine.low %v9830_v34, %v9839_v27  ;;  %9275 = vmatprep.subr.msk.bf16.mxu1 %vm728_vm0, %v10226_v5  ;;  %v1242_v54 = vsel %vm10103_vm7, %v7331_v52, %v1241_v8  ;;  %v1249_v10 = vsel %vm10103_vm7, %v7332_v43, %v1248_v20  ;;  %v1269_v51 = vrot.slane %v9676_v15, 5 }
  0x75   : > { %v10235_v28 = vrot.slane %v13790_v21, 6  ;;  %v10240_v24 = vrot.slane %v13791_v4, 4  ;;  %v10251_v21 = vcombine.low %v9762_v53, %v9769_v29  ;;  %v7333_v4 = vrot.slane %v10026_v17, 9 }
  0x76   : > { %13793 = vst [vmem:[#allocation61_spill] sm:$0xff] %v10255_v50  ;;  %8492 = vmatmul.mubr.msk.bf16.gmra.mxu0 %vm679_vm3, %v10218_v26  ;;  %v1245_v63 = vsel %vm10103_vm7, %v1243_v37, %v1244_v33  ;;  %v1252_v35 = vsel %vm10103_vm7, %v1250_v44, %v1251_v56  ;;  %v1258_v26 = vrot.slane %v10046_v60, 5  ;;  %v1276_v8 = vrot.slane %v9737_v57, 5 }
  0x77   : > { %13792 = vst [vmem:[#allocation60_spill] sm:$0xff] %v10251_v21  ;;  %8495 = vmatprep.mubr.msk.bf16.mxu0 %vm679_vm3, %v10230_v23  ;;  %v1257_v52 = vrot.slane %v1255_v49, 4  ;;  %v7334_v20 = vrot.slane %v9600_v11, 9  ;;  %v1264_v43 = vrot.slane %v1262_v61, 4  ;;  %v1265_v0 = vrot.slane %v9616_v19, 5 }
  0x78   : > { %v10279_v7 = vcombine.low %v9892_v31, %v9909_v46  ;;  %v7335_v23 = vrot.slane %v9663_v58, 9  ;;  %v1271_v33 = vrot.slane %v1269_v51, 4  ;;  %v1272_v37 = vrot.slane %v9679_v16, 5 }
  0x79   : > { %v10283_v44 = vcombine.low %v1242_v54, %v1245_v63  ;;  %v7336_v56 = vrot.slane %v9714_v42, 9  ;;  %v1278_v60 = vrot.slane %v1276_v8, 4  ;;  %v1279_v55 = vrot.slane %v9747_v14, 5 }
  0x7a   : > { %13794 = vst [vmem:[#allocation62_spill] sm:$0xff] %v10279_v7  ;;  %8458 = vmatmul.mubr.msk.bf16.gmra.mxu1 %vm679_vm3, %v10251_v21  ;;  %v10291_v19 = vcombine.low %v9958_v9, %v9971_v22  ;;  %v10293_v46 = vcombine.low %v1249_v10, %v1252_v35  ;;  %v10297_v31 = vcombine.low %v10026_v17, %v10033_v45  ;;  %v13841_v48 = vshll.u32 %v9762_v53, 16 }
  0x7b   : > { %13795 = vst [vmem:[#allocation63_spill] sm:$0xff] %v10283_v44  ;;  %v10301_v63 = vcombine.low %v9600_v11, %v9613_v18  ;;  %8461 = vmatprep.mubr.msk.bf16.mxu1 %vm679_vm3, %v10255_v50  ;;  %v1256_v54 = vsel %vm10103_vm7, %v7333_v4, %v1255_v49  ;;  %v1259_v21 = vsel %vm10103_vm7, %v1257_v52, %v1258_v26  ;;  %v7337_v50 = vrot.slane %v9797_v59, 9  ;;  %v13804_v52 = vld [vmem:[#allocation27_spill] sm:$0xff] }
  0x7c   : > { %13796 = vst [vmem:[#allocation64_spill] sm:$0xff] %v10291_v19  ;;  %13797 = vst [vmem:[#allocation65_spill] sm:$0xff] %v10293_v46  ;;  %v1263_v35 = vsel %vm10103_vm7, %v7334_v20, %v1262_v61  ;;  %v1266_v10 = vsel %vm10103_vm7, %v1264_v43, %v1265_v0  ;;  %v1270_v14 = vsel %vm10103_vm7, %v7335_v23, %v1269_v51  ;;  %v1283_v18 = vrot.slane %v9806_v38, 5 }
  0x7d   : > { %13798 = vst [vmem:[#allocation66_spill] sm:$0xff] %v10297_v31  ;;  %13799 = vst [vmem:[#allocation67_spill] sm:$0xff] %v10301_v63  ;;  %v1273_v16 = vsel %vm10103_vm7, %v1271_v33, %v1272_v37  ;;  %v10323_v26 = vcombine.low %v9663_v58, %v9676_v15  ;;  %v10327_v0 = vcombine.low %v9714_v42, %v9737_v57  ;;  %v7338_v4 = vrot.slane %v9860_v47, 9 }
  0x7e   : > { %8496 = vmatmul.mubr.msk.bf16.gmra.mxu0 %vm679_vm3, %v10283_v44  ;;  %v1277_v51 = vsel %vm10103_vm7, %v7336_v56, %v1276_v8  ;;  %v1280_v23 = vsel %vm10103_vm7, %v1278_v60, %v1279_v55  ;;  %v10335_v49 = vcombine.low %v1256_v54, %v1259_v21  ;;  %v10337_v61 = vcombine.low %v1263_v35, %v1266_v10  ;;  %v13807_v8 = vld [vmem:[#allocation24_spill] sm:$0xff]  ;;  %v13810_v54 = vld [vmem:[#allocation35_spill] sm:$0xff]  ;;  %v13812_v10 = vld [vmem:[#allocation41_spill] sm:$0xff] }
  0x7f   : > { %13800 = vst [vmem:[#allocation68_spill] sm:$0xff] %v10323_v26  ;;  %13801 = vst [vmem:[#allocation69_spill] sm:$0xff] %v10327_v0  ;;  %8499 = vmatprep.mubr.msk.bf16.mxu0 %vm679_vm3, %v10293_v46  ;;  %v1290_v20 = vrot.slane %v13804_v52, 5  ;;  %v10341_v43 = vcombine.low %v1270_v14, %v1273_v16  ;;  %v10345_v33 = vcombine.low %v9797_v59, %v9806_v38  ;;  %v1286_v37 = vrot.slane %v13807_v8, 5  ;;  %v13811_v16 = vld [vmem:[#allocation29_spill] sm:$0xff]  ;;  %v13813_v44 = vld [vmem:[#allocation47_spill] sm:$0xff] }
  0x80   : > { %13802 = vst [vmem:[#allocation70_spill] sm:$0xff] %v10335_v49  ;;  %13803 = vst [vmem:[#allocation71_spill] sm:$0xff] %v10337_v61  ;;  %v10350_v60 = vcombine.low %v9860_v47, %v13804_v52  ;;  %v10352_v55 = vcombine.low %v1277_v51, %v1280_v23  ;;  %v1284_v21 = vsel %vm10103_vm7, %v7337_v50, %v1283_v18  ;;  %v1285_v56 = vrot.slane %v1283_v18, 4  ;;  %v13814_v50 = vld [vmem:[#allocation34_spill] sm:$0xff]  ;;  %v13815_v52 = vld [vmem:[#allocation37_spill] sm:$0xff] }
  0x81   : > { %13805 = vst [vmem:[#allocation72_spill] sm:$0xff] %v10341_v43  ;;  %13806 = vst [vmem:[#allocation73_spill] sm:$0xff] %v10345_v33  ;;  %v1297_v35 = vrot.slane %v13810_v54, 5  ;;  %v1293_v14 = vrot.slane %v13811_v16, 5  ;;  %v1304_v46 = vrot.slane %v13812_v10, 5  ;;  %v1311_v38 = vrot.slane %v13813_v44, 5 }
  0x82   : > { %13808 = vst [vmem:[#allocation74_spill] sm:$0xff] %v10350_v60  ;;  %13809 = vst [vmem:[#allocation75_spill] sm:$0xff] %v10352_v55  ;;  %8462 = vmatmul.mubr.msk.bf16.gmra.mxu1 %vm679_vm3, %v10279_v7  ;;  %v1291_v51 = vsel %vm10103_vm7, %v7338_v4, %v1290_v20  ;;  %v1292_v23 = vrot.slane %v1290_v20, 4  ;;  %v1615_v18 = vor.u32 %v10192_v62, %v10172_v1  ;;  %v7339_v16 = vrot.slane %v13814_v50, 9  ;;  %v13816_v8 = vld [vmem:[#allocation40_spill] sm:$0xff]  ;;  %v13820_v7 = vld [vmem:[#allocation43_spill] sm:$0xff] }
  0x83   : > { %8465 = vmatprep.mubr.msk.bf16.mxu1 %vm679_vm3, %v10291_v19  ;;  %v1300_v47 = vrot.slane %v13815_v52, 5  ;;  %v7340_v59 = vrot.slane %v13816_v8, 9  ;;  %v13817_v57 = vmov 0  ;;  %v1619_v4 = vor.u32 %v10210_v12, %v10206_v3  ;;  %v13821_v52 = vld [vmem:[#allocation46_spill] sm:$0xff] }
  0x84   : > { %v13818_v57 = vsel %vm10371_vm10, 4294967295, %v13817_v57  ;;  %v1299_v20 = vrot.slane %v1297_v35, 4  ;;  %v1307_v42 = vrot.slane %v13820_v7, 5  ;;  %v1616_v1 = vrot.slane %v1615_v18, 4 }
  0x85   : > { %13819 = vst [vmem:[#allocation35_spill] sm:$0xff] %v13818_v57  ;;  %v1622_v62 = vshrl.u32 %v9593_v6, 16  ;;  %v1306_v19 = vrot.slane %v1304_v46, 4  ;;  %v7341_v15 = vrot.slane %v13821_v52, 9  ;;  %v1313_v58 = vrot.slane %v1311_v38, 4 }
  0x86   : > { %8500 = vmatmul.mubr.msk.bf16.gmra.mxu0 %vm679_vm3, %v10335_v49  ;;  %v1314_v11 = vrot.slane %v10081_v2, 5  ;;  %v1620_v3 = vsel %vm10371_vm10, %v1616_v1, %v1619_v4  ;;  %v1621_v12 = vrot.slane %v1619_v4, 4  ;;  %v1635_v6 = vsel %vm10371_vm10, %v10240_v24, %v9690_v25 }
  0x87   : > { %8503 = vmatprep.mubr.msk.bf16.mxu0 %vm679_vm3, %v10337_v61  ;;  %v1624_v7 = vrot.slane %v1622_v62, 5  ;;  %v1287_v18 = vsel %vm10103_vm7, %v1285_v56, %v1286_v37  ;;  %v1294_v49 = vsel %vm10103_vm7, %v1292_v23, %v1293_v14  ;;  %v10397_v61 = vcombine.low %v13814_v50, %v13810_v54 }
  0x88   : > { %v13823_v4 = vor.u32 %v10216_v13, %v10212_v32  ;;  %v13824_v1 = vrot.slane %v9690_v25, 4  ;;  %v1298_v24 = vsel %vm10103_vm7, %v7339_v16, %v1297_v35  ;;  %v1305_v37 = vsel %vm10103_vm7, %v7340_v59, %v1304_v46  ;;  %v9362_v46 = vld [vmem:[%s9584_s7 + $0x4] sm:$0xf] }
  0x89   : > { %13822 = vst [vmem:[#allocation41_spill] sm:$0xff] %v10397_v61  ;;  %v1626_v56 = vor.u32 %v10235_v28, %v1624_v7  ;;  %v1301_v23 = vsel %vm10103_vm7, %v1299_v20, %v1300_v47  ;;  %v1308_v13 = vsel %vm10103_vm7, %v1306_v19, %v1307_v42  ;;  %v1312_v25 = vsel %vm10103_vm7, %v7341_v15, %v1311_v38 }
  0x8a   : > { %v1642_v62 = vsel %vm10371_vm10, %v13824_v1, %v13823_v4  ;;  %8466 = vmatmul.mubr.msk.bf16.gmra.mxu1 %vm679_vm3, %v10297_v31  ;;  %v1315_v59 = vsel %vm10103_vm7, %v1313_v58, %v1314_v11  ;;  %v2152_v32 = vrot.slane %v9362_v46, 6  ;;  %v13825_v47 = vshrl.u32 %v9694_v30, 16 }
  0x8b   : > { %v10411_v14 = vcombine.low %v1635_v6, %v1642_v62  ;;  %v1627_v7 = vsel %vm10371_vm10, %v1621_v12, %v1626_v56  ;;  %8469 = vmatprep.mubr.msk.bf16.mxu1 %vm679_vm3, %v10301_v63  ;;  %v13826_v15 = vshll.u32 %v9694_v30, 16  ;;  %v13827_v38 = vshrl.u32 %v9702_v36, 16  ;;  %v9365_v56 = vld [vmem:[%s9584_s7 + $0x10] sm:$0xf] }
  0x8c   : > { %v1643_v28 = vrot.slane %v13825_v47, 5  ;;  %v10430_v19 = vcombine.low %v1620_v3, %v1627_v7  ;;  %v13828_v58 = vshll.u32 %v9702_v36, 16  ;;  %v10438_v16 = vcombine.low %v1284_v21, %v1287_v18 }
  0x8d   : > { %v1644_v42 = vrot.slane %v13826_v15, 6  ;;  %v1647_v11 = vrot.slane %v13827_v38, 5  ;;  %v10440_v20 = vcombine.low %v1291_v51, %v1294_v49  ;;  %v10444_v12 = vcombine.low %v13816_v8, %v13812_v10  ;;  %v9363_v49 = vld [vmem:[%s9584_s7] sm:$0xf] }
  0x8e   : > { %v1648_v35 = vrot.slane %v13828_v58, 6  ;;  %13829 = vst [vmem:[#allocation47_spill] sm:$0xff] %v10438_v16  ;;  %v1652_v3 = vshrl.u32 %v9711_v41, 16  ;;  %8504 = vmatmul.mubr.msk.bf16.gmra.mxu0 %vm679_vm3, %v10341_v43  ;;  %v10449_v6 = vcombine.low %v1298_v24, %v1301_v23  ;;  %v10451_v4 = vcombine.low %v1305_v37, %v1308_v13  ;;  %v9364_v24 = vld [vmem:[%s9584_s7 + $0x8] sm:$0x3] }
  0x8f   : > { %13830 = vst [vmem:[#allocation34_spill] sm:$0xff] %v10440_v20  ;;  %13831 = vst [vmem:[#allocation40_spill] sm:$0xff] %v10444_v12  ;;  %v10455_v21 = vcombine.low %v13821_v52, %v13813_v44  ;;  %v7408_v51 = vrot.slane %v9363_v49, 10  ;;  %8507 = vmatprep.mubr.msk.bf16.mxu0 %vm679_vm3, %v10352_v55  ;;  %v10460_v18 = vcombine.low %v1312_v25, %v1315_v59  ;;  %v13836_v1 = vmov 0  ;;  %v9366_v13 = vld [vmem:[%s9584_s7 + $0xc] sm:$0xf] }
  0x90   : > { %13832 = vst [vmem:[#allocation46_spill] sm:$0xff] %v10449_v6  ;;  %13833 = vst [vmem:[#allocation76_spill] sm:$0xff] %v10451_v4  ;;  %v13837_v1 = vsel %vm10464_vm12, 4294967295, %v13836_v1  ;;  %v2154_v62 = vrot.slane %v2152_v32, 4  ;;  %v2155_v37 = vrot.slane %v9364_v24, 6  ;;  %v2159_v23 = vrot.slane %v9365_v56, 6 }
  0x91   : > { %13834 = vst [vmem:[#allocation77_spill] sm:$0xff] %v10455_v21  ;;  %13835 = vst [vmem:[#allocation78_spill] sm:$0xff] %v10460_v18  ;;  %v7409_v7 = vrot.slane %v9366_v13, 10  ;;  %v1645_v46 = vor.u32 %v1644_v42, %v1643_v28  ;;  %v1649_v47 = vor.u32 %v1648_v35, %v1647_v11  ;;  %v13839_v15 = vshll.u32 %v9711_v41, 16 }
  0x92   : > { %13838 = vst [vmem:[#allocation79_spill] sm:$0xff] %v13837_v1  ;;  %v1654_v59 = vrot.slane %v1652_v3, 5  ;;  %v2166_v38 = vrot.slane %v9702_v36, 6  ;;  %v13840_v58 = vshrl.u32 %v9762_v53, 16  ;;  %v1659_v55 = vrot.slane %v13841_v48, 6  ;;  %8470 = vmatmul.mubr.msk.bf16.gmra.mxu1 %vm679_vm3, %v10323_v26  ;;  %v13984_v1 = vld [vmem:[#allocation38_spill] sm:$0xff] }
  0x93   : > { %v1655_v25 = vrot.slane %v13839_v15, 6  ;;  %v10480_v24 = vsel %vm10464_vm12, %v7408_v51, %v2152_v32  ;;  %v13842_v56 = vshrl.u32 %v9769_v29, 16  ;;  %v13843_v42 = vshll.u32 %v9769_v29, 16  ;;  %v9367_v3 = vld [vmem:[%s9584_s7 + $0x14] sm:$0x3]  ;;  %8473 = vmatprep.mubr.msk.bf16.mxu1 %vm679_vm3, %v10327_v0 }
  0x94   : > { %v1658_v49 = vrot.slane %v13840_v58, 5  ;;  %v1667_v35 = vshrl.u32 %v9792_v40, 16  ;;  %v10491_v36 = vsel %vm10464_vm12, %v2154_v62, %v2155_v37  ;;  %v2161_v48 = vrot.slane %v2159_v23, 4 }
  0x95   : > { %v1662_v28 = vrot.slane %v13842_v56, 5  ;;  %v1663_v11 = vrot.slane %v13843_v42, 6  ;;  %v2162_v13 = vrot.slane %v9367_v3, 6  ;;  %v7410_v32 = vrot.slane %v9694_v30, 10 }
  0x96   : > { %v2160_v51 = vsel %vm10464_vm12, %v7409_v7, %v2159_v23  ;;  %v10501_v15 = vsel %vm728_vm0, %v10226_v5, 0  ;;  %v1646_v58 = vrot.slane %v1645_v46, 4  ;;  %v2169_v56 = vrot.slane %v9711_v41, 6  ;;  %8508 = vmatmul.mubr.msk.bf16.gmra.mxu0 %vm679_vm3, %v10438_v16  ;;  %v13914_v16 = vld [vmem:[#allocation24_spill] sm:$0xff] }
  0x97   : > { %v1651_v62 = vrot.slane %v1649_v47, 4  ;;  %v1656_v37 = vor.u32 %v1655_v25, %v1654_v59  ;;  %v2168_v42 = vrot.slane %v2166_v38, 4  ;;  %v1660_v43 = vor.u32 %v1659_v55, %v1658_v49  ;;  %8511 = vmatprep.mubr.msk.bf16.mxu0 %vm679_vm3, %v10440_v20 }
  0x98   : > { %v1664_v30 = vor.u32 %v1663_v11, %v1662_v28  ;;  %v1669_v3 = vrot.slane %v1667_v35, 5  ;;  %v13844_v0 = vshll.u32 %v9792_v40, 16  ;;  %v2173_v23 = vrot.slane %v9769_v29, 6 }
  0x99   : > { %v2163_v41 = vsel %vm10464_vm12, %v2161_v48, %v2162_v13  ;;  %v2167_v5 = vsel %vm10464_vm12, %v7410_v32, %v2166_v38  ;;  %v13845_v55 = vshrl.u32 %v9830_v34, 16  ;;  %v13846_v46 = vshll.u32 %v9830_v34, 16 }
  0x9a   : > { %v1670_v26 = vrot.slane %v13844_v0, 6  ;;  %v1650_v0 = vsel %vm10371_vm10, %v1646_v58, %v1649_v47  ;;  %v13847_v29 = vshrl.u32 %v9839_v27, 16  ;;  %v13848_v49 = vshll.u32 %v9839_v27, 16  ;;  %8474 = vmatmul.mubr.msk.bf16.gmra.mxu1 %vm679_vm3, %v10345_v33 }
  0x9b   : > { %v1673_v7 = vrot.slane %v13845_v55, 5  ;;  %v1674_v25 = vrot.slane %v13846_v46, 6  ;;  %v1682_v11 = vshrl.u32 %v9855_v39, 16  ;;  %v1657_v38 = vsel %vm10371_vm10, %v1651_v62, %v1656_v37  ;;  %v13850_v62 = vld [vmem:[#allocation55_spill] sm:$0xff]  ;;  %8477 = vmatprep.mubr.msk.bf16.mxu1 %vm679_vm3, %v10350_v60 }
  0x9c   : > { %v1677_v59 = vrot.slane %v13847_v29, 5  ;;  %v1678_v28 = vrot.slane %v13848_v49, 6  ;;  %v2170_v35 = vsel %vm10464_vm12, %v2168_v42, %v2169_v56  ;;  %v1661_v48 = vrot.slane %v1660_v43, 4 }
  0x9d   : > { %v7411_v13 = vrot.slane %v9762_v53, 10  ;;  %v1666_v32 = vrot.slane %v1664_v30, 4  ;;  %v1671_v55 = vor.u32 %v1670_v26, %v1669_v3  ;;  %v2175_v47 = vrot.slane %v2173_v23, 4 }
  0x9e   : > { %v2176_v58 = vrot.slane %v9792_v40, 6  ;;  %v7425_v46 = vcombine.low %v10480_v24, %v10491_v36  ;;  %v10536_v29 = vcombine.low %v2160_v51, %v2163_v41  ;;  %v10540_v37 = vsel %vm728_vm0, %v13850_v62, 0  ;;  %8512 = vmatmul.mubr.msk.bf16.gmra.mxu0 %vm679_vm3, %v10449_v6 }
  0x9f   : > { %v1675_v43 = vor.u32 %v1674_v25, %v1673_v7  ;;  %v10544_v53 = vcombine.low %v2167_v5, %v2170_v35  ;;  %v1679_v26 = vor.u32 %v1678_v28, %v1677_v59  ;;  %v1684_v40 = vrot.slane %v1682_v11, 5  ;;  %v13854_v7 = vld [vmem:[#allocation30_spill] sm:$0xff]  ;;  %8515 = vmatprep.mubr.msk.bf16.mxu0 %vm679_vm3, %v10451_v4  ;;  %v13860_v35 = vld [vmem:[#allocation33_spill] sm:$0xff] }
  0xa0   : > { %13849 = vst [vmem:[#allocation80_spill] sm:$0xff] %v10536_v29  ;;  %v13852_v56 = vshll.u32 %v9855_v39, 16  ;;  %v10548_v3 = vcombine.low %v1650_v0, %v1657_v38  ;;  %v1665_v24 = vsel %vm10371_vm10, %v1661_v48, %v1664_v30  ;;  %v2174_v36 = vsel %vm10464_vm12, %v7411_v13, %v2173_v23 }
  0xa1   : > { %13851 = vst [vmem:[#allocation55_spill] sm:$0xff] %v10544_v53  ;;  %v2180_v51 = vrot.slane %v9839_v27, 6  ;;  %v1672_v41 = vsel %vm10371_vm10, %v1666_v32, %v1671_v55  ;;  %v2177_v5 = vsel %vm10464_vm12, %v2175_v47, %v2176_v58  ;;  %v13855_v25 = vshrl.u32 %v13854_v7, 16  ;;  %v13857_v27 = vld [vmem:[#allocation31_spill] sm:$0xff] }
  0xa2   : > { %v1685_v42 = vrot.slane %v13852_v56, 6  ;;  %13853 = vst [vmem:[#allocation81_spill] sm:$0xff] %v10548_v3  ;;  %v13856_v59 = vshll.u32 %v13854_v7, 16  ;;  %v1676_v23 = vrot.slane %v1675_v43, 4  ;;  %v13858_v49 = vshrl.u32 %v13857_v27, 16  ;;  %8478 = vmatmul.mubr.msk.bf16.gmra.mxu1 %vm679_vm3, %v10397_v61 }
  0xa3   : > { %v1688_v0 = vrot.slane %v13855_v25, 5  ;;  %v13859_v11 = vshll.u32 %v13857_v27, 16  ;;  %v1697_v48 = vshrl.u32 %v13860_v35, 16  ;;  %v1681_v13 = vrot.slane %v1679_v26, 4  ;;  %8481 = vmatprep.mubr.msk.bf16.mxu1 %vm679_vm3, %v10444_v12 }
  0xa4   : > { %v1689_v30 = vrot.slane %v13856_v59, 6  ;;  %v1692_v28 = vrot.slane %v13858_v49, 5  ;;  %v1686_v32 = vor.u32 %v1685_v42, %v1684_v40  ;;  %v13861_v55 = vshrl.u32 %v9958_v9, 16  ;;  %v13866_v42 = vld [vmem:[#allocation39_spill] sm:$0xff] }
  0xa5   : > { %v1693_v38 = vrot.slane %v13859_v11, 6  ;;  %v13862_v58 = vshll.u32 %v9958_v9, 16  ;;  %v10576_v56 = vcombine.low %v1665_v24, %v1672_v41  ;;  %v7412_v43 = vrot.slane %v9830_v34, 10 }
  0xa6   : > { %v1703_v47 = vrot.slane %v13861_v55, 5  ;;  %v2182_v25 = vrot.slane %v2180_v51, 4  ;;  %v2183_v59 = vrot.slane %v9855_v39, 6  ;;  %v1690_v49 = vor.u32 %v1689_v30, %v1688_v0  ;;  %8516 = vmatmul.mubr.msk.bf16.gmra.mxu0 %vm679_vm3, %v10460_v18 }
  0xa7   : > { %v1704_v62 = vrot.slane %v13862_v58, 6  ;;  %13863 = vst [vmem:[#allocation30_spill] sm:$0xff] %v10576_v56  ;;  %v13864_v11 = vshrl.u32 %v9971_v22, 16  ;;  %v13865_v6 = vshll.u32 %v9971_v22, 16  ;;  %v1712_v20 = vshrl.u32 %v13866_v42, 16  ;;  %8555 = vmatprep.mubr.msk.bf16.mxu0 %vm679_vm3, %v7425_v46 }
  0xa8   : > { %v10587_v55 = vcombine.low %v2174_v36, %v2177_v5  ;;  %v1694_v24 = vor.u32 %v1693_v38, %v1692_v28  ;;  %v1699_v41 = vrot.slane %v1697_v48, 5  ;;  %v13868_v34 = vshll.u32 %v13860_v35, 16 }
  0xa9   : > { %v1707_v4 = vrot.slane %v13864_v11, 5  ;;  %v1708_v40 = vrot.slane %v13865_v6, 6  ;;  %v1680_v39 = vsel %vm10371_vm10, %v1676_v23, %v1679_v26  ;;  %v1687_v6 = vsel %vm10371_vm10, %v1681_v13, %v1686_v32 }
  0xaa   : > { %13867 = vst [vmem:[#allocation31_spill] sm:$0xff] %v10587_v55  ;;  %v1700_v58 = vrot.slane %v13868_v34, 6  ;;  %v2187_v0 = vrot.slane %v13857_v27, 6  ;;  %v1705_v30 = vor.u32 %v1704_v62, %v1703_v47  ;;  %v2181_v36 = vsel %vm10464_vm12, %v7412_v43, %v2180_v51  ;;  %8482 = vmatmul.mubr.msk.bf16.gmra.mxu1 %vm679_vm3, %v10455_v21 }
  0xab   : > { %v1709_v5 = vor.u32 %v1708_v40, %v1707_v4  ;;  %v1714_v28 = vrot.slane %v1712_v20, 5  ;;  %v13869_v38 = vshll.u32 %v13866_v42, 16  ;;  %v2184_v26 = vsel %vm10464_vm12, %v2182_v25, %v2183_v59  ;;  %8521 = vmatprep.mubr.msk.bf16.mxu1 %vm679_vm3, %v10430_v19 }
  0xac   : > { %v1691_v23 = vrot.slane %v1690_v49, 4  ;;  %v7413_v13 = vrot.slane %v13854_v7, 10  ;;  %v2194_v27 = vrot.slane %v9971_v22, 6  ;;  %v10609_v32 = vcombine.low %v1680_v39, %v1687_v6 }
  0xad   : > { %v1715_v48 = vrot.slane %v13869_v38, 6  ;;  %v1696_v4 = vrot.slane %v1694_v24, 4  ;;  %v1701_v20 = vor.u32 %v1700_v58, %v1699_v41  ;;  %v2190_v51 = vrot.slane %v13860_v35, 6 }
  0xae   : > { %13870 = vst [vmem:[#allocation33_spill] sm:$0xff] %v10609_v32  ;;  %v2189_v47 = vrot.slane %v2187_v0, 4  ;;  %v1706_v62 = vrot.slane %v1705_v30, 4  ;;  %v13871_v43 = vshrl.u32 %v10026_v17, 16  ;;  %v13872_v25 = vshll.u32 %v10026_v17, 16  ;;  %8556 = vmatmul.mubr.msk.bf16.vlgmr.msra.gmra.mxu0 %vm679_vm3, %v10536_v29 }
  0xaf   : > { %v10616_v49 = vcombine.low %v2181_v36, %v2184_v26  ;;  %v1711_v7 = vrot.slane %v1709_v5, 4  ;;  %v1716_v22 = vor.u32 %v1715_v48, %v1714_v28  ;;  %v7414_v46 = vrot.slane %v9958_v9, 10  ;;  %v13876_v36 = vld [vmem:[#allocation45_spill] sm:$0xff]  ;;  %8622 = vmatpush3.bf16.msra.mxu0 %v10540_v37  ;;  %8559 = vmatprep.mubr.msk.bf16.mxu0 %vm679_vm3, %v10544_v53 }
  0xb0   : > { %v1718_v11 = vrot.slane %v13871_v43, 5  ;;  %v1719_v59 = vrot.slane %v13872_v25, 6  ;;  %v1695_v40 = vsel %vm10371_vm10, %v1691_v23, %v1694_v24  ;;  %v2188_v35 = vsel %vm10464_vm12, %v7413_v13, %v2187_v0  ;;  %v13877_v23 = vld [vmem:[#allocation8_spill] sm:$0xff] }
  0xb1   : > { %13873 = vst [vmem:[#allocation39_spill] sm:$0xff] %v10616_v49  ;;  %v2196_v41 = vrot.slane %v2194_v27, 4  ;;  %v2197_v34 = vrot.slane %v13866_v42, 6  ;;  %v1702_v58 = vsel %vm10371_vm10, %v1696_v4, %v1701_v20  ;;  %v13874_v39 = vshrl.u32 %v10033_v45, 16 }
  0xb2   : > { %v13875_v9 = vshll.u32 %v10033_v45, 16  ;;  %v1727_v24 = vshrl.u32 %v13876_v36, 16  ;;  %v2191_v42 = vsel %vm10464_vm12, %v2189_v47, %v2190_v51  ;;  %v1710_v0 = vsel %vm10371_vm10, %v1706_v62, %v1709_v5  ;;  %v10651_v51 = vld [vmem:[%s13381_s1 + $0x10] sm:$0x3]  ;;  %8522 = vmatmul.mubr.msk.bf16.vlgmr.msra.gmra.mxu1 %vm679_vm3, %v10411_v14 }
  0xb3   : > { %v1722_v6 = vrot.slane %v13874_v39, 5  ;;  %v1720_v28 = vor.u32 %v1719_v59, %v1718_v11  ;;  %v2201_v38 = vrot.slane %v10033_v45, 6  ;;  %v1717_v48 = vsel %vm10371_vm10, %v1711_v7, %v1716_v22  ;;  %v13880_v5 = vld [vmem:[#allocation9_spill] sm:$0xff]  ;;  %v10662_v11 = vld [vmem:[%s9584_s7 + $0x68] sm:$0x3]  ;;  %9278 = vmatprep.subr.msk.bf16.mxu0 %vm728_vm0, %v10651_v51  ;;  %8588 = vmatpush3.bf16.msra.mxu1 %v10501_v15 }
  0xb4   : > { %v1723_v30 = vrot.slane %v13875_v9, 6  ;;  %v2195_v26 = vsel %vm10464_vm12, %v7414_v46, %v2194_v27  ;;  %v13878_v13 = vshrl.u32 %v13877_v23, 16  ;;  %v13879_v19 = vshll.u32 %v13877_v23, 16  ;;  %8525 = vmatprep.mubr.msk.bf16.mxu1 %vm679_vm3, %v10548_v3 }
  0xb5   : > { %v2198_v45 = vsel %vm10464_vm12, %v2196_v41, %v2197_v34  ;;  %v13881_v47 = vshrl.u32 %v13880_v5, 16  ;;  %v13882_v62 = vshll.u32 %v13880_v5, 16  ;;  %v1742_v25 = vshrl.u32 %v10662_v11, 16 }
  0xb6   : > { %v1733_v4 = vrot.slane %v13878_v13, 5  ;;  %v1734_v20 = vrot.slane %v13879_v19, 6  ;;  %v10668_v59 = vcombine.low %v1695_v40, %v1702_v58  ;;  %v10670_v7 = vor.u32 %v1723_v30, %v1722_v6  ;;  %v9369_v19 = vld [vmem:[%s9584_s7 + $0x64] sm:$0xf]  ;;  %8560 = vmatmul.mubr.msk.bf16.gmra.mxu0 %vm679_vm3, %v10587_v55  ;;  %v10748_v55 = vld [vmem:[%s9584_s7 + $0x80] sm:$0x3] }
  0xb7   : > { %v1737_v27 = vrot.slane %v13881_v47, 5  ;;  %v1738_v43 = vrot.slane %v13882_v62, 6  ;;  %v1729_v22 = vrot.slane %v1727_v24, 5  ;;  %v13884_v46 = vshll.u32 %v13876_v36, 16  ;;  %v9370_v62 = vld [vmem:[%s9584_s7 + $0x60] sm:$0xf]  ;;  %8563 = vmatprep.mubr.msk.bf16.mxu0 %vm679_vm3, %v10616_v49 }
  0xb8   : > { %13883 = vst [vmem:[#allocation45_spill] sm:$0xff] %v10668_v59  ;;  %v10674_v34 = vrot.slane %v1720_v28, 4  ;;  %v7415_v39 = vrot.slane %v10026_v17, 10  ;;  %v2203_v9 = vrot.slane %v2201_v38, 4  ;;  %v2204_v23 = vrot.slane %v13876_v36, 6  ;;  %v13888_v28 = vld [vmem:[#allocation10_spill] sm:$0xff] }
  0xb9   : > { %v1730_v41 = vrot.slane %v13884_v46, 6  ;;  %v10680_v37 = vcombine.low %v2188_v35, %v2191_v42  ;;  %v10682_v40 = vcombine.low %v1710_v0, %v1717_v48  ;;  %v10684_v58 = vcombine.low %v2195_v26, %v2198_v45  ;;  %v10694_v36 = vld [vmem:[%s13381_s1 + $0xe] sm:$0x3]  ;;  %v13890_v0 = vld [vmem:[#allocation12_spill] sm:$0xff] }
  0xba   : > { %v1735_v6 = vor.u32 %v1734_v20, %v1733_v4  ;;  %v10686_v30 = vor.u32 %v1738_v43, %v1737_v27  ;;  %v1744_v24 = vrot.slane %v1742_v25, 5  ;;  %v13889_v13 = vshll.u32 %v13888_v28, 16  ;;  %9277 = vmatprep.subr.msk.bf16.mxu1 %vm728_vm0, %v10694_v36  ;;  %8526 = vmatmul.mubr.msk.bf16.gmra.mxu1 %vm679_vm3, %v10576_v56 }
  0xbb   : > { %13885 = vst [vmem:[#allocation8_spill] sm:$0xff] %v10680_v37  ;;  %13886 = vst [vmem:[#allocation9_spill] sm:$0xff] %v10682_v40  ;;  %v2208_v5 = vrot.slane %v9369_v19, 6  ;;  %v1726_v35 = vrot.slane %v10670_v7, 4  ;;  %v1731_v42 = vor.u32 %v1730_v41, %v1729_v22  ;;  %v13891_v48 = vshrl.u32 %v13890_v0, 16  ;;  %v13893_v22 = vld [vmem:[#allocation14_spill] sm:$0xff]  ;;  %8529 = vmatprep.mubr.msk.bf16.mxu1 %vm679_vm3, %v10609_v32 }
  0xbc   : > { %13887 = vst [vmem:[#allocation82_spill] sm:$0xff] %v10684_v58  ;;  %v1745_v17 = vrot.slane %v13889_v13, 6  ;;  %v13892_v4 = vshll.u32 %v13890_v0, 16  ;;  %v2202_v47 = vsel %vm10464_vm12, %v7415_v39, %v2201_v38  ;;  %v2205_v27 = vsel %vm10464_vm12, %v2203_v9, %v2204_v23  ;;  %v10722_v13 = vld [vmem:[%s9584_s7 + $0x74] sm:$0x3] }
  0xbd   : > { %v1748_v26 = vrot.slane %v13891_v48, 5  ;;  %v7416_v43 = vrot.slane %v9370_v62, 10  ;;  %v10715_v25 = vrot.slane %v1735_v6, 4  ;;  %v13894_v15 = vshrl.u32 %v13893_v22, 16  ;;  %v13896_v48 = vld [vmem:[#allocation16_spill] sm:$0xff] }
  0xbe   : > { %v1749_v20 = vrot.slane %v13892_v4, 6  ;;  %v13895_v41 = vshll.u32 %v13893_v22, 16  ;;  %v1757_v19 = vshrl.u32 %v10722_v13, 16  ;;  %v1741_v38 = vrot.slane %v10686_v30, 4  ;;  %8564 = vmatmul.mubr.msk.bf16.gmra.mxu0 %vm679_vm3, %v10680_v37 }
  0xbf   : > { %v1752_v46 = vrot.slane %v13894_v15, 5  ;;  %v1746_v39 = vor.u32 %v1745_v17, %v1744_v24  ;;  %v2210_v9 = vrot.slane %v2208_v5, 4  ;;  %v2211_v23 = vrot.slane %v10662_v11, 6  ;;  %v13900_v24 = vld [vmem:[#allocation18_spill] sm:$0xff]  ;;  %8567 = vmatprep.mubr.msk.bf16.mxu0 %vm679_vm3, %v10684_v58 }
  0xc0   : > { %v1753_v28 = vrot.slane %v13895_v41, 6  ;;  %v10735_v6 = vsel %vm10371_vm10, %v1726_v35, %v1731_v42  ;;  %v1750_v0 = vor.u32 %v1749_v20, %v1748_v26  ;;  %v13897_v4 = vshrl.u32 %v13896_v48, 16 }
  0xc1   : > { %v13898_v22 = vshll.u32 %v13896_v48, 16  ;;  %v10741_v41 = vcombine.low %v2202_v47, %v2205_v27  ;;  %v13901_v17 = vshrl.u32 %v13900_v24, 16  ;;  %v13902_v45 = vshll.u32 %v13900_v24, 16  ;;  %v13903_v47 = vld [vmem:[#allocation15_spill] sm:$0xff]  ;;  %v9373_v24 = vld [vmem:[%s9584_s7 + $0x70] sm:$0xf] }
  0xc2   : > { %v1763_v62 = vrot.slane %v13897_v4, 5  ;;  %v1772_v35 = vshrl.u32 %v10748_v55, 16  ;;  %v10755_v26 = vor.u32 %v1753_v28, %v1752_v46  ;;  %v1759_v20 = vrot.slane %v1757_v19, 5  ;;  %v9374_v28 = vld [vmem:[%s9584_s7 + $0x6c] sm:$0xf]  ;;  %8530 = vmatmul.mubr.msk.bf16.gmra.mxu1 %vm679_vm3, %v10668_v59 }
  0xc3   : > { %v1764_v15 = vrot.slane %v13898_v22, 6  ;;  %13899 = vst [vmem:[#allocation10_spill] sm:$0xff] %v10741_v41  ;;  %v1767_v11 = vrot.slane %v13901_v17, 5  ;;  %v1768_v49 = vrot.slane %v13902_v45, 6  ;;  %v13904_v27 = vshll.u32 %v13903_v47, 16  ;;  %8533 = vmatprep.mubr.msk.bf16.mxu1 %vm679_vm3, %v10682_v40 }
  0xc4   : > { %v10761_v4 = vsel %vm10371_vm10, %v1741_v38, %v1746_v39  ;;  %v2209_v45 = vsel %vm10464_vm12, %v7416_v43, %v2208_v5  ;;  %v2212_v22 = vsel %vm10464_vm12, %v2210_v9, %v2211_v23  ;;  %v2215_v17 = vrot.slane %v9373_v24, 6  ;;  %v13907_v9 = vld [vmem:[#allocation21_spill] sm:$0xff] }
  0xc5   : > { %v1760_v48 = vrot.slane %v13904_v27, 6  ;;  %v10770_v46 = vrot.slane %v1750_v0, 4  ;;  %v7417_v19 = vrot.slane %v9374_v28, 10  ;;  %v1765_v47 = vor.u32 %v1764_v15, %v1763_v62  ;;  %v13905_v27 = vld [vmem:[#allocation19_spill] sm:$0xff]  ;;  %v13910_v62 = vld [vmem:[#allocation22_spill] sm:$0xff] }
  0xc6   : > { %v13906_v38 = vshll.u32 %v13905_v27, 16  ;;  %v1769_v5 = vor.u32 %v1768_v49, %v1767_v11  ;;  %v1774_v43 = vrot.slane %v1772_v35, 5  ;;  %v13908_v23 = vshrl.u32 %v13907_v9, 16  ;;  %v9375_v35 = vld [vmem:[%s9584_s7 + $0x7c] sm:$0xf]  ;;  %8568 = vmatmul.mubr.msk.bf16.gmra.mxu0 %vm679_vm3, %v10741_v41 }
  0xc7   : > { %v13909_v42 = vshll.u32 %v13907_v9, 16  ;;  %v1756_v53 = vrot.slane %v10755_v26, 4  ;;  %v1761_v28 = vor.u32 %v1760_v48, %v1759_v20  ;;  %v13911_v15 = vshrl.u32 %v13910_v62, 16  ;;  %v9376_v9 = vld [vmem:[%s9584_s7 + $0x8c] sm:$0x3] }
  0xc8   : > { %v1775_v39 = vrot.slane %v13906_v38, 6  ;;  %v1778_v24 = vrot.slane %v13908_v23, 5  ;;  %v13912_v38 = vshll.u32 %v13910_v62, 16  ;;  %v2217_v49 = vrot.slane %v2215_v17, 4 }
  0xc9   : > { %v1779_v0 = vrot.slane %v13909_v42, 6  ;;  %v1782_v27 = vrot.slane %v13911_v15, 5  ;;  %v2218_v11 = vrot.slane %v10722_v13, 6  ;;  %v2222_v23 = vrot.slane %v9375_v35, 6  ;;  %v9377_v15 = vld [vmem:[%s9584_s7 + $0x88] sm:$0xf] }
  0xca   : > { %v1783_v29 = vrot.slane %v13912_v38, 6  ;;  %v1787_v42 = vshrl.u32 %v9376_v9, 16  ;;  %v10793_v20 = vcombine.low %v2209_v45, %v2212_v22  ;;  %v1755_v48 = vsel %vm10371_vm10, %v10770_v46, %v10755_v26  ;;  %v9378_v46 = vld [vmem:[%s9584_s7 + $0x78] sm:$0xf] }
  0xcb   : > { %v1766_v62 = vrot.slane %v1765_v47, 4  ;;  %v2229_v38 = vrot.slane %v9377_v15, 6  ;;  %v2216_v13 = vsel %vm10464_vm12, %v7417_v19, %v2215_v17  ;;  %v1771_v35 = vrot.slane %v1769_v5, 4 }
  0xcc   : > { %13913 = vst [vmem:[#allocation12_spill] sm:$0xff] %v10793_v20  ;;  %v1776_v37 = vor.u32 %v1775_v39, %v1774_v43  ;;  %v1780_v18 = vor.u32 %v1779_v0, %v1778_v24  ;;  %v1762_v58 = vsel %vm10371_vm10, %v1756_v53, %v1761_v28  ;;  %v10804_v45 = vor.u32 %v1783_v29, %v1782_v27  ;;  %v9379_v29 = vld [vmem:[%s9584_s7 + $0x84] sm:$0xf] }
  0xcd   : > { %v1789_v22 = vrot.slane %v1787_v42, 5  ;;  %v13915_v32 = vshll.u32 %v13914_v16, 16  ;;  %v2219_v26 = vsel %vm10464_vm12, %v2217_v49, %v2218_v11  ;;  %v7418_v47 = vrot.slane %v9378_v46, 10  ;;  %v13919_v11 = vld [vmem:[#allocation27_spill] sm:$0xff]  ;;  %8571 = vmatprep.mubr.msk.bf16.mxu0 %vm679_vm3, %v10793_v20  ;;  %v13987_v20 = vld [vmem:[#allocation49_spill] sm:$0xff] }
  0xce   : > { %v2224_v15 = vrot.slane %v2222_v23, 4  ;;  %v2225_v17 = vrot.slane %v10748_v55, 6  ;;  %v1770_v53 = vsel %vm10371_vm10, %v1766_v62, %v1769_v5  ;;  %v7419_v19 = vrot.slane %v9379_v29, 10  ;;  %v13916_v55 = vld [vmem:[#allocation26_spill] sm:$0xff] }
  0xcf   : > { %v1790_v56 = vrot.slane %v13915_v32, 6  ;;  %v2231_v39 = vrot.slane %v2229_v38, 4  ;;  %v2232_v16 = vrot.slane %v9376_v9, 6  ;;  %v1777_v32 = vsel %vm10371_vm10, %v1771_v35, %v1776_v37 }
  0xd0   : > { %v10821_v43 = vrot.slane %v1780_v18, 4  ;;  %v13917_v24 = vshrl.u32 %v13916_v55, 16  ;;  %v13918_v28 = vshll.u32 %v13916_v55, 16  ;;  %v1786_v5 = vrot.slane %v10804_v45, 4 }
  0xd1   : > { %v1791_v49 = vor.u32 %v1790_v56, %v1789_v22  ;;  %v13920_v42 = vshrl.u32 %v13919_v11, 16  ;;  %v13921_v62 = vshll.u32 %v13919_v11, 16  ;;  %v13922_v18 = vsel %vm10371_vm10, %v10674_v34, %v10670_v7  ;;  %v9380_v22 = vld [vmem:[%s9584_s7 + $0x98] sm:$0x3]  ;;  %v9382_v11 = vld [vmem:[%s9584_s7 + $0xa4] sm:$0x3] }
  0xd2   : > { %v1793_v0 = vrot.slane %v13917_v24, 5  ;;  %v1794_v27 = vrot.slane %v13918_v28, 6  ;;  %v10838_v37 = vcombine.low %v13922_v18, %v10735_v6  ;;  %v2223_v56 = vsel %vm10464_vm12, %v7418_v47, %v2222_v23 }
  0xd3   : > { %v1797_v9 = vrot.slane %v13920_v42, 5  ;;  %v1798_v46 = vrot.slane %v13921_v62, 6  ;;  %v2226_v35 = vsel %vm10464_vm12, %v2224_v15, %v2225_v17  ;;  %v1802_v29 = vshrl.u32 %v9380_v22, 16  ;;  %v9383_v62 = vld [vmem:[%s9584_s7 + $0x90] sm:$0xf] }
  0xd4   : > { %13923 = vst [vmem:[#allocation14_spill] sm:$0xff] %v10838_v37  ;;  %v13924_v55 = vsel %vm10371_vm10, %v10715_v25, %v10686_v30  ;;  %v10857_v34 = vcombine.low %v1755_v48, %v1762_v58  ;;  %v2230_v6 = vsel %vm10464_vm12, %v7419_v19, %v2229_v38  ;;  %v2233_v23 = vsel %vm10464_vm12, %v2231_v39, %v2232_v16  ;;  %v9381_v30 = vld [vmem:[%s9584_s7 + $0x94] sm:$0xf] }
  0xd5   : > { %v10853_v7 = vcombine.low %v13924_v55, %v10761_v4  ;;  %v10863_v47 = vcombine.low %v2216_v13, %v2219_v26  ;;  %v10865_v15 = vcombine.low %v1770_v53, %v1777_v32  ;;  %v1795_v17 = vor.u32 %v1794_v27, %v1793_v0  ;;  %v13931_v53 = vld [vmem:[#allocation29_spill] sm:$0xff]  ;;  %8534 = vmatmul.mubr.msk.bf16.gmra.mxu1 %vm679_vm3, %v10838_v37 }
  0xd6   : > { %13926 = vst [vmem:[#allocation18_spill] sm:$0xff] %v10857_v34  ;;  %v2236_v25 = vrot.slane %v9381_v30, 6  ;;  %v10868_v4 = vcombine.low %v2223_v56, %v2226_v35  ;;  %v10876_v48 = vsel %vm10371_vm10, %v1786_v5, %v1791_v49  ;;  %v10878_v38 = vor.u32 %v1798_v46, %v1797_v9  ;;  %v9384_v35 = vld [vmem:[%s9584_s7 + $0xa0] sm:$0xf] }
  0xd7   : > { %13925 = vst [vmem:[#allocation16_spill] sm:$0xff] %v10853_v7  ;;  %13927 = vst [vmem:[#allocation15_spill] sm:$0xff] %v10863_v47  ;;  %v10880_v13 = vcombine.low %v2230_v6, %v2233_v23  ;;  %v1804_v26 = vrot.slane %v1802_v29, 5  ;;  %v13932_v19 = vshll.u32 %v13931_v53, 16  ;;  %v13933_v16 = vshrl.u32 %v13814_v50, 16  ;;  %8537 = vmatprep.mubr.msk.bf16.mxu1 %vm679_vm3, %v10853_v7  ;;  %8572 = vmatmul.mubr.msk.bf16.gmra.mxu0 %vm679_vm3, %v10863_v47 }
  0xd8   : > { %13928 = vst [vmem:[#allocation19_spill] sm:$0xff] %v10865_v15  ;;  %13929 = vst [vmem:[#allocation21_spill] sm:$0xff] %v10868_v4  ;;  %v13934_v24 = vshll.u32 %v13814_v50, 16  ;;  %v13935_v28 = vshrl.u32 %v13810_v54, 16  ;;  %v13936_v5 = vshll.u32 %v13810_v54, 16  ;;  %v1817_v42 = vshrl.u32 %v9382_v11, 16  ;;  %8575 = vmatprep.mubr.msk.bf16.mxu0 %vm679_vm3, %v10868_v4 }
  0xd9   : > { %13930 = vst [vmem:[#allocation22_spill] sm:$0xff] %v10880_v13  ;;  %v1805_v39 = vrot.slane %v13932_v19, 6  ;;  %v1808_v32 = vrot.slane %v13933_v16, 5  ;;  %v1796_v9 = vrot.slane %v1795_v17, 4  ;;  %v7420_v46 = vrot.slane %v9383_v62, 10  ;;  %v13941_v62 = vld [vmem:[#allocation37_spill] sm:$0xff] }
  0xda   : > { %v1809_v0 = vrot.slane %v13934_v24, 6  ;;  %v1812_v27 = vrot.slane %v13935_v28, 5  ;;  %v1813_v49 = vrot.slane %v13936_v5, 6  ;;  %v2238_v18 = vrot.slane %v2236_v25, 4  ;;  %v9385_v16 = vld [vmem:[%s9584_s7 + $0xb0] sm:$0x3] }
  0xdb   : > { %v2239_v56 = vrot.slane %v9380_v22, 6  ;;  %v1801_v50 = vrot.slane %v10878_v38, 4  ;;  %v2243_v29 = vrot.slane %v9384_v35, 6  ;;  %v13937_v55 = vshrl.u32 %v13816_v8, 16 }
  0xdc   : > { %v13938_v54 = vshll.u32 %v13816_v8, 16  ;;  %v1806_v30 = vor.u32 %v1805_v39, %v1804_v26  ;;  %v13939_v17 = vshrl.u32 %v13812_v10, 16  ;;  %v13940_v22 = vshll.u32 %v13812_v10, 16 }
  0xdd   : > { %v1823_v6 = vrot.slane %v13937_v55, 5  ;;  %v1832_v24 = vshrl.u32 %v9385_v16, 16  ;;  %v1810_v28 = vor.u32 %v1809_v0, %v1808_v32  ;;  %v10913_v8 = vor.u32 %v1813_v49, %v1812_v27  ;;  %v9387_v27 = vld [vmem:[%s9584_s7 + $0xac] sm:$0xf]  ;;  %8538 = vmatmul.mubr.msk.bf16.gmra.mxu1 %vm679_vm3, %v10857_v34 }
  0xde   : > { %v1824_v23 = vrot.slane %v13938_v54, 6  ;;  %v1827_v53 = vrot.slane %v13939_v17, 5  ;;  %v1828_v19 = vrot.slane %v13940_v22, 6  ;;  %v1819_v5 = vrot.slane %v1817_v42, 5  ;;  %v9386_v54 = vld [vmem:[%s9584_s7 + $0x9c] sm:$0xf]  ;;  %8541 = vmatprep.mubr.msk.bf16.mxu1 %vm679_vm3, %v10865_v15 }
  0xdf   : > { %v13942_v35 = vshll.u32 %v13941_v62, 16  ;;  %v1800_v26 = vsel %vm10371_vm10, %v1796_v9, %v10878_v38  ;;  %v2237_v10 = vsel %vm10464_vm12, %v7420_v46, %v2236_v25  ;;  %v2240_v39 = vsel %vm10464_vm12, %v2238_v18, %v2239_v56  ;;  %v13943_v38 = vld [vmem:[#allocation43_spill] sm:$0xff]  ;;  %8576 = vmatmul.mubr.msk.bf16.gmra.mxu0 %vm679_vm3, %v10880_v13 }
  0xe0   : > { %v7421_v17 = vrot.slane %v9386_v54, 10  ;;  %v2245_v22 = vrot.slane %v2243_v29, 4  ;;  %v2246_v32 = vrot.slane %v9382_v11, 6  ;;  %v1825_v0 = vor.u32 %v1824_v23, %v1823_v6 }
  0xe1   : > { %v1820_v55 = vrot.slane %v13942_v35, 6  ;;  %v2250_v49 = vrot.slane %v9387_v27, 6  ;;  %v1807_v42 = vsel %vm10371_vm10, %v1801_v50, %v1806_v30  ;;  %v1829_v62 = vor.u32 %v1828_v19, %v1827_v53  ;;  %v9388_v50 = vld [vmem:[%s9584_s7 + $0xa8] sm:$0xf] }
  0xe2   : > { %v1834_v35 = vrot.slane %v1832_v24, 5  ;;  %v13944_v9 = vshll.u32 %v13943_v38, 16  ;;  %v10932_v25 = vcombine.low %v2237_v10, %v2240_v39  ;;  %v1811_v46 = vrot.slane %v1810_v28, 4 }
  0xe3   : > { %v1816_v18 = vrot.slane %v10913_v8, 4  ;;  %v1821_v11 = vor.u32 %v1820_v55, %v1819_v5  ;;  %v2244_v56 = vsel %vm10464_vm12, %v7421_v17, %v2243_v29  ;;  %v7422_v6 = vrot.slane %v9388_v50, 10  ;;  %v9391_v50 = vld [vmem:[%s9584_s7 + $0xb4] sm:$0xf] }
  0xe4   : > { %v1835_v58 = vrot.slane %v13944_v9, 6  ;;  %13945 = vst [vmem:[#allocation24_spill] sm:$0xff] %v10932_v25  ;;  %v2252_v23 = vrot.slane %v2250_v49, 4  ;;  %v2253_v30 = vrot.slane %v9385_v16, 6  ;;  %v2247_v53 = vsel %vm10464_vm12, %v2245_v22, %v2246_v32  ;;  %8579 = vmatprep.mubr.msk.bf16.mxu0 %vm679_vm3, %v10932_v25 }
  0xe5   : > { %v1826_v19 = vrot.slane %v1825_v0, 4  ;;  %v13946_v24 = vshrl.u32 %v13821_v52, 16  ;;  %v13947_v5 = vshll.u32 %v13821_v52, 16  ;;  %v1831_v29 = vrot.slane %v1829_v62, 4  ;;  %v9389_v52 = vld [vmem:[%s9584_s7 + $0xbc] sm:$0x3] }
  0xe6   : > { %v1836_v10 = vor.u32 %v1835_v58, %v1834_v35  ;;  %v13948_v39 = vshrl.u32 %v13813_v44, 16  ;;  %v13949_v16 = vshll.u32 %v13813_v44, 16  ;;  %v13950_v22 = vsel %vm10371_vm10, %v10821_v43, %v10804_v45  ;;  %v9390_v0 = vld [vmem:[%s9584_s7 + $0xb8] sm:$0xf] }
  0xe7   : > { %v1838_v28 = vrot.slane %v13946_v24, 5  ;;  %v1839_v55 = vrot.slane %v13947_v5, 6  ;;  %v10958_v32 = vcombine.low %v13950_v22, %v10876_v48  ;;  %v1847_v58 = vshrl.u32 %v9389_v52, 16  ;;  %v11003_v24 = vld [vmem:[%s9584_s7 + $0xc8] sm:$0x3] }
  0xe8   : > { %v1842_v54 = vrot.slane %v13948_v39, 5  ;;  %v1843_v17 = vrot.slane %v13949_v16, 6  ;;  %v2257_v27 = vrot.slane %v9390_v0, 6  ;;  %v10964_v35 = vcombine.low %v1800_v26, %v1807_v42 }
  0xe9   : > { %13951 = vst [vmem:[#allocation26_spill] sm:$0xff] %v10958_v32  ;;  %v1815_v44 = vsel %vm10371_vm10, %v1811_v46, %v10913_v8  ;;  %v2251_v45 = vsel %vm10464_vm12, %v7422_v6, %v2250_v49  ;;  %v2254_v43 = vsel %vm10464_vm12, %v2252_v23, %v2253_v30  ;;  %v1822_v48 = vsel %vm10371_vm10, %v1816_v18, %v1821_v11  ;;  %v10985_v23 = vld [vmem:[%s9584_s7 + $0xc0] sm:$0xf]  ;;  %v10992_v30 = vld [vmem:[%s9584_s7 + $0xc4] sm:$0xf] }
  0xea   : > { %13952 = vst [vmem:[#allocation27_spill] sm:$0xff] %v10964_v35  ;;  %v10975_v38 = vcombine.low %v2244_v56, %v2247_v53  ;;  %v1830_v26 = vsel %vm10371_vm10, %v1826_v19, %v1829_v62  ;;  %v1840_v42 = vor.u32 %v1839_v55, %v1838_v28  ;;  %v1837_v9 = vsel %vm10371_vm10, %v1831_v29, %v1836_v10 }
  0xeb   : > { %v1844_v8 = vor.u32 %v1843_v17, %v1842_v54  ;;  %v13954_v46 = vshll.u32 %v10081_v2, 16  ;;  %v7423_v6 = vrot.slane %v9391_v50, 10  ;;  %8542 = vmatmul.mubr.msk.bf16.gmra.mxu1 %vm679_vm3, %v10958_v32  ;;  %v10989_v18 = vcombine.low %v2251_v45, %v2254_v43  ;;  %v13960_v50 = vld [vmem:[#allocation17_spill] sm:$0xff] }
  0xec   : > { %13953 = vst [vmem:[#allocation29_spill] sm:$0xff] %v10975_v38  ;;  %v1849_v11 = vrot.slane %v1847_v58, 5  ;;  %v2259_v62 = vrot.slane %v2257_v27, 4  ;;  %v2260_v56 = vrot.slane %v9389_v52, 6  ;;  %8545 = vmatprep.mubr.msk.bf16.mxu1 %vm679_vm3, %v10964_v35  ;;  %v10996_v2 = vcombine.low %v1815_v44, %v1822_v48  ;;  %8580 = vmatmul.mubr.msk.bf16.gmra.mxu0 %vm679_vm3, %v10975_v38 }
  0xed   : > { %v1850_v49 = vrot.slane %v13954_v46, 6  ;;  %13955 = vst [vmem:[#allocation37_spill] sm:$0xff] %v10989_v18  ;;  %v10998_v53 = vcombine.low %v1830_v26, %v1837_v9  ;;  %v1841_v19 = vrot.slane %v1840_v42, 4  ;;  %v13608_v28 = vshrl.u32 %v10985_v23, 16  ;;  %8583 = vmatprep.mubr.msk.bf16.mxu0 %vm679_vm3, %v10989_v18 }
  0xee   : > { %13956 = vst [vmem:[#allocation43_spill] sm:$0xff] %v10996_v2  ;;  %v13607_v5 = vshll.u32 %v10985_v23, 16  ;;  %v13606_v55 = vshll.u32 %v10992_v30, 16  ;;  %v1846_v29 = vrot.slane %v1844_v8, 4  ;;  %v2258_v39 = vsel %vm10464_vm12, %v7423_v6, %v2257_v27 }
  0xef   : > { %13957 = vst [vmem:[#allocation83_spill] sm:$0xff] %v10998_v53  ;;  %v1851_v10 = vor.u32 %v1850_v49, %v1849_v11  ;;  %v2261_v54 = vsel %vm10464_vm12, %v2259_v62, %v2260_v56  ;;  %v13605_v16 = vshrl.u32 %v10992_v30, 16  ;;  %v3202_v17 = vrot.slane %v13608_v28, 5 }
  0xf0   : > { %v3203_v22 = vrot.slane %v13607_v5, 6  ;;  %v3207_v52 = vrot.slane %v13606_v55, 6  ;;  %v13604_v58 = vshll.u32 %v11003_v24, 16  ;;  %v11022_v0 = vcombine.low %v2258_v39, %v2261_v54  ;;  %v13963_v39 = vld [vmem:[#allocation23_spill] sm:$0xff]  ;;  %v13964_v54 = vld [vmem:[#allocation28_spill] sm:$0xff]  ;;  %v13977_v5 = vld [vmem:[#allocation25_spill] sm:$0xff] }
  0xf1   : > { %v3206_v27 = vrot.slane %v13605_v16, 5  ;;  %v3211_v44 = vshrl.u32 %v11003_v24, 16  ;;  %v1845_v45 = vsel %vm10371_vm10, %v1841_v19, %v1844_v8  ;;  %v1852_v48 = vsel %vm10371_vm10, %v1846_v29, %v1851_v10  ;;  %v13962_v19 = vld [vmem:[#allocation56_spill] sm:$0xff]  ;;  %v11058_v10 = vld [vmem:[%s13381_s1 + $0x14] sm:$0x3] }
  0xf2   : > { %13958 = vst [vmem:[#allocation84_spill] sm:$0xff] %v11022_v0  ;;  %v3214_v43 = vrot.slane %v13604_v58, 6  ;;  %v3204_v26 = vor.u32 %v3203_v22, %v3202_v17  ;;  %v11039_v49 = vcombine.low %v1845_v45, %v1852_v48  ;;  %v3226_v29 = vsel %vm728_vm0, %v10651_v51, 0  ;;  %v11071_v51 = vld [vmem:[%s13381_s1 + $0x12] sm:$0x3]  ;;  %v13976_v55 = vld [vmem:[#allocation68_spill] sm:$0xff] }
  0xf3   : > { %8546 = vmatmul.mubr.msk.bf16.gmra.mxu1 %vm679_vm3, %v10996_v2  ;;  %v3208_v42 = vor.u32 %v3207_v52, %v3206_v27  ;;  %v3213_v9 = vrot.slane %v3211_v44, 5  ;;  %v3007_v17 = vsel %vm728_vm0, %v10694_v36, 0  ;;  %v13965_v22 = vld [vmem:[#allocation57_spill] sm:$0xff]  ;;  %v13966_v52 = vld [vmem:[#allocation60_spill] sm:$0xff]  ;;  %v11081_v44 = vpop.f32.mrf.mxu0  ;;  %v13968_v36 = vld [vmem:[#allocation42_spill] sm:$0xff]  ;;  %v13982_v57 = vshll.u32 %v10992_v30, 16 }
  0xf4   : > { %8549 = vmatprep.mubr.msk.bf16.mxu1 %vm679_vm3, %v10998_v53  ;;  %8584 = vmatmul.mubr.msk.bf16.gmra.mxu0 %vm679_vm3, %v11022_v0  ;;  %v3205_v46 = vrot.slane %v3204_v26, 4  ;;  %13959 = vst [vmem:[#allocation85_spill] sm:$0xff] %v11039_v49  ;;  %v13967_v27 = vld [vmem:[#allocation36_spill] sm:$0xff]  ;;  %v13970_v26 = vld [vmem:[#allocation62_spill] sm:$0xff] }
  0xf5   : > { %8623 = vmatprep.mubr.msk.bf16.mxu0 %vm679_vm3, %v13960_v50  ;;  %v3210_v8 = vrot.slane %v3208_v42, 4  ;;  %v3215_v6 = vor.u32 %v3214_v43, %v3213_v9  ;;  %v11085_v45 = vpop.f32.mrf.mxu0  ;;  %v13969_v43 = vld [vmem:[#allocation61_spill] sm:$0xff]  ;;  %v2774_v0 = vrot.slane %v13982_v57, 5 }
  0xf6   : > { %v3209_v11 = vsel %vm10371_vm10, %v3205_v46, %v3208_v42  ;;  %v13971_v42 = vld [vmem:[#allocation48_spill] sm:$0xff]  ;;  %v13972_v46 = vld [vmem:[#allocation51_spill] sm:$0xff] }
  0xf7   : > { %v3216_v62 = vsel %vm10371_vm10, %v3210_v8, %v3215_v6  ;;  %v11089_v48 = vpop.f32.mrf.mxu1  ;;  %v11095_v9 = vpop.f32.mrf.mxu0  ;;  %v13973_v6 = vld [vmem:[#allocation64_spill] sm:$0xff] }
  0xf8   : > { %v11047_v56 = vcombine.low %v3209_v11, %v3216_v62  ;;  %v13974_v62 = vld [vmem:[#allocation13_spill] sm:$0xff] }
  0xf9   : > { %v11099_v50 = vpop.f32.mrf.mxu1  ;;  %v11101_v8 = vpop.f32.mrf.mxu0 }
  0xfa   : > { %13961 = vst [vmem:[#allocation17_spill] sm:$0xff] %v11047_v56 }
  0xfb   : > { %8550 = vmatmul.mubr.msk.bf16.gmra.mxu1 %vm679_vm3, %v11039_v49  ;;  %v11105_v11 = vpop.f32.mrf.mxu1 }
  0xfc   : > { %8589 = vmatprep.mubr.msk.bf16.mxu1 %vm679_vm3, %v13962_v19  ;;  %8624 = vmatmul.mubr.msk.bf16.vlgmr.msra.gmra.mxu0 %vm679_vm3, %v13963_v39  ;;  %v13981_v39 = vshll.u32 %v10985_v23, 16 }
  0xfd   : > { %8690 = vmatpush3.bf16.msra.mxu0 %v3226_v29  ;;  %8627 = vmatprep.mubr.msk.bf16.mxu0 %vm679_vm3, %v13964_v54  ;;  %v13975_v29 = vld [vmem:[#allocation20_spill] sm:$0xff] }
  0xfe   : > { %9280 = vmatprep.subr.msk.bf16.mxu0 %vm728_vm0, %v11058_v10 }
 0x103   : > { %8590 = vmatmul.mubr.msk.bf16.vlgmr.msra.gmra.mxu1 %vm679_vm3, %v13965_v22  ;;  %v11111_v19 = vpop.f32.mrf.mxu0 }
 0x104   : > { %8656 = vmatpush3.bf16.msra.mxu1 %v3007_v17  ;;  %8593 = vmatprep.mubr.msk.bf16.mxu1 %vm679_vm3, %v13966_v52  ;;  %v11115_v17 = vpop.f32.mrf.mxu1 }
 0x105   : > { %9279 = vmatprep.subr.msk.bf16.mxu1 %vm728_vm0, %v11071_v51  ;;  %8628 = vmatmul.mubr.msk.bf16.gmra.mxu0 %vm679_vm3, %v13967_v27  ;;  %v11117_v58 = vpop.f32.mrf.mxu0  ;;  %v13980_v27 = vshrl.u32 %v10985_v23, 16 }
 0x106   : > { %8631 = vmatprep.mubr.msk.bf16.mxu0 %vm679_vm3, %v13968_v36 }
 0x107   : > { %v11127_v28 = vpop.f32.mrf.mxu0  ;;  %v2765_v54 = vrot.slane %v13980_v27, 4  ;;  %v13985_v27 = vld [vmem:[#allocation44_spill] sm:$0xff] }
 0x108   : > { %v11121_v16 = vpop.f32.mrf.mxu1 }
 0x10b   : > { %8594 = vmatmul.mubr.msk.bf16.gmra.mxu1 %vm679_vm3, %v13969_v43 }
 0x10c   : > { %8597 = vmatprep.mubr.msk.bf16.mxu1 %vm679_vm3, %v13970_v26 }
 0x10d   : > { %8632 = vmatmul.mubr.msk.bf16.gmra.mxu0 %vm679_vm3, %v13971_v42  ;;  %v13979_v42 = vld [vmem:[#allocation69_spill] sm:$0xff] }
 0x10e   : > { %8635 = vmatprep.mubr.msk.bf16.mxu0 %vm679_vm3, %v13972_v46  ;;  %v11133_v46 = vpop.f32.mrf.mxu0 }
 0x113   : > { %8598 = vmatmul.mubr.msk.bf16.gmra.mxu1 %vm679_vm3, %v13973_v6 }
 0x114   : > { %8601 = vmatprep.mubr.msk.bf16.mxu1 %vm679_vm3, %v10297_v31  ;;  %v13997_v31 = vld [vmem:[#allocation58_spill] sm:$0xff] }
 0x115   : > { %8636 = vmatmul.mubr.msk.bf16.gmra.mxu0 %vm679_vm3, %v13974_v62  ;;  %v13978_v62 = vld [vmem:[#allocation32_spill] sm:$0xff]  ;;  %v11151_v38 = vpop.f32.mrf.mxu0 }
 0x116   : > { %8639 = vmatprep.mubr.msk.bf16.mxu0 %vm679_vm3, %v13975_v29  ;;  %v11131_v29 = vpop.f32.mrf.mxu1 }
 0x117   : > { %v11157_v4 = vpop.f32.mrf.mxu0 }
 0x118   : > { %v11137_v36 = vpop.f32.mrf.mxu1 }
 0x11a   : > { %v11153_v25 = vpop.f32.mrf.mxu1 }
 0x11b   : > { %8602 = vmatmul.mubr.msk.bf16.gmra.mxu1 %vm679_vm3, %v10301_v63 }
 0x11c   : > { %8605 = vmatprep.mubr.msk.bf16.mxu1 %vm679_vm3, %v13976_v55  ;;  %v11161_v57 = vpop.f32.mrf.mxu1 }
 0x11d   : > { %8640 = vmatmul.mubr.msk.bf16.gmra.mxu0 %vm679_vm3, %v13977_v5  ;;  %v2768_v5 = vrot.slane %v13981_v39, 5 }
 0x11e   : > { %8643 = vmatprep.mubr.msk.bf16.mxu0 %vm679_vm3, %v13978_v62  ;;  %v13983_v62 = vshrl.u32 %v10992_v30, 16 }
 0x11f   : > { %v2769_v39 = vor.u32 %v2768_v5, %v2765_v54  ;;  %v11169_v5 = vpop.f32.mrf.mxu0  ;;  %v13988_v54 = vld [vmem:[#allocation52_spill] sm:$0xff] }
 0x120   : > { %v2778_v18 = vrot.slane %v13983_v62, 4 }
 0x121   : > { %v2770_v62 = vrot.slane %v2769_v39, 4 }
 0x122   : > { %v2779_v13 = vor.u32 %v2778_v18, %v2774_v0  ;;  %v11171_v18 = vpop.f32.mrf.mxu1 }
 0x123   : > { %8606 = vmatmul.mubr.msk.bf16.gmra.mxu1 %vm679_vm3, %v13979_v42  ;;  %v2775_v39 = vsel %vm9624_vm4, %v2770_v62, %v2774_v0  ;;  %v3437_v42 = vsel %vm728_vm0, %v11071_v51, 0 }
 0x124   : > { %8609 = vmatprep.mubr.msk.bf16.mxu1 %vm679_vm3, %v10345_v33  ;;  %v2780_v33 = vrot.slane %v2779_v13, 4 }
 0x125   : > { %8644 = vmatmul.mubr.msk.bf16.gmra.mxu0 %vm679_vm3, %v13984_v1  ;;  %v13986_v1 = vshll.u32 %v11003_v24, 16 }
 0x126   : > { %8647 = vmatprep.mubr.msk.bf16.mxu0 %vm679_vm3, %v13985_v27  ;;  %v13992_v27 = vld [vmem:[#allocation53_spill] sm:$0xff] }
 0x127   : > { %v2784_v47 = vrot.slane %v13986_v1, 5  ;;  %v11179_v1 = vpop.f32.mrf.mxu0 }
 0x129   : > { %v2785_v13 = vsel %vm9624_vm4, %v2780_v33, %v2784_v47  ;;  %v11197_v33 = vcombine.low %v10985_v23, %v10992_v30 }
 0x12b   : > { %8610 = vmatmul.mubr.msk.bf16.gmra.mxu1 %vm679_vm3, %v10350_v60  ;;  %v11181_v60 = vcombine.low %v2775_v39, %v2785_v13  ;;  %13991 = vst [vmem:[#allocation57_spill] sm:$0xff] %v11197_v33 }
 0x12c   : > { %8613 = vmatprep.mubr.msk.bf16.mxu1 %vm679_vm3, %v10397_v61  ;;  %v11189_v61 = vpop.f32.mrf.mxu0 }
 0x12d   : > { %8648 = vmatmul.mubr.msk.bf16.gmra.mxu0 %vm679_vm3, %v13987_v20  ;;  %13990 = vst [vmem:[#allocation56_spill] sm:$0xff] %v11181_v60  ;;  %v11185_v20 = vpop.f32.mrf.mxu1 }
 0x12e   : > { %8651 = vmatprep.mubr.msk.bf16.mxu0 %vm679_vm3, %v13988_v54  ;;  %v11201_v47 = vpop.f32.mrf.mxu0 }
 0x12f   : > { %v11193_v0 = vpop.f32.mrf.mxu1 }
 0x130   : > { %v11203_v62 = vpop.f32.mrf.mxu0 }
 0x131   : > { %v11205_v39 = vpop.f32.mrf.mxu1 }
 0x132   : > { %v11209_v13 = vpop.f32.mrf.mxu0 }
 0x133   : > { %8614 = vmatmul.mubr.msk.bf16.gmra.mxu1 %vm679_vm3, %v10444_v12  ;;  %v11215_v54 = vpop.f32.mrf.mxu1  ;;  %v13994_v12 = vld [vmem:[#allocation30_spill] sm:$0xff] }
 0x134   : > { %8617 = vmatprep.mubr.msk.bf16.mxu1 %vm679_vm3, %v10455_v21  ;;  %v8489_v21 = vpop.f32.mrf.mxu0 }
 0x135   : > { %8652 = vmatmul.mubr.msk.bf16.gmra.mxu0 %vm679_vm3, %v11181_v60  ;;  %v3643_v60 = vsel %vm728_vm0, %v11058_v10, 0 }
 0x136   : > { %8691 = vmatprep.mubr.msk.bf16.mxu0 %vm679_vm3, %v10411_v14  ;;  %v11220_v14 = vld [vmem:[%s13381_s1 + $0x18] sm:$0x3] }
 0x13b   : > { %8618 = vmatmul.mubr.msk.bf16.gmra.mxu1 %vm679_vm3, %v11197_v33  ;;  %v11224_v33 = vpop.f32.mrf.mxu1 }
 0x13c   : > { %8657 = vmatprep.mubr.msk.bf16.mxu1 %vm679_vm3, %v13992_v27  ;;  %13993 = vst [vmem:[#allocation53_spill] sm:$0xff] %v11224_v33  ;;  %v1451_v27 = vpop.f32.mrf.mxu0  ;;  %v13999_v33 = vld [vmem:[#allocation33_spill] sm:$0xff] }
 0x13d   : > { %8692 = vmatmul.mubr.msk.bf16.vlgmr.msra.gmra.mxu0 %vm679_vm3, %v10548_v3  ;;  %v11230_v10 = vpop.f32.mrf.mxu1  ;;  %v11237_v3 = vld [vmem:[%s13381_s1 + $0x16] sm:$0x3] }
 0x13e   : > { %8758 = vmatpush3.bf16.msra.mxu0 %v3643_v60  ;;  %8695 = vmatprep.mubr.msk.bf16.mxu0 %vm679_vm3, %v13994_v12  ;;  %13995 = vst [vmem:[#allocation86_spill] sm:$0xff] %v11230_v10  ;;  %v8490_v55 = vpop.f32.mrf.mxu0  ;;  %v13996_v60 = vld [vmem:[#allocation54_spill] sm:$0xff] }
 0x13f   : > { %9282 = vmatprep.subr.msk.bf16.mxu0 %vm728_vm0, %v11220_v14  ;;  %v8455_v41 = vpop.f32.mrf.mxu1 }
 0x140   : > { %v1067_v12 = vadd.f32 %v8455_v41, %v11081_v44  ;;  %v1454_v63 = vpop.f32.mrf.mxu0 }
 0x141   : > { %v1058_v6 = vpop.f32.mrf.mxu1 }
 0x142   : > { %v11246_v51 = vadd.f32 %v8489_v21, %v1067_v12  ;;  %v1059_v26 = vadd.f32 %v1058_v6, %v11085_v45  ;;  %v8493_v10 = vpop.f32.mrf.mxu0  ;;  %v14000_v6 = vld [vmem:[#allocation59_spill] sm:$0xff] }
 0x143   : > { %8658 = vmatmul.mubr.msk.bf16.vlgmr.msra.gmra.mxu1 %vm679_vm3, %v13996_v60  ;;  %v8456_v60 = vpop.f32.mrf.mxu1 }
 0x144   : > { %8724 = vmatpush3.bf16.msra.mxu1 %v3437_v42  ;;  %8661 = vmatprep.mubr.msk.bf16.mxu1 %vm679_vm3, %v13997_v31  ;;  %13998 = vst [vmem:[#allocation87_spill] sm:$0xff] %v11246_v51  ;;  %v11253_v41 = vadd.f32 %v1451_v27, %v1059_v26  ;;  %v1070_v44 = vadd.f32 %v8456_v60, %v11095_v9  ;;  %v1467_v42 = vpop.f32.mrf.mxu0  ;;  %v14001_v26 = vld [vmem:[#allocation63_spill] sm:$0xff] }
 0x145   : > { %9281 = vmatprep.subr.msk.bf16.mxu1 %vm728_vm0, %v11237_v3  ;;  %8696 = vmatmul.mubr.msk.bf16.gmra.mxu0 %vm679_vm3, %v13999_v33  ;;  %v1061_v31 = vpop.f32.mrf.mxu1 }
 0x146   : > { %8699 = vmatprep.mubr.msk.bf16.mxu0 %vm679_vm3, %v10668_v59  ;;  %v11256_v43 = vadd.f32 %v8490_v55, %v1070_v44  ;;  %v1062_v12 = vadd.f32 %v1061_v31, %v11101_v8  ;;  %v8494_v21 = vpop.f32.mrf.mxu0 }
 0x147   : > { %v8459_v45 = vpop.f32.mrf.mxu1 }
 0x148   : > { %v11261_v33 = vadd.f32 %v1454_v63, %v1062_v12  ;;  %v1083_v51 = vadd.f32 %v8459_v45, %v11111_v19  ;;  %v1470_v59 = vpop.f32.mrf.mxu0  ;;  %v14002_v45 = vld [vmem:[#allocation65_spill] sm:$0xff] }
 0x149   : > { %v1074_v9 = vpop.f32.mrf.mxu1 }
 0x14a   : > { %v11266_v27 = vadd.f32 %v8493_v10, %v1083_v51  ;;  %v1075_v55 = vadd.f32 %v1074_v9, %v11117_v58  ;;  %v8497_v60 = vpop.f32.mrf.mxu0 }
 0x14b   : > { %8662 = vmatmul.mubr.msk.bf16.gmra.mxu1 %vm679_vm3, %v14000_v6  ;;  %v8460_v31 = vpop.f32.mrf.mxu1 }
 0x14c   : > { %8665 = vmatprep.mubr.msk.bf16.mxu1 %vm679_vm3, %v14001_v26  ;;  %v11273_v63 = vadd.f32 %v1467_v42, %v1075_v55  ;;  %v1086_v8 = vadd.f32 %v8460_v31, %v11127_v28  ;;  %v1483_v19 = vpop.f32.mrf.mxu0  ;;  %v14003_v42 = vld [vmem:[#allocation70_spill] sm:$0xff] }
 0x14d   : > { %8700 = vmatmul.mubr.msk.bf16.gmra.mxu0 %vm679_vm3, %v10682_v40  ;;  %v1077_v44 = vpop.f32.mrf.mxu1 }
 0x14e   : > { %8703 = vmatprep.mubr.msk.bf16.mxu0 %vm679_vm3, %v10838_v37  ;;  %v11276_v12 = vadd.f32 %v8494_v21, %v1086_v8  ;;  %v1078_v10 = vadd.f32 %v1077_v44, %v11133_v46  ;;  %v8498_v51 = vpop.f32.mrf.mxu0 }
 0x14f   : > { %v8463_v58 = vpop.f32.mrf.mxu1 }
 0x150   : > { %v11281_v9 = vadd.f32 %v1470_v59, %v1078_v10  ;;  %v1099_v40 = vadd.f32 %v8463_v58, %v11151_v38  ;;  %v1486_v37 = vpop.f32.mrf.mxu0  ;;  %v14004_v58 = vld [vmem:[#allocation71_spill] sm:$0xff] }
 0x151   : > { %v1090_v28 = vpop.f32.mrf.mxu1 }
 0x152   : > { %v11286_v55 = vadd.f32 %v8497_v60, %v1099_v40  ;;  %v1091_v21 = vadd.f32 %v1090_v28, %v11157_v4  ;;  %v8501_v31 = vpop.f32.mrf.mxu0 }
 0x153   : > { %8666 = vmatmul.mubr.msk.bf16.gmra.mxu1 %vm679_vm3, %v14002_v45  ;;  %v8464_v46 = vpop.f32.mrf.mxu1 }
 0x154   : > { %8669 = vmatprep.mubr.msk.bf16.mxu1 %vm679_vm3, %v14003_v42  ;;  %v11293_v59 = vadd.f32 %v1483_v19, %v1091_v21  ;;  %v1102_v38 = vadd.f32 %v8464_v46, %v11169_v5  ;;  %v1499_v8 = vpop.f32.mrf.mxu0  ;;  %v14005_v19 = vld [vmem:[#allocation72_spill] sm:$0xff] }
 0x155   : > { %8704 = vmatmul.mubr.msk.bf16.gmra.mxu0 %vm679_vm3, %v10853_v7  ;;  %v1093_v44 = vpop.f32.mrf.mxu1 }
 0x156   : > { %8707 = vmatprep.mubr.msk.bf16.mxu0 %vm679_vm3, %v10857_v34  ;;  %v11296_v10 = vadd.f32 %v8498_v51, %v1102_v38  ;;  %v1094_v40 = vadd.f32 %v1093_v44, %v11179_v1  ;;  %v8502_v60 = vpop.f32.mrf.mxu0 }
 0x157   : > { %v8467_v4 = vpop.f32.mrf.mxu1 }
 0x158   : > { %v11301_v28 = vadd.f32 %v1486_v37, %v1094_v40  ;;  %v1115_v7 = vadd.f32 %v8467_v4, %v11189_v61  ;;  %v1502_v34 = vpop.f32.mrf.mxu0  ;;  %v14006_v4 = vld [vmem:[#allocation75_spill] sm:$0xff] }
 0x159   : > { %v1106_v5 = vpop.f32.mrf.mxu1 }
 0x15a   : > { %v11306_v21 = vadd.f32 %v8501_v31, %v1115_v7  ;;  %v1107_v51 = vadd.f32 %v1106_v5, %v11201_v47  ;;  %v8505_v46 = vpop.f32.mrf.mxu0 }
 0x15b   : > { %8670 = vmatmul.mubr.msk.bf16.gmra.mxu1 %vm679_vm3, %v14004_v58  ;;  %v8468_v1 = vpop.f32.mrf.mxu1 }
 0x15c   : > { %8673 = vmatprep.mubr.msk.bf16.mxu1 %vm679_vm3, %v14005_v19  ;;  %v11313_v37 = vadd.f32 %v1499_v8, %v1107_v51  ;;  %v1118_v61 = vadd.f32 %v8468_v1, %v11203_v62  ;;  %v1515_v38 = vpop.f32.mrf.mxu0  ;;  %v14007_v8 = vld [vmem:[#allocation47_spill] sm:$0xff] }
 0x15d   : > { %8708 = vmatmul.mubr.msk.bf16.gmra.mxu0 %vm679_vm3, %v10865_v15  ;;  %v1109_v44 = vpop.f32.mrf.mxu1 }
 0x15e   : > { %8711 = vmatprep.mubr.msk.bf16.mxu0 %vm679_vm3, %v10958_v32  ;;  %v11316_v40 = vadd.f32 %v8502_v60, %v1118_v61  ;;  %v1110_v7 = vadd.f32 %v1109_v44, %v11209_v13  ;;  %v8506_v31 = vpop.f32.mrf.mxu0 }
 0x15f   : > { %v8471_v47 = vpop.f32.mrf.mxu1 }
 0x160   : > { %v11321_v5 = vadd.f32 %v1502_v34, %v1110_v7  ;;  %v1131_v15 = vadd.f32 %v8471_v47, %v11089_v48  ;;  %v1518_v32 = vpop.f32.mrf.mxu0  ;;  %v14008_v47 = vld [vmem:[#allocation34_spill] sm:$0xff] }
 0x161   : > { %v1122_v62 = vpop.f32.mrf.mxu1 }
 0x162   : > { %v11326_v51 = vadd.f32 %v8505_v46, %v1131_v15  ;;  %v1123_v60 = vadd.f32 %v1122_v62, %v11099_v50  ;;  %v8509_v1 = vpop.f32.mrf.mxu0 }
 0x163   : > { %8674 = vmatmul.mubr.msk.bf16.gmra.mxu1 %vm679_vm3, %v14006_v4  ;;  %v8472_v13 = vpop.f32.mrf.mxu1 }
 0x164   : > { %8677 = vmatprep.mubr.msk.bf16.mxu1 %vm679_vm3, %v14007_v8  ;;  %v11333_v34 = vadd.f32 %v1515_v38, %v1123_v60  ;;  %v1134_v48 = vadd.f32 %v8472_v13, %v11105_v11  ;;  %v1531_v61 = vpop.f32.mrf.mxu0  ;;  %v14009_v38 = vld [vmem:[#allocation46_spill] sm:$0xff]  ;;  %v2993_v11 = vrot.slane %v10992_v30, 5 }
 0x165   : > { %8712 = vmatmul.mubr.msk.bf16.gmra.mxu0 %vm679_vm3, %v10964_v35  ;;  %v1125_v44 = vpop.f32.mrf.mxu1 }
 0x166   : > { %8715 = vmatprep.mubr.msk.bf16.mxu0 %vm679_vm3, %v10996_v2  ;;  %v11336_v7 = vadd.f32 %v8506_v31, %v1134_v48  ;;  %v1126_v15 = vadd.f32 %v1125_v44, %v11115_v17  ;;  %v8510_v46 = vpop.f32.mrf.mxu0 }
 0x167   : > { %v8475_v50 = vpop.f32.mrf.mxu1 }
 0x168   : > { %v11341_v62 = vadd.f32 %v1518_v32, %v1126_v15  ;;  %v1147_v35 = vadd.f32 %v8475_v50, %v11121_v16  ;;  %v1534_v2 = vpop.f32.mrf.mxu0  ;;  %v7493_v32 = vrot.slane %v10985_v23, 9  ;;  %v2995_v50 = vrot.slane %v2993_v11, 4 }
 0x169   : > { %v1138_v60 = vpop.f32.mrf.mxu1 }
 0x16a   : > { %v11347_v31 = vadd.f32 %v8509_v1, %v1147_v35  ;;  %v1139_v17 = vadd.f32 %v1138_v60, %v11131_v29  ;;  %v8513_v13 = vpop.f32.mrf.mxu0  ;;  %v2996_v35 = vrot.slane %v11003_v24, 5  ;;  %v2994_v8 = vsel %vm10103_vm7, %v7493_v32, %v2993_v11 }
 0x16b   : > { %8678 = vmatmul.mubr.msk.bf16.gmra.mxu1 %vm679_vm3, %v14008_v47  ;;  %v8476_v48 = vpop.f32.mrf.mxu1  ;;  %v14010_v47 = vld [vmem:[#allocation76_spill] sm:$0xff] }
 0x16c   : > { %8681 = vmatprep.mubr.msk.bf16.mxu1 %vm679_vm3, %v14009_v38  ;;  %v11355_v16 = vadd.f32 %v1531_v61, %v1139_v17  ;;  %v1150_v44 = vadd.f32 %v8476_v48, %v11137_v36  ;;  %v1547_v15 = vpop.f32.mrf.mxu0  ;;  %v14011_v36 = vld [vmem:[#allocation78_spill] sm:$0xff] }
 0x16d   : > { %8716 = vmatmul.mubr.msk.bf16.gmra.mxu0 %vm679_vm3, %v10998_v53  ;;  %v1141_v1 = vpop.f32.mrf.mxu1 }
 0x16e   : > { %8719 = vmatprep.mubr.msk.bf16.mxu0 %vm679_vm3, %v11039_v49  ;;  %v11359_v29 = vadd.f32 %v8510_v46, %v1150_v44  ;;  %v1142_v60 = vadd.f32 %v1141_v1, %v11153_v25  ;;  %v8514_v53 = vpop.f32.mrf.mxu0  ;;  %v2997_v46 = vsel %vm10103_vm7, %v2995_v50, %v2996_v35 }
 0x16f   : > { %v8479_v38 = vpop.f32.mrf.mxu1 }
 0x170   : > { %v11364_v49 = vadd.f32 %v1534_v2, %v1142_v60  ;;  %v1163_v61 = vadd.f32 %v8479_v38, %v11161_v57  ;;  %v1550_v17 = vpop.f32.mrf.mxu0  ;;  %v11378_v57 = vcombine.low %v2994_v8, %v2997_v46 }
 0x171   : > { %v1154_v25 = vpop.f32.mrf.mxu1 }
 0x172   : > { %v11373_v44 = vadd.f32 %v8513_v13, %v1163_v61  ;;  %v1155_v1 = vadd.f32 %v1154_v25, %v11171_v18  ;;  %14013 = vst [vmem:[#allocation88_spill] sm:$0xff] %v11378_v57 }
 0x173   : > { %8682 = vmatmul.mubr.msk.bf16.gmra.mxu1 %vm679_vm3, %v14010_v47  ;;  %v8517_v47 = vpop.f32.mrf.mxu0  ;;  %v8480_v2 = vpop.f32.mrf.mxu1 }
 0x174   : > { %8685 = vmatprep.mubr.msk.bf16.mxu1 %vm679_vm3, %v14011_v36  ;;  %v11382_v38 = vadd.f32 %v1547_v15, %v1155_v1  ;;  %v1166_v11 = vadd.f32 %v8480_v2, %v11185_v20  ;;  %v14014_v15 = vld [vmem:[#allocation80_spill] sm:$0xff]  ;;  %v4083_v20 = vsel %vm728_vm0, %v11220_v14, 0  ;;  %v14015_v1 = vld [vmem:[#allocation61_spill] sm:$0xff] }
 0x175   : > { %8720 = vmatmul.mubr.msk.bf16.gmra.mxu0 %vm679_vm3, %v11047_v56  ;;  %v1563_v32 = vpop.f32.mrf.mxu0  ;;  %v1157_v50 = vpop.f32.mrf.mxu1  ;;  %v14016_v2 = vld [vmem:[#allocation53_spill] sm:$0xff] }
 0x176   : > { %8759 = vmatprep.mubr.msk.bf16.mxu0 %vm679_vm3, %v13965_v22  ;;  %v11385_v13 = vadd.f32 %v8514_v53, %v1166_v11  ;;  %v1158_v18 = vadd.f32 %v1157_v50, %v11193_v0  ;;  %v11400_v0 = vld [vmem:[%s13381_s1 + $0x1c] sm:$0x3] }
 0x177   : > { %v8518_v35 = vpop.f32.mrf.mxu0  ;;  %v8483_v60 = vpop.f32.mrf.mxu1 }
 0x178   : > { %v11390_v8 = vadd.f32 %v1550_v17, %v1158_v18  ;;  %v1179_v61 = vadd.f32 %v8483_v60, %v11205_v39  ;;  %v14017_v60 = vld [vmem:[#allocation86_spill] sm:$0xff] }
 0x179   : > { %v1566_v22 = vpop.f32.mrf.mxu0  ;;  %v1170_v53 = vpop.f32.mrf.mxu1 }
 0x17a   : > { %v11402_v46 = vadd.f32 %v8517_v47, %v1179_v61  ;;  %v1171_v17 = vadd.f32 %v1170_v53, %v11215_v54  ;;  %v3871_v54 = vsel %vm728_vm0, %v11237_v3, 0  ;;  %v14018_v53 = vld [vmem:[#allocation55_spill] sm:$0xff] }
 0x17b   : > { %8686 = vmatmul.mubr.msk.bf16.gmra.mxu1 %vm679_vm3, %v11378_v57  ;;  %v8557_v25 = vpop.f32.mrf.mxu0  ;;  %v8484_v39 = vpop.f32.mrf.mxu1 }
 0x17c   : > { %8725 = vmatprep.mubr.msk.bf16.mxu1 %vm679_vm3, %v14014_v15  ;;  %v11409_v14 = vadd.f32 %v1563_v32, %v1171_v17  ;;  %v1182_v11 = vadd.f32 %v8484_v39, %v14016_v2  ;;  %v11422_v32 = vld [vmem:[%s13381_s1 + $0x1a] sm:$0x3]  ;;  %v14019_v39 = vld [vmem:[#allocation87_spill] sm:$0xff] }
 0x17d   : > { %8760 = vmatmul.mubr.msk.bf16.vlgmr.msra.gmra.mxu0 %vm679_vm3, %v13966_v52  ;;  %v2397_v50 = vpop.f32.mrf.mxu0  ;;  %v1173_v47 = vpop.f32.mrf.mxu1  ;;  %v14021_v52 = vld [vmem:[#allocation62_spill] sm:$0xff] }
 0x17e   : > { %8826 = vmatpush3.bf16.msra.mxu0 %v4083_v20  ;;  %8763 = vmatprep.mubr.msk.bf16.mxu0 %vm679_vm3, %v14015_v1  ;;  %v11416_v18 = vadd.f32 %v8518_v35, %v1182_v11  ;;  %v1174_v61 = vadd.f32 %v1173_v47, %v14017_v60  ;;  %v14020_v35 = vld [vmem:[#allocation31_spill] sm:$0xff] }
 0x17f   : > { %9284 = vmatprep.subr.msk.bf16.mxu0 %vm728_vm0, %v11400_v0  ;;  %v8558_v15 = vpop.f32.mrf.mxu0  ;;  %v8523_v20 = vpop.f32.mrf.mxu1 }
 0x180   : > { %v11426_v17 = vadd.f32 %v1566_v22, %v1174_v61  ;;  %v2117_v2 = vadd.f32 %v8523_v20, %v14019_v39  ;;  %v14022_v61 = vld [vmem:[#allocation64_spill] sm:$0xff] }
 0x181   : > { %v2400_v3 = vpop.f32.mrf.mxu0  ;;  %v1988_v11 = vpop.f32.mrf.mxu1 }
 0x182   : > { %v11433_v47 = vadd.f32 %v8557_v25, %v2117_v2  ;;  %v2115_v60 = vadd.f32 %v1988_v11, %v11253_v41  ;;  %v14023_v11 = vld [vmem:[#allocation39_spill] sm:$0xff] }
 0x183   : > { %8726 = vmatmul.mubr.msk.bf16.vlgmr.msra.gmra.mxu1 %vm679_vm3, %v14018_v53  ;;  %v8561_v1 = vpop.f32.mrf.mxu0  ;;  %v8524_v22 = vpop.f32.mrf.mxu1 }
 0x184   : > { %8792 = vmatpush3.bf16.msra.mxu1 %v3871_v54  ;;  %8729 = vmatprep.mubr.msk.bf16.mxu1 %vm679_vm3, %v14020_v35  ;;  %v11440_v54 = vadd.f32 %v2397_v50, %v2115_v60  ;;  %v2118_v20 = vadd.f32 %v8524_v22, %v11256_v43  ;;  %v14024_v50 = vld [vmem:[#allocation8_spill] sm:$0xff] }
 0x185   : > { %9283 = vmatprep.subr.msk.bf16.mxu1 %vm728_vm0, %v11422_v32  ;;  %8764 = vmatmul.mubr.msk.bf16.gmra.mxu0 %vm679_vm3, %v14021_v52  ;;  %v2413_v39 = vpop.f32.mrf.mxu0  ;;  %v1991_v56 = vpop.f32.mrf.mxu1 }
 0x186   : > { %8767 = vmatprep.mubr.msk.bf16.mxu0 %vm679_vm3, %v14022_v61  ;;  %v11443_v35 = vadd.f32 %v8558_v15, %v2118_v20  ;;  %v2116_v25 = vadd.f32 %v1991_v56, %v11261_v33  ;;  %v14025_v56 = vld [vmem:[#allocation66_spill] sm:$0xff]  ;;  %v14026_v20 = vld [vmem:[#allocation67_spill] sm:$0xff] }
 0x187   : > { %v8562_v2 = vpop.f32.mrf.mxu0  ;;  %v8527_v41 = vpop.f32.mrf.mxu1 }
 0x188   : > { %v11448_v52 = vadd.f32 %v2400_v3, %v2116_v25  ;;  %v2121_v53 = vadd.f32 %v8527_v41, %v11266_v27 }
 0x189   : > { %v2416_v61 = vpop.f32.mrf.mxu0  ;;  %v2004_v43 = vpop.f32.mrf.mxu1 }
 0x18a   : > { %v11453_v60 = vadd.f32 %v8561_v1, %v2121_v53  ;;  %v2119_v15 = vadd.f32 %v2004_v43, %v11273_v63  ;;  %v14027_v43 = vld [vmem:[#allocation82_spill] sm:$0xff] }
 0x18b   : > { %8730 = vmatmul.mubr.msk.bf16.gmra.mxu1 %vm679_vm3, %v14023_v11  ;;  %v8565_v22 = vpop.f32.mrf.mxu0  ;;  %v8528_v33 = vpop.f32.mrf.mxu1 }
 0x18c   : > { %8733 = vmatprep.mubr.msk.bf16.mxu1 %vm679_vm3, %v14024_v50  ;;  %v11460_v3 = vadd.f32 %v2413_v39, %v2119_v15  ;;  %v2122_v27 = vadd.f32 %v8528_v33, %v11276_v12  ;;  %v14028_v39 = vld [vmem:[#allocation10_spill] sm:$0xff] }
 0x18d   : > { %8768 = vmatmul.mubr.msk.bf16.gmra.mxu0 %vm679_vm3, %v14025_v56  ;;  %v2429_v25 = vpop.f32.mrf.mxu0  ;;  %v2007_v41 = vpop.f32.mrf.mxu1 }
 0x18e   : > { %8771 = vmatprep.mubr.msk.bf16.mxu0 %vm679_vm3, %v14026_v20  ;;  %v11463_v50 = vadd.f32 %v8562_v2, %v2122_v27  ;;  %v2120_v1 = vadd.f32 %v2007_v41, %v11281_v9  ;;  %v14029_v9 = vld [vmem:[#allocation68_spill] sm:$0xff]  ;;  %v14030_v41 = vld [vmem:[#allocation69_spill] sm:$0xff] }
 0x18f   : > { %v8566_v53 = vpop.f32.mrf.mxu0  ;;  %v8531_v63 = vpop.f32.mrf.mxu1 }
 0x190   : > { %v11468_v56 = vadd.f32 %v2416_v61, %v2120_v1  ;;  %v2125_v11 = vadd.f32 %v8531_v63, %v11286_v55 }
 0x191   : > { %v2432_v20 = vpop.f32.mrf.mxu0  ;;  %v2020_v12 = vpop.f32.mrf.mxu1 }
 0x192   : > { %v11473_v15 = vadd.f32 %v8565_v22, %v2125_v11  ;;  %v2123_v2 = vadd.f32 %v2020_v12, %v11293_v59  ;;  %v14031_v12 = vld [vmem:[#allocation12_spill] sm:$0xff] }
 0x193   : > { %8734 = vmatmul.mubr.msk.bf16.gmra.mxu1 %vm679_vm3, %v14027_v43  ;;  %v8569_v33 = vpop.f32.mrf.mxu0  ;;  %v8532_v27 = vpop.f32.mrf.mxu1 }
 0x194   : > { %8737 = vmatprep.mubr.msk.bf16.mxu1 %vm679_vm3, %v14028_v39  ;;  %v11480_v61 = vadd.f32 %v2429_v25, %v2123_v2  ;;  %v2126_v55 = vadd.f32 %v8532_v27, %v11296_v10  ;;  %v14032_v25 = vld [vmem:[#allocation15_spill] sm:$0xff] }
 0x195   : > { %8772 = vmatmul.mubr.msk.bf16.gmra.mxu0 %vm679_vm3, %v14029_v9  ;;  %v2445_v1 = vpop.f32.mrf.mxu0  ;;  %v2023_v63 = vpop.f32.mrf.mxu1 }
 0x196   : > { %8775 = vmatprep.mubr.msk.bf16.mxu0 %vm679_vm3, %v14030_v41  ;;  %v11483_v39 = vadd.f32 %v8566_v53, %v2126_v55  ;;  %v2124_v11 = vadd.f32 %v2023_v63, %v11301_v28  ;;  %v14033_v28 = vld [vmem:[#allocation73_spill] sm:$0xff]  ;;  %v14034_v63 = vld [vmem:[#allocation74_spill] sm:$0xff] }
 0x197   : > { %v8570_v22 = vpop.f32.mrf.mxu0  ;;  %v8535_v59 = vpop.f32.mrf.mxu1 }
 0x198   : > { %v11488_v9 = vadd.f32 %v2432_v20, %v2124_v11  ;;  %v2129_v43 = vadd.f32 %v8535_v59, %v11306_v21 }
 0x199   : > { %v2448_v41 = vpop.f32.mrf.mxu0  ;;  %v2036_v10 = vpop.f32.mrf.mxu1 }
 0x19a   : > { %v11493_v2 = vadd.f32 %v8569_v33, %v2129_v43  ;;  %v2127_v53 = vadd.f32 %v2036_v10, %v11313_v37  ;;  %v14035_v10 = vld [vmem:[#allocation21_spill] sm:$0xff] }
 0x19b   : > { %8738 = vmatmul.mubr.msk.bf16.gmra.mxu1 %vm679_vm3, %v14031_v12  ;;  %v8573_v27 = vpop.f32.mrf.mxu0  ;;  %v8536_v55 = vpop.f32.mrf.mxu1 }
 0x19c   : > { %8741 = vmatprep.mubr.msk.bf16.mxu1 %vm679_vm3, %v14032_v25  ;;  %v11500_v20 = vadd.f32 %v2445_v1, %v2127_v53  ;;  %v2130_v21 = vadd.f32 %v8536_v55, %v11316_v40  ;;  %v14036_v1 = vld [vmem:[#allocation22_spill] sm:$0xff] }
 0x19d   : > { %8776 = vmatmul.mubr.msk.bf16.gmra.mxu0 %vm679_vm3, %v14033_v28  ;;  %v2461_v11 = vpop.f32.mrf.mxu0  ;;  %v2039_v59 = vpop.f32.mrf.mxu1 }
 0x19e   : > { %8779 = vmatprep.mubr.msk.bf16.mxu0 %vm679_vm3, %v14034_v63  ;;  %v11503_v25 = vadd.f32 %v8570_v22, %v2130_v21  ;;  %v2128_v43 = vadd.f32 %v2039_v59, %v11321_v5  ;;  %v14037_v5 = vld [vmem:[#allocation41_spill] sm:$0xff]  ;;  %v14038_v59 = vld [vmem:[#allocation40_spill] sm:$0xff] }
 0x19f   : > { %v8574_v33 = vpop.f32.mrf.mxu0  ;;  %v8539_v37 = vpop.f32.mrf.mxu1 }
 0x1a0   : > { %v11508_v28 = vadd.f32 %v2448_v41, %v2128_v43  ;;  %v2133_v12 = vadd.f32 %v8539_v37, %v11326_v51 }
 0x1a1   : > { %v2464_v63 = vpop.f32.mrf.mxu0  ;;  %v2052_v40 = vpop.f32.mrf.mxu1 }
 0x1a2   : > { %v11513_v53 = vadd.f32 %v8573_v27, %v2133_v12  ;;  %v2131_v22 = vadd.f32 %v2052_v40, %v11333_v34  ;;  %v14040_v40 = vld [vmem:[#allocation24_spill] sm:$0xff] }
 0x1a3   : > { %8742 = vmatmul.mubr.msk.bf16.gmra.mxu1 %vm679_vm3, %v14035_v10  ;;  %v8577_v55 = vpop.f32.mrf.mxu0  ;;  %v8540_v21 = vpop.f32.mrf.mxu1  ;;  %v14044_v10 = vld [vmem:[#allocation77_spill] sm:$0xff] }
 0x1a4   : > { %8745 = vmatprep.mubr.msk.bf16.mxu1 %vm679_vm3, %v14036_v1  ;;  %v11520_v41 = vadd.f32 %v2461_v11, %v2131_v22  ;;  %v2134_v51 = vadd.f32 %v8540_v21, %v11336_v7  ;;  %v3423_v11 = vrot.slane %v10992_v30, 6  ;;  %v14042_v21 = vld [vmem:[#allocation29_spill] sm:$0xff] }
 0x1a5   : > { %8780 = vmatmul.mubr.msk.bf16.gmra.mxu0 %vm679_vm3, %v14037_v5  ;;  %v2477_v43 = vpop.f32.mrf.mxu0  ;;  %v2055_v37 = vpop.f32.mrf.mxu1  ;;  %v11544_v30 = vld [vmem:[%s9584_s7 + $0xd0] sm:$0xf] }
 0x1a6   : > { %8783 = vmatprep.mubr.msk.bf16.mxu0 %vm679_vm3, %v14038_v59  ;;  %v11523_v1 = vadd.f32 %v8574_v33, %v2134_v51  ;;  %v2132_v12 = vadd.f32 %v2055_v37, %v11341_v62  ;;  %v7530_v59 = vrot.slane %v10985_v23, 10  ;;  %v11541_v23 = vld [vmem:[%s9584_s7 + $0xcc] sm:$0xf]  ;;  %14045 = vst [vmem:[#allocation87_spill] sm:$0xff] %v11544_v30 }
 0x1a7   : > { %v8578_v34 = vpop.f32.mrf.mxu0  ;;  %v13680_v48 = vshll.u32 %v11541_v23, 16  ;;  %v11561_v36 = vcombine.low %v11541_v23, %v11544_v30 }
 0x1a8   : > { %14039 = vst [vmem:[#allocation80_spill] sm:$0xff] %v11523_v1  ;;  %v11530_v22 = vadd.f32 %v2464_v63, %v2132_v12  ;;  %v11547_v63 = vld [vmem:[%s9584_s7 + $0xd4] sm:$0x3]  ;;  %v14046_v12 = vld [vmem:[#allocation57_spill] sm:$0xff] }
 0x1a9   : > { %v2480_v33 = vpop.f32.mrf.mxu0  ;;  %14049 = vst [vmem:[#allocation90_spill] sm:$0xff] %v11561_v36 }
 0x1aa   : > { %14041 = vst [vmem:[#allocation53_spill] sm:$0xff] %v11530_v22 }
 0x1ab   : > { %v8543_v27 = vpop.f32.mrf.mxu1  ;;  %8746 = vmatmul.mubr.msk.bf16.gmra.mxu1 %vm679_vm3, %v14040_v40  ;;  %v13679_v40 = vshrl.u32 %v11541_v23, 16 }
 0x1ac   : > { %v2137_v7 = vadd.f32 %v8543_v27, %v11347_v31  ;;  %8749 = vmatprep.mubr.msk.bf16.mxu1 %vm679_vm3, %v14042_v21  ;;  %v8581_v5 = vpop.f32.mrf.mxu0  ;;  %v14054_v27 = vshll.u32 %v11547_v63, 16 }
 0x1ad   : > { %v2068_v62 = vpop.f32.mrf.mxu1  ;;  %8784 = vmatmul.mubr.msk.bf16.gmra.mxu0 %vm679_vm3, %v14044_v10 }
 0x1ae   : > { %v11535_v51 = vadd.f32 %v8577_v55, %v2137_v7  ;;  %v2135_v37 = vadd.f32 %v2068_v62, %v11355_v16  ;;  %8787 = vmatprep.mubr.msk.bf16.mxu0 %vm679_vm3, %v14046_v12  ;;  %v3424_v55 = vsel %vm10464_vm12, %v7530_v59, %v3423_v11  ;;  %v3425_v7 = vrot.slane %v3423_v11, 4  ;;  %v2493_v21 = vpop.f32.mrf.mxu0 }
 0x1af   : > { %v8544_v31 = vpop.f32.mrf.mxu1  ;;  %v3426_v16 = vrot.slane %v11003_v24, 6  ;;  %v13682_v59 = vshrl.u32 %v11544_v30, 16 }
 0x1b0   : > { %14043 = vst [vmem:[#allocation86_spill] sm:$0xff] %v11535_v51  ;;  %v11554_v62 = vadd.f32 %v2477_v43, %v2135_v37  ;;  %v2138_v10 = vadd.f32 %v8544_v31, %v11359_v29  ;;  %v8582_v11 = vpop.f32.mrf.mxu0  ;;  %v4278_v37 = vrot.slane %v13679_v40, 5  ;;  %v4279_v31 = vrot.slane %v13680_v48, 6  ;;  %v14051_v51 = vld [vmem:[#allocation37_spill] sm:$0xff] }
 0x1b1   : > { %v2071_v57 = vpop.f32.mrf.mxu1  ;;  %v3427_v12 = vsel %vm10464_vm12, %v3425_v7, %v3426_v16  ;;  %v4290_v7 = vrot.slane %v14054_v27, 6 }
 0x1b2   : > { %14048 = vst [vmem:[#allocation89_spill] sm:$0xff] %v11554_v62  ;;  %v11566_v43 = vadd.f32 %v8578_v34, %v2138_v10  ;;  %v2136_v29 = vadd.f32 %v2071_v57, %v11364_v49  ;;  %v4282_v10 = vrot.slane %v13682_v59, 5  ;;  %v14052_v34 = vshll.u32 %v11544_v30, 16  ;;  %v2496_v48 = vpop.f32.mrf.mxu0 }
 0x1b3   : > { %v8547_v62 = vpop.f32.mrf.mxu1  ;;  %8750 = vmatmul.mubr.msk.bf16.gmra.mxu1 %vm679_vm3, %v14051_v51  ;;  %v4287_v57 = vshrl.u32 %v11547_v63, 16  ;;  %v4280_v51 = vor.u32 %v4279_v31, %v4278_v37 }
 0x1b4   : > { %14050 = vst [vmem:[#allocation91_spill] sm:$0xff] %v11566_v43  ;;  %v4283_v49 = vrot.slane %v14052_v34, 6  ;;  %v11582_v24 = vadd.f32 %v2480_v33, %v2136_v29  ;;  %v2141_v40 = vadd.f32 %v8547_v62, %v11373_v44  ;;  %v14053_v43 = vld [vmem:[#allocation84_spill] sm:$0xff]  ;;  %v8585_v30 = vpop.f32.mrf.mxu0  ;;  %v11594_v62 = vcombine.low %v3424_v55, %v3427_v12  ;;  %v14056_v29 = vld [vmem:[#allocation54_spill] sm:$0xff] }
 0x1b5   : > { %8753 = vmatprep.mubr.msk.bf16.mxu1 %vm679_vm3, %v14053_v43  ;;  %v2084_v16 = vpop.f32.mrf.mxu1  ;;  %v4289_v59 = vrot.slane %v4287_v57, 5  ;;  %8788 = vmatmul.mubr.msk.bf16.gmra.mxu0 %vm679_vm3, %v11561_v36  ;;  %v4281_v44 = vrot.slane %v4280_v51, 4 }
 0x1b6   : > { %v4284_v22 = vor.u32 %v4283_v49, %v4282_v10  ;;  %v11589_v1 = vadd.f32 %v8581_v5, %v2141_v40  ;;  %v2139_v34 = vadd.f32 %v2084_v16, %v11382_v38  ;;  %14055 = vst [vmem:[#allocation92_spill] sm:$0xff] %v11594_v62  ;;  %8827 = vmatprep.mubr.msk.bf16.mxu0 %vm679_vm3, %v14056_v29  ;;  %v2509_v40 = vpop.f32.mrf.mxu0  ;;  %v14060_v29 = vld [vmem:[#allocation58_spill] sm:$0xff] }
 0x1b7   : > { %v8548_v33 = vpop.f32.mrf.mxu1  ;;  %v4291_v27 = vor.u32 %v4290_v7, %v4289_v59  ;;  %v14059_v7 = vld [vmem:[#allocation23_spill] sm:$0xff] }
 0x1b8   : > { %v4286_v37 = vrot.slane %v4284_v22, 4  ;;  %v11598_v31 = vadd.f32 %v2493_v21, %v2139_v34  ;;  %v2142_v5 = vadd.f32 %v8548_v33, %v11385_v13  ;;  %v4285_v38 = vsel %vm10371_vm10, %v4281_v44, %v4284_v22  ;;  %v8586_v55 = vpop.f32.mrf.mxu0 }
 0x1b9   : > { %v2087_v49 = vpop.f32.mrf.mxu1 }
 0x1ba   : > { %v4292_v51 = vsel %vm10371_vm10, %v4286_v37, %v4291_v27  ;;  %v11605_v57 = vadd.f32 %v8582_v11, %v2142_v5  ;;  %v2140_v12 = vadd.f32 %v2087_v49, %v11390_v8  ;;  %v2512_v22 = vpop.f32.mrf.mxu0  ;;  %v4513_v11 = vsel %vm728_vm0, %v11400_v0, 0  ;;  %v11622_v8 = vld [vmem:[%s13381_s1 + $0x20] sm:$0x3] }
 0x1bb   : > { %v11608_v16 = vcombine.low %v4285_v38, %v4292_v51  ;;  %v8551_v59 = vpop.f32.mrf.mxu1  ;;  %8754 = vmatmul.mubr.msk.bf16.gmra.mxu1 %vm679_vm3, %v11594_v62 }
 0x1bc   : > { %v11612_v13 = vadd.f32 %v2496_v48, %v2140_v12  ;;  %v2145_v21 = vadd.f32 %v8551_v59, %v11402_v46  ;;  %8793 = vmatprep.mubr.msk.bf16.mxu1 %vm679_vm3, %v14059_v7  ;;  %v8625_v33 = vpop.f32.mrf.mxu0 }
 0x1bd   : > { %14058 = vst [vmem:[#allocation54_spill] sm:$0xff] %v11608_v16  ;;  %v2100_v34 = vpop.f32.mrf.mxu1  ;;  %8828 = vmatmul.mubr.msk.bf16.vlgmr.msra.gmra.mxu0 %vm679_vm3, %v14060_v29  ;;  %v14087_v16 = vld [vmem:[#allocation88_spill] sm:$0xff] }
 0x1be   : > { %v11624_v44 = vadd.f32 %v8585_v30, %v2145_v21  ;;  %v2143_v48 = vadd.f32 %v2100_v34, %v11409_v14  ;;  %8894 = vmatpush3.bf16.msra.mxu0 %v4513_v11  ;;  %8831 = vmatprep.mubr.msk.bf16.mxu0 %vm679_vm3, %v14000_v6  ;;  %v2831_v27 = vpop.f32.mrf.mxu0  ;;  %v4302_v14 = vsel %vm728_vm0, %v11422_v32, 0 }
 0x1bf   : > { %v8552_v46 = vpop.f32.mrf.mxu1  ;;  %9286 = vmatprep.subr.msk.bf16.mxu0 %vm728_vm0, %v11622_v8 }
 0x1c0   : > { %v11631_v0 = vadd.f32 %v2509_v40, %v2143_v48  ;;  %v2146_v37 = vadd.f32 %v8552_v46, %v11416_v18  ;;  %v8626_v49 = vpop.f32.mrf.mxu0  ;;  %v11644_v40 = vld [vmem:[%s13381_s1 + $0x1e] sm:$0x3]  ;;  %v14061_v18 = vld [vmem:[#allocation28_spill] sm:$0xff] }
 0x1c1   : > { %v2103_v30 = vpop.f32.mrf.mxu1 }
 0x1c2   : > { %v11638_v5 = vadd.f32 %v8586_v55, %v2146_v37  ;;  %v2144_v38 = vadd.f32 %v2103_v30, %v11426_v17  ;;  %v2834_v32 = vpop.f32.mrf.mxu0  ;;  %v14062_v55 = vld [vmem:[#allocation36_spill] sm:$0xff] }
 0x1c3   : > { %v8591_v51 = vpop.f32.mrf.mxu1  ;;  %8794 = vmatmul.mubr.msk.bf16.vlgmr.msra.gmra.mxu1 %vm679_vm3, %v14061_v18 }
 0x1c4   : > { %v11648_v12 = vadd.f32 %v2512_v22, %v2144_v38  ;;  %v2732_v59 = vadd.f32 %v8591_v51, %v11433_v47  ;;  %8860 = vmatpush3.bf16.msra.mxu1 %v4302_v14  ;;  %8797 = vmatprep.mubr.msk.bf16.mxu1 %vm679_vm3, %v14062_v55  ;;  %v14063_v14 = vld [vmem:[#allocation42_spill] sm:$0xff] }
 0x1c5   : > { %v2603_v17 = vpop.f32.mrf.mxu1  ;;  %9285 = vmatprep.subr.msk.bf16.mxu1 %vm728_vm0, %v11644_v40  ;;  %v8629_v11 = vpop.f32.mrf.mxu0  ;;  %8832 = vmatmul.mubr.msk.bf16.gmra.mxu0 %vm679_vm3, %v14001_v26  ;;  %v14077_v26 = vld [vmem:[#allocation87_spill] sm:$0xff] }
 0x1c6   : > { %v11655_v21 = vadd.f32 %v8625_v33, %v2732_v59  ;;  %v2730_v7 = vadd.f32 %v2603_v17, %v11440_v54  ;;  %8835 = vmatprep.mubr.msk.bf16.mxu0 %vm679_vm3, %v14002_v45  ;;  %v4069_v6 = vrot.slane %v14077_v26, 5  ;;  %v14079_v29 = vshll.u32 %v14077_v26, 16 }
 0x1c7   : > { %v8592_v22 = vpop.f32.mrf.mxu1  ;;  %v2847_v48 = vpop.f32.mrf.mxu0  ;;  %v14080_v36 = vshrl.u32 %v14077_v26, 16 }
 0x1c8   : > { %v11662_v47 = vadd.f32 %v2831_v27, %v2730_v7  ;;  %v2733_v34 = vadd.f32 %v8592_v22, %v11443_v35  ;;  %v14064_v27 = vld [vmem:[#allocation48_spill] sm:$0xff] }
 0x1c9   : > { %v2606_v46 = vpop.f32.mrf.mxu1  ;;  %v8630_v30 = vpop.f32.mrf.mxu0 }
 0x1ca   : > { %v11665_v37 = vadd.f32 %v8626_v49, %v2733_v34  ;;  %v2731_v33 = vadd.f32 %v2606_v46, %v11448_v52 }
 0x1cb   : > { %v8595_v54 = vpop.f32.mrf.mxu1  ;;  %8798 = vmatmul.mubr.msk.bf16.gmra.mxu1 %vm679_vm3, %v14063_v14  ;;  %v2850_v59 = vpop.f32.mrf.mxu0  ;;  %v14085_v14 = vld [vmem:[#allocation89_spill] sm:$0xff] }
 0x1cc   : > { %v11670_v38 = vadd.f32 %v2834_v32, %v2731_v33  ;;  %v2736_v51 = vadd.f32 %v8595_v54, %v11453_v60  ;;  %8801 = vmatprep.mubr.msk.bf16.mxu1 %vm679_vm3, %v14064_v27  ;;  %v14065_v54 = vld [vmem:[#allocation51_spill] sm:$0xff] }
 0x1cd   : > { %v2619_v35 = vpop.f32.mrf.mxu1  ;;  %v8633_v7 = vpop.f32.mrf.mxu0  ;;  %8836 = vmatmul.mubr.msk.bf16.gmra.mxu0 %vm679_vm3, %v14003_v42 }
 0x1ce   : > { %v11675_v17 = vadd.f32 %v8629_v11, %v2736_v51  ;;  %v2734_v49 = vadd.f32 %v2619_v35, %v11460_v3  ;;  %8839 = vmatprep.mubr.msk.bf16.mxu0 %vm679_vm3, %v14004_v58 }
 0x1cf   : > { %v8596_v52 = vpop.f32.mrf.mxu1  ;;  %v2863_v22 = vpop.f32.mrf.mxu0 }
 0x1d0   : > { %v11682_v32 = vadd.f32 %v2847_v48, %v2734_v49  ;;  %v2737_v60 = vadd.f32 %v8596_v52, %v11463_v50  ;;  %v14066_v48 = vld [vmem:[#allocation13_spill] sm:$0xff] }
 0x1d1   : > { %v2622_v34 = vpop.f32.mrf.mxu1  ;;  %v8634_v33 = vpop.f32.mrf.mxu0 }
 0x1d2   : > { %v11685_v46 = vadd.f32 %v8630_v30, %v2737_v60  ;;  %v2735_v11 = vadd.f32 %v2622_v34, %v11468_v56 }
 0x1d3   : > { %v8599_v3 = vpop.f32.mrf.mxu1  ;;  %8802 = vmatmul.mubr.msk.bf16.gmra.mxu1 %vm679_vm3, %v14065_v54  ;;  %v2866_v58 = vpop.f32.mrf.mxu0  ;;  %v14083_v54 = vld [vmem:[#allocation86_spill] sm:$0xff] }
 0x1d4   : > { %v11690_v51 = vadd.f32 %v2850_v59, %v2735_v11  ;;  %v2740_v35 = vadd.f32 %v8599_v3, %v11473_v15  ;;  %8805 = vmatprep.mubr.msk.bf16.mxu1 %vm679_vm3, %v14066_v48  ;;  %v14082_v48 = vld [vmem:[#allocation44_spill] sm:$0xff] }
 0x1d5   : > { %v2635_v50 = vpop.f32.mrf.mxu1  ;;  %v8637_v52 = vpop.f32.mrf.mxu0  ;;  %8840 = vmatmul.mubr.msk.bf16.gmra.mxu0 %vm679_vm3, %v14005_v19 }
 0x1d6   : > { %v11695_v49 = vadd.f32 %v8633_v7, %v2740_v35  ;;  %v2738_v30 = vadd.f32 %v2635_v50, %v11480_v61  ;;  %8843 = vmatprep.mubr.msk.bf16.mxu0 %vm679_vm3, %v14006_v4  ;;  %v14067_v35 = vld [vmem:[#allocation20_spill] sm:$0xff] }
 0x1d7   : > { %v8600_v56 = vpop.f32.mrf.mxu1  ;;  %v2879_v60 = vpop.f32.mrf.mxu0 }
 0x1d8   : > { %v11702_v59 = vadd.f32 %v2863_v22, %v2738_v30  ;;  %v2741_v15 = vadd.f32 %v8600_v56, %v11483_v39  ;;  %v14068_v22 = vld [vmem:[#allocation25_spill] sm:$0xff] }
 0x1d9   : > { %v2638_v34 = vpop.f32.mrf.mxu1  ;;  %v8638_v3 = vpop.f32.mrf.mxu0 }
 0x1da   : > { %v11705_v11 = vadd.f32 %v8634_v33, %v2741_v15  ;;  %v2739_v7 = vadd.f32 %v2638_v34, %v11488_v9  ;;  %v14069_v9 = vld [vmem:[#allocation47_spill] sm:$0xff]  ;;  %v14070_v34 = vld [vmem:[#allocation34_spill] sm:$0xff] }
 0x1db   : > { %v8603_v61 = vpop.f32.mrf.mxu1  ;;  %8806 = vmatmul.mubr.msk.bf16.gmra.mxu1 %vm679_vm3, %v14067_v35  ;;  %v2882_v4 = vpop.f32.mrf.mxu0 }
 0x1dc   : > { %v11710_v50 = vadd.f32 %v2866_v58, %v2739_v7  ;;  %v2744_v19 = vadd.f32 %v8603_v61, %v11493_v2  ;;  %8809 = vmatprep.mubr.msk.bf16.mxu1 %vm679_vm3, %v14068_v22 }
 0x1dd   : > { %v2651_v39 = vpop.f32.mrf.mxu1  ;;  %v8641_v56 = vpop.f32.mrf.mxu0  ;;  %8844 = vmatmul.mubr.msk.bf16.gmra.mxu0 %vm679_vm3, %v14069_v9 }
 0x1de   : > { %v11715_v30 = vadd.f32 %v8637_v52, %v2744_v19  ;;  %v2742_v33 = vadd.f32 %v2651_v39, %v11500_v20  ;;  %8847 = vmatprep.mubr.msk.bf16.mxu0 %vm679_vm3, %v14070_v34  ;;  %v14071_v39 = vld [vmem:[#allocation32_spill] sm:$0xff] }
 0x1df   : > { %v8604_v15 = vpop.f32.mrf.mxu1  ;;  %v2895_v7 = vpop.f32.mrf.mxu0 }
 0x1e0   : > { %v11722_v58 = vadd.f32 %v2879_v60, %v2742_v33  ;;  %v2745_v2 = vadd.f32 %v8604_v15, %v11503_v25  ;;  %v14072_v60 = vld [vmem:[#allocation38_spill] sm:$0xff] }
 0x1e1   : > { %v2654_v61 = vpop.f32.mrf.mxu1  ;;  %v8642_v52 = vpop.f32.mrf.mxu0 }
 0x1e2   : > { %v11725_v42 = vadd.f32 %v8638_v3, %v2745_v2  ;;  %v2743_v19 = vadd.f32 %v2654_v61, %v11508_v28  ;;  %v14073_v28 = vld [vmem:[#allocation46_spill] sm:$0xff]  ;;  %v14074_v61 = vld [vmem:[#allocation76_spill] sm:$0xff] }
 0x1e3   : > { %v8607_v20 = vpop.f32.mrf.mxu1  ;;  %8810 = vmatmul.mubr.msk.bf16.gmra.mxu1 %vm679_vm3, %v14071_v39  ;;  %v2898_v34 = vpop.f32.mrf.mxu0 }
 0x1e4   : > { %v11730_v9 = vadd.f32 %v2882_v4, %v2743_v19  ;;  %v2748_v45 = vadd.f32 %v8607_v20, %v11513_v53  ;;  %8813 = vmatprep.mubr.msk.bf16.mxu1 %vm679_vm3, %v14072_v60  ;;  %v14075_v4 = vshrl.u32 %v11541_v23, 16  ;;  %v14076_v19 = vshll.u32 %v11541_v23, 16 }
 0x1e5   : > { %v2667_v25 = vpop.f32.mrf.mxu1  ;;  %v8645_v15 = vpop.f32.mrf.mxu0  ;;  %8848 = vmatmul.mubr.msk.bf16.gmra.mxu0 %vm679_vm3, %v14073_v28  ;;  %v3850_v28 = vrot.slane %v14079_v29, 5  ;;  %v3854_v60 = vrot.slane %v14080_v36, 4 }
 0x1e6   : > { %v11735_v33 = vadd.f32 %v8641_v56, %v2748_v45  ;;  %v2746_v3 = vadd.f32 %v2667_v25, %v11520_v41  ;;  %8851 = vmatprep.mubr.msk.bf16.mxu0 %vm679_vm3, %v14074_v61  ;;  %v3841_v53 = vrot.slane %v14075_v4, 4  ;;  %v3844_v20 = vrot.slane %v14076_v19, 5  ;;  %v14078_v56 = vld [vmem:[#allocation80_spill] sm:$0xff]  ;;  %v14081_v4 = vld [vmem:[#allocation53_spill] sm:$0xff] }
 0x1e7   : > { %v8608_v2 = vpop.f32.mrf.mxu1  ;;  %v2911_v25 = vpop.f32.mrf.mxu0 }
 0x1e8   : > { %v11747_v45 = vadd.f32 %v2895_v7, %v2746_v3  ;;  %v2749_v41 = vadd.f32 %v8608_v2, %v14078_v56  ;;  %v3845_v7 = vor.u32 %v3844_v20, %v3841_v53  ;;  %v7585_v3 = vrot.slane %v11541_v23, 9  ;;  %v14086_v20 = vld [vmem:[#allocation78_spill] sm:$0xff] }
 0x1e9   : > { %v2670_v61 = vpop.f32.mrf.mxu1  ;;  %v8646_v35 = vpop.f32.mrf.mxu0  ;;  %v4071_v2 = vrot.slane %v4069_v6, 4  ;;  %v4072_v56 = vrot.slane %v11547_v63, 5 }
 0x1ea   : > { %v11754_v39 = vadd.f32 %v8642_v52, %v2749_v41  ;;  %v2747_v22 = vadd.f32 %v2670_v61, %v14081_v4  ;;  %v14084_v52 = vld [vmem:[#allocation49_spill] sm:$0xff]  ;;  %v3855_v61 = vor.u32 %v3854_v60, %v3850_v28 }
 0x1eb   : > { %v8611_v19 = vpop.f32.mrf.mxu1  ;;  %8814 = vmatmul.mubr.msk.bf16.gmra.mxu1 %vm679_vm3, %v14082_v48  ;;  %v2914_v27 = vpop.f32.mrf.mxu0  ;;  %v4073_v60 = vsel %vm10103_vm7, %v4071_v2, %v4072_v56  ;;  %v14093_v2 = vld [vmem:[#allocation56_spill] sm:$0xff] }
 0x1ec   : > { %v11761_v29 = vadd.f32 %v2898_v34, %v2747_v22  ;;  %v2752_v36 = vadd.f32 %v8611_v19, %v14083_v54  ;;  %8817 = vmatprep.mubr.msk.bf16.mxu1 %vm679_vm3, %v14084_v52  ;;  %v3846_v22 = vrot.slane %v3845_v7, 4  ;;  %v4070_v34 = vsel %vm10103_vm7, %v7585_v3, %v4069_v6  ;;  %v14092_v3 = vld [vmem:[#allocation52_spill] sm:$0xff] }
 0x1ed   : > { %v2683_v41 = vpop.f32.mrf.mxu1  ;;  %v8649_v53 = vpop.f32.mrf.mxu0  ;;  %8852 = vmatmul.mubr.msk.bf16.gmra.mxu0 %vm679_vm3, %v14086_v20  ;;  %v14090_v52 = vshll.u32 %v11547_v63, 16  ;;  %v11785_v62 = vcombine.low %v4070_v34, %v4073_v60  ;;  %v14096_v60 = vld [vmem:[#allocation55_spill] sm:$0xff] }
 0x1ee   : > { %v11766_v4 = vadd.f32 %v8645_v15, %v2752_v36  ;;  %v2750_v48 = vadd.f32 %v2683_v41, %v14085_v14  ;;  %8855 = vmatprep.mubr.msk.bf16.mxu0 %vm679_vm3, %v14087_v16  ;;  %v14089_v15 = vld [vmem:[#allocation91_spill] sm:$0xff]  ;;  %v3856_v41 = vrot.slane %v3855_v61, 4 }
 0x1ef   : > { %v8612_v55 = vpop.f32.mrf.mxu1  ;;  %v2927_v14 = vpop.f32.mrf.mxu0  ;;  %v3860_v20 = vrot.slane %v14090_v52, 5  ;;  %14091 = vst [vmem:[#allocation23_spill] sm:$0xff] %v11785_v62 }
 0x1f0   : > { %v11777_v19 = vadd.f32 %v2911_v25, %v2750_v48  ;;  %v2753_v36 = vadd.f32 %v8612_v55, %v14089_v15 }
 0x1f1   : > { %v2686_v10 = vpop.f32.mrf.mxu1  ;;  %v8650_v16 = vpop.f32.mrf.mxu0 }
 0x1f2   : > { %v11782_v18 = vadd.f32 %v8646_v35, %v2753_v36  ;;  %v2751_v7 = vadd.f32 %v2686_v10, %v11582_v24  ;;  %v3851_v35 = vsel %vm9624_vm4, %v3846_v22, %v3850_v28  ;;  %v3861_v24 = vsel %vm9624_vm4, %v3856_v41, %v3860_v20 }
 0x1f3   : > { %v8615_v6 = vpop.f32.mrf.mxu1  ;;  %8818 = vmatmul.mubr.msk.bf16.gmra.mxu1 %vm679_vm3, %v14092_v3  ;;  %v2930_v25 = vpop.f32.mrf.mxu0 }
 0x1f4   : > { %v11789_v48 = vadd.f32 %v2914_v27, %v2751_v7  ;;  %v2756_v55 = vadd.f32 %v8615_v6, %v11589_v1  ;;  %8821 = vmatprep.mubr.msk.bf16.mxu1 %vm679_vm3, %v14093_v2  ;;  %v11803_v27 = vcombine.low %v3851_v35, %v3861_v24 }
 0x1f5   : > { %v2699_v10 = vpop.f32.mrf.mxu1  ;;  %v8653_v34 = vpop.f32.mrf.mxu0  ;;  %8856 = vmatmul.mubr.msk.bf16.gmra.mxu0 %vm679_vm3, %v11785_v62 }
 0x1f6   : > { %v11798_v52 = vadd.f32 %v8649_v53, %v2756_v55  ;;  %v2754_v61 = vadd.f32 %v2699_v10, %v11598_v31  ;;  %14095 = vst [vmem:[#allocation87_spill] sm:$0xff] %v11803_v27  ;;  %8895 = vmatprep.mubr.msk.bf16.mxu0 %vm679_vm3, %v14096_v60  ;;  %v14098_v10 = vld [vmem:[#allocation31_spill] sm:$0xff] }
 0x1f7   : > { %v8616_v1 = vpop.f32.mrf.mxu1  ;;  %v2943_v20 = vpop.f32.mrf.mxu0 }
 0x1f8   : > { %v11807_v15 = vadd.f32 %v2927_v14, %v2754_v61  ;;  %v2757_v28 = vadd.f32 %v8616_v1, %v11605_v57  ;;  %v14097_v14 = vld [vmem:[#allocation81_spill] sm:$0xff]  ;;  %v4947_v57 = vsel %vm728_vm0, %v11622_v8, 0  ;;  %v14099_v61 = vld [vmem:[#allocation39_spill] sm:$0xff] }
 0x1f9   : > { %v2702_v22 = vpop.f32.mrf.mxu1  ;;  %v8654_v36 = vpop.f32.mrf.mxu0 }
 0x1fa   : > { %v11810_v53 = vadd.f32 %v8650_v16, %v2757_v28  ;;  %v2755_v31 = vadd.f32 %v2702_v22, %v11612_v13  ;;  %v11825_v13 = vld [vmem:[%s13381_s1 + $0x24] sm:$0x3] }
 0x1fb   : > { %v8619_v41 = vpop.f32.mrf.mxu1  ;;  %8822 = vmatmul.mubr.msk.bf16.gmra.mxu1 %vm679_vm3, %v11803_v27  ;;  %v2946_v55 = vpop.f32.mrf.mxu0 }
 0x1fc   : > { %v11815_v7 = vadd.f32 %v2930_v25, %v2755_v31  ;;  %v2760_v6 = vadd.f32 %v8619_v41, %v11624_v44  ;;  %8861 = vmatprep.mubr.msk.bf16.mxu1 %vm679_vm3, %v14097_v14 }
 0x1fd   : > { %v2715_v16 = vpop.f32.mrf.mxu1  ;;  %v8693_v24 = vpop.f32.mrf.mxu0  ;;  %8896 = vmatmul.mubr.msk.bf16.vlgmr.msra.gmra.mxu0 %vm679_vm3, %v14098_v10 }
 0x1fe   : > { %v11827_v35 = vadd.f32 %v8653_v34, %v2760_v6  ;;  %v2758_v25 = vadd.f32 %v2715_v16, %v11631_v0  ;;  %8962 = vmatpush3.bf16.msra.mxu0 %v4947_v57  ;;  %8899 = vmatprep.mubr.msk.bf16.mxu0 %vm679_vm3, %v14099_v61  ;;  %v4719_v0 = vsel %vm728_vm0, %v11644_v40, 0 }
 0x1ff   : > { %v8620_v44 = vpop.f32.mrf.mxu1  ;;  %v3262_v60 = vpop.f32.mrf.mxu0  ;;  %9288 = vmatprep.subr.msk.bf16.mxu0 %vm728_vm0, %v11825_v13 }
 0x200   : > { %v11834_v8 = vadd.f32 %v2943_v20, %v2758_v25  ;;  %v2761_v1 = vadd.f32 %v8620_v44, %v11638_v5  ;;  %v11847_v20 = vld [vmem:[%s13381_s1 + $0x22] sm:$0x3]  ;;  %v14100_v5 = vld [vmem:[#allocation30_spill] sm:$0xff]  ;;  %v14102_v44 = vld [vmem:[#allocation8_spill] sm:$0xff] }
 0x201   : > { %v2718_v34 = vpop.f32.mrf.mxu1  ;;  %v8694_v31 = vpop.f32.mrf.mxu0 }
 0x202   : > { %v11841_v28 = vadd.f32 %v8654_v36, %v2761_v1  ;;  %v2759_v22 = vadd.f32 %v2718_v34, %v11648_v12  ;;  %v14101_v36 = vld [vmem:[#allocation33_spill] sm:$0xff]  ;;  %v14103_v1 = vld [vmem:[#allocation82_spill] sm:$0xff] }
 0x203   : > { %v8659_v41 = vpop.f32.mrf.mxu1  ;;  %8862 = vmatmul.mubr.msk.bf16.vlgmr.msra.gmra.mxu1 %vm679_vm3, %v14100_v5  ;;  %v3265_v40 = vpop.f32.mrf.mxu0 }
 0x204   : > { %v11851_v6 = vadd.f32 %v2946_v55, %v2759_v22  ;;  %v3172_v14 = vadd.f32 %v8659_v41, %v11655_v21  ;;  %8928 = vmatpush3.bf16.msra.mxu1 %v4719_v0  ;;  %8865 = vmatprep.mubr.msk.bf16.mxu1 %vm679_vm3, %v14101_v36 }
 0x205   : > { %v3043_v12 = vpop.f32.mrf.mxu1  ;;  %9287 = vmatprep.subr.msk.bf16.mxu1 %vm728_vm0, %v11847_v20  ;;  %v8697_v25 = vpop.f32.mrf.mxu0  ;;  %8900 = vmatmul.mubr.msk.bf16.gmra.mxu0 %vm679_vm3, %v14102_v44 }
 0x206   : > { %v11858_v57 = vadd.f32 %v8693_v24, %v3172_v14  ;;  %v3170_v16 = vadd.f32 %v3043_v12, %v11662_v47  ;;  %8903 = vmatprep.mubr.msk.bf16.mxu0 %vm679_vm3, %v14103_v1  ;;  %v14104_v12 = vld [vmem:[#allocation45_spill] sm:$0xff] }
 0x207   : > { %v8660_v55 = vpop.f32.mrf.mxu1  ;;  %v3278_v0 = vpop.f32.mrf.mxu0 }
 0x208   : > { %v11865_v21 = vadd.f32 %v3262_v60, %v3170_v16  ;;  %v3173_v34 = vadd.f32 %v8660_v55, %v11665_v37  ;;  %v14105_v60 = vld [vmem:[#allocation9_spill] sm:$0xff] }
 0x209   : > { %v3046_v22 = vpop.f32.mrf.mxu1  ;;  %v8698_v14 = vpop.f32.mrf.mxu0 }
 0x20a   : > { %v11868_v41 = vadd.f32 %v8694_v31, %v3173_v34  ;;  %v3171_v24 = vadd.f32 %v3046_v22, %v11670_v38  ;;  %v14106_v38 = vld [vmem:[#allocation10_spill] sm:$0xff]  ;;  %v14107_v22 = vld [vmem:[#allocation12_spill] sm:$0xff] }
 0x20b   : > { %v8663_v47 = vpop.f32.mrf.mxu1  ;;  %8866 = vmatmul.mubr.msk.bf16.gmra.mxu1 %vm679_vm3, %v14104_v12  ;;  %v3281_v1 = vpop.f32.mrf.mxu0 }
 0x20c   : > { %v11873_v44 = vadd.f32 %v3265_v40, %v3171_v24  ;;  %v3176_v61 = vadd.f32 %v8663_v47, %v11675_v17  ;;  %8869 = vmatprep.mubr.msk.bf16.mxu1 %vm679_vm3, %v14105_v60 }
 0x20d   : > { %v3059_v37 = vpop.f32.mrf.mxu1  ;;  %v8701_v55 = vpop.f32.mrf.mxu0  ;;  %8904 = vmatmul.mubr.msk.bf16.gmra.mxu0 %vm679_vm3, %v14106_v38 }
 0x20e   : > { %v11878_v16 = vadd.f32 %v8697_v25, %v3176_v61  ;;  %v3174_v31 = vadd.f32 %v3059_v37, %v11682_v32  ;;  %8907 = vmatprep.mubr.msk.bf16.mxu0 %vm679_vm3, %v14107_v22  ;;  %v14108_v37 = vld [vmem:[#allocation14_spill] sm:$0xff] }
 0x20f   : > { %v8664_v34 = vpop.f32.mrf.mxu1  ;;  %v3294_v24 = vpop.f32.mrf.mxu0 }
 0x210   : > { %v11885_v40 = vadd.f32 %v3278_v0, %v3174_v31  ;;  %v3177_v17 = vadd.f32 %v8664_v34, %v11685_v46  ;;  %v14109_v0 = vld [vmem:[#allocation16_spill] sm:$0xff] }
 0x211   : > { %v3062_v47 = vpop.f32.mrf.mxu1  ;;  %v8702_v25 = vpop.f32.mrf.mxu0 }
 0x212   : > { %v11888_v10 = vadd.f32 %v8698_v14, %v3177_v17  ;;  %v3175_v61 = vadd.f32 %v3062_v47, %v11690_v51  ;;  %v14110_v51 = vld [vmem:[#allocation15_spill] sm:$0xff]  ;;  %v14111_v47 = vld [vmem:[#allocation21_spill] sm:$0xff] }
 0x213   : > { %v8667_v32 = vpop.f32.mrf.mxu1  ;;  %8870 = vmatmul.mubr.msk.bf16.gmra.mxu1 %vm679_vm3, %v14108_v37  ;;  %v3297_v22 = vpop.f32.mrf.mxu0  ;;  %v14126_v37 = vld [vmem:[#allocation85_spill] sm:$0xff] }
 0x214   : > { %v11893_v38 = vadd.f32 %v3281_v1, %v3175_v61  ;;  %v3180_v54 = vadd.f32 %v8667_v32, %v11695_v49  ;;  %8873 = vmatprep.mubr.msk.bf16.mxu1 %vm679_vm3, %v14109_v0 }
 0x215   : > { %v3075_v46 = vpop.f32.mrf.mxu1  ;;  %v8705_v34 = vpop.f32.mrf.mxu0  ;;  %8908 = vmatmul.mubr.msk.bf16.gmra.mxu0 %vm679_vm3, %v14110_v51 }
 0x216   : > { %v11898_v31 = vadd.f32 %v8701_v55, %v3180_v54  ;;  %v3178_v14 = vadd.f32 %v3075_v46, %v11702_v59  ;;  %8911 = vmatprep.mubr.msk.bf16.mxu0 %vm679_vm3, %v14111_v47  ;;  %v14112_v46 = vld [vmem:[#allocation18_spill] sm:$0xff] }
 0x217   : > { %v8668_v17 = vpop.f32.mrf.mxu1  ;;  %v3310_v61 = vpop.f32.mrf.mxu0 }
 0x218   : > { %v11905_v1 = vadd.f32 %v3294_v24, %v3178_v14  ;;  %v3181_v49 = vadd.f32 %v8668_v17, %v11705_v11  ;;  %v14113_v24 = vld [vmem:[#allocation19_spill] sm:$0xff] }
 0x219   : > { %v3078_v32 = vpop.f32.mrf.mxu1  ;;  %v8706_v55 = vpop.f32.mrf.mxu0 }
 0x21a   : > { %v11908_v62 = vadd.f32 %v8702_v25, %v3181_v49  ;;  %v3179_v54 = vadd.f32 %v3078_v32, %v11710_v50  ;;  %v14114_v50 = vld [vmem:[#allocation22_spill] sm:$0xff]  ;;  %v14115_v32 = vld [vmem:[#allocation24_spill] sm:$0xff] }
 0x21b   : > { %v8671_v59 = vpop.f32.mrf.mxu1  ;;  %8874 = vmatmul.mubr.msk.bf16.gmra.mxu1 %vm679_vm3, %v14112_v46  ;;  %v3313_v47 = vpop.f32.mrf.mxu0 }
 0x21c   : > { %v11913_v51 = vadd.f32 %v3297_v22, %v3179_v54  ;;  %v3184_v0 = vadd.f32 %v8671_v59, %v11715_v30  ;;  %8877 = vmatprep.mubr.msk.bf16.mxu1 %vm679_vm3, %v14113_v24 }
 0x21d   : > { %v3091_v11 = vpop.f32.mrf.mxu1  ;;  %v8709_v17 = vpop.f32.mrf.mxu0  ;;  %8912 = vmatmul.mubr.msk.bf16.gmra.mxu0 %vm679_vm3, %v14114_v50 }
 0x21e   : > { %v11918_v14 = vadd.f32 %v8705_v34, %v3184_v0  ;;  %v3182_v25 = vadd.f32 %v3091_v11, %v11722_v58  ;;  %8915 = vmatprep.mubr.msk.bf16.mxu0 %vm679_vm3, %v14115_v32  ;;  %v14116_v11 = vld [vmem:[#allocation26_spill] sm:$0xff] }
 0x21f   : > { %v8672_v49 = vpop.f32.mrf.mxu1  ;;  %v3326_v54 = vpop.f32.mrf.mxu0 }
 0x220   : > { %v11925_v22 = vadd.f32 %v3310_v61, %v3182_v25  ;;  %v3185_v30 = vadd.f32 %v8672_v49, %v11725_v42  ;;  %v14117_v61 = vld [vmem:[#allocation27_spill] sm:$0xff] }
 0x221   : > { %v3094_v59 = vpop.f32.mrf.mxu1  ;;  %v8710_v34 = vpop.f32.mrf.mxu0 }
 0x222   : > { %v11928_v24 = vadd.f32 %v8706_v55, %v3185_v30  ;;  %v3183_v0 = vadd.f32 %v3094_v59, %v11730_v9  ;;  %v14118_v9 = vld [vmem:[#allocation29_spill] sm:$0xff]  ;;  %v4499_v30 = vrot.slane %v14077_v26, 6  ;;  %v4502_v26 = vrot.slane %v11547_v63, 6 }
 0x223   : > { %v8675_v58 = vpop.f32.mrf.mxu1  ;;  %8878 = vmatmul.mubr.msk.bf16.gmra.mxu1 %vm679_vm3, %v14116_v11  ;;  %v3329_v32 = vpop.f32.mrf.mxu0 }
 0x224   : > { %v11933_v50 = vadd.f32 %v3313_v47, %v3183_v0  ;;  %v3188_v46 = vadd.f32 %v8675_v58, %v11735_v33  ;;  %8881 = vmatprep.mubr.msk.bf16.mxu1 %vm679_vm3, %v14117_v61  ;;  %v14119_v47 = vld [vmem:[#allocation37_spill] sm:$0xff]  ;;  %v4501_v61 = vrot.slane %v4499_v30, 4 }
 0x225   : > { %v3107_v42 = vpop.f32.mrf.mxu1  ;;  %v8713_v49 = vpop.f32.mrf.mxu0  ;;  %8916 = vmatmul.mubr.msk.bf16.gmra.mxu0 %vm679_vm3, %v14118_v9 }
 0x226   : > { %v11938_v25 = vadd.f32 %v8709_v17, %v3188_v46  ;;  %v3186_v55 = vadd.f32 %v3107_v42, %v11747_v45  ;;  %8919 = vmatprep.mubr.msk.bf16.mxu0 %vm679_vm3, %v14119_v47  ;;  %v7622_v17 = vrot.slane %v11541_v23, 10  ;;  %v14120_v47 = vld [vmem:[#allocation43_spill] sm:$0xff] }
 0x227   : > { %v8676_v59 = vpop.f32.mrf.mxu1  ;;  %v3342_v58 = vpop.f32.mrf.mxu0 }
 0x228   : > { %v11946_v33 = vadd.f32 %v3326_v54, %v3186_v55  ;;  %v3189_v0 = vadd.f32 %v8676_v59, %v11754_v39  ;;  %v14121_v59 = vld [vmem:[#allocation83_spill] sm:$0xff] }
 0x229   : > { %v3110_v46 = vpop.f32.mrf.mxu1  ;;  %v8714_v9 = vpop.f32.mrf.mxu0 }
 0x22a   : > { %v11950_v45 = vadd.f32 %v8710_v34, %v3189_v0  ;;  %v3187_v42 = vadd.f32 %v3110_v46, %v11761_v29  ;;  %v11962_v29 = vld [vmem:[%s9584_s7 + $0xd8] sm:$0xf]  ;;  %v4500_v46 = vsel %vm10464_vm12, %v7622_v17, %v4499_v30 }
 0x22b   : > { %v8679_v11 = vpop.f32.mrf.mxu1  ;;  %8882 = vmatmul.mubr.msk.bf16.gmra.mxu1 %vm679_vm3, %v14120_v47  ;;  %v3345_v55 = vpop.f32.mrf.mxu0  ;;  %v13704_v30 = vshll.u32 %v11962_v29, 16 }
 0x22c   : > { %v11956_v54 = vadd.f32 %v3329_v32, %v3187_v42  ;;  %v3192_v39 = vadd.f32 %v8679_v11, %v11766_v4  ;;  %8885 = vmatprep.mubr.msk.bf16.mxu1 %vm679_vm3, %v14121_v59  ;;  %v4503_v4 = vsel %vm10464_vm12, %v4501_v61, %v4502_v26  ;;  %v11974_v11 = vld [vmem:[%s9584_s7 + $0xdc] sm:$0xf]  ;;  %v14123_v59 = vld [vmem:[#allocation92_spill] sm:$0xff] }
 0x22d   : > { %v3123_v23 = vpop.f32.mrf.mxu1  ;;  %v8717_v0 = vpop.f32.mrf.mxu0  ;;  %8920 = vmatmul.mubr.msk.bf16.gmra.mxu0 %vm679_vm3, %v14053_v43  ;;  %v13703_v43 = vshrl.u32 %v11962_v29, 16  ;;  %v11986_v32 = vcombine.low %v4500_v46, %v4503_v4  ;;  %v13706_v61 = vshll.u32 %v11974_v11, 16  ;;  %v13705_v26 = vshrl.u32 %v11974_v11, 16 }
 0x22e   : > { %v11964_v34 = vadd.f32 %v8713_v49, %v3192_v39  ;;  %v3190_v63 = vadd.f32 %v3123_v23, %v11777_v19  ;;  %8923 = vmatprep.mubr.msk.bf16.mxu0 %vm679_vm3, %v14123_v59  ;;  %v11982_v23 = vld [vmem:[%s9584_s7 + $0xe0] sm:$0x3] }
 0x22f   : > { %v8680_v42 = vpop.f32.mrf.mxu1  ;;  %v3358_v39 = vpop.f32.mrf.mxu0  ;;  %14124 = vst [vmem:[#allocation80_spill] sm:$0xff] %v11986_v32  ;;  %v5358_v4 = vrot.slane %v13705_v26, 5  ;;  %v14128_v36 = vshll.u32 %v11982_v23, 16 }
 0x230   : > { %v11978_v49 = vadd.f32 %v3342_v58, %v3190_v63  ;;  %v3193_v19 = vadd.f32 %v8680_v42, %v11782_v18  ;;  %v5354_v18 = vrot.slane %v13703_v43, 5  ;;  %v5355_v42 = vrot.slane %v13704_v30, 6  ;;  %v14127_v30 = vld [vmem:[#allocation17_spill] sm:$0xff] }
 0x231   : > { %v3126_v17 = vpop.f32.mrf.mxu1  ;;  %v8718_v63 = vpop.f32.mrf.mxu0  ;;  %v5366_v26 = vrot.slane %v14128_v36, 6 }
 0x232   : > { %v11990_v47 = vadd.f32 %v8714_v9, %v3193_v19  ;;  %v3191_v58 = vadd.f32 %v3126_v17, %v11789_v48  ;;  %v5359_v9 = vrot.slane %v13706_v61, 6  ;;  %v5363_v48 = vshrl.u32 %v11982_v23, 16 }
 0x233   : > { %v8683_v59 = vpop.f32.mrf.mxu1  ;;  %8886 = vmatmul.mubr.msk.bf16.gmra.mxu1 %vm679_vm3, %v14126_v37  ;;  %v3361_v43 = vpop.f32.mrf.mxu0  ;;  %v5356_v60 = vor.u32 %v5355_v42, %v5354_v18 }
 0x234   : > { %14125 = vst [vmem:[#allocation53_spill] sm:$0xff] %v11990_v47  ;;  %v12005_v19 = vadd.f32 %v3345_v55, %v3191_v58  ;;  %v3196_v17 = vadd.f32 %v8683_v59, %v11798_v52  ;;  %8889 = vmatprep.mubr.msk.bf16.mxu1 %vm679_vm3, %v14127_v30  ;;  %v5360_v12 = vor.u32 %v5359_v9, %v5358_v4  ;;  %v5365_v46 = vrot.slane %v5363_v48, 5  ;;  %v14129_v55 = vld [vmem:[#allocation28_spill] sm:$0xff] }
 0x235   : > { %v3139_v37 = vpop.f32.mrf.mxu1  ;;  %v8721_v47 = vpop.f32.mrf.mxu0  ;;  %8924 = vmatmul.mubr.msk.bf16.gmra.mxu0 %vm679_vm3, %v11986_v32  ;;  %v5357_v59 = vrot.slane %v5356_v60, 4 }
 0x236   : > { %v12012_v5 = vadd.f32 %v8717_v0, %v3196_v17  ;;  %v3194_v61 = vadd.f32 %v3139_v37, %v11807_v15  ;;  %8963 = vmatprep.mubr.msk.bf16.mxu0 %vm679_vm3, %v14129_v55  ;;  %v5362_v58 = vrot.slane %v5360_v12, 4  ;;  %v5367_v18 = vor.u32 %v5366_v26, %v5365_v46 }
 0x237   : > { %v8684_v52 = vpop.f32.mrf.mxu1  ;;  %v3374_v36 = vpop.f32.mrf.mxu0  ;;  %v5361_v15 = vsel %vm10371_vm10, %v5357_v59, %v5360_v12  ;;  %v14133_v12 = vld [vmem:[#allocation60_spill] sm:$0xff] }
 0x238   : > { %v12019_v42 = vadd.f32 %v3358_v39, %v3194_v61  ;;  %v3197_v4 = vadd.f32 %v8684_v52, %v11810_v53  ;;  %v5368_v37 = vsel %vm10371_vm10, %v5362_v58, %v5367_v18  ;;  %v14132_v39 = vld [vmem:[#allocation54_spill] sm:$0xff]  ;;  %v14134_v18 = vld [vmem:[#allocation36_spill] sm:$0xff] }
 0x239   : > { %v3142_v0 = vpop.f32.mrf.mxu1  ;;  %v8722_v55 = vpop.f32.mrf.mxu0  ;;  %v12029_v60 = vcombine.low %v5361_v15, %v5368_v37 }
 0x23a   : > { %v12026_v48 = vadd.f32 %v8718_v63, %v3197_v4  ;;  %v3195_v17 = vadd.f32 %v3142_v0, %v11815_v7  ;;  %v5378_v63 = vsel %vm728_vm0, %v11825_v13, 0  ;;  %v12043_v7 = vld [vmem:[%s13381_s1 + $0x28] sm:$0x3]  ;;  %v14135_v4 = vld [vmem:[#allocation42_spill] sm:$0xff] }
 0x23b   : > { %14131 = vst [vmem:[#allocation86_spill] sm:$0xff] %v12029_v60  ;;  %v8687_v26 = vpop.f32.mrf.mxu1  ;;  %8890 = vmatmul.mubr.msk.bf16.gmra.mxu1 %vm679_vm3, %v14132_v39  ;;  %v3377_v46 = vpop.f32.mrf.mxu0 }
 0x23c   : > { %v12033_v53 = vadd.f32 %v3361_v43, %v3195_v17  ;;  %v3200_v61 = vadd.f32 %v8687_v26, %v11827_v35  ;;  %8929 = vmatprep.mubr.msk.bf16.mxu1 %vm679_vm3, %v14133_v12 }
 0x23d   : > { %v3155_v52 = vpop.f32.mrf.mxu1  ;;  %v8761_v58 = vpop.f32.mrf.mxu0  ;;  %8964 = vmatmul.mubr.msk.bf16.vlgmr.msra.gmra.mxu0 %vm679_vm3, %v14134_v18 }
 0x23e   : > { %v12045_v59 = vadd.f32 %v8721_v47, %v3200_v61  ;;  %v3198_v43 = vadd.f32 %v3155_v52, %v11834_v8  ;;  %9030 = vmatpush3.bf16.msra.mxu0 %v5378_v63  ;;  %8967 = vmatprep.mubr.msk.bf16.mxu0 %vm679_vm3, %v14135_v4  ;;  %v5159_v8 = vsel %vm728_vm0, %v11847_v20, 0 }
 0x23f   : > { %v8688_v35 = vpop.f32.mrf.mxu1  ;;  %v3679_v15 = vpop.f32.mrf.mxu0  ;;  %9290 = vmatprep.subr.msk.bf16.mxu0 %vm728_vm0, %v12043_v7 }
 0x240   : > { %v12052_v13 = vadd.f32 %v3374_v36, %v3198_v43  ;;  %v3201_v0 = vadd.f32 %v8688_v35, %v11841_v28  ;;  %v12065_v36 = vld [vmem:[%s13381_s1 + $0x26] sm:$0x3]  ;;  %v14136_v28 = vld [vmem:[#allocation61_spill] sm:$0xff] }
 0x241   : > { %v3158_v47 = vpop.f32.mrf.mxu1  ;;  %v8762_v26 = vpop.f32.mrf.mxu0 }
 0x242   : > { %v12059_v37 = vadd.f32 %v8722_v55, %v3201_v0  ;;  %v3199_v17 = vadd.f32 %v3158_v47, %v11851_v6  ;;  %v14137_v55 = vld [vmem:[#allocation62_spill] sm:$0xff]  ;;  %v14138_v0 = vld [vmem:[#allocation48_spill] sm:$0xff]  ;;  %v14139_v47 = vld [vmem:[#allocation51_spill] sm:$0xff] }
 0x243   : > { %v8727_v61 = vpop.f32.mrf.mxu1  ;;  %8930 = vmatmul.mubr.msk.bf16.vlgmr.msra.gmra.mxu1 %vm679_vm3, %v14136_v28  ;;  %v3682_v20 = vpop.f32.mrf.mxu0  ;;  %v14159_v28 = vld [vmem:[#allocation40_spill] sm:$0xff] }
 0x244   : > { %v12069_v12 = vadd.f32 %v3377_v46, %v3199_v17  ;;  %v3602_v63 = vadd.f32 %v8727_v61, %v11858_v57  ;;  %8996 = vmatpush3.bf16.msra.mxu1 %v5159_v8  ;;  %8933 = vmatprep.mubr.msk.bf16.mxu1 %vm679_vm3, %v14137_v55  ;;  %v14158_v55 = vld [vmem:[#allocation49_spill] sm:$0xff] }
 0x245   : > { %v3473_v6 = vpop.f32.mrf.mxu1  ;;  %9289 = vmatprep.subr.msk.bf16.mxu1 %vm728_vm0, %v12065_v36  ;;  %v8765_v35 = vpop.f32.mrf.mxu0  ;;  %8968 = vmatmul.mubr.msk.bf16.gmra.mxu0 %vm679_vm3, %v14138_v0 }
 0x246   : > { %v12076_v52 = vadd.f32 %v8761_v58, %v3602_v63  ;;  %v3600_v43 = vadd.f32 %v3473_v6, %v11865_v21  ;;  %8971 = vmatprep.mubr.msk.bf16.mxu0 %vm679_vm3, %v14139_v47  ;;  %v14140_v6 = vld [vmem:[#allocation64_spill] sm:$0xff] }
 0x247   : > { %v8728_v46 = vpop.f32.mrf.mxu1  ;;  %v3695_v17 = vpop.f32.mrf.mxu0 }
 0x248   : > { %v12083_v57 = vadd.f32 %v3679_v15, %v3600_v43  ;;  %v3603_v8 = vadd.f32 %v8728_v46, %v11868_v41  ;;  %v14141_v15 = vld [vmem:[#allocation66_spill] sm:$0xff] }
 0x249   : > { %v3476_v61 = vpop.f32.mrf.mxu1  ;;  %v8766_v63 = vpop.f32.mrf.mxu0 }
 0x24a   : > { %v12086_v4 = vadd.f32 %v8762_v26, %v3603_v8  ;;  %v3601_v58 = vadd.f32 %v3476_v61, %v11873_v44  ;;  %v14142_v44 = vld [vmem:[#allocation13_spill] sm:$0xff]  ;;  %v14143_v61 = vld [vmem:[#allocation20_spill] sm:$0xff] }
 0x24b   : > { %v8731_v21 = vpop.f32.mrf.mxu1  ;;  %8934 = vmatmul.mubr.msk.bf16.gmra.mxu1 %vm679_vm3, %v14140_v6  ;;  %v3698_v47 = vpop.f32.mrf.mxu0 }
 0x24c   : > { %v12091_v0 = vadd.f32 %v3682_v20, %v3601_v58  ;;  %v3606_v18 = vadd.f32 %v8731_v21, %v11878_v16  ;;  %8937 = vmatprep.mubr.msk.bf16.mxu1 %vm679_vm3, %v14141_v15  ;;  %v14157_v15 = vld [vmem:[#allocation41_spill] sm:$0xff] }
 0x24d   : > { %v3489_v41 = vpop.f32.mrf.mxu1  ;;  %v8769_v46 = vpop.f32.mrf.mxu0  ;;  %8972 = vmatmul.mubr.msk.bf16.gmra.mxu0 %vm679_vm3, %v14142_v44 }
 0x24e   : > { %v12096_v43 = vadd.f32 %v8765_v35, %v3606_v18  ;;  %v3604_v26 = vadd.f32 %v3489_v41, %v11885_v40  ;;  %8975 = vmatprep.mubr.msk.bf16.mxu0 %vm679_vm3, %v14143_v61  ;;  %v14144_v41 = vld [vmem:[#allocation67_spill] sm:$0xff] }
 0x24f   : > { %v8732_v8 = vpop.f32.mrf.mxu1  ;;  %v3711_v58 = vpop.f32.mrf.mxu0 }
 0x250   : > { %v12103_v20 = vadd.f32 %v3695_v17, %v3604_v26  ;;  %v3607_v16 = vadd.f32 %v8732_v8, %v11888_v10  ;;  %v14145_v17 = vld [vmem:[#allocation68_spill] sm:$0xff] }
 0x251   : > { %v3492_v21 = vpop.f32.mrf.mxu1  ;;  %v8770_v35 = vpop.f32.mrf.mxu0 }
 0x252   : > { %v12106_v9 = vadd.f32 %v8766_v63, %v3607_v16  ;;  %v3605_v18 = vadd.f32 %v3492_v21, %v11893_v38  ;;  %v14146_v38 = vld [vmem:[#allocation25_spill] sm:$0xff]  ;;  %v14147_v21 = vld [vmem:[#allocation32_spill] sm:$0xff] }
 0x253   : > { %v8735_v40 = vpop.f32.mrf.mxu1  ;;  %8938 = vmatmul.mubr.msk.bf16.gmra.mxu1 %vm679_vm3, %v14144_v41  ;;  %v3714_v61 = vpop.f32.mrf.mxu0 }
 0x254   : > { %v12111_v44 = vadd.f32 %v3698_v47, %v3605_v18  ;;  %v3610_v32 = vadd.f32 %v8735_v40, %v11898_v31  ;;  %8941 = vmatprep.mubr.msk.bf16.mxu1 %vm679_vm3, %v14145_v17 }
 0x255   : > { %v3505_v10 = vpop.f32.mrf.mxu1  ;;  %v8773_v8 = vpop.f32.mrf.mxu0  ;;  %8976 = vmatmul.mubr.msk.bf16.gmra.mxu0 %vm679_vm3, %v14146_v38 }
 0x256   : > { %v12116_v26 = vadd.f32 %v8769_v46, %v3610_v32  ;;  %v3608_v63 = vadd.f32 %v3505_v10, %v11905_v1  ;;  %8979 = vmatprep.mubr.msk.bf16.mxu0 %vm679_vm3, %v14147_v21  ;;  %v14148_v10 = vld [vmem:[#allocation69_spill] sm:$0xff] }
 0x257   : > { %v8736_v16 = vpop.f32.mrf.mxu1  ;;  %v3727_v18 = vpop.f32.mrf.mxu0 }
 0x258   : > { %v12123_v47 = vadd.f32 %v3711_v58, %v3608_v63  ;;  %v3611_v31 = vadd.f32 %v8736_v16, %v11908_v62  ;;  %v14149_v58 = vld [vmem:[#allocation73_spill] sm:$0xff] }
 0x259   : > { %v3508_v40 = vpop.f32.mrf.mxu1  ;;  %v8774_v46 = vpop.f32.mrf.mxu0 }
 0x25a   : > { %v12126_v17 = vadd.f32 %v8770_v35, %v3611_v31  ;;  %v3609_v32 = vadd.f32 %v3508_v40, %v11913_v51  ;;  %v14150_v51 = vld [vmem:[#allocation38_spill] sm:$0xff]  ;;  %v14151_v40 = vld [vmem:[#allocation44_spill] sm:$0xff] }
 0x25b   : > { %v8739_v1 = vpop.f32.mrf.mxu1  ;;  %8942 = vmatmul.mubr.msk.bf16.gmra.mxu1 %vm679_vm3, %v14148_v10  ;;  %v3730_v21 = vpop.f32.mrf.mxu0 }
 0x25c   : > { %v12131_v38 = vadd.f32 %v3714_v61, %v3609_v32  ;;  %v3614_v41 = vadd.f32 %v8739_v1, %v11918_v14  ;;  %8945 = vmatprep.mubr.msk.bf16.mxu1 %vm679_vm3, %v14149_v58 }
 0x25d   : > { %v3521_v62 = vpop.f32.mrf.mxu1  ;;  %v8777_v16 = vpop.f32.mrf.mxu0  ;;  %8980 = vmatmul.mubr.msk.bf16.gmra.mxu0 %vm679_vm3, %v14150_v51  ;;  %v14153_v51 = vshrl.u32 %v11962_v29, 16 }
 0x25e   : > { %v12136_v63 = vadd.f32 %v8773_v8, %v3614_v41  ;;  %v3612_v35 = vadd.f32 %v3521_v62, %v11925_v22  ;;  %8983 = vmatprep.mubr.msk.bf16.mxu0 %vm679_vm3, %v14151_v40  ;;  %v14152_v62 = vld [vmem:[#allocation74_spill] sm:$0xff]  ;;  %v14154_v40 = vshll.u32 %v11962_v29, 16 }
 0x25f   : > { %v8740_v31 = vpop.f32.mrf.mxu1  ;;  %v3743_v32 = vpop.f32.mrf.mxu0  ;;  %v4917_v10 = vrot.slane %v14153_v51, 4 }
 0x260   : > { %v12143_v61 = vadd.f32 %v3727_v18, %v3612_v35  ;;  %v3615_v14 = vadd.f32 %v8740_v31, %v11928_v24  ;;  %v4920_v18 = vrot.slane %v14154_v40, 5  ;;  %v14155_v35 = vshll.u32 %v11974_v11, 16 }
 0x261   : > { %v3524_v1 = vpop.f32.mrf.mxu1  ;;  %v8778_v8 = vpop.f32.mrf.mxu0  ;;  %v14156_v31 = vshrl.u32 %v11974_v11, 16 }
 0x262   : > { %v12146_v58 = vadd.f32 %v8774_v46, %v3615_v14  ;;  %v3613_v41 = vadd.f32 %v3524_v1, %v11933_v50  ;;  %v4926_v24 = vrot.slane %v14155_v35, 5 }
 0x263   : > { %v8743_v22 = vpop.f32.mrf.mxu1  ;;  %8946 = vmatmul.mubr.msk.bf16.gmra.mxu1 %vm679_vm3, %v14152_v62  ;;  %v4930_v46 = vrot.slane %v14156_v31, 4  ;;  %v3746_v1 = vpop.f32.mrf.mxu0 }
 0x264   : > { %v12159_v14 = vadd.f32 %v3730_v21, %v3613_v41  ;;  %v3618_v50 = vadd.f32 %v8743_v22, %v11938_v25  ;;  %8949 = vmatprep.mubr.msk.bf16.mxu1 %vm679_vm3, %v14157_v15  ;;  %v4921_v21 = vor.u32 %v4920_v18, %v4917_v10  ;;  %v14160_v10 = vshll.u32 %v11982_v23, 16 }
 0x265   : > { %v3537_v62 = vpop.f32.mrf.mxu1  ;;  %v8781_v40 = vpop.f32.mrf.mxu0  ;;  %8984 = vmatmul.mubr.msk.bf16.gmra.mxu0 %vm679_vm3, %v14158_v55  ;;  %v4931_v41 = vor.u32 %v4930_v46, %v4926_v24 }
 0x266   : > { %v12164_v6 = vadd.f32 %v8777_v16, %v3618_v50  ;;  %v3616_v51 = vadd.f32 %v3537_v62, %v11946_v33  ;;  %8987 = vmatprep.mubr.msk.bf16.mxu0 %vm679_vm3, %v14092_v3  ;;  %v4922_v55 = vrot.slane %v4921_v21, 4  ;;  %v4936_v18 = vrot.slane %v14160_v10, 5 }
 0x267   : > { %v8744_v35 = vpop.f32.mrf.mxu1  ;;  %v3759_v31 = vpop.f32.mrf.mxu0  ;;  %v4932_v60 = vrot.slane %v4931_v41, 4 }
 0x268   : > { %v12171_v25 = vadd.f32 %v3743_v32, %v3616_v51  ;;  %v3619_v22 = vadd.f32 %v8744_v35, %v11950_v45  ;;  %v14161_v51 = vld [vmem:[#allocation77_spill] sm:$0xff] }
 0x269   : > { %v3540_v15 = vpop.f32.mrf.mxu1  ;;  %v8782_v62 = vpop.f32.mrf.mxu0 }
 0x26a   : > { %v12174_v16 = vadd.f32 %v8778_v8, %v3619_v22  ;;  %v3617_v33 = vadd.f32 %v3540_v15, %v11956_v54 }
 0x26b   : > { %v8747_v50 = vpop.f32.mrf.mxu1  ;;  %8950 = vmatmul.mubr.msk.bf16.gmra.mxu1 %vm679_vm3, %v14159_v28  ;;  %v3762_v46 = vpop.f32.mrf.mxu0 }
 0x26c   : > { %v12181_v32 = vadd.f32 %v3746_v1, %v3617_v33  ;;  %v3622_v45 = vadd.f32 %v8747_v50, %v11964_v34  ;;  %8953 = vmatprep.mubr.msk.bf16.mxu1 %vm679_vm3, %v14161_v51  ;;  %v4927_v34 = vsel %vm9624_vm4, %v4922_v55, %v4926_v24  ;;  %v4937_v1 = vsel %vm9624_vm4, %v4932_v60, %v4936_v18 }
 0x26d   : > { %v3553_v8 = vpop.f32.mrf.mxu1  ;;  %v8785_v35 = vpop.f32.mrf.mxu0  ;;  %8988 = vmatmul.mubr.msk.bf16.gmra.mxu0 %vm679_vm3, %v14093_v2  ;;  %v14164_v2 = vld [vmem:[#allocation57_spill] sm:$0xff] }
 0x26e   : > { %v12186_v54 = vadd.f32 %v8781_v40, %v3622_v45  ;;  %v3620_v15 = vadd.f32 %v3553_v8, %v11978_v49  ;;  %8991 = vmatprep.mubr.msk.bf16.mxu0 %vm679_vm3, %v11803_v27  ;;  %v14162_v40 = vld [vmem:[#allocation53_spill] sm:$0xff]  ;;  %v12203_v8 = vcombine.low %v4927_v34, %v4937_v1  ;;  %v14166_v34 = vld [vmem:[#allocation30_spill] sm:$0xff] }
 0x26f   : > { %v8748_v21 = vpop.f32.mrf.mxu1  ;;  %v3775_v33 = vpop.f32.mrf.mxu0 }
 0x270   : > { %v12197_v41 = vadd.f32 %v3759_v31, %v3620_v15  ;;  %v3623_v22 = vadd.f32 %v8748_v21, %v14162_v40  ;;  %14163 = vst [vmem:[#allocation89_spill] sm:$0xff] %v12203_v8  ;;  %v14165_v31 = vld [vmem:[#allocation90_spill] sm:$0xff] }
 0x271   : > { %v3556_v49 = vpop.f32.mrf.mxu1  ;;  %v8786_v45 = vpop.f32.mrf.mxu0 }
 0x272   : > { %v12200_v50 = vadd.f32 %v8782_v62, %v3623_v22  ;;  %v3621_v10 = vadd.f32 %v3556_v49, %v12005_v19 }
 0x273   : > { %v8751_v27 = vpop.f32.mrf.mxu1  ;;  %8954 = vmatmul.mubr.msk.bf16.gmra.mxu1 %vm679_vm3, %v14164_v2  ;;  %v3778_v24 = vpop.f32.mrf.mxu0 }
 0x274   : > { %v12207_v55 = vadd.f32 %v3762_v46, %v3621_v10  ;;  %v3626_v60 = vadd.f32 %v8751_v27, %v12012_v5  ;;  %8957 = vmatprep.mubr.msk.bf16.mxu1 %vm679_vm3, %v14165_v31  ;;  %v12219_v46 = vcombine.low %v11962_v29, %v11974_v11 }
 0x275   : > { %v3569_v18 = vpop.f32.mrf.mxu1  ;;  %v8789_v15 = vpop.f32.mrf.mxu0  ;;  %8992 = vmatmul.mubr.msk.bf16.gmra.mxu0 %vm679_vm3, %v12203_v8 }
 0x276   : > { %v12212_v62 = vadd.f32 %v8785_v35, %v3626_v60  ;;  %v3624_v19 = vadd.f32 %v3569_v18, %v12019_v42  ;;  %9031 = vmatprep.mubr.msk.bf16.mxu0 %vm679_vm3, %v14166_v34  ;;  %v14168_v34 = vld [vmem:[#allocation33_spill] sm:$0xff] }
 0x277   : > { %v8752_v21 = vpop.f32.mrf.mxu1  ;;  %v3791_v35 = vpop.f32.mrf.mxu0 }
 0x278   : > { %v12223_v27 = vadd.f32 %v3775_v33, %v3624_v19  ;;  %v3627_v5 = vadd.f32 %v8752_v21, %v12026_v48  ;;  %v14167_v33 = vld [vmem:[#allocation58_spill] sm:$0xff]  ;;  %v5795_v48 = vsel %vm728_vm0, %v12043_v7, 0 }
 0x279   : > { %v3572_v1 = vpop.f32.mrf.mxu1  ;;  %v8790_v22 = vpop.f32.mrf.mxu0 }
 0x27a   : > { %v12226_v40 = vadd.f32 %v8786_v45, %v3627_v5  ;;  %v3625_v42 = vadd.f32 %v3572_v1, %v12033_v53  ;;  %v12241_v53 = vld [vmem:[%s13381_s1 + $0x2c] sm:$0x3] }
 0x27b   : > { %v8755_v49 = vpop.f32.mrf.mxu1  ;;  %8958 = vmatmul.mubr.msk.bf16.gmra.mxu1 %vm679_vm3, %v12219_v46  ;;  %v3794_v18 = vpop.f32.mrf.mxu0  ;;  %v14169_v5 = vld [vmem:[#allocation45_spill] sm:$0xff] }
 0x27c   : > { %v12231_v10 = vadd.f32 %v3778_v24, %v3625_v42  ;;  %v3630_v60 = vadd.f32 %v8755_v49, %v12045_v59  ;;  %8997 = vmatprep.mubr.msk.bf16.mxu1 %vm679_vm3, %v14167_v33 }
 0x27d   : > { %v3585_v45 = vpop.f32.mrf.mxu1  ;;  %v8829_v21 = vpop.f32.mrf.mxu0  ;;  %9032 = vmatmul.mubr.msk.bf16.vlgmr.msra.gmra.mxu0 %vm679_vm3, %v14168_v34 }
 0x27e   : > { %v12243_v19 = vadd.f32 %v8789_v15, %v3630_v60  ;;  %v3628_v24 = vadd.f32 %v3585_v45, %v12052_v13  ;;  %9098 = vmatpush3.bf16.msra.mxu0 %v5795_v48  ;;  %9035 = vmatprep.mubr.msk.bf16.mxu0 %vm679_vm3, %v14169_v5  ;;  %v5589_v13 = vsel %vm728_vm0, %v12065_v36, 0  ;;  %v14172_v5 = vld [vmem:[#allocation9_spill] sm:$0xff] }
 0x27f   : > { %v8756_v59 = vpop.f32.mrf.mxu1  ;;  %v4119_v42 = vpop.f32.mrf.mxu0  ;;  %9292 = vmatprep.subr.msk.bf16.mxu0 %vm728_vm0, %v12241_v53 }
 0x280   : > { %v12250_v7 = vadd.f32 %v3791_v35, %v3628_v24  ;;  %v3631_v1 = vadd.f32 %v8756_v59, %v12059_v37  ;;  %v12263_v35 = vld [vmem:[%s13381_s1 + $0x2a] sm:$0x3]  ;;  %v14170_v37 = vld [vmem:[#allocation59_spill] sm:$0xff] }
 0x281   : > { %v3588_v15 = vpop.f32.mrf.mxu1  ;;  %v8830_v33 = vpop.f32.mrf.mxu0 }
 0x282   : > { %v12257_v49 = vadd.f32 %v8790_v22, %v3631_v1  ;;  %v3629_v60 = vadd.f32 %v3588_v15, %v12069_v12  ;;  %v14171_v22 = vld [vmem:[#allocation63_spill] sm:$0xff] }
 0x283   : > { %v8795_v48 = vpop.f32.mrf.mxu1  ;;  %8998 = vmatmul.mubr.msk.bf16.vlgmr.msra.gmra.mxu1 %vm679_vm3, %v14170_v37  ;;  %v4122_v36 = vpop.f32.mrf.mxu0 }
 0x284   : > { %v12267_v45 = vadd.f32 %v3794_v18, %v3629_v60  ;;  %v4036_v24 = vadd.f32 %v8795_v48, %v12076_v52  ;;  %9064 = vmatpush3.bf16.msra.mxu1 %v5589_v13  ;;  %9001 = vmatprep.mubr.msk.bf16.mxu1 %vm679_vm3, %v14171_v22  ;;  %v14173_v60 = vld [vmem:[#allocation14_spill] sm:$0xff] }
 0x285   : > { %v3907_v12 = vpop.f32.mrf.mxu1  ;;  %9291 = vmatprep.subr.msk.bf16.mxu1 %vm728_vm0, %v12263_v35  ;;  %v8833_v15 = vpop.f32.mrf.mxu0  ;;  %9036 = vmatmul.mubr.msk.bf16.gmra.mxu0 %vm679_vm3, %v14172_v5 }
 0x286   : > { %v12274_v59 = vadd.f32 %v8829_v21, %v4036_v24  ;;  %v4034_v1 = vadd.f32 %v3907_v12, %v12083_v57  ;;  %9039 = vmatprep.mubr.msk.bf16.mxu0 %vm679_vm3, %v14173_v60  ;;  %v14174_v12 = vld [vmem:[#allocation65_spill] sm:$0xff] }
 0x287   : > { %v8796_v18 = vpop.f32.mrf.mxu1  ;;  %v4135_v48 = vpop.f32.mrf.mxu0 }
 0x288   : > { %v12281_v52 = vadd.f32 %v4119_v42, %v4034_v1  ;;  %v4037_v13 = vadd.f32 %v8796_v18, %v12086_v4  ;;  %v14175_v42 = vld [vmem:[#allocation70_spill] sm:$0xff] }
 0x289   : > { %v3910_v34 = vpop.f32.mrf.mxu1  ;;  %v8834_v24 = vpop.f32.mrf.mxu0 }
 0x28a   : > { %v12284_v56 = vadd.f32 %v8830_v33, %v4037_v13  ;;  %v4035_v21 = vadd.f32 %v3910_v34, %v12091_v0  ;;  %v14176_v0 = vld [vmem:[#allocation16_spill] sm:$0xff]  ;;  %v14177_v13 = vld [vmem:[#allocation18_spill] sm:$0xff] }
 0x28b   : > { %v8799_v57 = vpop.f32.mrf.mxu1  ;;  %9002 = vmatmul.mubr.msk.bf16.gmra.mxu1 %vm679_vm3, %v14174_v12  ;;  %v4138_v60 = vpop.f32.mrf.mxu0 }
 0x28c   : > { %v12289_v5 = vadd.f32 %v4122_v36, %v4035_v21  ;;  %v4040_v8 = vadd.f32 %v8799_v57, %v12096_v43  ;;  %9005 = vmatprep.mubr.msk.bf16.mxu1 %vm679_vm3, %v14175_v42 }
 0x28d   : > { %v3923_v4 = vpop.f32.mrf.mxu1  ;;  %v8837_v18 = vpop.f32.mrf.mxu0  ;;  %9040 = vmatmul.mubr.msk.bf16.gmra.mxu0 %vm679_vm3, %v14176_v0 }
 0x28e   : > { %v12294_v1 = vadd.f32 %v8833_v15, %v4040_v8  ;;  %v4038_v33 = vadd.f32 %v3923_v4, %v12103_v20  ;;  %9043 = vmatprep.mubr.msk.bf16.mxu0 %vm679_vm3, %v14177_v13  ;;  %v14178_v4 = vld [vmem:[#allocation71_spill] sm:$0xff] }
 0x28f   : > { %v8800_v34 = vpop.f32.mrf.mxu1  ;;  %v4151_v21 = vpop.f32.mrf.mxu0 }
 0x290   : > { %v12301_v36 = vadd.f32 %v4135_v48, %v4038_v33  ;;  %v4041_v43 = vadd.f32 %v8800_v34, %v12106_v9  ;;  %v14179_v48 = vld [vmem:[#allocation72_spill] sm:$0xff] }
 0x291   : > { %v3926_v57 = vpop.f32.mrf.mxu1  ;;  %v8838_v15 = vpop.f32.mrf.mxu0 }
 0x292   : > { %v12304_v3 = vadd.f32 %v8834_v24, %v4041_v43  ;;  %v4039_v8 = vadd.f32 %v3926_v57, %v12111_v44  ;;  %v14180_v44 = vld [vmem:[#allocation19_spill] sm:$0xff]  ;;  %v14181_v57 = vld [vmem:[#allocation26_spill] sm:$0xff] }
 0x293   : > { %v8803_v20 = vpop.f32.mrf.mxu1  ;;  %9006 = vmatmul.mubr.msk.bf16.gmra.mxu1 %vm679_vm3, %v14178_v4  ;;  %v4154_v13 = vpop.f32.mrf.mxu0 }
 0x294   : > { %v12309_v0 = vadd.f32 %v4138_v60, %v4039_v8  ;;  %v4044_v42 = vadd.f32 %v8803_v20, %v12116_v26  ;;  %9009 = vmatprep.mubr.msk.bf16.mxu1 %vm679_vm3, %v14179_v48 }
 0x295   : > { %v3939_v9 = vpop.f32.mrf.mxu1  ;;  %v8841_v34 = vpop.f32.mrf.mxu0  ;;  %9044 = vmatmul.mubr.msk.bf16.gmra.mxu0 %vm679_vm3, %v14180_v44 }
 0x296   : > { %v12314_v33 = vadd.f32 %v8837_v18, %v4044_v42  ;;  %v4042_v24 = vadd.f32 %v3939_v9, %v12123_v47  ;;  %9047 = vmatprep.mubr.msk.bf16.mxu0 %vm679_vm3, %v14181_v57  ;;  %v14182_v9 = vld [vmem:[#allocation75_spill] sm:$0xff] }
 0x297   : > { %v8804_v43 = vpop.f32.mrf.mxu1  ;;  %v4167_v8 = vpop.f32.mrf.mxu0 }
 0x298   : > { %v12321_v60 = vadd.f32 %v4151_v21, %v4042_v24  ;;  %v4045_v26 = vadd.f32 %v8804_v43, %v12126_v17  ;;  %v14183_v21 = vld [vmem:[#allocation47_spill] sm:$0xff] }
 0x299   : > { %v3942_v20 = vpop.f32.mrf.mxu1  ;;  %v8842_v18 = vpop.f32.mrf.mxu0 }
 0x29a   : > { %v12324_v48 = vadd.f32 %v8838_v15, %v4045_v26  ;;  %v4043_v42 = vadd.f32 %v3942_v20, %v12131_v38  ;;  %v14184_v38 = vld [vmem:[#allocation27_spill] sm:$0xff] }
 0x29b   : > { %v8807_v47 = vpop.f32.mrf.mxu1  ;;  %9010 = vmatmul.mubr.msk.bf16.gmra.mxu1 %vm679_vm3, %v14182_v9  ;;  %v4170_v57 = vpop.f32.mrf.mxu0  ;;  %v14185_v20 = vld [vmem:[#allocation43_spill] sm:$0xff] }
 0x29c   : > { %v12329_v44 = vadd.f32 %v4154_v13, %v4043_v42  ;;  %v4048_v4 = vadd.f32 %v8807_v47, %v12136_v63  ;;  %9013 = vmatprep.mubr.msk.bf16.mxu1 %vm679_vm3, %v14183_v21 }
 0x29d   : > { %v3955_v17 = vpop.f32.mrf.mxu1  ;;  %v8845_v43 = vpop.f32.mrf.mxu0  ;;  %9048 = vmatmul.mubr.msk.bf16.gmra.mxu0 %vm679_vm3, %v14184_v38 }
 0x29e   : > { %v12334_v24 = vadd.f32 %v8841_v34, %v4048_v4  ;;  %v4046_v15 = vadd.f32 %v3955_v17, %v12143_v61  ;;  %9051 = vmatprep.mubr.msk.bf16.mxu0 %vm679_vm3, %v14185_v20  ;;  %v14186_v17 = vld [vmem:[#allocation34_spill] sm:$0xff] }
 0x29f   : > { %v8808_v26 = vpop.f32.mrf.mxu1  ;;  %v4183_v42 = vpop.f32.mrf.mxu0 }
 0x2a0   : > { %v12341_v13 = vadd.f32 %v4167_v8, %v4046_v15  ;;  %v4049_v63 = vadd.f32 %v8808_v26, %v12146_v58  ;;  %v14187_v8 = vld [vmem:[#allocation46_spill] sm:$0xff] }
 0x2a1   : > { %v3958_v47 = vpop.f32.mrf.mxu1  ;;  %v8846_v34 = vpop.f32.mrf.mxu0 }
 0x2a2   : > { %v12344_v21 = vadd.f32 %v8842_v18, %v4049_v63  ;;  %v4047_v4 = vadd.f32 %v3958_v47, %v12159_v14  ;;  %v14188_v14 = vld [vmem:[#allocation83_spill] sm:$0xff]  ;;  %v14189_v47 = vld [vmem:[#allocation85_spill] sm:$0xff] }
 0x2a3   : > { %v8811_v61 = vpop.f32.mrf.mxu1  ;;  %9014 = vmatmul.mubr.msk.bf16.gmra.mxu1 %vm679_vm3, %v14186_v17  ;;  %v4186_v20 = vpop.f32.mrf.mxu0 }
 0x2a4   : > { %v12349_v38 = vadd.f32 %v4170_v57, %v4047_v4  ;;  %v4052_v9 = vadd.f32 %v8811_v61, %v12164_v6  ;;  %9017 = vmatprep.mubr.msk.bf16.mxu1 %vm679_vm3, %v14187_v8 }
 0x2a5   : > { %v3971_v58 = vpop.f32.mrf.mxu1  ;;  %v8849_v26 = vpop.f32.mrf.mxu0  ;;  %9052 = vmatmul.mubr.msk.bf16.gmra.mxu0 %vm679_vm3, %v14188_v14 }
 0x2a6   : > { %v12354_v15 = vadd.f32 %v8845_v43, %v4052_v9  ;;  %v4050_v18 = vadd.f32 %v3971_v58, %v12171_v25  ;;  %9055 = vmatprep.mubr.msk.bf16.mxu0 %vm679_vm3, %v14189_v47  ;;  %v14190_v58 = vld [vmem:[#allocation76_spill] sm:$0xff] }
 0x2a7   : > { %v8812_v63 = vpop.f32.mrf.mxu1  ;;  %v4199_v4 = vpop.f32.mrf.mxu0 }
 0x2a8   : > { %v12361_v57 = vadd.f32 %v4183_v42, %v4050_v18  ;;  %v4053_v6 = vadd.f32 %v8812_v63, %v12174_v16  ;;  %v14191_v42 = vld [vmem:[#allocation78_spill] sm:$0xff]  ;;  %v5145_v16 = vrot.slane %v11974_v11, 5 }
 0x2a9   : > { %v3974_v61 = vpop.f32.mrf.mxu1  ;;  %v8850_v43 = vpop.f32.mrf.mxu0 }
 0x2aa   : > { %v12364_v8 = vadd.f32 %v8846_v34, %v4053_v6  ;;  %v4051_v9 = vadd.f32 %v3974_v61, %v12181_v32 }
 0x2ab   : > { %v8815_v25 = vpop.f32.mrf.mxu1  ;;  %9018 = vmatmul.mubr.msk.bf16.gmra.mxu1 %vm679_vm3, %v14190_v58  ;;  %v4202_v47 = vpop.f32.mrf.mxu0 }
 0x2ac   : > { %v12369_v14 = vadd.f32 %v4186_v20, %v4051_v9  ;;  %v4056_v17 = vadd.f32 %v8815_v25, %v12186_v54  ;;  %9021 = vmatprep.mubr.msk.bf16.mxu1 %vm679_vm3, %v14191_v42  ;;  %v7677_v54 = vrot.slane %v11962_v29, 9  ;;  %v5147_v9 = vrot.slane %v5145_v16, 4  ;;  %v14192_v42 = vld [vmem:[#allocation88_spill] sm:$0xff] }
 0x2ad   : > { %v3987_v18 = vpop.f32.mrf.mxu1  ;;  %v8853_v63 = vpop.f32.mrf.mxu0  ;;  %9056 = vmatmul.mubr.msk.bf16.gmra.mxu0 %vm679_vm3, %v14127_v30 }
 0x2ae   : > { %v12375_v34 = vadd.f32 %v8849_v26, %v4056_v17  ;;  %v4054_v32 = vadd.f32 %v3987_v18, %v12197_v41  ;;  %9059 = vmatprep.mubr.msk.bf16.mxu0 %vm679_vm3, %v14132_v39  ;;  %v5148_v17 = vrot.slane %v11982_v23, 5  ;;  %v5146_v23 = vsel %vm10103_vm7, %v7677_v54, %v5145_v16 }
 0x2af   : > { %v8816_v6 = vpop.f32.mrf.mxu1  ;;  %v4215_v11 = vpop.f32.mrf.mxu0 }
 0x2b0   : > { %v12383_v20 = vadd.f32 %v4199_v4, %v4054_v32  ;;  %v4057_v61 = vadd.f32 %v8816_v6, %v12200_v50  ;;  %v14193_v50 = vld [vmem:[#allocation23_spill] sm:$0xff] }
 0x2b1   : > { %v3990_v26 = vpop.f32.mrf.mxu1  ;;  %v8854_v18 = vpop.f32.mrf.mxu0 }
 0x2b2   : > { %v12387_v41 = vadd.f32 %v8850_v43, %v4057_v61  ;;  %v4055_v25 = vadd.f32 %v3990_v26, %v12207_v55  ;;  %v5149_v43 = vsel %vm10103_vm7, %v5147_v9, %v5148_v17 }
 0x2b3   : > { %v8819_v30 = vpop.f32.mrf.mxu1  ;;  %9022 = vmatmul.mubr.msk.bf16.gmra.mxu1 %vm679_vm3, %v14192_v42  ;;  %v4218_v4 = vpop.f32.mrf.mxu0 }
 0x2b4   : > { %v12392_v39 = vadd.f32 %v4202_v47, %v4055_v25  ;;  %v4060_v29 = vadd.f32 %v8819_v30, %v12212_v62  ;;  %9025 = vmatprep.mubr.msk.bf16.mxu1 %vm679_vm3, %v14193_v50  ;;  %v14195_v47 = vld [vmem:[#allocation86_spill] sm:$0xff]  ;;  %v12406_v62 = vcombine.low %v5146_v23, %v5149_v43  ;;  %v14197_v25 = vld [vmem:[#allocation61_spill] sm:$0xff] }
 0x2b5   : > { %v4003_v55 = vpop.f32.mrf.mxu1  ;;  %v8857_v26 = vpop.f32.mrf.mxu0  ;;  %9060 = vmatmul.mubr.msk.bf16.gmra.mxu0 %vm679_vm3, %v14195_v47 }
 0x2b6   : > { %v12401_v6 = vadd.f32 %v8853_v63, %v4060_v29  ;;  %v4058_v61 = vadd.f32 %v4003_v55, %v12223_v27  ;;  %14196 = vst [vmem:[#allocation91_spill] sm:$0xff] %v12406_v62  ;;  %9099 = vmatprep.mubr.msk.bf16.mxu0 %vm679_vm3, %v14197_v25  ;;  %v14199_v25 = vld [vmem:[#allocation62_spill] sm:$0xff] }
 0x2b7   : > { %v8820_v30 = vpop.f32.mrf.mxu1  ;;  %v4231_v54 = vpop.f32.mrf.mxu0 }
 0x2b8   : > { %v12410_v50 = vadd.f32 %v4215_v11, %v4058_v61  ;;  %v4061_v16 = vadd.f32 %v8820_v30, %v12226_v40  ;;  %v14198_v11 = vld [vmem:[#allocation31_spill] sm:$0xff]  ;;  %v6235_v40 = vsel %vm728_vm0, %v12241_v53, 0 }
 0x2b9   : > { %v4006_v9 = vpop.f32.mrf.mxu1  ;;  %v8858_v17 = vpop.f32.mrf.mxu0 }
 0x2ba   : > { %v12413_v63 = vadd.f32 %v8854_v18, %v4061_v16  ;;  %v4059_v27 = vadd.f32 %v4006_v9, %v12231_v10  ;;  %v12428_v10 = vld [vmem:[%s13381_s1 + $0x30] sm:$0x3]  ;;  %v14200_v16 = vld [vmem:[#allocation64_spill] sm:$0xff] }
 0x2bb   : > { %v8823_v29 = vpop.f32.mrf.mxu1  ;;  %9026 = vmatmul.mubr.msk.bf16.gmra.mxu1 %vm679_vm3, %v12406_v62  ;;  %v4234_v55 = vpop.f32.mrf.mxu0  ;;  %v14225_v62 = vld [vmem:[#allocation92_spill] sm:$0xff] }
 0x2bc   : > { %v12418_v23 = vadd.f32 %v4218_v4, %v4059_v27  ;;  %v4064_v43 = vadd.f32 %v8823_v29, %v12243_v19  ;;  %9065 = vmatprep.mubr.msk.bf16.mxu1 %vm679_vm3, %v14198_v11 }
 0x2bd   : > { %v4019_v18 = vpop.f32.mrf.mxu1  ;;  %v8897_v30 = vpop.f32.mrf.mxu0  ;;  %9100 = vmatmul.mubr.msk.bf16.vlgmr.msra.gmra.mxu0 %vm679_vm3, %v14199_v25 }
 0x2be   : > { %v12430_v61 = vadd.f32 %v8857_v26, %v4064_v43  ;;  %v4062_v4 = vadd.f32 %v4019_v18, %v12250_v7  ;;  %9166 = vmatpush3.bf16.msra.mxu0 %v6235_v40  ;;  %9103 = vmatprep.mubr.msk.bf16.mxu0 %vm679_vm3, %v14200_v16  ;;  %v6023_v7 = vsel %vm728_vm0, %v12263_v35, 0 }
 0x2bf   : > { %v8824_v19 = vpop.f32.mrf.mxu1  ;;  %v4549_v27 = vpop.f32.mrf.mxu0  ;;  %9294 = vmatprep.subr.msk.bf16.mxu0 %vm728_vm0, %v12428_v10 }
 0x2c0   : > { %v12437_v53 = vadd.f32 %v4231_v54, %v4062_v4  ;;  %v4065_v9 = vadd.f32 %v8824_v19, %v12257_v49  ;;  %v12450_v54 = vld [vmem:[%s13381_s1 + $0x2e] sm:$0x3]  ;;  %v14201_v49 = vld [vmem:[#allocation39_spill] sm:$0xff] }
 0x2c1   : > { %v4022_v26 = vpop.f32.mrf.mxu1  ;;  %v8898_v11 = vpop.f32.mrf.mxu0 }
 0x2c2   : > { %v12444_v29 = vadd.f32 %v8858_v17, %v4065_v9  ;;  %v4063_v43 = vadd.f32 %v4022_v26, %v12267_v45  ;;  %v14202_v17 = vld [vmem:[#allocation8_spill] sm:$0xff]  ;;  %v14203_v9 = vld [vmem:[#allocation66_spill] sm:$0xff]  ;;  %v14204_v26 = vld [vmem:[#allocation67_spill] sm:$0xff] }
 0x2c3   : > { %v8863_v40 = vpop.f32.mrf.mxu1  ;;  %9066 = vmatmul.mubr.msk.bf16.vlgmr.msra.gmra.mxu1 %vm679_vm3, %v14201_v49  ;;  %v4552_v35 = vpop.f32.mrf.mxu0 }
 0x2c4   : > { %v12454_v18 = vadd.f32 %v4234_v55, %v4063_v43  ;;  %v4467_v4 = vadd.f32 %v8863_v40, %v12274_v59  ;;  %9132 = vmatpush3.bf16.msra.mxu1 %v6023_v7  ;;  %9069 = vmatprep.mubr.msk.bf16.mxu1 %vm679_vm3, %v14202_v17 }
 0x2c5   : > { %v4338_v45 = vpop.f32.mrf.mxu1  ;;  %9293 = vmatprep.subr.msk.bf16.mxu1 %vm728_vm0, %v12450_v54  ;;  %v8901_v16 = vpop.f32.mrf.mxu0  ;;  %9104 = vmatmul.mubr.msk.bf16.gmra.mxu0 %vm679_vm3, %v14203_v9 }
 0x2c6   : > { %v12461_v25 = vadd.f32 %v8897_v30, %v4467_v4  ;;  %v4465_v19 = vadd.f32 %v4338_v45, %v12281_v52  ;;  %9107 = vmatprep.mubr.msk.bf16.mxu0 %vm679_vm3, %v14204_v26  ;;  %v14205_v45 = vld [vmem:[#allocation82_spill] sm:$0xff] }
 0x2c7   : > { %v8864_v55 = vpop.f32.mrf.mxu1  ;;  %v4565_v43 = vpop.f32.mrf.mxu0 }
 0x2c8   : > { %v12468_v59 = vadd.f32 %v4549_v27, %v4465_v19  ;;  %v4468_v7 = vadd.f32 %v8864_v55, %v12284_v56  ;;  %v14206_v27 = vld [vmem:[#allocation10_spill] sm:$0xff] }
 0x2c9   : > { %v4341_v40 = vpop.f32.mrf.mxu1  ;;  %v8902_v4 = vpop.f32.mrf.mxu0 }
 0x2ca   : > { %v12471_v47 = vadd.f32 %v8898_v11, %v4468_v7  ;;  %v4466_v30 = vadd.f32 %v4341_v40, %v12289_v5  ;;  %v14207_v5 = vld [vmem:[#allocation68_spill] sm:$0xff]  ;;  %v14208_v40 = vld [vmem:[#allocation69_spill] sm:$0xff] }
 0x2cb   : > { %v8867_v52 = vpop.f32.mrf.mxu1  ;;  %9070 = vmatmul.mubr.msk.bf16.gmra.mxu1 %vm679_vm3, %v14205_v45  ;;  %v4568_v26 = vpop.f32.mrf.mxu0 }
 0x2cc   : > { %v12476_v9 = vadd.f32 %v4552_v35, %v4466_v30  ;;  %v4471_v17 = vadd.f32 %v8867_v52, %v12294_v1  ;;  %9073 = vmatprep.mubr.msk.bf16.mxu1 %vm679_vm3, %v14206_v27 }
 0x2cd   : > { %v4354_v56 = vpop.f32.mrf.mxu1  ;;  %v8905_v55 = vpop.f32.mrf.mxu0  ;;  %9108 = vmatmul.mubr.msk.bf16.gmra.mxu0 %vm679_vm3, %v14207_v5 }
 0x2ce   : > { %v12481_v19 = vadd.f32 %v8901_v16, %v4471_v17  ;;  %v4469_v11 = vadd.f32 %v4354_v56, %v12301_v36  ;;  %9111 = vmatprep.mubr.msk.bf16.mxu0 %vm679_vm3, %v14208_v40  ;;  %v14209_v56 = vld [vmem:[#allocation12_spill] sm:$0xff] }
 0x2cf   : > { %v8868_v7 = vpop.f32.mrf.mxu1  ;;  %v4581_v30 = vpop.f32.mrf.mxu0 }
 0x2d0   : > { %v12488_v35 = vadd.f32 %v4565_v43, %v4469_v11  ;;  %v4472_v1 = vadd.f32 %v8868_v7, %v12304_v3  ;;  %v14210_v43 = vld [vmem:[#allocation15_spill] sm:$0xff] }
 0x2d1   : > { %v4357_v52 = vpop.f32.mrf.mxu1  ;;  %v8906_v16 = vpop.f32.mrf.mxu0 }
 0x2d2   : > { %v12491_v27 = vadd.f32 %v8902_v4, %v4472_v1  ;;  %v4470_v17 = vadd.f32 %v4357_v52, %v12309_v0  ;;  %v14211_v0 = vld [vmem:[#allocation73_spill] sm:$0xff]  ;;  %v14212_v52 = vld [vmem:[#allocation74_spill] sm:$0xff] }
 0x2d3   : > { %v8871_v36 = vpop.f32.mrf.mxu1  ;;  %9074 = vmatmul.mubr.msk.bf16.gmra.mxu1 %vm679_vm3, %v14209_v56  ;;  %v4584_v40 = vpop.f32.mrf.mxu0 }
 0x2d4   : > { %v12496_v5 = vadd.f32 %v4568_v26, %v4470_v17  ;;  %v4475_v45 = vadd.f32 %v8871_v36, %v12314_v33  ;;  %9077 = vmatprep.mubr.msk.bf16.mxu1 %vm679_vm3, %v14210_v43 }
 0x2d5   : > { %v4370_v3 = vpop.f32.mrf.mxu1  ;;  %v8909_v7 = vpop.f32.mrf.mxu0  ;;  %9112 = vmatmul.mubr.msk.bf16.gmra.mxu0 %vm679_vm3, %v14211_v0 }
 0x2d6   : > { %v12501_v11 = vadd.f32 %v8905_v55, %v4475_v45  ;;  %v4473_v4 = vadd.f32 %v4370_v3, %v12321_v60  ;;  %9115 = vmatprep.mubr.msk.bf16.mxu0 %vm679_vm3, %v14212_v52  ;;  %v14213_v3 = vld [vmem:[#allocation21_spill] sm:$0xff] }
 0x2d7   : > { %v8872_v1 = vpop.f32.mrf.mxu1  ;;  %v4597_v17 = vpop.f32.mrf.mxu0 }
 0x2d8   : > { %v12508_v26 = vadd.f32 %v4581_v30, %v4473_v4  ;;  %v4476_v33 = vadd.f32 %v8872_v1, %v12324_v48  ;;  %v14214_v30 = vld [vmem:[#allocation22_spill] sm:$0xff] }
 0x2d9   : > { %v4373_v36 = vpop.f32.mrf.mxu1  ;;  %v8910_v55 = vpop.f32.mrf.mxu0 }
 0x2da   : > { %v12511_v43 = vadd.f32 %v8906_v16, %v4476_v33  ;;  %v4474_v45 = vadd.f32 %v4373_v36, %v12329_v44  ;;  %v14215_v44 = vld [vmem:[#allocation41_spill] sm:$0xff] }
 0x2db   : > { %v8875_v60 = vpop.f32.mrf.mxu1  ;;  %9078 = vmatmul.mubr.msk.bf16.gmra.mxu1 %vm679_vm3, %v14213_v3  ;;  %v4600_v52 = vpop.f32.mrf.mxu0 }
 0x2dc   : > { %v12516_v0 = vadd.f32 %v4584_v40, %v4474_v45  ;;  %v4479_v56 = vadd.f32 %v8875_v60, %v12334_v24  ;;  %9081 = vmatprep.mubr.msk.bf16.mxu1 %vm679_vm3, %v14214_v30 }
 0x2dd   : > { %v4386_v48 = vpop.f32.mrf.mxu1  ;;  %v8913_v1 = vpop.f32.mrf.mxu0  ;;  %9116 = vmatmul.mubr.msk.bf16.gmra.mxu0 %vm679_vm3, %v14215_v44 }
 0x2de   : > { %v12521_v4 = vadd.f32 %v8909_v7, %v4479_v56  ;;  %v4477_v16 = vadd.f32 %v4386_v48, %v12341_v13  ;;  %9119 = vmatprep.mubr.msk.bf16.mxu0 %vm679_vm3, %v14159_v28  ;;  %v14216_v48 = vld [vmem:[#allocation24_spill] sm:$0xff] }
 0x2df   : > { %v8876_v33 = vpop.f32.mrf.mxu1  ;;  %v4613_v36 = vpop.f32.mrf.mxu0 }
 0x2e0   : > { %v12528_v40 = vadd.f32 %v4597_v17, %v4477_v16  ;;  %v4480_v24 = vadd.f32 %v8876_v33, %v12344_v21  ;;  %v14217_v17 = vld [vmem:[#allocation29_spill] sm:$0xff] }
 0x2e1   : > { %v4389_v45 = vpop.f32.mrf.mxu1  ;;  %v8914_v7 = vpop.f32.mrf.mxu0 }
 0x2e2   : > { %v12531_v60 = vadd.f32 %v8910_v55, %v4480_v24  ;;  %v4478_v56 = vadd.f32 %v4389_v45, %v12349_v38 }
 0x2e3   : > { %v8879_v13 = vpop.f32.mrf.mxu1  ;;  %9082 = vmatmul.mubr.msk.bf16.gmra.mxu1 %vm679_vm3, %v14216_v48  ;;  %v4616_v28 = vpop.f32.mrf.mxu0 }
 0x2e4   : > { %v12536_v44 = vadd.f32 %v4600_v52, %v4478_v56  ;;  %v4483_v30 = vadd.f32 %v8879_v13, %v12354_v15  ;;  %9085 = vmatprep.mubr.msk.bf16.mxu1 %vm679_vm3, %v14217_v17  ;;  %v14218_v13 = vld [vmem:[#allocation37_spill] sm:$0xff] }
 0x2e5   : > { %v4402_v21 = vpop.f32.mrf.mxu1  ;;  %v8917_v38 = vpop.f32.mrf.mxu0  ;;  %9120 = vmatmul.mubr.msk.bf16.gmra.mxu0 %vm679_vm3, %v14161_v51  ;;  %v9392_v51 = vld [vmem:[%s9584_s7 + $0xd8] sm:$0xf] }
 0x2e6   : > { %v12541_v16 = vadd.f32 %v8913_v1, %v4483_v30  ;;  %v4481_v55 = vadd.f32 %v4402_v21, %v12361_v57  ;;  %9123 = vmatprep.mubr.msk.bf16.mxu0 %vm679_vm3, %v14164_v2  ;;  %v7714_v2 = vrot.slane %v9392_v51, 10  ;;  %v12569_v51 = vld [vmem:[%s9584_s7 + $0xe4] sm:$0xf] }
 0x2e7   : > { %v8880_v33 = vpop.f32.mrf.mxu1  ;;  %v4629_v24 = vpop.f32.mrf.mxu0  ;;  %v13720_v17 = vshrl.u32 %v12569_v51, 16  ;;  %v13721_v48 = vshll.u32 %v12569_v51, 16 }
 0x2e8   : > { %v12548_v15 = vadd.f32 %v4613_v36, %v4481_v55  ;;  %v4484_v52 = vadd.f32 %v8880_v33, %v12364_v8  ;;  %v9393_v36 = vld [vmem:[%s9584_s7 + $0xdc] sm:$0xf]  ;;  %v14220_v33 = vld [vmem:[#allocation84_spill] sm:$0xff] }
 0x2e9   : > { %v4405_v45 = vpop.f32.mrf.mxu1  ;;  %v8918_v57 = vpop.f32.mrf.mxu0  ;;  %v5575_v21 = vrot.slane %v9393_v36, 6 }
 0x2ea   : > { %v12551_v56 = vadd.f32 %v8914_v7, %v4484_v52  ;;  %v4482_v30 = vadd.f32 %v4405_v45, %v12369_v14 }
 0x2eb   : > { %v8883_v1 = vpop.f32.mrf.mxu1  ;;  %9086 = vmatmul.mubr.msk.bf16.gmra.mxu1 %vm679_vm3, %v14218_v13  ;;  %v4632_v7 = vpop.f32.mrf.mxu0  ;;  %v5577_v36 = vrot.slane %v5575_v21, 4 }
 0x2ec   : > { %v12558_v55 = vadd.f32 %v4616_v28, %v4482_v30  ;;  %v4487_v8 = vadd.f32 %v8883_v1, %v12375_v34  ;;  %9089 = vmatprep.mubr.msk.bf16.mxu1 %vm679_vm3, %v14220_v33  ;;  %v12572_v28 = vld [vmem:[%s9584_s7 + $0xe8] sm:$0xf]  ;;  %v12575_v30 = vld [vmem:[%s9584_s7 + $0xec] sm:$0x3] }
 0x2ed   : > { %v4418_v14 = vpop.f32.mrf.mxu1  ;;  %v8921_v13 = vpop.f32.mrf.mxu0  ;;  %9124 = vmatmul.mubr.msk.bf16.gmra.mxu0 %vm679_vm3, %v14165_v31  ;;  %v7734_v49 = vcombine.low %v12569_v51, %v12572_v28  ;;  %v14228_v1 = vshll.u32 %v12575_v30, 16 }
 0x2ee   : > { %14219 = vst [vmem:[#allocation55_spill] sm:$0xff] %v12558_v55  ;;  %v12563_v52 = vadd.f32 %v8917_v38, %v4487_v8  ;;  %v4485_v45 = vadd.f32 %v4418_v14, %v12383_v20  ;;  %9127 = vmatprep.mubr.msk.bf16.mxu0 %vm679_vm3, %v12219_v46  ;;  %v5576_v38 = vsel %vm10464_vm12, %v7714_v2, %v5575_v21  ;;  %v9394_v8 = vld [vmem:[%s9584_s7 + $0xe0] sm:$0x3]  ;;  %v13723_v2 = vshrl.u32 %v12572_v28, 16  ;;  %s13218_s7 = sand.u32 1, %s9477_s13  }
 0x2ef   : > { %v8884_v34 = vpop.f32.mrf.mxu1  ;;  %v5578_v20 = vrot.slane %v9394_v8, 6  ;;  %v4645_v33 = vpop.f32.mrf.mxu0  ;;  %s7258_s27 = sshll.u32 %s13218_s7, 7  ;;  %s7129_s8 = scalar_lea.sflag [#allocation3], %s13218_s7 }
 0x2f0   : > { %14221 = vst [vmem:[#allocation81_spill] sm:$0xff] %v12563_v52  ;;  %v12582_v14 = vadd.f32 %v4629_v24, %v4485_v45  ;;  %v4488_v31 = vadd.f32 %v8884_v34, %v12387_v41  ;;  %v6430_v45 = vrot.slane %v13720_v17, 5  ;;  %v6431_v34 = vrot.slane %v13721_v48, 6  ;;  %s13234_s28 = scalar_lea.vmem [#allocation2], %s7258_s27 }
 0x2f1   : > { %v4421_v3 = vpop.f32.mrf.mxu1  ;;  %v8922_v41 = vpop.f32.mrf.mxu0  ;;  %v5579_v46 = vsel %vm10464_vm12, %v5577_v36, %v5578_v20  ;;  %v6442_v36 = vrot.slane %v14228_v1, 6  ;;  %s7147_s30 = sshll.u32 %s13234_s28, 4  ;;  %s13318_s30 = int_to_ptr.vmem [resolvable:$true] %s7147_s30 }
 0x2f2   : > { %14223 = vst [vmem:[#allocation28_spill] sm:$0xff] %v12582_v14  ;;  %v12592_v8 = vadd.f32 %v8918_v57, %v4488_v31  ;;  %v4486_v24 = vadd.f32 %v4421_v3, %v12392_v39  ;;  %v6434_v57 = vrot.slane %v13723_v2, 5  ;;  %v14226_v31 = vshll.u32 %v12572_v28, 16  ;;  %s9395_s9 = scalar_lea.vmem %s13318_s30, 2048  ;;  %p9402_p0 = scmp.lt.s32.totalorder %s13318_s30, %s9400_s11 }
 0x2f3   : > { %v8887_v32 = vpop.f32.mrf.mxu1  ;;  %9090 = vmatmul.mubr.msk.bf16.gmra.mxu1 %vm679_vm3, %v14225_v62  ;;  %v6439_v3 = vshrl.u32 %v12575_v30, 16  ;;  %v4648_v48 = vpop.f32.mrf.mxu0  ;;  %v6432_v62 = vor.u32 %v6431_v34, %v6430_v45  ;;  %p9396_p11 = scmp.ne.s32.totalorder %s13318_s30, %s9395_s9  ;;  %p9403_p1 = scmp.lt.s32.totalorder %s9401_s17, %s9395_s9 }
 0x2f4   : > { %14224 = vst [vmem:[#allocation60_spill] sm:$0xff] %v12592_v8  ;;  %v6435_v39 = vrot.slane %v14226_v31, 6  ;;  %v12608_v21 = vadd.f32 %v4632_v7, %v4486_v24  ;;  %v4491_v17 = vadd.f32 %v8887_v32, %v12401_v6  ;;  %v14227_v8 = vld [vmem:[#allocation80_spill] sm:$0xff]  ;;  %v12619_v6 = vcombine.low %v5576_v38, %v5579_v46 }
 0x2f5   : > { %9093 = vmatprep.mubr.msk.bf16.mxu1 %vm679_vm3, %v14227_v8  ;;  %v4434_v20 = vpop.f32.mrf.mxu1  ;;  %v6441_v2 = vrot.slane %v6439_v3, 5  ;;  %v8925_v55 = vpop.f32.mrf.mxu0  ;;  %9128 = vmatmul.mubr.msk.bf16.gmra.mxu0 %vm679_vm3, %v7734_v49  ;;  %v6433_v7 = vrot.slane %v6432_v62, 4  ;;  %p9397_p12 = pnand %p9396_p11, %p9549_p5  ;;  %p9404_p2 = por %p9403_p1, %p9402_p0 }
 0x2f6   : > { %v6436_v14 = vor.u32 %v6435_v39, %v6434_v57  ;;  %v12615_v52 = vadd.f32 %v8921_v13, %v4491_v17  ;;  %v4489_v31 = vadd.f32 %v4434_v20, %v12410_v50  ;;  %9167 = vmatprep.mubr.msk.bf16.mxu0 %vm679_vm3, %v14170_v37  ;;  %v14230_v39 = vld [vmem:[#allocation36_spill] sm:$0xff] }
 0x2f7   : > { %v8888_v32 = vpop.f32.mrf.mxu1  ;;  %v6443_v45 = vor.u32 %v6442_v36, %v6441_v2  ;;  %v4661_v17 = vpop.f32.mrf.mxu0  ;;  %p9398_p13 = pneg %p9397_p12 }
 0x2f8   : > { %v6438_v24 = vrot.slane %v6436_v14, 4  ;;  %v12623_v1 = vadd.f32 %v4645_v33, %v4489_v31  ;;  %v4492_v34 = vadd.f32 %v8888_v32, %v12413_v63  ;;  %v6437_v50 = vsel %vm10371_vm10, %v6433_v7, %v6436_v14 }
 0x2f9   : > { %v4437_v57 = vpop.f32.mrf.mxu1  ;;  %v8926_v46 = vpop.f32.mrf.mxu0  ;;  %p9405_p3 = pnand %p9404_p2, %p9398_p13 }
 0x2fa   : > { %v6444_v62 = vsel %vm10371_vm10, %v6438_v24, %v6443_v45  ;;  %v12630_v49 = vadd.f32 %v8922_v41, %v4492_v34  ;;  %v4490_v38 = vadd.f32 %v4437_v57, %v12418_v23  ;;  %v6665_v41 = vsel %vm728_vm0, %v12428_v10, 0  ;;  %v14231_v45 = vld [vmem:[#allocation42_spill] sm:$0xff] }
 0x2fb   : > { %v12633_v37 = vcombine.low %v6437_v50, %v6444_v62  ;;  %v8891_v2 = vpop.f32.mrf.mxu1  ;;  %9094 = vmatmul.mubr.msk.bf16.gmra.mxu1 %vm679_vm3, %v12619_v6  ;;  %v4664_v14 = vpop.f32.mrf.mxu0  ;;  %v14233_v57 = vld [vmem:[#allocation70_spill] sm:$0xff] }
 0x2fc   : > { %v12637_v63 = vadd.f32 %v4648_v48, %v4490_v38  ;;  %v4495_v33 = vadd.f32 %v8891_v2, %v12430_v61  ;;  %9133 = vmatprep.mubr.msk.bf16.mxu1 %vm679_vm3, %v14230_v39  ;;  %v14234_v38 = vld [vmem:[#allocation71_spill] sm:$0xff] }
 0x2fd   : > { %v4450_v3 = vpop.f32.mrf.mxu1  ;;  %v8965_v20 = vpop.f32.mrf.mxu0  ;;  %9168 = vmatmul.mubr.msk.bf16.vlgmr.msra.gmra.mxu0 %vm679_vm3, %v14171_v22 }
 0x2fe   : > { %v12644_v23 = vadd.f32 %v8925_v55, %v4495_v33  ;;  %v4493_v36 = vadd.f32 %v4450_v3, %v12437_v53  ;;  %9234 = vmatpush3.bf16.msra.mxu0 %v6665_v41  ;;  %9171 = vmatprep.mubr.msk.bf16.mxu0 %vm679_vm3, %v14174_v12  ;;  %v6454_v55 = vsel %vm728_vm0, %v12450_v54, 0  ;;  %v14235_v3 = vld [vmem:[#allocation51_spill] sm:$0xff] }
 0x2ff   : > { %v8892_v48 = vpop.f32.mrf.mxu1  ;;  %v4983_v7 = vpop.f32.mrf.mxu0 }
 0x300   : > { %v12651_v61 = vadd.f32 %v4661_v17, %v4493_v36  ;;  %v4496_v31 = vadd.f32 %v8892_v48, %v12444_v29  ;;  %v14232_v17 = vld [vmem:[#allocation48_spill] sm:$0xff] }
 0x301   : > { %v4453_v10 = vpop.f32.mrf.mxu1  ;;  %v8966_v24 = vpop.f32.mrf.mxu0 }
 0x302   : > { %v12656_v32 = vadd.f32 %v8926_v46, %v4496_v31  ;;  %v4494_v53 = vadd.f32 %v4453_v10, %v12454_v18  ;;  %v14236_v31 = vld [vmem:[#allocation13_spill] sm:$0xff] }
 0x303   : > { %v8931_v22 = vpop.f32.mrf.mxu1  ;;  %9134 = vmatmul.mubr.msk.bf16.vlgmr.msra.gmra.mxu1 %vm679_vm3, %v14231_v45  ;;  %v4986_v29 = vpop.f32.mrf.mxu0 }
 0x304   : > { %v12661_v34 = vadd.f32 %v4664_v14, %v4494_v53  ;;  %v4884_v12 = vadd.f32 %v8931_v22, %v12461_v25  ;;  %9200 = vmatpush3.bf16.msra.mxu1 %v6454_v55  ;;  %9137 = vmatprep.mubr.msk.bf16.mxu1 %vm679_vm3, %v14232_v17 }
 0x305   : > { %v4755_v13 = vpop.f32.mrf.mxu1  ;;  %v8969_v18 = vpop.f32.mrf.mxu0  ;;  %9172 = vmatmul.mubr.msk.bf16.gmra.mxu0 %vm679_vm3, %v14233_v57 }
 0x306   : > { %v12666_v54 = vadd.f32 %v8965_v20, %v4884_v12  ;;  %v4882_v50 = vadd.f32 %v4755_v13, %v12468_v59  ;;  %9175 = vmatprep.mubr.msk.bf16.mxu0 %vm679_vm3, %v14234_v38  ;;  %v14240_v38 = vld [vmem:[#allocation25_spill] sm:$0xff] }
 0x307   : > { %v8932_v62 = vpop.f32.mrf.mxu1  ;;  %v4999_v2 = vpop.f32.mrf.mxu0 }
 0x308   : > { %v12673_v46 = vadd.f32 %v4983_v7, %v4882_v50  ;;  %v4885_v25 = vadd.f32 %v8932_v62, %v12471_v47  ;;  %v14239_v50 = vld [vmem:[#allocation20_spill] sm:$0xff] }
 0x309   : > { %v4758_v33 = vpop.f32.mrf.mxu1  ;;  %v8970_v41 = vpop.f32.mrf.mxu0 }
 0x30a   : > { %v12676_v14 = vadd.f32 %v8966_v24, %v4885_v25  ;;  %v4883_v39 = vadd.f32 %v4758_v33, %v12476_v9  ;;  %v14237_v9 = vld [vmem:[#allocation72_spill] sm:$0xff]  ;;  %v14238_v24 = vld [vmem:[#allocation75_spill] sm:$0xff] }
 0x30b   : > { %v8935_v59 = vpop.f32.mrf.mxu1  ;;  %9138 = vmatmul.mubr.msk.bf16.gmra.mxu1 %vm679_vm3, %v14235_v3  ;;  %v5002_v48 = vpop.f32.mrf.mxu0 }
 0x30c   : > { %v12681_v36 = vadd.f32 %v4986_v29, %v4883_v39  ;;  %v4888_v20 = vadd.f32 %v8935_v59, %v12481_v19  ;;  %9141 = vmatprep.mubr.msk.bf16.mxu1 %vm679_vm3, %v14236_v31 }
 0x30d   : > { %v4771_v47 = vpop.f32.mrf.mxu1  ;;  %v8973_v55 = vpop.f32.mrf.mxu0  ;;  %9176 = vmatmul.mubr.msk.bf16.gmra.mxu0 %vm679_vm3, %v14237_v9 }
 0x30e   : > { %v12686_v7 = vadd.f32 %v8969_v18, %v4888_v20  ;;  %v4886_v10 = vadd.f32 %v4771_v47, %v12488_v35  ;;  %9179 = vmatprep.mubr.msk.bf16.mxu0 %vm679_vm3, %v14238_v24  ;;  %v14244_v24 = vld [vmem:[#allocation38_spill] sm:$0xff] }
 0x30f   : > { %v8936_v53 = vpop.f32.mrf.mxu1  ;;  %v5015_v45 = vpop.f32.mrf.mxu0 }
 0x310   : > { %v12693_v22 = vadd.f32 %v4999_v2, %v4886_v10  ;;  %v4889_v19 = vadd.f32 %v8936_v53, %v12491_v27  ;;  %v14243_v10 = vld [vmem:[#allocation32_spill] sm:$0xff] }
 0x311   : > { %v4774_v12 = vpop.f32.mrf.mxu1  ;;  %v8974_v13 = vpop.f32.mrf.mxu0 }
 0x312   : > { %v12696_v29 = vadd.f32 %v8970_v41, %v4889_v19  ;;  %v4887_v17 = vadd.f32 %v4774_v12, %v12496_v5  ;;  %v14241_v5 = vld [vmem:[#allocation47_spill] sm:$0xff]  ;;  %v14242_v41 = vld [vmem:[#allocation34_spill] sm:$0xff] }
 0x313   : > { %v8939_v35 = vpop.f32.mrf.mxu1  ;;  %9142 = vmatmul.mubr.msk.bf16.gmra.mxu1 %vm679_vm3, %v14239_v50  ;;  %v5018_v62 = vpop.f32.mrf.mxu0 }
 0x314   : > { %v12701_v18 = vadd.f32 %v5002_v48, %v4887_v17  ;;  %v4892_v57 = vadd.f32 %v8939_v35, %v12501_v11  ;;  %9145 = vmatprep.mubr.msk.bf16.mxu1 %vm679_vm3, %v14240_v38 }
 0x315   : > { %v4787_v27 = vpop.f32.mrf.mxu1  ;;  %v8977_v33 = vpop.f32.mrf.mxu0  ;;  %9180 = vmatmul.mubr.msk.bf16.gmra.mxu0 %vm679_vm3, %v14241_v5  ;;  %v14247_v5 = vld [vmem:[#allocation49_spill] sm:$0xff] }
 0x316   : > { %v12706_v25 = vadd.f32 %v8973_v55, %v4892_v57  ;;  %v4890_v2 = vadd.f32 %v4787_v27, %v12508_v26  ;;  %9183 = vmatprep.mubr.msk.bf16.mxu0 %vm679_vm3, %v14242_v41  ;;  %v14246_v27 = vld [vmem:[#allocation44_spill] sm:$0xff] }
 0x317   : > { %v8940_v39 = vpop.f32.mrf.mxu1  ;;  %v5031_v3 = vpop.f32.mrf.mxu0 }
 0x318   : > { %v12713_v59 = vadd.f32 %v5015_v45, %v4890_v2  ;;  %v4893_v11 = vadd.f32 %v8940_v39, %v12511_v43 }
 0x319   : > { %v4790_v20 = vpop.f32.mrf.mxu1  ;;  %v8978_v47 = vpop.f32.mrf.mxu0 }
 0x31a   : > { %v12716_v48 = vadd.f32 %v8974_v13, %v4893_v11  ;;  %v4891_v31 = vadd.f32 %v4790_v20, %v12516_v0  ;;  %v14245_v0 = vld [vmem:[#allocation46_spill] sm:$0xff]  ;;  %v14249_v20 = vshrl.u32 %v12569_v51, 16 }
 0x31b   : > { %v8943_v26 = vpop.f32.mrf.mxu1  ;;  %9146 = vmatmul.mubr.msk.bf16.gmra.mxu1 %vm679_vm3, %v14243_v10  ;;  %v5034_v53 = vpop.f32.mrf.mxu0 }
 0x31c   : > { %v12721_v55 = vadd.f32 %v5018_v62, %v4891_v31  ;;  %v4896_v9 = vadd.f32 %v8943_v26, %v12521_v4  ;;  %9149 = vmatprep.mubr.msk.bf16.mxu1 %vm679_vm3, %v14244_v24  ;;  %v14250_v31 = vshll.u32 %v12569_v51, 16  ;;  %v6221_v26 = vrot.slane %v12572_v28, 5 }
 0x31d   : > { %v4803_v43 = vpop.f32.mrf.mxu1  ;;  %v8981_v12 = vpop.f32.mrf.mxu0  ;;  %9184 = vmatmul.mubr.msk.bf16.gmra.mxu0 %vm679_vm3, %v14245_v0  ;;  %v14253_v0 = vld [vmem:[#allocation55_spill] sm:$0xff] }
 0x31e   : > { %v12726_v19 = vadd.f32 %v8977_v33, %v4896_v9  ;;  %v4894_v45 = vadd.f32 %v4803_v43, %v12528_v40  ;;  %9187 = vmatprep.mubr.msk.bf16.mxu0 %vm679_vm3, %v14190_v58  ;;  %v14252_v43 = vshrl.u32 %v12572_v28, 16 }
 0x31f   : > { %v8944_v17 = vpop.f32.mrf.mxu1  ;;  %v5047_v35 = vpop.f32.mrf.mxu0 }
 0x320   : > { %v12733_v13 = vadd.f32 %v5031_v3, %v4894_v45  ;;  %v4897_v4 = vadd.f32 %v8944_v17, %v12531_v60  ;;  %v6006_v45 = vrot.slane %v14252_v43, 4  ;;  %v14259_v43 = vld [vmem:[#allocation91_spill] sm:$0xff] }
 0x321   : > { %v4806_v50 = vpop.f32.mrf.mxu1  ;;  %v8982_v38 = vpop.f32.mrf.mxu0 }
 0x322   : > { %v12736_v57 = vadd.f32 %v8978_v47, %v4897_v4  ;;  %v4895_v62 = vadd.f32 %v4806_v50, %v12536_v44  ;;  %v14248_v44 = vld [vmem:[#allocation78_spill] sm:$0xff]  ;;  %v5996_v47 = vrot.slane %v14250_v31, 5  ;;  %v14257_v31 = vld [vmem:[#allocation28_spill] sm:$0xff] }
 0x323   : > { %v8947_v40 = vpop.f32.mrf.mxu1  ;;  %9150 = vmatmul.mubr.msk.bf16.gmra.mxu1 %vm679_vm3, %v14246_v27  ;;  %v5050_v58 = vpop.f32.mrf.mxu0  ;;  %v6224_v27 = vrot.slane %v12575_v30, 5 }
 0x324   : > { %v12741_v2 = vadd.f32 %v5034_v53, %v4895_v62  ;;  %v4900_v33 = vadd.f32 %v8947_v40, %v12541_v16  ;;  %9153 = vmatprep.mubr.msk.bf16.mxu1 %vm679_vm3, %v14247_v5  ;;  %v5993_v16 = vrot.slane %v14249_v20, 4  ;;  %v14251_v53 = vshll.u32 %v12572_v28, 16  ;;  %v14254_v62 = vld [vmem:[#allocation52_spill] sm:$0xff]  ;;  %v14255_v5 = vld [vmem:[#allocation81_spill] sm:$0xff] }
 0x325   : > { %v4819_v60 = vpop.f32.mrf.mxu1  ;;  %v8985_v11 = vpop.f32.mrf.mxu0  ;;  %9188 = vmatmul.mubr.msk.bf16.gmra.mxu0 %vm679_vm3, %v14248_v44  ;;  %v6223_v40 = vrot.slane %v6221_v26, 4 }
 0x326   : > { %v12746_v39 = vadd.f32 %v8981_v12, %v4900_v33  ;;  %v4898_v41 = vadd.f32 %v4819_v60, %v12548_v15  ;;  %9191 = vmatprep.mubr.msk.bf16.mxu0 %vm679_vm3, %v14192_v42  ;;  %v6002_v24 = vrot.slane %v14251_v53, 5 }
 0x327   : > { %v8948_v3 = vpop.f32.mrf.mxu1  ;;  %v5063_v9 = vpop.f32.mrf.mxu0 }
 0x328   : > { %v12758_v10 = vadd.f32 %v5047_v35, %v4898_v41  ;;  %v4901_v15 = vadd.f32 %v8948_v3, %v12551_v56  ;;  %v5997_v35 = vor.u32 %v5996_v47, %v5993_v16  ;;  %v7769_v56 = vrot.slane %v12569_v51, 9  ;;  %v14258_v47 = vld [vmem:[#allocation23_spill] sm:$0xff] }
 0x329   : > { %v4822_v42 = vpop.f32.mrf.mxu1  ;;  %v8986_v4 = vpop.f32.mrf.mxu0  ;;  %v6007_v44 = vor.u32 %v6006_v45, %v6002_v24  ;;  %v6225_v45 = vsel %vm10103_vm7, %v6223_v40, %v6224_v27 }
 0x32a   : > { %v12765_v12 = vadd.f32 %v8982_v38, %v4901_v15  ;;  %v4899_v17 = vadd.f32 %v4822_v42, %v14253_v0  ;;  %v14256_v38 = vld [vmem:[#allocation56_spill] sm:$0xff]  ;;  %v6222_v0 = vsel %vm10103_vm7, %v7769_v56, %v6221_v26  ;;  %v14263_v56 = vld [vmem:[#allocation87_spill] sm:$0xff] }
 0x32b   : > { %v8951_v50 = vpop.f32.mrf.mxu1  ;;  %9154 = vmatmul.mubr.msk.bf16.gmra.mxu1 %vm679_vm3, %v14254_v62  ;;  %v5066_v41 = vpop.f32.mrf.mxu0 }
 0x32c   : > { %v12772_v33 = vadd.f32 %v5050_v58, %v4899_v17  ;;  %v4904_v60 = vadd.f32 %v8951_v50, %v14255_v5  ;;  %9157 = vmatprep.mubr.msk.bf16.mxu1 %vm679_vm3, %v14256_v38  ;;  %v5998_v58 = vrot.slane %v5997_v35, 4  ;;  %v6008_v5 = vrot.slane %v6007_v44, 4  ;;  %v14264_v44 = vld [vmem:[#allocation89_spill] sm:$0xff] }
 0x32d   : > { %v4835_v3 = vpop.f32.mrf.mxu1  ;;  %v8989_v16 = vpop.f32.mrf.mxu0  ;;  %9192 = vmatmul.mubr.msk.bf16.gmra.mxu0 %vm679_vm3, %v14258_v47 }
 0x32e   : > { %v12777_v20 = vadd.f32 %v8985_v11, %v4904_v60  ;;  %v4902_v15 = vadd.f32 %v4835_v3, %v14257_v31  ;;  %9195 = vmatprep.mubr.msk.bf16.mxu0 %vm679_vm3, %v14259_v43  ;;  %v14261_v11 = vld [vmem:[#allocation60_spill] sm:$0xff]  ;;  %v14262_v60 = vshll.u32 %v12575_v30, 16  ;;  %v7771_v43 = vcombine.low %v6222_v0, %v6225_v45 }
 0x32f   : > { %v8952_v53 = vpop.f32.mrf.mxu1  ;;  %v5079_v62 = vpop.f32.mrf.mxu0 }
 0x330   : > { %v12788_v17 = vadd.f32 %v5063_v9, %v4902_v15  ;;  %v4905_v50 = vadd.f32 %v8952_v53, %v14261_v11  ;;  %v6012_v38 = vrot.slane %v14262_v60, 5  ;;  %v14266_v11 = vld [vmem:[#allocation39_spill] sm:$0xff] }
 0x331   : > { %v4838_v3 = vpop.f32.mrf.mxu1  ;;  %v8990_v47 = vpop.f32.mrf.mxu0 }
 0x332   : > { %v12793_v31 = vadd.f32 %v8986_v4, %v4905_v50  ;;  %v4903_v35 = vadd.f32 %v4838_v3, %v12608_v21  ;;  %v6003_v4 = vsel %vm9624_vm4, %v5998_v58, %v6002_v24  ;;  %v6013_v21 = vsel %vm9624_vm4, %v6008_v5, %v6012_v38 }
 0x333   : > { %v8955_v26 = vpop.f32.mrf.mxu1  ;;  %9158 = vmatmul.mubr.msk.bf16.gmra.mxu1 %vm679_vm3, %v14263_v56  ;;  %v5082_v27 = vpop.f32.mrf.mxu0 }
 0x334   : > { %v12798_v9 = vadd.f32 %v5066_v41, %v4903_v35  ;;  %v4908_v40 = vadd.f32 %v8955_v26, %v12615_v52  ;;  %9161 = vmatprep.mubr.msk.bf16.mxu1 %vm679_vm3, %v14264_v44  ;;  %v7752_v52 = vcombine.low %v6003_v4, %v6013_v21  ;;  %v14267_v26 = vld [vmem:[#allocation33_spill] sm:$0xff]  ;;  %v14269_v44 = vld [vmem:[#allocation82_spill] sm:$0xff] }
 0x335   : > { %v4851_v53 = vpop.f32.mrf.mxu1  ;;  %v8993_v45 = vpop.f32.mrf.mxu0  ;;  %9196 = vmatmul.mubr.msk.bf16.gmra.mxu0 %vm679_vm3, %v7771_v43 }
 0x336   : > { %v12807_v42 = vadd.f32 %v8989_v16, %v4908_v40  ;;  %v4906_v0 = vadd.f32 %v4851_v53, %v12623_v1  ;;  %9235 = vmatprep.mubr.msk.bf16.mxu0 %vm679_vm3, %v14266_v11  ;;  %v14268_v40 = vld [vmem:[#allocation8_spill] sm:$0xff] }
 0x337   : > { %v8956_v41 = vpop.f32.mrf.mxu1  ;;  %v5095_v58 = vpop.f32.mrf.mxu0 }
 0x338   : > { %v12813_v50 = vadd.f32 %v5079_v62, %v4906_v0  ;;  %v4909_v24 = vadd.f32 %v8956_v41, %v12630_v49 }
 0x339   : > { %v4854_v60 = vpop.f32.mrf.mxu1  ;;  %v8994_v38 = vpop.f32.mrf.mxu0 }
 0x33a   : > { %v12816_v5 = vadd.f32 %v8990_v47, %v4909_v24  ;;  %v4907_v16 = vadd.f32 %v4854_v60, %v12637_v63  ;;  %v14271_v24 = vld [vmem:[#allocation9_spill] sm:$0xff] }
 0x33b   : > { %v8959_v1 = vpop.f32.mrf.mxu1  ;;  %9162 = vmatmul.mubr.msk.bf16.gmra.mxu1 %vm679_vm3, %v7752_v52  ;;  %v5098_v43 = vpop.f32.mrf.mxu0 }
 0x33c   : > { %v12820_v3 = vadd.f32 %v5082_v27, %v4907_v16  ;;  %v4912_v35 = vadd.f32 %v8959_v1, %v12644_v23  ;;  %9201 = vmatprep.mubr.msk.bf16.mxu1 %vm679_vm3, %v14267_v26  ;;  %v14273_v1 = vld [vmem:[#allocation12_spill] sm:$0xff] }
 0x33d   : > { %v4867_v62 = vpop.f32.mrf.mxu1  ;;  %v9033_v56 = vpop.f32.mrf.mxu0  ;;  %9236 = vmatmul.mubr.msk.bf16.vlgmr.msra.gmra.mxu0 %vm679_vm3, %v14268_v40  ;;  %v14274_v40 = vld [vmem:[#allocation14_spill] sm:$0xff] }
 0x33e   : > { %v12825_v49 = vadd.f32 %v8993_v45, %v4912_v35  ;;  %v4910_v47 = vadd.f32 %v4867_v62, %v12651_v61  ;;  %9239 = vmatprep.mubr.msk.bf16.mxu0 %vm679_vm3, %v14269_v44  ;;  %v14270_v45 = vld [vmem:[#allocation45_spill] sm:$0xff] }
 0x33f   : > { %v8960_v63 = vpop.f32.mrf.mxu1  ;;  %v5414_v15 = vpop.f32.mrf.mxu0 }
 0x340   : > { %v12832_v27 = vadd.f32 %v5095_v58, %v4910_v47  ;;  %v4913_v23 = vadd.f32 %v8960_v63, %v12656_v32 }
 0x341   : > { %v4870_v4 = vpop.f32.mrf.mxu1  ;;  %v9034_v0 = vpop.f32.mrf.mxu0 }
 0x342   : > { %v12835_v21 = vadd.f32 %v8994_v38, %v4913_v23  ;;  %v4911_v53 = vadd.f32 %v4870_v4, %v12661_v34  ;;  %v14272_v34 = vld [vmem:[#allocation10_spill] sm:$0xff] }
 0x343   : > { %v8999_v61 = vpop.f32.mrf.mxu1  ;;  %9202 = vmatmul.mubr.msk.bf16.vlgmr.msra.gmra.mxu1 %vm679_vm3, %v14270_v45  ;;  %v5417_v11 = vpop.f32.mrf.mxu0  ;;  %v14277_v45 = vld [vmem:[#allocation21_spill] sm:$0xff] }
 0x344   : > { %v12840_v41 = vadd.f32 %v5098_v43, %v4911_v53  ;;  %v5324_v52 = vadd.f32 %v8999_v61, %v12666_v54  ;;  %9205 = vmatprep.mubr.msk.bf16.mxu1 %vm679_vm3, %v14271_v24 }
 0x345   : > { %v5195_v32 = vpop.f32.mrf.mxu1  ;;  %v9037_v16 = vpop.f32.mrf.mxu0  ;;  %9240 = vmatmul.mubr.msk.bf16.gmra.mxu0 %vm679_vm3, %v14272_v34  ;;  %v14278_v34 = vld [vmem:[#allocation18_spill] sm:$0xff] }
 0x346   : > { %v12845_v58 = vadd.f32 %v9033_v56, %v5324_v52  ;;  %v5322_v60 = vadd.f32 %v5195_v32, %v12673_v46  ;;  %9243 = vmatprep.mubr.msk.bf16.mxu0 %vm679_vm3, %v14273_v1 }
 0x347   : > { %v9000_v38 = vpop.f32.mrf.mxu1  ;;  %v5430_v43 = vpop.f32.mrf.mxu0 }
 0x348   : > { %v12852_v35 = vadd.f32 %v5414_v15, %v5322_v60  ;;  %v5325_v54 = vadd.f32 %v9000_v38, %v12676_v14  ;;  %v14275_v15 = vld [vmem:[#allocation16_spill] sm:$0xff] }
 0x349   : > { %v5198_v26 = vpop.f32.mrf.mxu1  ;;  %v9038_v56 = vpop.f32.mrf.mxu0 }
 0x34a   : > { %v12855_v62 = vadd.f32 %v9034_v0, %v5325_v54  ;;  %v5323_v47 = vadd.f32 %v5198_v26, %v12681_v36  ;;  %v14276_v36 = vld [vmem:[#allocation15_spill] sm:$0xff] }
 0x34b   : > { %v9003_v46 = vpop.f32.mrf.mxu1  ;;  %9206 = vmatmul.mubr.msk.bf16.gmra.mxu1 %vm679_vm3, %v14274_v40  ;;  %v5433_v23 = vpop.f32.mrf.mxu0  ;;  %v14281_v40 = vld [vmem:[#allocation24_spill] sm:$0xff] }
 0x34c   : > { %v12860_v63 = vadd.f32 %v5417_v11, %v5323_v47  ;;  %v5328_v44 = vadd.f32 %v9003_v46, %v12686_v7  ;;  %9209 = vmatprep.mubr.msk.bf16.mxu1 %vm679_vm3, %v14275_v15 }
 0x34d   : > { %v5211_v14 = vpop.f32.mrf.mxu1  ;;  %v9041_v0 = vpop.f32.mrf.mxu0  ;;  %9244 = vmatmul.mubr.msk.bf16.gmra.mxu0 %vm679_vm3, %v14276_v36  ;;  %v14282_v36 = vld [vmem:[#allocation26_spill] sm:$0xff] }
 0x34e   : > { %v12865_v4 = vadd.f32 %v9037_v16, %v5328_v44  ;;  %v5326_v53 = vadd.f32 %v5211_v14, %v12693_v22  ;;  %9247 = vmatprep.mubr.msk.bf16.mxu0 %vm679_vm3, %v14277_v45 }
 0x34f   : > { %v9004_v61 = vpop.f32.mrf.mxu1  ;;  %v5446_v11 = vpop.f32.mrf.mxu0 }
 0x350   : > { %v12872_v52 = vadd.f32 %v5430_v43, %v5326_v53  ;;  %v5329_v7 = vadd.f32 %v9004_v61, %v12696_v29  ;;  %v14279_v43 = vld [vmem:[#allocation19_spill] sm:$0xff] }
 0x351   : > { %v5214_v24 = vpop.f32.mrf.mxu1  ;;  %v9042_v16 = vpop.f32.mrf.mxu0 }
 0x352   : > { %v12875_v32 = vadd.f32 %v9038_v56, %v5329_v7  ;;  %v5327_v60 = vadd.f32 %v5214_v24, %v12701_v18  ;;  %v14280_v18 = vld [vmem:[#allocation22_spill] sm:$0xff] }
 0x353   : > { %v9007_v22 = vpop.f32.mrf.mxu1  ;;  %9210 = vmatmul.mubr.msk.bf16.gmra.mxu1 %vm679_vm3, %v14278_v34  ;;  %v5449_v54 = vpop.f32.mrf.mxu0  ;;  %v14285_v34 = vld [vmem:[#allocation37_spill] sm:$0xff] }
 0x354   : > { %v12880_v38 = vadd.f32 %v5433_v23, %v5327_v60  ;;  %v5332_v1 = vadd.f32 %v9007_v22, %v12706_v25  ;;  %9213 = vmatprep.mubr.msk.bf16.mxu1 %vm679_vm3, %v14279_v43 }
 0x355   : > { %v5227_v29 = vpop.f32.mrf.mxu1  ;;  %v9045_v56 = vpop.f32.mrf.mxu0  ;;  %9248 = vmatmul.mubr.msk.bf16.gmra.mxu0 %vm679_vm3, %v14280_v18  ;;  %v14286_v18 = vld [vmem:[#allocation43_spill] sm:$0xff] }
 0x356   : > { %v12885_v26 = vadd.f32 %v9041_v0, %v5332_v1  ;;  %v5330_v47 = vadd.f32 %v5227_v29, %v12713_v59  ;;  %9251 = vmatprep.mubr.msk.bf16.mxu0 %vm679_vm3, %v14281_v40 }
 0x357   : > { %v9008_v46 = vpop.f32.mrf.mxu1  ;;  %v5462_v23 = vpop.f32.mrf.mxu0 }
 0x358   : > { %v12892_v44 = vadd.f32 %v5446_v11, %v5330_v47  ;;  %v5333_v25 = vadd.f32 %v9008_v46, %v12716_v48  ;;  %v14283_v11 = vld [vmem:[#allocation27_spill] sm:$0xff] }
 0x359   : > { %v5230_v15 = vpop.f32.mrf.mxu1  ;;  %v9046_v0 = vpop.f32.mrf.mxu0 }
 0x35a   : > { %v12895_v14 = vadd.f32 %v9042_v16, %v5333_v25  ;;  %v5331_v53 = vadd.f32 %v5230_v15, %v12721_v55  ;;  %v14284_v55 = vld [vmem:[#allocation29_spill] sm:$0xff] }
 0x35b   : > { %v9011_v59 = vpop.f32.mrf.mxu1  ;;  %9214 = vmatmul.mubr.msk.bf16.gmra.mxu1 %vm679_vm3, %v14282_v36  ;;  %v5465_v7 = vpop.f32.mrf.mxu0  ;;  %v14289_v36 = vld [vmem:[#allocation92_spill] sm:$0xff] }
 0x35c   : > { %v12900_v61 = vadd.f32 %v5449_v54, %v5331_v53  ;;  %v5336_v45 = vadd.f32 %v9011_v59, %v12726_v19  ;;  %9217 = vmatprep.mubr.msk.bf16.mxu1 %vm679_vm3, %v14283_v11 }
 0x35d   : > { %v5243_v48 = vpop.f32.mrf.mxu1  ;;  %v9049_v16 = vpop.f32.mrf.mxu0  ;;  %9252 = vmatmul.mubr.msk.bf16.gmra.mxu0 %vm679_vm3, %v14284_v55 }
 0x35e   : > { %v12905_v24 = vadd.f32 %v9045_v56, %v5336_v45  ;;  %v5334_v60 = vadd.f32 %v5243_v48, %v12733_v13  ;;  %9255 = vmatprep.mubr.msk.bf16.mxu0 %vm679_vm3, %v14285_v34  ;;  %v6651_v45 = vrot.slane %v12572_v28, 6  ;;  %v7806_v34 = vrot.slane %v12569_v51, 10 }
 0x35f   : > { %v9012_v22 = vpop.f32.mrf.mxu1  ;;  %v5478_v54 = vpop.f32.mrf.mxu0  ;;  %v6654_v28 = vrot.slane %v12575_v30, 6 }
 0x360   : > { %v12912_v1 = vadd.f32 %v5462_v23, %v5334_v60  ;;  %v5337_v19 = vadd.f32 %v9012_v22, %v12736_v57  ;;  %v14287_v23 = vld [vmem:[#allocation83_spill] sm:$0xff]  ;;  %v14290_v22 = vld [vmem:[#allocation85_spill] sm:$0xff] }
 0x361   : > { %v5246_v43 = vpop.f32.mrf.mxu1  ;;  %v9050_v56 = vpop.f32.mrf.mxu0 }
 0x362   : > { %v12915_v29 = vadd.f32 %v9046_v0, %v5337_v19  ;;  %v5335_v47 = vadd.f32 %v5246_v43, %v12741_v2  ;;  %v14288_v2 = vld [vmem:[#allocation84_spill] sm:$0xff]  ;;  %v6653_v19 = vrot.slane %v6651_v45, 4 }
 0x363   : > { %v9015_v13 = vpop.f32.mrf.mxu1  ;;  %9218 = vmatmul.mubr.msk.bf16.gmra.mxu1 %vm679_vm3, %v14286_v18  ;;  %v5481_v25 = vpop.f32.mrf.mxu0 }
 0x364   : > { %v12920_v46 = vadd.f32 %v5465_v7, %v5335_v47  ;;  %v5340_v40 = vadd.f32 %v9015_v13, %v12746_v39  ;;  %9221 = vmatprep.mubr.msk.bf16.mxu1 %vm679_vm3, %v14287_v23  ;;  %v14291_v47 = vld [vmem:[#allocation17_spill] sm:$0xff] }
 0x365   : > { %v5259_v57 = vpop.f32.mrf.mxu1  ;;  %v9053_v0 = vpop.f32.mrf.mxu0  ;;  %9256 = vmatmul.mubr.msk.bf16.gmra.mxu0 %vm679_vm3, %v14288_v2 }
 0x366   : > { %v12925_v15 = vadd.f32 %v9049_v16, %v5340_v40  ;;  %v5338_v53 = vadd.f32 %v5259_v57, %v12758_v10  ;;  %9259 = vmatprep.mubr.msk.bf16.mxu0 %vm679_vm3, %v14289_v36  ;;  %v6655_v40 = vsel %vm10464_vm12, %v6653_v19, %v6654_v28 }
 0x367   : > { %v9016_v59 = vpop.f32.mrf.mxu1  ;;  %v5494_v11 = vpop.f32.mrf.mxu0 }
 0x368   : > { %v12933_v39 = vadd.f32 %v5478_v54, %v5338_v53  ;;  %v5341_v7 = vadd.f32 %v9016_v59, %v12765_v12 }
 0x369   : > { %v5262_v48 = vpop.f32.mrf.mxu1  ;;  %v9054_v16 = vpop.f32.mrf.mxu0 }
 0x36a   : > { %v12936_v60 = vadd.f32 %v9050_v56, %v5341_v7  ;;  %v5339_v10 = vadd.f32 %v5262_v48, %v12772_v33 }
 0x36b   : > { %v9019_v55 = vpop.f32.mrf.mxu1  ;;  %9222 = vmatmul.mubr.msk.bf16.gmra.mxu1 %vm679_vm3, %v14290_v22  ;;  %v5497_v43 = vpop.f32.mrf.mxu0 }
 0x36c   : > { %v12943_v54 = vadd.f32 %v5481_v25, %v5339_v10  ;;  %v5344_v12 = vadd.f32 %v9019_v55, %v12777_v20  ;;  %9225 = vmatprep.mubr.msk.bf16.mxu1 %vm679_vm3, %v14291_v47  ;;  %v6652_v20 = vsel %vm10464_vm12, %v7806_v34, %v6651_v45 }
 0x36d   : > { %v5275_v56 = vpop.f32.mrf.mxu1  ;;  %v9057_v18 = vpop.f32.mrf.mxu0  ;;  %9260 = vmatmul.mubr.msk.bf16.gmra.mxu0 %vm679_vm3, %v14227_v8  ;;  %v7808_v2 = vcombine.low %v6652_v20, %v6655_v40 }
 0x36e   : > { %v12948_v33 = vadd.f32 %v9053_v0, %v5344_v12  ;;  %v5342_v13 = vadd.f32 %v5275_v56, %v12788_v17  ;;  %9263 = vmatprep.mubr.msk.bf16.mxu0 %vm679_vm3, %v12619_v6  ;;  %v14293_v6 = vld [vmem:[#allocation54_spill] sm:$0xff] }
 0x36f   : > { %v9020_v51 = vpop.f32.mrf.mxu1  ;;  %v5510_v57 = vpop.f32.mrf.mxu0 }
 0x370   : > { %v12959_v25 = vadd.f32 %v5494_v11, %v5342_v13  ;;  %v5345_v23 = vadd.f32 %v9020_v51, %v12793_v31  ;;  %v14294_v11 = vld [vmem:[#allocation86_spill] sm:$0xff] }
 0x371   : > { %v5278_v17 = vpop.f32.mrf.mxu1  ;;  %v9058_v0 = vpop.f32.mrf.mxu0 }
 0x372   : > { %v12962_v53 = vadd.f32 %v9054_v16, %v5345_v23  ;;  %v5343_v8 = vadd.f32 %v5278_v17, %v12798_v9 }
 0x373   : > { %v9023_v59 = vpop.f32.mrf.mxu1  ;;  %9226 = vmatmul.mubr.msk.bf16.gmra.mxu1 %vm679_vm3, %v14293_v6  ;;  %v5513_v7 = vpop.f32.mrf.mxu0 }
 0x374   : > { %v12967_v36 = vadd.f32 %v5497_v43, %v5343_v8  ;;  %v5348_v45 = vadd.f32 %v9023_v59, %v12807_v42  ;;  %9229 = vmatprep.mubr.msk.bf16.mxu1 %vm679_vm3, %v14294_v11 }
 0x375   : > { %v5291_v31 = vpop.f32.mrf.mxu1  ;;  %v9061_v9 = vpop.f32.mrf.mxu0  ;;  %9264 = vmatmul.mubr.msk.bf16.gmra.mxu0 %vm679_vm3, %v7808_v2 }
 0x376   : > { %v12972_v48 = vadd.f32 %v9057_v18, %v5348_v45  ;;  %v5346_v10 = vadd.f32 %v5291_v31, %v12813_v50 }
 0x377   : > { %v9024_v16 = vpop.f32.mrf.mxu1  ;;  %v5526_v34 = vpop.f32.mrf.mxu0 }
 0x378   : > { %v12976_v55 = vadd.f32 %v5510_v57, %v5346_v10  ;;  %v5349_v22 = vadd.f32 %v9024_v16, %v12816_v5 }
 0x379   : > { %v5294_v19 = vpop.f32.mrf.mxu1  ;;  %v9062_v12 = vpop.f32.mrf.mxu0 }
 0x37a   : > { %v12979_v42 = vadd.f32 %v9058_v0, %v5349_v22  ;;  %v5347_v28 = vadd.f32 %v5294_v19, %v12820_v3 }
 0x37b   : > { %v9027_v43 = vpop.f32.mrf.mxu1  ;;  %9230 = vmatmul.mubr.msk.bf16.gmra.mxu1 %vm679_vm3, %v12633_v37  ;;  %v5529_v56 = vpop.f32.mrf.mxu0 }
 0x37c   : > { %v12984_v50 = vadd.f32 %v5513_v7, %v5347_v28  ;;  %v5352_v47 = vadd.f32 %v9027_v43, %v12825_v49 }
 0x37d   : > { %v5307_v13 = vpop.f32.mrf.mxu1  ;;  %v9101_v51 = vpop.f32.mrf.mxu0 }
 0x37e   : > { %v12987_v18 = vadd.f32 %v9061_v9, %v5352_v47  ;;  %v5350_v5 = vadd.f32 %v5307_v13, %v12832_v27 }
 0x37f   : > { %v9028_v30 = vpop.f32.mrf.mxu1  ;;  %v5831_v40 = vpop.f32.mrf.mxu0 }
 0x380   : > { %v12990_v20 = vadd.f32 %v5526_v34, %v5350_v5  ;;  %v5353_v3 = vadd.f32 %v9028_v30, %v12835_v21 }
 0x381   : > { %v5310_v23 = vpop.f32.mrf.mxu1  ;;  %v9102_v17 = vpop.f32.mrf.mxu0 }
 0x382   : > { %v12993_v57 = vadd.f32 %v9062_v12, %v5353_v3  ;;  %v5351_v37 = vadd.f32 %v5310_v23, %v12840_v41 }
 0x383   : > { %v9067_v49 = vpop.f32.mrf.mxu1  ;;  %v5834_v2 = vpop.f32.mrf.mxu0 }
 0x384   : > { %v12996_v8 = vadd.f32 %v5529_v56, %v5351_v37  ;;  %v5754_v0 = vadd.f32 %v9067_v49, %v12845_v58 }
 0x385   : > { %v5625_v27 = vpop.f32.mrf.mxu1  ;;  %v9105_v45 = vpop.f32.mrf.mxu0 }
 0x386   : > { %v12999_v59 = vadd.f32 %v9101_v51, %v5754_v0  ;;  %v5752_v6 = vadd.f32 %v5625_v27, %v12852_v35 }
 0x387   : > { %v9068_v21 = vpop.f32.mrf.mxu1  ;;  %v5847_v31 = vpop.f32.mrf.mxu0 }
 0x388   : > { %v13002_v7 = vadd.f32 %v5831_v40, %v5752_v6  ;;  %v5755_v11 = vadd.f32 %v9068_v21, %v12855_v62 }
 0x389   : > { %v5628_v41 = vpop.f32.mrf.mxu1  ;;  %v9106_v16 = vpop.f32.mrf.mxu0 }
 0x38a   : > { %v13005_v10 = vadd.f32 %v9102_v17, %v5755_v11  ;;  %v5753_v9 = vadd.f32 %v5628_v41, %v12860_v63 }
 0x38b   : > { %v9071_v58 = vpop.f32.mrf.mxu1  ;;  %v5850_v19 = vpop.f32.mrf.mxu0 }
 0x38c   : > { %v13008_v22 = vadd.f32 %v5834_v2, %v5753_v9  ;;  %v5758_v34 = vadd.f32 %v9071_v58, %v12865_v4 }
 0x38d   : > { %v5641_v35 = vpop.f32.mrf.mxu1  ;;  %v9109_v43 = vpop.f32.mrf.mxu0 }
 0x38e   : > { %v13011_v28 = vadd.f32 %v9105_v45, %v5758_v34  ;;  %v5756_v12 = vadd.f32 %v5641_v35, %v12872_v52 }
 0x38f   : > { %v9072_v62 = vpop.f32.mrf.mxu1  ;;  %v5863_v13 = vpop.f32.mrf.mxu0 }
 0x390   : > { %v13014_v47 = vadd.f32 %v5847_v31, %v5756_v12  ;;  %v5759_v56 = vadd.f32 %v9072_v62, %v12875_v32 }
 0x391   : > { %v5644_v63 = vpop.f32.mrf.mxu1  ;;  %v9110_v30 = vpop.f32.mrf.mxu0 }
 0x392   : > { %v13017_v5 = vadd.f32 %v9106_v16, %v5759_v56  ;;  %v5757_v51 = vadd.f32 %v5644_v63, %v12880_v38 }
 0x393   : > { %v9075_v4 = vpop.f32.mrf.mxu1  ;;  %v5866_v23 = vpop.f32.mrf.mxu0 }
 0x394   : > { %v13020_v3 = vadd.f32 %v5850_v19, %v5757_v51  ;;  %v5762_v40 = vadd.f32 %v9075_v4, %v12885_v26 }
 0x395   : > { %v5657_v52 = vpop.f32.mrf.mxu1  ;;  %v9113_v49 = vpop.f32.mrf.mxu0 }
 0x396   : > { %v13023_v37 = vadd.f32 %v9109_v43, %v5762_v40  ;;  %v5760_v17 = vadd.f32 %v5657_v52, %v12892_v44 }
 0x397   : > { %v9076_v32 = vpop.f32.mrf.mxu1  ;;  %v5879_v27 = vpop.f32.mrf.mxu0 }
 0x398   : > { %v13026_v0 = vadd.f32 %v5863_v13, %v5760_v17  ;;  %v5763_v2 = vadd.f32 %v9076_v32, %v12895_v14 }
 0x399   : > { %v5660_v38 = vpop.f32.mrf.mxu1  ;;  %v9114_v21 = vpop.f32.mrf.mxu0 }
 0x39a   : > { %v13029_v6 = vadd.f32 %v9110_v30, %v5763_v2  ;;  %v5761_v45 = vadd.f32 %v5660_v38, %v12900_v61 }
 0x39b   : > { %v9079_v26 = vpop.f32.mrf.mxu1  ;;  %v5882_v41 = vpop.f32.mrf.mxu0 }
 0x39c   : > { %v13032_v11 = vadd.f32 %v5866_v23, %v5761_v45  ;;  %v5766_v31 = vadd.f32 %v9079_v26, %v12905_v24 }
 0x39d   : > { %v5673_v44 = vpop.f32.mrf.mxu1  ;;  %v9117_v58 = vpop.f32.mrf.mxu0 }
 0x39e   : > { %v13035_v9 = vadd.f32 %v9113_v49, %v5766_v31  ;;  %v5764_v16 = vadd.f32 %v5673_v44, %v12912_v1 }
 0x39f   : > { %v9080_v14 = vpop.f32.mrf.mxu1  ;;  %v5895_v35 = vpop.f32.mrf.mxu0 }
 0x3a0   : > { %v13038_v34 = vadd.f32 %v5879_v27, %v5764_v16  ;;  %v5767_v19 = vadd.f32 %v9080_v14, %v12915_v29 }
 0x3a1   : > { %v5676_v61 = vpop.f32.mrf.mxu1  ;;  %v9118_v62 = vpop.f32.mrf.mxu0 }
 0x3a2   : > { %v13041_v12 = vadd.f32 %v9114_v21, %v5767_v19  ;;  %v5765_v43 = vadd.f32 %v5676_v61, %v12920_v46 }
 0x3a3   : > { %v9083_v24 = vpop.f32.mrf.mxu1  ;;  %v5898_v63 = vpop.f32.mrf.mxu0 }
 0x3a4   : > { %v13044_v56 = vadd.f32 %v5882_v41, %v5765_v43  ;;  %v5770_v13 = vadd.f32 %v9083_v24, %v12925_v15 }
 0x3a5   : > { %v5689_v1 = vpop.f32.mrf.mxu1  ;;  %v9121_v4 = vpop.f32.mrf.mxu0 }
 0x3a6   : > { %v13047_v51 = vadd.f32 %v9117_v58, %v5770_v13  ;;  %v5768_v30 = vadd.f32 %v5689_v1, %v12933_v39 }
 0x3a7   : > { %v9084_v29 = vpop.f32.mrf.mxu1  ;;  %v5911_v52 = vpop.f32.mrf.mxu0 }
 0x3a8   : > { %v13050_v40 = vadd.f32 %v5895_v35, %v5768_v30  ;;  %v5771_v23 = vadd.f32 %v9084_v29, %v12936_v60 }
 0x3a9   : > { %v5692_v46 = vpop.f32.mrf.mxu1  ;;  %v9122_v32 = vpop.f32.mrf.mxu0 }
 0x3aa   : > { %v13053_v17 = vadd.f32 %v9118_v62, %v5771_v23  ;;  %v5769_v49 = vadd.f32 %v5692_v46, %v12943_v54 }
 0x3ab   : > { %v9087_v15 = vpop.f32.mrf.mxu1  ;;  %v5914_v38 = vpop.f32.mrf.mxu0 }
 0x3ac   : > { %v13056_v2 = vadd.f32 %v5898_v63, %v5769_v49  ;;  %v5774_v27 = vadd.f32 %v9087_v15, %v12948_v33 }
 0x3ad   : > { %v5705_v39 = vpop.f32.mrf.mxu1  ;;  %v9125_v26 = vpop.f32.mrf.mxu0 }
 0x3ae   : > { %v13059_v45 = vadd.f32 %v9121_v4, %v5774_v27  ;;  %v5772_v21 = vadd.f32 %v5705_v39, %v12959_v25 }
 0x3af   : > { %v9088_v60 = vpop.f32.mrf.mxu1  ;;  %v5927_v44 = vpop.f32.mrf.mxu0 }
 0x3b0   : > { %v13062_v31 = vadd.f32 %v5911_v52, %v5772_v21  ;;  %v5775_v41 = vadd.f32 %v9088_v60, %v12962_v53 }
 0x3b1   : > { %v5708_v54 = vpop.f32.mrf.mxu1  ;;  %v9126_v14 = vpop.f32.mrf.mxu0 }
 0x3b2   : > { %14295 = vst [vmem:[#allocation40_spill] sm:$0xff] %v13062_v31  ;;  %v13065_v16 = vadd.f32 %v9122_v32, %v5775_v41  ;;  %v5773_v58 = vadd.f32 %v5708_v54, %v12967_v36 }
 0x3b3   : > { %v9091_v33 = vpop.f32.mrf.mxu1  ;;  %v5930_v61 = vpop.f32.mrf.mxu0 }
 0x3b4   : > { %14296 = vst [vmem:[#allocation77_spill] sm:$0xff] %v13065_v16  ;;  %v13068_v19 = vadd.f32 %v5914_v38, %v5773_v58  ;;  %v5778_v35 = vadd.f32 %v9091_v33, %v12972_v48 }
 0x3b5   : > { %v5721_v25 = vpop.f32.mrf.mxu1  ;;  %v9129_v24 = vpop.f32.mrf.mxu0 }
 0x3b6   : > { %14297 = vst [vmem:[#allocation53_spill] sm:$0xff] %v13068_v19  ;;  %v13071_v43 = vadd.f32 %v9125_v26, %v5778_v35  ;;  %v5776_v62 = vadd.f32 %v5721_v25, %v12976_v55 }
 0x3b7   : > { %v9092_v53 = vpop.f32.mrf.mxu1  ;;  %v5943_v1 = vpop.f32.mrf.mxu0 }
 0x3b8   : > { %v13074_v13 = vadd.f32 %v5927_v44, %v5776_v62  ;;  %v5779_v63 = vadd.f32 %v9092_v53, %v12979_v42 }
 0x3b9   : > { %v5724_v36 = vpop.f32.mrf.mxu1  ;;  %v9130_v29 = vpop.f32.mrf.mxu0 }
 0x3ba   : > { %14298 = vst [vmem:[#allocation57_spill] sm:$0xff] %v13074_v13  ;;  %v13077_v30 = vadd.f32 %v9126_v14, %v5779_v63  ;;  %v5777_v4 = vadd.f32 %v5724_v36, %v12984_v50 }
 0x3bb   : > { %v9095_v48 = vpop.f32.mrf.mxu1  ;;  %v5946_v46 = vpop.f32.mrf.mxu0 }
 0x3bc   : > { %14299 = vst [vmem:[#allocation90_spill] sm:$0xff] %v13077_v30  ;;  %v13080_v23 = vadd.f32 %v5930_v61, %v5777_v4  ;;  %v5782_v52 = vadd.f32 %v9095_v48, %v12987_v18 }
 0x3bd   : > { %v5737_v55 = vpop.f32.mrf.mxu1  ;;  %v9169_v15 = vpop.f32.mrf.mxu0 }
 0x3be   : > { %14300 = vst [vmem:[#allocation30_spill] sm:$0xff] %v13080_v23  ;;  %v13083_v49 = vadd.f32 %v9129_v24, %v5782_v52  ;;  %v5780_v32 = vadd.f32 %v5737_v55, %v12990_v20 }
 0x3bf   : > { %v9096_v42 = vpop.f32.mrf.mxu1  ;;  %v6271_v39 = vpop.f32.mrf.mxu0 }
 0x3c0   : > { %v13086_v27 = vadd.f32 %v5943_v1, %v5780_v32  ;;  %v5783_v38 = vadd.f32 %v9096_v42, %v12993_v57 }
 0x3c1   : > { %v5740_v50 = vpop.f32.mrf.mxu1  ;;  %v13092_v60 = vpop.f32.mrf.mxu0 }
 0x3c2   : > { %14301 = vst [vmem:[#allocation58_spill] sm:$0xff] %v13086_v27  ;;  %v13089_v21 = vadd.f32 %v9130_v29, %v5783_v38  ;;  %v5781_v26 = vadd.f32 %v5740_v50, %v12996_v8 }
 0x3c3   : > { %v9135_v18 = vpop.f32.mrf.mxu1  ;;  %v13097_v20 = vpop.f32.mrf.mxu0 }
 0x3c4   : > { %14302 = vst [vmem:[#allocation59_spill] sm:$0xff] %v13089_v21  ;;  %v13094_v41 = vadd.f32 %v5946_v46, %v5781_v26  ;;  %v6188_v44 = vadd.f32 %v9135_v18, %v12999_v59 }
 0x3c5   : > { %v6059_v54 = vpop.f32.mrf.mxu1  ;;  %v9173_v14 = vpop.f32.mrf.mxu0 }
 0x3c6   : > { %14303 = vst [vmem:[#allocation63_spill] sm:$0xff] %v13094_v41  ;;  %v13099_v58 = vadd.f32 %v9169_v15, %v6188_v44  ;;  %v6186_v57 = vadd.f32 %v6059_v54, %v13002_v7 }
 0x3c7   : > { %v13102_v33 = vpop.f32.mrf.mxu1  ;;  %v13106_v8 = vpop.f32.mrf.mxu0 }
 0x3c8   : > { %v13104_v35 = vadd.f32 %v6271_v39, %v6186_v57 }
 0x3c9   : > { %v13108_v61 = vpop.f32.mrf.mxu1  ;;  %v13110_v25 = vpop.f32.mrf.mxu0 }
 0x3cb   : > { %v9139_v62 = vpop.f32.mrf.mxu1  ;;  %v13113_v24 = vpop.f32.mrf.mxu0 }
 0x3cc   : > { %v6192_v59 = vadd.f32 %v9139_v62, %v13011_v28 }
 0x3cd   : > { %v13115_v53 = vpop.f32.mrf.mxu1  ;;  %v9177_v7 = vpop.f32.mrf.mxu0 }
 0x3ce   : > { %v13117_v63 = vadd.f32 %v9173_v14, %v6192_v59 }
 0x3cf   : > { %v13119_v1 = vpop.f32.mrf.mxu1  ;;  %v13121_v36 = vpop.f32.mrf.mxu0 }
 0x3d1   : > { %v13123_v4 = vpop.f32.mrf.mxu1  ;;  %v13125_v29 = vpop.f32.mrf.mxu0 }
 0x3d3   : > { %v9143_v48 = vpop.f32.mrf.mxu1  ;;  %v13128_v46 = vpop.f32.mrf.mxu0 }
 0x3d4   : > { %v6196_v52 = vadd.f32 %v9143_v48, %v13023_v37 }
 0x3d5   : > { %v13130_v28 = vpop.f32.mrf.mxu1  ;;  %v9181_v32 = vpop.f32.mrf.mxu0 }
 0x3d6   : > { %v13132_v55 = vadd.f32 %v9177_v7, %v6196_v52 }
 0x3d7   : > { %v13134_v15 = vpop.f32.mrf.mxu1  ;;  %v13136_v42 = vpop.f32.mrf.mxu0 }
 0x3d9   : > { %v13138_v38 = vpop.f32.mrf.mxu1  ;;  %v13140_v39 = vpop.f32.mrf.mxu0 }
 0x3db   : > { %v9147_v50 = vpop.f32.mrf.mxu1  ;;  %v13143_v18 = vpop.f32.mrf.mxu0 }
 0x3dc   : > { %v6200_v26 = vadd.f32 %v9147_v50, %v13035_v9 }
 0x3dd   : > { %v13145_v37 = vpop.f32.mrf.mxu1  ;;  %v9185_v54 = vpop.f32.mrf.mxu0 }
 0x3de   : > { %v13147_v44 = vadd.f32 %v9181_v32, %v6200_v26 }
 0x3df   : > { %v13149_v57 = vpop.f32.mrf.mxu1  ;;  %v13151_v14 = vpop.f32.mrf.mxu0 }
 0x3e1   : > { %v13153_v62 = vpop.f32.mrf.mxu1  ;;  %v13155_v59 = vpop.f32.mrf.mxu0 }
 0x3e3   : > { %v9151_v7 = vpop.f32.mrf.mxu1  ;;  %v13158_v52 = vpop.f32.mrf.mxu0 }
 0x3e4   : > { %v6204_v48 = vadd.f32 %v9151_v7, %v13047_v51  ;;  %14304 = vst [vmem:[#allocation65_spill] sm:$0xff] %v13158_v52 }
 0x3e5   : > { %v13160_v9 = vpop.f32.mrf.mxu1  ;;  %v9189_v32 = vpop.f32.mrf.mxu0 }
 0x3e6   : > { %v13162_v50 = vadd.f32 %v9185_v54, %v6204_v48 }
 0x3e7   : > { %v13164_v26 = vpop.f32.mrf.mxu1  ;;  %v13166_v41 = vpop.f32.mrf.mxu0 }
 0x3e8   : > { %14305 = vst [vmem:[#allocation76_spill] sm:$0xff] %v13166_v41 }
 0x3e9   : > { %v13168_v21 = vpop.f32.mrf.mxu1  ;;  %v13170_v27 = vpop.f32.mrf.mxu0 }
 0x3ea   : > { %14306 = vst [vmem:[#allocation88_spill] sm:$0xff] %v13170_v27 }
 0x3eb   : > { %v9155_v23 = vpop.f32.mrf.mxu1  ;;  %v13173_v13 = vpop.f32.mrf.mxu0 }
 0x3ec   : > { %v6208_v30 = vadd.f32 %v9155_v23, %v13059_v45  ;;  %14307 = vst [vmem:[#allocation61_spill] sm:$0xff] %v13173_v13 }
 0x3ed   : > { %v13175_v51 = vpop.f32.mrf.mxu1  ;;  %v9193_v54 = vpop.f32.mrf.mxu0 }
 0x3ee   : > { %v13177_v7 = vadd.f32 %v9189_v32, %v6208_v30 }
 0x3ef   : > { %v13179_v48 = vpop.f32.mrf.mxu1  ;;  %v13181_v19 = vpop.f32.mrf.mxu0 }
 0x3f0   : > { %14308 = vst [vmem:[#allocation31_spill] sm:$0xff] %v13177_v7  ;;  %14309 = vst [vmem:[#allocation62_spill] sm:$0xff] %v13179_v48 }
 0x3f1   : > { %14310 = vst [vmem:[#allocation64_spill] sm:$0xff] %v13181_v19  ;;  %v13183_v16 = vpop.f32.mrf.mxu1  ;;  %v13185_v41 = vpop.f32.mrf.mxu0 }
 0x3f2   : > { %14311 = vst [vmem:[#allocation66_spill] sm:$0xff] %v13183_v16  ;;  %14312 = vst [vmem:[#allocation67_spill] sm:$0xff] %v13185_v41 }
 0x3f3   : > { %v9159_v31 = vpop.f32.mrf.mxu1  ;;  %v13188_v52 = vpop.f32.mrf.mxu0 }
 0x3f4   : > { %v6212_v27 = vadd.f32 %v9159_v31, %v13071_v43  ;;  %14313 = vst [vmem:[#allocation68_spill] sm:$0xff] %v13188_v52 }
 0x3f5   : > { %v13190_v45 = vpop.f32.mrf.mxu1  ;;  %v9197_v30 = vpop.f32.mrf.mxu0 }
 0x3f6   : > { %14314 = vst [vmem:[#allocation69_spill] sm:$0xff] %v13190_v45  ;;  %v13192_v23 = vadd.f32 %v9193_v54, %v6212_v27 }
 0x3f7   : > { %v13194_v32 = vpop.f32.mrf.mxu1  ;;  %v13196_v13 = vpop.f32.mrf.mxu0 }
 0x3f8   : > { %14315 = vst [vmem:[#allocation73_spill] sm:$0xff] %v13192_v23  ;;  %14316 = vst [vmem:[#allocation74_spill] sm:$0xff] %v13194_v32 }
 0x3f9   : > { %14317 = vst [vmem:[#allocation41_spill] sm:$0xff] %v13196_v13  ;;  %v13198_v7 = vpop.f32.mrf.mxu1  ;;  %v13200_v19 = vpop.f32.mrf.mxu0  ;;  %v6189_v13 = vadd.f32 %v13102_v33, %v13005_v10 }
 0x3fa   : > { %14318 = vst [vmem:[#allocation80_spill] sm:$0xff] %v13198_v7  ;;  %14319 = vst [vmem:[#allocation35_spill] sm:$0xff] %v13200_v19 }
 0x3fb   : > { %v9163_v41 = vpop.f32.mrf.mxu1  ;;  %v13203_v31 = vpop.f32.mrf.mxu0 }
 0x3fc   : > { %v6216_v16 = vadd.f32 %v9163_v41, %v13083_v49  ;;  %14320 = vst [vmem:[#allocation36_spill] sm:$0xff] %v13203_v31  ;;  %v6187_v49 = vadd.f32 %v13108_v61, %v13008_v22  ;;  %v6190_v22 = vadd.f32 %v13115_v53, %v13014_v47  ;;  %v6193_v61 = vadd.f32 %v13119_v1, %v13017_v5 }
 0x3fd   : > { %v13205_v43 = vpop.f32.mrf.mxu1  ;;  %v9237_v27 = vpop.f32.mrf.mxu0 }
 0x3fe   : > { %14321 = vst [vmem:[#allocation42_spill] sm:$0xff] %v13205_v43  ;;  %v13207_v52 = vadd.f32 %v9197_v30, %v6216_v16  ;;  %v6401_v16 = vadd.f32 %v13092_v60, %v6189_v13  ;;  %v6399_v10 = vadd.f32 %v13097_v20, %v6187_v49  ;;  %v6405_v47 = vadd.f32 %v13110_v25, %v6193_v61 }
 0x3ff   : > { %v13209_v54 = vpop.f32.mrf.mxu1  ;;  %v6701_v23 = vpop.f32.mrf.mxu0 }
 0x400   : > { %14322 = vst [vmem:[#allocation48_spill] sm:$0xff] %v13207_v52  ;;  %14323 = vst [vmem:[#allocation70_spill] sm:$0xff] %v13209_v54 }
 0x401   : > { %v13211_v32 = vpop.f32.mrf.mxu1  ;;  %v9238_v19 = vpop.f32.mrf.mxu0 }
 0x402   : > { %14324 = vst [vmem:[#allocation71_spill] sm:$0xff] %v13211_v32 }
 0x403   : > { %v9203_v7 = vpop.f32.mrf.mxu1  ;;  %v6704_v41 = vpop.f32.mrf.mxu0 }
 0x404   : > { %v6619_v30 = vadd.f32 %v9203_v7, %v13099_v58 }
 0x405   : > { %v6490_v31 = vpop.f32.mrf.mxu1  ;;  %v9241_v32 = vpop.f32.mrf.mxu0 }
 0x406   : > { %v6617_v52 = vadd.f32 %v6490_v31, %v13104_v35  ;;  %v6830_v48 = vadd.f32 %v9237_v27, %v6619_v30  ;;  %v6191_v35 = vadd.f32 %v13123_v4, %v13020_v3 }
 0x407   : > { %v9204_v54 = vpop.f32.mrf.mxu1  ;;  %v6717_v43 = vpop.f32.mrf.mxu0 }
 0x408   : > { %v6620_v33 = vadd.f32 %v9204_v54, %v6401_v16  ;;  %v6828_v13 = vadd.f32 %v6701_v23, %v6617_v52  ;;  %v6402_v16 = vadd.f32 %v13106_v8, %v6190_v22  ;;  %v6194_v8 = vadd.f32 %v13130_v28, %v13026_v0 }
 0x409   : > { %v6493_v45 = vpop.f32.mrf.mxu1  ;;  %v9242_v7 = vpop.f32.mrf.mxu0  ;;  %v7060_v27 = vmul.f32 %v6830_v48, %v6830_v48 }
 0x40a   : > { %v6831_v60 = vadd.f32 %v9238_v19, %v6620_v33  ;;  %v6618_v58 = vadd.f32 %v6493_v45, %v6399_v10  ;;  %v7058_v1 = vmul.f32 %v6828_v13, %v6828_v13  ;;  %v6403_v45 = vadd.f32 %v13113_v24, %v6191_v35 }
 0x40b   : > { %v9207_v31 = vpop.f32.mrf.mxu1  ;;  %v6720_v49 = vpop.f32.mrf.mxu0  ;;  %v6197_v33 = vadd.f32 %v13134_v15, %v13029_v6 }
 0x40c   : > { %v7905_v20 = vpack.c.bf16 %v6831_v60, %v6830_v48  ;;  %v6829_v54 = vadd.f32 %v6704_v41, %v6618_v58  ;;  %v6623_v53 = vadd.f32 %v9207_v31, %v13117_v63  ;;  %v7061_v22 = vmul.f32 %v6831_v60, %v6831_v60 }
 0x40d   : > { %v6506_v5 = vpop.f32.mrf.mxu1  ;;  %v9245_v4 = vpop.f32.mrf.mxu0 }
 0x40e   : > { %7977 = vst [vmem:[%s13234_s28 + $0x8] sm:$0xff] %v7905_v20   ;;  %v7900_v19 = vpack.c.bf16 %v6829_v54, %v6828_v13  ;;  %v7020_v52 = vadd.f32 %v6829_v54, %v6828_v13  ;;  %v7059_v3 = vmul.f32 %v6829_v54, %v6829_v54  ;;  %v6621_v23 = vadd.f32 %v6506_v5, %v6402_v16 }
 0x40f   : > { %v9208_v25 = vpop.f32.mrf.mxu1  ;;  %v6733_v10 = vpop.f32.mrf.mxu0  ;;  %v6834_v61 = vadd.f32 %v9241_v32, %v6623_v53  ;;  %v6406_v20 = vadd.f32 %v13121_v36, %v6194_v8  ;;  %v6409_v53 = vadd.f32 %v13125_v29, %v6197_v33 }
 0x410   : > { %7901 = vst [vmem:[%s13234_s28] sm:$0xff] %v7900_v19   ;;  %v7021_v63 = vadd.f32 %v7020_v52, %v6830_v48  ;;  %v7090_v41 = vadd.f32 %v7059_v3, %v7058_v1  ;;  %v6624_v30 = vadd.f32 %v9208_v25, %v6405_v47  ;;  %v6832_v13 = vadd.f32 %v6717_v43, %v6621_v23 }
 0x411   : > { %v6509_v58 = vpop.f32.mrf.mxu1  ;;  %v9246_v28 = vpop.f32.mrf.mxu0  ;;  %v6195_v48 = vadd.f32 %v13138_v38, %v13032_v11  ;;  %v7064_v23 = vmul.f32 %v6834_v61, %v6834_v61 }
 0x412   : > { %v7091_v31 = vadd.f32 %v7090_v41, %v7060_v27  ;;  %v7022_v24 = vadd.f32 %v7021_v63, %v6831_v60  ;;  %v6835_v35 = vadd.f32 %v9242_v7, %v6624_v30  ;;  %v6622_v0 = vadd.f32 %v6509_v58, %v6403_v45 }
 0x413   : > { %v9211_v54 = vpop.f32.mrf.mxu1  ;;  %v7062_v47 = vmul.f32 %v6832_v13, %v6832_v13  ;;  %v6736_v15 = vpop.f32.mrf.mxu0  ;;  %v6407_v3 = vadd.f32 %v13128_v46, %v6195_v48  ;;  %v6198_v45 = vadd.f32 %v13145_v37, %v13038_v34 }
 0x414   : > { %v7023_v16 = vadd.f32 %v7022_v24, %v6832_v13  ;;  %v7092_v5 = vadd.f32 %v7091_v31, %v7061_v22  ;;  %v7915_v6 = vpack.c.bf16 %v6835_v35, %v6834_v61  ;;  %v6833_v32 = vadd.f32 %v6720_v49, %v6622_v0 }
 0x415   : > { %v6522_v43 = vpop.f32.mrf.mxu1  ;;  %v6627_v7 = vadd.f32 %v9211_v54, %v13132_v55  ;;  %v9249_v36 = vpop.f32.mrf.mxu0  ;;  %v6201_v49 = vadd.f32 %v13149_v57, %v13041_v12  ;;  %v7065_v46 = vmul.f32 %v6835_v35, %v6835_v35  ;;  %v6410_v37 = vadd.f32 %v13136_v42, %v6198_v45 }
 0x416   : > { %v7093_v60 = vadd.f32 %v7092_v5, %v7062_v47  ;;  %7979 = vst [vmem:[%s13234_s28 + $0x18] sm:$0xff] %v7915_v6   ;;  %v6625_v1 = vadd.f32 %v6522_v43, %v6406_v20  ;;  %v7910_v19 = vpack.c.bf16 %v6833_v32, %v6832_v13  ;;  %v7024_v52 = vadd.f32 %v7023_v16, %v6833_v32 }
 0x417   : > { %v7063_v11 = vmul.f32 %v6833_v32, %v6833_v32  ;;  %v9212_v38 = vpop.f32.mrf.mxu1  ;;  %v6749_v8 = vpop.f32.mrf.mxu0  ;;  %v6838_v41 = vadd.f32 %v9245_v4, %v6627_v7  ;;  %v6199_v12 = vadd.f32 %v13153_v62, %v13044_v56  ;;  %v6205_v5 = vadd.f32 %v13164_v26, %v13053_v17 }
 0x418   : > { %v6628_v29 = vadd.f32 %v9212_v38, %v6409_v53  ;;  %7978 = vst [vmem:[%s13234_s28 + $0x10] sm:$0xff] %v7910_v19   ;;  %v7025_v25 = vadd.f32 %v7024_v52, %v6834_v61  ;;  %v6836_v27 = vadd.f32 %v6733_v10, %v6625_v1  ;;  %v6413_v10 = vadd.f32 %v13140_v39, %v6201_v49 }
 0x419   : > { %v7094_v55 = vadd.f32 %v7093_v60, %v7063_v11  ;;  %v6525_v63 = vpop.f32.mrf.mxu1  ;;  %v9250_v22 = vpop.f32.mrf.mxu0  ;;  %v6411_v62 = vadd.f32 %v13143_v18, %v6199_v12  ;;  %v6202_v39 = vadd.f32 %v13160_v9, %v13050_v40  ;;  %v7068_v32 = vmul.f32 %v6838_v41, %v6838_v41 }
 0x41a   : > { %v6839_v30 = vadd.f32 %v9246_v28, %v6628_v29  ;;  %v6626_v33 = vadd.f32 %v6525_v63, %v6407_v3  ;;  %v7026_v58 = vadd.f32 %v7025_v25, %v6835_v35  ;;  %v7066_v4 = vmul.f32 %v6836_v27, %v6836_v27 }
 0x41b   : > { %v7095_v13 = vadd.f32 %v7094_v55, %v7064_v23  ;;  %v9215_v34 = vpop.f32.mrf.mxu1  ;;  %v6752_v61 = vpop.f32.mrf.mxu0  ;;  %v6414_v9 = vadd.f32 %v13151_v14, %v6202_v39  ;;  %v6203_v17 = vadd.f32 %v13168_v21, %v13056_v2  ;;  %v6417_v49 = vadd.f32 %v13155_v59, %v6205_v5  ;;  %v14325_v21 = vld [vmem:[#allocation65_spill] sm:$0xff] }
 0x41c   : > { %v7925_v57 = vpack.c.bf16 %v6839_v30, %v6838_v41  ;;  %v6837_v31 = vadd.f32 %v6736_v15, %v6626_v33  ;;  %v7027_v24 = vadd.f32 %v7026_v58, %v6836_v27  ;;  %v6631_v35 = vadd.f32 %v9215_v34, %v13147_v44 }
 0x41d   : > { %v7096_v0 = vadd.f32 %v7095_v13, %v7065_v46  ;;  %v6538_v28 = vpop.f32.mrf.mxu1  ;;  %v9253_v42 = vpop.f32.mrf.mxu0  ;;  %v7069_v18 = vmul.f32 %v6839_v30, %v6839_v30  ;;  %v6415_v33 = vadd.f32 %v14325_v21, %v6203_v17  ;;  %v14327_v46 = vld [vmem:[#allocation77_spill] sm:$0xff]  ;;  %v14328_v13 = vld [vmem:[#allocation62_spill] sm:$0xff] }
 0x41e   : > { %7981 = vst [vmem:[%s13234_s28 + $0x28] sm:$0xff] %v7925_v57   ;;  %v7920_v20 = vpack.c.bf16 %v6837_v31, %v6836_v27  ;;  %v7067_v48 = vmul.f32 %v6837_v31, %v6837_v31  ;;  %v6629_v54 = vadd.f32 %v6538_v28, %v6410_v37  ;;  %v7028_v47 = vadd.f32 %v7027_v24, %v6837_v31  ;;  %v14335_v17 = vld [vmem:[#allocation57_spill] sm:$0xff] }
 0x41f   : > { %v7097_v16 = vadd.f32 %v7096_v0, %v7066_v4  ;;  %v9216_v56 = vpop.f32.mrf.mxu1  ;;  %v6765_v15 = vpop.f32.mrf.mxu0  ;;  %v6842_v7 = vadd.f32 %v9249_v36, %v6631_v35  ;;  %v6209_v58 = vadd.f32 %v14328_v13, %v14327_v46  ;;  %v14329_v35 = vld [vmem:[#allocation76_spill] sm:$0xff] }
 0x420   : > { %7980 = vst [vmem:[%s13234_s28 + $0x20] sm:$0xff] %v7920_v20   ;;  %v6632_v6 = vadd.f32 %v9216_v56, %v6413_v10  ;;  %v7029_v43 = vadd.f32 %v7028_v47, %v6838_v41  ;;  %v6840_v44 = vadd.f32 %v6749_v8, %v6629_v54  ;;  %v14331_v47 = vld [vmem:[#allocation66_spill] sm:$0xff]  ;;  %v14339_v13 = vld [vmem:[#allocation64_spill] sm:$0xff] }
 0x421   : > { %v7098_v53 = vadd.f32 %v7097_v16, %v7067_v48  ;;  %v6541_v60 = vpop.f32.mrf.mxu1  ;;  %v9254_v52 = vpop.f32.mrf.mxu0  ;;  %v7072_v12 = vmul.f32 %v6842_v7, %v6842_v7  ;;  %v14330_v16 = vld [vmem:[#allocation53_spill] sm:$0xff] }
 0x422   : > { %v6843_v1 = vadd.f32 %v9250_v22, %v6632_v6  ;;  %v6630_v19 = vadd.f32 %v6541_v60, %v6411_v62  ;;  %v7030_v38 = vadd.f32 %v7029_v43, %v6839_v30  ;;  %v7070_v36 = vmul.f32 %v6840_v44, %v6840_v44  ;;  %v14326_v22 = vld [vmem:[#allocation40_spill] sm:$0xff] }
 0x423   : > { %v7099_v11 = vadd.f32 %v7098_v53, %v7068_v32  ;;  %v9219_v40 = vpop.f32.mrf.mxu1  ;;  %v6768_v45 = vpop.f32.mrf.mxu0  ;;  %v6206_v59 = vadd.f32 %v13175_v51, %v14326_v22  ;;  %v6207_v56 = vadd.f32 %v14331_v47, %v14330_v16  ;;  %v14332_v6 = vld [vmem:[#allocation88_spill] sm:$0xff] }
 0x424   : > { %v7935_v26 = vpack.c.bf16 %v6843_v1, %v6842_v7  ;;  %v6841_v3 = vadd.f32 %v6752_v61, %v6630_v19  ;;  %v7031_v29 = vadd.f32 %v7030_v38, %v6840_v44  ;;  %v6635_v27 = vadd.f32 %v9219_v40, %v13162_v50  ;;  %v14334_v40 = vld [vmem:[#allocation61_spill] sm:$0xff] }
 0x425   : > { %v7100_v8 = vadd.f32 %v7099_v11, %v7069_v18  ;;  %v6554_v23 = vpop.f32.mrf.mxu1  ;;  %v9257_v14 = vpop.f32.mrf.mxu0  ;;  %v7073_v28 = vmul.f32 %v6843_v1, %v6843_v1  ;;  %v6418_v54 = vadd.f32 %v14329_v35, %v6206_v59 }
 0x426   : > { %7983 = vst [vmem:[%s13234_s28 + $0x38] sm:$0xff] %v7935_v26   ;;  %v7930_v25 = vpack.c.bf16 %v6841_v3, %v6840_v44  ;;  %v7071_v55 = vmul.f32 %v6841_v3, %v6841_v3  ;;  %v6633_v63 = vadd.f32 %v6554_v23, %v6414_v9  ;;  %v7032_v30 = vadd.f32 %v7031_v29, %v6841_v3  ;;  %v14336_v26 = vld [vmem:[#allocation69_spill] sm:$0xff] }
 0x427   : > { %v7101_v41 = vadd.f32 %v7100_v8, %v7070_v36  ;;  %v9220_v2 = vpop.f32.mrf.mxu1  ;;  %v6781_v37 = vpop.f32.mrf.mxu0  ;;  %v6846_v10 = vadd.f32 %v9253_v42, %v6635_v27  ;;  %v6419_v9 = vadd.f32 %v14334_v40, %v6207_v56  ;;  %v6210_v3 = vadd.f32 %v14336_v26, %v14335_v17 }
 0x428   : > { %7982 = vst [vmem:[%s13234_s28 + $0x30] sm:$0xff] %v7930_v25   ;;  %v6636_v34 = vadd.f32 %v9220_v2, %v6417_v49  ;;  %v7033_v57 = vadd.f32 %v7032_v30, %v6842_v7  ;;  %v6844_v50 = vadd.f32 %v6765_v15, %v6633_v63  ;;  %v6421_v15 = vadd.f32 %v14332_v6, %v6209_v58  ;;  %v14333_v7 = vld [vmem:[#allocation31_spill] sm:$0xff]  ;;  %v14338_v49 = vld [vmem:[#allocation74_spill] sm:$0xff] }
 0x429   : > { %v7102_v31 = vadd.f32 %v7101_v41, %v7071_v55  ;;  %v6557_v61 = vpop.f32.mrf.mxu1  ;;  %v9258_v0 = vpop.f32.mrf.mxu0  ;;  %v7076_v23 = vmul.f32 %v6846_v10, %v6846_v10  ;;  %v6422_v58 = vadd.f32 %v14339_v13, %v6210_v3  ;;  %v14346_v6 = vld [vmem:[#allocation42_spill] sm:$0xff] }
 0x42a   : > { %v6847_v24 = vadd.f32 %v9254_v52, %v6636_v34  ;;  %v6634_v4 = vadd.f32 %v6557_v61, %v6415_v33  ;;  %v7034_v48 = vadd.f32 %v7033_v57, %v6843_v1  ;;  %v7074_v42 = vmul.f32 %v6844_v50, %v6844_v50  ;;  %v14340_v34 = vld [vmem:[#allocation30_spill] sm:$0xff] }
 0x42b   : > { %v7103_v20 = vadd.f32 %v7102_v31, %v7072_v12  ;;  %v9223_v51 = vpop.f32.mrf.mxu1  ;;  %v6784_v5 = vpop.f32.mrf.mxu0  ;;  %v14341_v12 = vld [vmem:[#allocation80_spill] sm:$0xff] }
 0x42c   : > { %v7945_v62 = vpack.c.bf16 %v6847_v24, %v6846_v10  ;;  %v6845_v39 = vadd.f32 %v6768_v45, %v6634_v4  ;;  %v7035_v32 = vadd.f32 %v7034_v48, %v6844_v50  ;;  %v6639_v1 = vadd.f32 %v9223_v51, %v14333_v7  ;;  %v14337_v45 = vld [vmem:[#allocation90_spill] sm:$0xff] }
 0x42d   : > { %v7104_v43 = vadd.f32 %v7103_v20, %v7073_v28  ;;  %v6570_v53 = vpop.f32.mrf.mxu1  ;;  %v9261_v52 = vpop.f32.mrf.mxu0  ;;  %v6213_v29 = vadd.f32 %v14338_v49, %v14337_v45  ;;  %v7077_v33 = vmul.f32 %v6847_v24, %v6847_v24  ;;  %v6211_v57 = vadd.f32 %v14341_v12, %v14340_v34  ;;  %v14349_v45 = vld [vmem:[#allocation41_spill] sm:$0xff]  ;;  %v14354_v12 = vld [vmem:[#allocation36_spill] sm:$0xff] }
 0x42e   : > { %7985 = vst [vmem:[%s13234_s28 + $0x48] sm:$0xff] %v7945_v62   ;;  %v7940_v44 = vpack.c.bf16 %v6845_v39, %v6844_v50  ;;  %v7075_v60 = vmul.f32 %v6845_v39, %v6845_v39  ;;  %v6637_v19 = vadd.f32 %v6570_v53, %v6418_v54  ;;  %v7036_v11 = vadd.f32 %v7035_v32, %v6845_v39  ;;  %v14344_v62 = vld [vmem:[#allocation68_spill] sm:$0xff]  ;;  %v14347_v32 = vld [vmem:[#allocation59_spill] sm:$0xff] }
 0x42f   : > { %v7105_v18 = vadd.f32 %v7104_v43, %v7074_v42  ;;  %v9224_v38 = vpop.f32.mrf.mxu1  ;;  %v6797_v8 = vpop.f32.mrf.mxu0  ;;  %v6850_v41 = vadd.f32 %v9257_v14, %v6639_v1  ;;  %v6423_v39 = vadd.f32 %v14344_v62, %v6211_v57  ;;  %v14348_v42 = vld [vmem:[#allocation70_spill] sm:$0xff] }
 0x430   : > { %7984 = vst [vmem:[%s13234_s28 + $0x40] sm:$0xff] %v7940_v44   ;;  %v6640_v36 = vadd.f32 %v9224_v38, %v6421_v15  ;;  %v7037_v25 = vadd.f32 %v7036_v11, %v6846_v10  ;;  %v6848_v27 = vadd.f32 %v6781_v37, %v6637_v19  ;;  %v14342_v10 = vld [vmem:[#allocation67_spill] sm:$0xff]  ;;  %v6217_v43 = vadd.f32 %v14348_v42, %v14347_v32 }
 0x431   : > { %v7106_v55 = vadd.f32 %v7105_v18, %v7075_v60  ;;  %v6573_v63 = vpop.f32.mrf.mxu1  ;;  %v9262_v21 = vpop.f32.mrf.mxu0  ;;  %v6425_v37 = vadd.f32 %v14342_v10, %v6213_v29  ;;  %v7080_v44 = vmul.f32 %v6850_v41, %v6850_v41  ;;  %v14350_v29 = vld [vmem:[#allocation63_spill] sm:$0xff] }
 0x432   : > { %v6851_v30 = vadd.f32 %v9258_v0, %v6640_v36  ;;  %v6638_v2 = vadd.f32 %v6573_v63, %v6419_v9  ;;  %v7038_v59 = vadd.f32 %v7037_v25, %v6847_v24  ;;  %v7078_v14 = vmul.f32 %v6848_v27, %v6848_v27  ;;  %v14343_v24 = vld [vmem:[#allocation73_spill] sm:$0xff]  ;;  %v14351_v36 = vld [vmem:[#allocation71_spill] sm:$0xff] }
 0x433   : > { %v7107_v22 = vadd.f32 %v7106_v55, %v7076_v23  ;;  %v9227_v46 = vpop.f32.mrf.mxu1  ;;  %v6800_v61 = vpop.f32.mrf.mxu0  ;;  %v6215_v23 = vadd.f32 %v14351_v36, %v14350_v29 }
 0x434   : > { %v7955_v31 = vpack.c.bf16 %v6851_v30, %v6850_v41  ;;  %v6849_v50 = vadd.f32 %v6784_v5, %v6638_v2  ;;  %v7039_v4 = vadd.f32 %v7038_v59, %v6848_v27  ;;  %v6643_v51 = vadd.f32 %v9227_v46, %v14343_v24  ;;  %v14345_v5 = vld [vmem:[#allocation58_spill] sm:$0xff] }
 0x435   : > { %v7108_v0 = vadd.f32 %v7107_v22, %v7077_v33  ;;  %v6586_v28 = vpop.f32.mrf.mxu1  ;;  %v9265_v56 = vpop.f32.mrf.mxu0  ;;  %v6214_v15 = vadd.f32 %v14346_v6, %v14345_v5  ;;  %v7081_v40 = vmul.f32 %v6851_v30, %v6851_v30  ;;  %v6427_v57 = vadd.f32 %v14354_v12, %v6215_v23 }
 0x436   : > { %7987 = vst [vmem:[%s13234_s28 + $0x58] sm:$0xff] %v7955_v31   ;;  %v7950_v20 = vpack.c.bf16 %v6849_v50, %v6848_v27  ;;  %v7079_v48 = vmul.f32 %v6849_v50, %v6849_v50  ;;  %v6641_v35 = vadd.f32 %v6586_v28, %v6422_v58  ;;  %v7040_v16 = vadd.f32 %v7039_v4, %v6849_v50  ;;  %v14352_v27 = vld [vmem:[#allocation35_spill] sm:$0xff] }
 0x437   : > { %v7109_v54 = vadd.f32 %v7108_v0, %v7078_v14  ;;  %v9228_v47 = vpop.f32.mrf.mxu1  ;;  %v6854_v18 = vadd.f32 %v9261_v52, %v6643_v51  ;;  %v6813_v3 = vpop.f32.mrf.mxu0  ;;  %v6426_v49 = vadd.f32 %v14349_v45, %v6214_v15 }
 0x438   : > { %7986 = vst [vmem:[%s13234_s28 + $0x50] sm:$0xff] %v7950_v20   ;;  %v6644_v53 = vadd.f32 %v9228_v47, %v6425_v37  ;;  %v7041_v60 = vadd.f32 %v7040_v16, %v6850_v41  ;;  %v6852_v1 = vadd.f32 %v6797_v8, %v6641_v35  ;;  %v6429_v8 = vadd.f32 %v14352_v27, %v6217_v43 }
 0x439   : > { %v7110_v7 = vadd.f32 %v7109_v54, %v7079_v48  ;;  %v6589_v19 = vpop.f32.mrf.mxu1  ;;  %v9266_v34 = vpop.f32.mrf.mxu0  ;;  %v7084_v50 = vmul.f32 %v6854_v18, %v6854_v18 }
 0x43a   : > { %v6855_v11 = vadd.f32 %v9262_v21, %v6644_v53  ;;  %v6642_v38 = vadd.f32 %v6589_v19, %v6423_v39  ;;  %v7042_v17 = vadd.f32 %v7041_v60, %v6851_v30  ;;  %v7082_v52 = vmul.f32 %v6852_v1, %v6852_v1  ;;  %v14353_v30 = vld [vmem:[#allocation48_spill] sm:$0xff] }
 0x43b   : > { %v7111_v9 = vadd.f32 %v7110_v7, %v7080_v44  ;;  %v9231_v26 = vpop.f32.mrf.mxu1  ;;  %v6816_v51 = vpop.f32.mrf.mxu0 }
 0x43c   : > { %v7965_v25 = vpack.c.bf16 %v6855_v11, %v6854_v18  ;;  %v6853_v55 = vadd.f32 %v6800_v61, %v6642_v38  ;;  %v7043_v63 = vadd.f32 %v7042_v17, %v6852_v1  ;;  %v6647_v22 = vadd.f32 %v9231_v26, %v14353_v30 }
 0x43d   : > { %v7112_v41 = vadd.f32 %v7111_v9, %v7081_v40  ;;  %v6602_v2 = vpop.f32.mrf.mxu1  ;;  %v7085_v20 = vmul.f32 %v6855_v11, %v6855_v11 }
 0x43e   : > { %7989 = vst [vmem:[%s13234_s28 + $0x68] sm:$0xff] %v7965_v25   ;;  %v7960_v21 = vpack.c.bf16 %v6853_v55, %v6852_v1  ;;  %v7083_v33 = vmul.f32 %v6853_v55, %v6853_v55  ;;  %v6645_v59 = vadd.f32 %v6602_v2, %v6426_v49  ;;  %v7044_v13 = vadd.f32 %v7043_v63, %v6853_v55 }
 0x43f   : > { %v7113_v46 = vadd.f32 %v7112_v41, %v7082_v52  ;;  %v9232_v58 = vpop.f32.mrf.mxu1  ;;  %v6858_v14 = vadd.f32 %v9265_v56, %v6647_v22 }
 0x440   : > { %7988 = vst [vmem:[%s13234_s28 + $0x60] sm:$0xff] %v7960_v21   ;;  %v6648_v31 = vadd.f32 %v9232_v58, %v6429_v8  ;;  %v7045_v61 = vadd.f32 %v7044_v13, %v6854_v18  ;;  %v6856_v37 = vadd.f32 %v6813_v3, %v6645_v59 }
 0x441   : > { %v7114_v10 = vadd.f32 %v7113_v46, %v7083_v33  ;;  %v6605_v4 = vpop.f32.mrf.mxu1  ;;  %v7088_v15 = vmul.f32 %v6858_v14, %v6858_v14 }
 0x442   : > { %v6859_v0 = vadd.f32 %v9266_v34, %v6648_v31  ;;  %v6646_v28 = vadd.f32 %v6605_v4, %v6427_v57  ;;  %v7046_v24 = vadd.f32 %v7045_v61, %v6855_v11  ;;  %v7086_v47 = vmul.f32 %v6856_v37, %v6856_v37 }
 0x443   : > { %v7115_v48 = vadd.f32 %v7114_v10, %v7084_v50 }
 0x444   : > { %v7975_v35 = vpack.c.bf16 %v6859_v0, %v6858_v14  ;;  %v6857_v54 = vadd.f32 %v6816_v51, %v6646_v28  ;;  %v7047_v16 = vadd.f32 %v7046_v24, %v6856_v37 }
 0x445   : > { %v7116_v62 = vadd.f32 %v7115_v48, %v7085_v20 }
 0x446   : > { %7991 = vst [vmem:[%s13234_s28 + $0x78] sm:$0xff] %v7975_v35   ;;  %v7970_v56 = vpack.c.bf16 %v6857_v54, %v6856_v37  ;;  %v7087_v39 = vmul.f32 %v6857_v54, %v6857_v54  ;;  %v7048_v6 = vadd.f32 %v7047_v16, %v6857_v54 }
 0x447   : > { %v7117_v5 = vadd.f32 %v7116_v62, %v7086_v47 }
 0x448   : > { %7990 = vst [vmem:[%s13234_s28 + $0x70] sm:$0xff] %v7970_v56   ;;  %v7049_v32 = vadd.f32 %v7048_v6, %v6858_v14 }
 0x449   : > { %v7118_v42 = vadd.f32 %v7117_v5, %v7087_v39 }
 0x44a   : > { %9408 = shalt.err (!%p9405_p3)
}
 0x44b   : > { %s9409_s19 = scalar_lea.hbm %s13316_s6, 2048  ;;  %s9413_s25 = scalar_lea.hbm %s13382_s2, 4096 }
 0x44c   : > { %p9410_p4 = scmp.ne.s32.totalorder %s13316_s6, %s9409_s19  ;;  %p9414_p9 = scmp.lt.s32.totalorder %s13316_s6, %s13382_s2 }
 0x44d   : > { %p9415_p10 = scmp.lt.s32.totalorder %s9413_s25, %s9409_s19 }
 0x44e   : > { %p9411_p7 = pnand %p9410_p4, %p9549_p5 }
 0x44f   : > { %p9416_p11 = por %p9415_p10, %p9414_p9 }
 0x450   : > { %p9412_p8 = pneg %p9411_p7 }
 0x452   : > { %p9417_p12 = pnand %p9416_p11, %p9412_p8 }
 0x454   : > { %9420 = shalt.err (!%p9417_p12)
}
 0x455   : > { %s9488_s28 = smov 64   ;;  %s9489_s29 = smov 4   ;;  %v7089_v43 = vmul.f32 %v6859_v0, %v6859_v0  ;;  %v7050_v53 = vadd.f32 %v7049_v32, %v6859_v0  ;;  %v7119_v44 = vadd.f32 %v7118_v42, %v7088_v15 }
 0x456   : > { %9296 = dma.vmem_to_hbm [thread:$0]  (%p9549_p5), %s13318_s30, 2048, %s13316_s6, %s7129_s8, %s9488_s28, %s9488_s28, %s9489_s29  }
 0x457   : > { %v7051_v60 = vrot.slane %v7050_v53, 4  ;;  %v7120_v7 = vadd.f32 %v7119_v44, %v7089_v43  ;;  %s7259_s4 = sshll.u32 %s13218_s7, 1  ;;  %s7861_s5 = sshll.u32 %s9532_s16, 5 }
 0x458   : > { %s174_s9 = scalar_lea.vmem [#allocation4], %s7259_s4  ;;  %s7161_s8 = scalar_lea.hbm %s13383_s3, %s7861_s5 }
 0x459   : > { %v7052_v1 = vadd.f32 %v7051_v60, %v7050_v53  ;;  %v7121_v19 = vrot.slane %v7120_v7, 4  ;;  %s7163_s10 = sshll.u32 %s174_s9, 4  ;;  %s7134_s11 = scalar_lea.sflag [#allocation5], %s13218_s7  ;;  %s7164_s10 = int_to_ptr.vmem [resolvable:$true] %s7163_s10 }
 0x45a   : > { %s9421_s17 = scalar_lea.vmem %s7164_s10, 32  ;;  %s9490_s19 = smov [#allocation4]  }
 0x45b   : > { %v7053_v18 = vrot.slane %v7052_v1, 2  ;;  %v7122_v11 = vadd.f32 %v7121_v19, %v7120_v7  ;;  %p9422_p13 = scmp.ne.s32.totalorder %s7164_s10, %s9421_s17  ;;  %s9425_s16 = sshll.u32 %s9490_s19, 4  ;;  %s9426_s16 = int_to_ptr.vmem [resolvable:$false] %s9425_s16 }
 0x45c   : > { %s9427_s20 = scalar_lea.vmem %s9426_s16, 64  ;;  %p9428_p2 = scmp.lt.s32.totalorder %s7164_s10, %s9426_s16 }
 0x45d   : > { %v7054_v38 = vadd.f32 %v7053_v18, %v7052_v1  ;;  %v7123_v40 = vrot.slane %v7122_v11, 2  ;;  %p9423_p0 = pnand %p9422_p13, %p9549_p5  ;;  %p9429_p3 = scmp.lt.s32.totalorder %s9427_s20, %s9421_s17 }
 0x45f   : > { %v7055_v9 = vrot.slane %v7054_v38, 1  ;;  %v7124_v17 = vadd.f32 %v7123_v40, %v7122_v11  ;;  %p9424_p1 = pneg %p9423_p0  ;;  %p9430_p4 = por %p9429_p3, %p9428_p2 }
 0x461   : > { %v7056_v26 = vadd.f32 %v7055_v9, %v7054_v38  ;;  %v7125_v3 = vrot.slane %v7124_v17, 1  ;;  %p9431_p7 = pnand %p9430_p4, %p9424_p1 }
 0x463   : > { %7057 = vst [vmem:[%s174_s9] sm:$0x1] %v7056_v26  ;;  %v7126_v45 = vadd.f32 %v7125_v3, %v7124_v17 }
 0x465   : > { %7127 = vst [vmem:[%s174_s9 + $0x1] sm:$0x1] %v7126_v45 }
 0x466   : > { %9434 = shalt.err (!%p9431_p7)
}
 0x467   : > { %s9435_s24 = scalar_lea.hbm %s7161_s8, 32  ;;  %s9439_s26 = scalar_lea.hbm %s13383_s3, 64 }
 0x468   : > { %p9436_p8 = scmp.ne.s32.totalorder %s7161_s8, %s9435_s24  ;;  %p9440_p11 = scmp.lt.s32.totalorder %s7161_s8, %s13383_s3 }
 0x469   : > { %p9441_p12 = scmp.lt.s32.totalorder %s9439_s26, %s9435_s24 }
 0x46a   : > { %p9437_p9 = pnand %p9436_p8, %p9549_p5 }
 0x46b   : > { %p9442_p13 = por %p9441_p12, %p9440_p11 }
 0x46c   : > { %p9438_p10 = pneg %p9437_p9 }
 0x46e   : > { %p9443_p0 = pnand %p9442_p13, %p9438_p10 }
 0x470   : > { %9446 = shalt.err (!%p9443_p0)
}
 0x471   : > { %9297 = dma.vmem_to_hbm [thread:$0]  (%p9549_p5), %s7164_s10, 32, %s7161_s8, %s7134_s11  }
 0x472 PF: > { %p9307_p1 = scmp.ge.s32.totalorder %s9485_s15, 2  ;;  %s7175_s29 = sand.u32 1, %s9473_s12  }
 0x473   : > { %s7176_s4 = scalar_lea.sflag [#allocation3], %s7175_s29 }
 0x474   : > { %p9301_p2 = pnand %p9307_p1, %p9553_p6 }
 0x476   : > { %p9302_p3 = pneg %p9301_p2 }
 0x478   : > { %9464 = dma.done.wait (%p9302_p3), %s7176_s4, 2048  }
 0x479   : > { %9466 = vsyncadd (%p9302_p3), %s7176_s4, 4294965248  ;;  %s7185_s5 = scalar_lea.sflag [#allocation5], %s7175_s29 }
 0x47a   : > { %9468 = dma.done.wait (%p9302_p3), %s7185_s5, 32  }
 0x47b   : > { %9470 = vsyncadd (%p9302_p3), %s7185_s5, 4294967264  ;;  %p17_p5 = scmp.ge.s32.totalorder %s9536_s18, 4   ;;  %s14355_s12 = smov %s9477_s13 }
 0x47c   : > { %s14356_s13 = smov %s9481_s14  ;;  %s14357_s14 = smov %s9547_s21 }
 0x47d   : > { %s14358_s15 = smov %s9536_s18  ;;  %19 = sbr.rel (!%p17_p5) target bundleno = 5 (0x5), region = 104 }
 0x482   :  { %7190 = vsyncpa [#allocation3], 1 }
 0x483   :  { %7192 = vsyncpa [#allocation3 + $0x1], 1 }
 0x484   :  { %7193 = vsyncpa [#allocation5], 1 }
 0x485   :  { %7195 = vsyncpa [#allocation5 + $0x1], 1 }

</bundles_post_ra>
